<compile_context>
chip_gen: v6e
topology: v6e:2x2x1
jax: 0.10.0
libtpu: 0.0.40
codegen_flags: <defaults>
</compile_context>

<pallas_src>
import jax
import jax.numpy as jnp
from jax import lax
from jax.experimental import pallas as pl
from jax.experimental.pallas import tpu as pltpu

# ------------------------------ config ("opt") ------------------------------
NC_IM = 3        # opt.nc_im
NFC = 32         # opt.nfc
MIN_NFC = 32     # opt.min_nfc
KER = 3          # opt.ker_size
PADD = 0         # opt.padd_size  (valid conv)
NUM_LAYER = 5    # opt.num_layer -> head + 3 body blocks + tail = 5 valid convs
BN_EPS = 1e-5
CIN_HEAD_PAD = 16  # head input channels zero-padded 3 -> 16 (bf16 sublane-tile aligned)


def _round_up(n, m):
    return ((n + m - 1) // m) * m


# -----------------------------------------------------------------------------
# Fused kernel: entire discriminator forward, all batch images folded into the
# matmul column (lane) dimension.
#   inputs : x (CIN_HEAD_PAD, B*HW_pad) f32, then per conv block (w, bias),
#            then tail (w, bias).  Conv weights are host-side folded+flattened
#            to (cout, 9*cin) bf16 with row order k = (dy*3+dx)*cin + c.
#   scratch: patches (288, B*HW_pad) bf16   -- im2col, assembled along sublanes
#            act     (32, B*HW_pad + pad) f32 -- resident plane-layout activation
# -----------------------------------------------------------------------------
def _make_kernel(width, ncols):
    def kernel(x_ref, w0, b0, w1, b1, w2, b2, w3, b3, wt, bt,
               o_ref, patches_ref, act_ref):

        def conv3x3(w_ref):
            # Channel-major 3x3 valid conv as ONE MXU matmul:
            #   y(cout, ncols) = W(cout, 9*cin) @ P(9*cin, ncols)
            # Patches are built tap-major along sublanes; the (dy,dx) tap shift
            # is a static lane-offset slice of act_ref (flat offset dy*width+dx).
            cin = w_ref.shape[1] // (KER * KER)
            for dy in range(KER):
                for dx in range(KER):
                    off = dy * width + dx
                    slab = act_ref[pl.ds(0, cin), pl.ds(off, ncols)]        # f32
                    patches_ref[pl.ds((dy * KER + dx) * cin, cin), :] = (
                        slab.astype(jnp.bfloat16))                          # bf16 MXU operand
            k = KER * KER * cin
            return jnp.dot(w_ref[...], patches_ref[pl.ds(0, k), :],
                           preferred_element_type=jnp.float32)               # f32 accum

        # Zero once so the never-overwritten lane slack stays finite.
        act_ref[...] = jnp.zeros_like(act_ref)
        act_ref[pl.ds(0, x_ref.shape[0]), pl.ds(0, ncols)] = x_ref[...]

        # head + 3 body ConvBlocks: conv + folded-BN bias + LeakyReLU(0.2), f32.
        for w_ref, b_ref in ((w0, b0), (w1, b1), (w2, b2), (w3, b3)):
            y = conv3x3(w_ref) + b_ref[...]
            a = jnp.where(y >= 0.0, y, 0.2 * y)
            act_ref[pl.ds(0, a.shape[0]), pl.ds(0, ncols)] = a

        # tail Conv2d(32 -> 1): plain conv bias, no BN / activation.  Weight is
        # padded to 8 output rows (rows 1..7 zero) so the MXU M dim is aligned.
        y = conv3x3(wt)
        o_ref[...] = y[0:1, :] + bt[...]            # lane-dense (1, ncols) row

    return kernel


# ------------------------------- wrapper --------------------------------------
def _full_spec(shape):
    nd = len(shape)
    return pl.BlockSpec(shape, lambda i, _nd=nd: (0,) * _nd)


@jax.jit
def discriminator_forward(params, x_nchw):
    b, c, h, w = x_nchw.shape
    hw = h * w
    hw_pad = _round_up(hw, 128)                 # one 128-aligned lane window per image
    ncols = b * hw_pad
    # lane slack so every tap slice [off, off+ncols) of the last image stays in-bounds
    act_cols = ncols + _round_up((KER - 1) * w + KER, 128)

    # NCHW kept channel-major (no NHWC transpose): flatten spatial to lanes,
    # zero-pad head channels (3 -> 16) and lanes (hw -> hw_pad):
    #   x_k shape = (CIN_HEAD_PAD, B*hw_pad)
    x = x_nchw.astype(jnp.float32).reshape(b, c, hw)
    x = jnp.pad(x, ((0, 0), (0, CIN_HEAD_PAD - c), (0, hw_pad - hw)))
    x = jnp.transpose(x, (1, 0, 2)).reshape(CIN_HEAD_PAD, ncols)

    weights = []
    for (w2d, bias) in params["blocks"]:
        weights += [w2d, bias]
    weights += [params["tail_w"], params["tail_b"]]

    out = pl.pallas_call(
        _make_kernel(w, ncols),
        out_shape=jax.ShapeDtypeStruct((1, ncols), jnp.float32),
        grid=(1,),                                    # single fused step; batch folded into lanes
        in_specs=[_full_spec(x.shape)] + [_full_spec(p.shape) for p in weights],
        out_specs=pl.BlockSpec((1, ncols), lambda i: (0, 0)),
        scratch_shapes=[
            pltpu.VMEM((KER * KER * NFC, ncols), jnp.bfloat16),   # im2col patches
            pltpu.VMEM((NFC, act_cols), jnp.float32),             # resident activation
        ],
        compiler_params=pltpu.CompilerParams(dimension_semantics=("arbitrary",)),
    )(x, *weights)

    # crop the valid region of the plane layout back to NCHW
    hout = h - NUM_LAYER * (KER - 1)
    wout = w - NUM_LAYER * (KER - 1)
    out = out.reshape(b, hw_pad)[:, :hw].reshape(b, h, w)[:, :hout, :wout]
    return out[:, None, :, :]                                     # (B, 1, hout, wout)


# ------------------------------ parameters ------------------------------------
def _conv_block_params(key, cin, cout, cin_pad):
    k = jax.random.split(key, 6)
    # PyTorch-layout conv weight (OIHW) + bias, eval-mode BN stats.
    w = 0.1 * jax.random.normal(k[0], (cout, cin, KER, KER), jnp.float32)
    conv_b = 0.1 * jax.random.normal(k[1], (cout,), jnp.float32)
    gamma = 1.0 + 0.1 * jax.random.normal(k[2], (cout,), jnp.float32)
    beta = 0.1 * jax.random.normal(k[3], (cout,), jnp.float32)
    r_mean = 0.1 * jax.random.normal(k[4], (cout,), jnp.float32)
    r_var = jax.random.uniform(k[5], (cout,), jnp.float32, 0.5, 1.5)
    s = gamma * lax.rsqrt(r_var + BN_EPS)
    bias = beta + (conv_b - r_mean) * s
    # Fold BN scale into the weight rows; permute OIHW -> (O, kh, kw, I) and
    # flatten so row k = (dy*3+dx)*cin_pad + c matches the kernel's tap-major /
    # channel-minor patch assembly.  (Real PyTorch checkpoints must go through
    # this exact permute before flattening.)
    wf = w * s[:, None, None, None]
    wf = jnp.pad(wf, ((0, 0), (0, cin_pad - cin), (0, 0), (0, 0)))
    w2d = jnp.transpose(wf, (0, 2, 3, 1)).reshape(cout, KER * KER * cin_pad)
    return w2d.astype(jnp.bfloat16), bias.reshape(cout, 1).astype(jnp.float32)


def init_params(key):
    # channel plan mirrors My24WDiscriminator.__init__
    chans = [(NC_IM, NFC)]                                     # head
    n = NFC
    for i in range(NUM_LAYER - 2):                             # body blocks
        n = int(NFC / (2 ** (i + 1)))
        chans.append((max(2 * n, MIN_NFC), max(n, MIN_NFC)))
    tail_in = max(n, MIN_NFC)

    keys = jax.random.split(key, len(chans) + 2)
    blocks = []
    for i, (ci, co) in enumerate(chans):
        cin_pad = CIN_HEAD_PAD if i == 0 else ci
        blocks.append(_conv_block_params(keys[i], ci, co, cin_pad))

    tw = 0.1 * jax.random.normal(keys[-2], (1, tail_in, KER, KER), jnp.float32)
    tb = 0.1 * jax.random.normal(keys[-1], (1,), jnp.float32)
    tw2d = jnp.transpose(tw, (0, 2, 3, 1)).reshape(1, KER * KER * tail_in)
    tw2d = jnp.pad(tw2d, ((0, 7), (0, 0)))       # pad MXU M dim to 8 rows (rows 1..7 zero)
    return {"blocks": blocks,
            "tail_w": tw2d.astype(jnp.bfloat16),
            "tail_b": tb.reshape(1, 1).astype(jnp.float32)}


# ------------------------------ reference --------------------------------------
def reference_forward(params, x_nchw):
    """Pure-JAX reference (same bf16-rounded folded weights, f32 accumulation)."""
    x = x_nchw.astype(jnp.float32)
    for (w2d, bias) in params["blocks"]:
        cout, kk = w2d.shape
        cin = kk // (KER * KER)
        w_oihw = jnp.transpose(
            w2d.astype(jnp.float32).reshape(cout, KER, KER, cin), (0, 3, 1, 2))
        if x.shape[1] < cin:
            x = jnp.pad(x, ((0, 0), (0, cin - x.shape[1]), (0, 0), (0, 0)))
        xq = x.astype(jnp.bfloat16).astype(jnp.float32)   # match bf16 MXU operands
        y = lax.conv_general_dilated(xq, w_oihw, (1, 1), "VALID",
                                     dimension_numbers=("NCHW", "OIHW", "NCHW"),
                                     precision=lax.Precision.HIGHEST)
        y = y + bias.reshape(1, cout, 1, 1)
        x = jnp.where(y >= 0.0, y, 0.2 * y)
    wt2d = params["tail_w"][0:1].astype(jnp.float32)
    cin = wt2d.shape[1] // (KER * KER)
    wt = jnp.transpose(wt2d.reshape(1, KER, KER, cin), (0, 3, 1, 2))
    xq = x.astype(jnp.bfloat16).astype(jnp.float32)
    y = lax.conv_general_dilated(xq, wt, (1, 1), "VALID",
                                 dimension_numbers=("NCHW", "OIHW", "NCHW"),
                                 precision=lax.Precision.HIGHEST)
    return y + params["tail_b"].reshape(1, 1, 1, 1)


# --------------------------------- main ----------------------------------------
if __name__ == "__main__":
    key = jax.random.PRNGKey(0)
    k_param, k_x = jax.random.split(key)
    params = init_params(k_param)

    B, H, W = 2, 18, 18
    x = jax.random.normal(k_x, (B, NC_IM, H, W), jnp.float32)     # NCHW like PyTorch

    out = jax.block_until_ready(discriminator_forward(params, x))

    expected_hw = H - NUM_LAYER * (KER - 1)                       # 18 - 10 = 8
    assert out.shape == (B, 1, expected_hw, expected_hw), out.shape
    assert bool(jnp.all(jnp.isfinite(out)))

    ref = reference_forward(params, x)
    err = float(jnp.max(jnp.abs(out - ref)))
    assert err < 2e-2, f"kernel vs reference max abs diff = {err}"
    print("KERNEL_OK")
</pallas_src>

<mosaic_0001>
module attributes {stable_mosaic.version = 11 : i64} {
  func.func @kernel(%arg0: i32, %arg1: memref<16x768xf32, #tpu.memory_space<vmem>>, %arg2: memref<32x144xbf16, #tpu.memory_space<vmem>>, %arg3: memref<32x1xf32, #tpu.memory_space<vmem>>, %arg4: memref<32x288xbf16, #tpu.memory_space<vmem>>, %arg5: memref<32x1xf32, #tpu.memory_space<vmem>>, %arg6: memref<32x288xbf16, #tpu.memory_space<vmem>>, %arg7: memref<32x1xf32, #tpu.memory_space<vmem>>, %arg8: memref<32x288xbf16, #tpu.memory_space<vmem>>, %arg9: memref<32x1xf32, #tpu.memory_space<vmem>>, %arg10: memref<8x288xbf16, #tpu.memory_space<vmem>>, %arg11: memref<1x1xf32, #tpu.memory_space<vmem>>, %arg12: memref<1x768xf32, #tpu.memory_space<vmem>>, %arg13: memref<288x768xbf16, #tpu.memory_space<vmem>>, %arg14: memref<32x896xf32, #tpu.memory_space<vmem>>) attributes {dimension_semantics = [#tpu.dimension_semantics<arbitrary>], iteration_bounds = array<i64: 1>, scalar_prefetch = 0 : i64, scratch_operands = 2 : i64, tpu.core_type = #tpu.core_type<tc>, window_params = [{pipeline_mode = #tpu.pipeline_mode<synchronous>, transform_indices = @transform_0, window_bounds = array<i64: 16, 768>}, {pipeline_mode = #tpu.pipeline_mode<synchronous>, transform_indices = @transform_1, window_bounds = array<i64: 32, 144>}, {pipeline_mode = #tpu.pipeline_mode<synchronous>, transform_indices = @transform_2, window_bounds = array<i64: 32, 1>}, {pipeline_mode = #tpu.pipeline_mode<synchronous>, transform_indices = @transform_3, window_bounds = array<i64: 32, 288>}, {pipeline_mode = #tpu.pipeline_mode<synchronous>, transform_indices = @transform_4, window_bounds = array<i64: 32, 1>}, {pipeline_mode = #tpu.pipeline_mode<synchronous>, transform_indices = @transform_5, window_bounds = array<i64: 32, 288>}, {pipeline_mode = #tpu.pipeline_mode<synchronous>, transform_indices = @transform_6, window_bounds = array<i64: 32, 1>}, {pipeline_mode = #tpu.pipeline_mode<synchronous>, transform_indices = @transform_7, window_bounds = array<i64: 32, 288>}, {pipeline_mode = #tpu.pipeline_mode<synchronous>, transform_indices = @transform_8, window_bounds = array<i64: 32, 1>}, {pipeline_mode = #tpu.pipeline_mode<synchronous>, transform_indices = @transform_9, window_bounds = array<i64: 8, 288>}, {pipeline_mode = #tpu.pipeline_mode<synchronous>, transform_indices = @transform_10, window_bounds = array<i64: 1, 1>}, {pipeline_mode = #tpu.pipeline_mode<synchronous>, transform_indices = @transform_11, window_bounds = array<i64: 1, 768>}]} {
    %cst = arith.constant 0.000000e+00 : f32
    %0 = vector.broadcast %cst : f32 to vector<32x896xf32>
    %c0 = arith.constant 0 : index
    %c0_0 = arith.constant 0 : index
    %1 = vector.load %arg14[%c0, %c0_0] : memref<32x896xf32, #tpu.memory_space<vmem>>, vector<32x896xf32>
    tpu.vector_store %arg14[%c0, %c0_0], %0 {strides = array<i32>} : memref<32x896xf32, #tpu.memory_space<vmem>>, vector<32x896xf32>,
    %c0_1 = arith.constant 0 : index
    %c0_2 = arith.constant 0 : index
    %2 = vector.load %arg1[%c0_1, %c0_2] : memref<16x768xf32, #tpu.memory_space<vmem>>, vector<16x768xf32>
    %c0_3 = arith.constant 0 : index
    %c0_4 = arith.constant 0 : index
    %3 = vector.load %arg14[%c0_3, %c0_4] : memref<32x896xf32, #tpu.memory_space<vmem>>, vector<16x768xf32>
    tpu.vector_store %arg14[%c0_3, %c0_4], %2 {strides = array<i32>} : memref<32x896xf32, #tpu.memory_space<vmem>>, vector<16x768xf32>,
    %c0_5 = arith.constant 0 : index
    %c0_6 = arith.constant 0 : index
    %4 = vector.load %arg14[%c0_5, %c0_6] : memref<32x896xf32, #tpu.memory_space<vmem>>, vector<16x768xf32>
    %5 = arith.truncf %4 : vector<16x768xf32> to vector<16x768xbf16>
    %c0_7 = arith.constant 0 : index
    %c0_8 = arith.constant 0 : index
    %6 = vector.load %arg13[%c0_7, %c0_8] : memref<288x768xbf16, #tpu.memory_space<vmem>>, vector<16x768xbf16>
    tpu.vector_store %arg13[%c0_7, %c0_8], %5 {strides = array<i32>} : memref<288x768xbf16, #tpu.memory_space<vmem>>, vector<16x768xbf16>,
    %c0_9 = arith.constant 0 : index
    %c1 = arith.constant 1 : index
    %7 = vector.load %arg14[%c0_9, %c1] : memref<32x896xf32, #tpu.memory_space<vmem>>, vector<16x768xf32>
    %8 = arith.truncf %7 : vector<16x768xf32> to vector<16x768xbf16>
    %c16 = arith.constant 16 : index
    %c0_10 = arith.constant 0 : index
    %9 = vector.load %arg13[%c16, %c0_10] : memref<288x768xbf16, #tpu.memory_space<vmem>>, vector<16x768xbf16>
    tpu.vector_store %arg13[%c16, %c0_10], %8 {strides = array<i32>} : memref<288x768xbf16, #tpu.memory_space<vmem>>, vector<16x768xbf16>,
    %c0_11 = arith.constant 0 : index
    %c2 = arith.constant 2 : index
    %10 = vector.load %arg14[%c0_11, %c2] : memref<32x896xf32, #tpu.memory_space<vmem>>, vector<16x768xf32>
    %11 = arith.truncf %10 : vector<16x768xf32> to vector<16x768xbf16>
    %c32 = arith.constant 32 : index
    %c0_12 = arith.constant 0 : index
    %12 = vector.load %arg13[%c32, %c0_12] : memref<288x768xbf16, #tpu.memory_space<vmem>>, vector<16x768xbf16>
    tpu.vector_store %arg13[%c32, %c0_12], %11 {strides = array<i32>} : memref<288x768xbf16, #tpu.memory_space<vmem>>, vector<16x768xbf16>,
    %c0_13 = arith.constant 0 : index
    %c18 = arith.constant 18 : index
    %13 = vector.load %arg14[%c0_13, %c18] : memref<32x896xf32, #tpu.memory_space<vmem>>, vector<16x768xf32>
    %14 = arith.truncf %13 : vector<16x768xf32> to vector<16x768xbf16>
    %c48 = arith.constant 48 : index
    %c0_14 = arith.constant 0 : index
    %15 = vector.load %arg13[%c48, %c0_14] : memref<288x768xbf16, #tpu.memory_space<vmem>>, vector<16x768xbf16>
    tpu.vector_store %arg13[%c48, %c0_14], %14 {strides = array<i32>} : memref<288x768xbf16, #tpu.memory_space<vmem>>, vector<16x768xbf16>,
    %c0_15 = arith.constant 0 : index
    %c19 = arith.constant 19 : index
    %16 = vector.load %arg14[%c0_15, %c19] : memref<32x896xf32, #tpu.memory_space<vmem>>, vector<16x768xf32>
    %17 = arith.truncf %16 : vector<16x768xf32> to vector<16x768xbf16>
    %c64 = arith.constant 64 : index
    %c0_16 = arith.constant 0 : index
    %18 = vector.load %arg13[%c64, %c0_16] : memref<288x768xbf16, #tpu.memory_space<vmem>>, vector<16x768xbf16>
    tpu.vector_store %arg13[%c64, %c0_16], %17 {strides = array<i32>} : memref<288x768xbf16, #tpu.memory_space<vmem>>, vector<16x768xbf16>,
    %c0_17 = arith.constant 0 : index
    %c20 = arith.constant 20 : index
    %19 = vector.load %arg14[%c0_17, %c20] : memref<32x896xf32, #tpu.memory_space<vmem>>, vector<16x768xf32>
    %20 = arith.truncf %19 : vector<16x768xf32> to vector<16x768xbf16>
    %c80 = arith.constant 80 : index
    %c0_18 = arith.constant 0 : index
    %21 = vector.load %arg13[%c80, %c0_18] : memref<288x768xbf16, #tpu.memory_space<vmem>>, vector<16x768xbf16>
    tpu.vector_store %arg13[%c80, %c0_18], %20 {strides = array<i32>} : memref<288x768xbf16, #tpu.memory_space<vmem>>, vector<16x768xbf16>,
    %c0_19 = arith.constant 0 : index
    %c36 = arith.constant 36 : index
    %22 = vector.load %arg14[%c0_19, %c36] : memref<32x896xf32, #tpu.memory_space<vmem>>, vector<16x768xf32>
    %23 = arith.truncf %22 : vector<16x768xf32> to vector<16x768xbf16>
    %c96 = arith.constant 96 : index
    %c0_20 = arith.constant 0 : index
    %24 = vector.load %arg13[%c96, %c0_20] : memref<288x768xbf16, #tpu.memory_space<vmem>>, vector<16x768xbf16>
    tpu.vector_store %arg13[%c96, %c0_20], %23 {strides = array<i32>} : memref<288x768xbf16, #tpu.memory_space<vmem>>, vector<16x768xbf16>,
    %c0_21 = arith.constant 0 : index
    %c37 = arith.constant 37 : index
    %25 = vector.load %arg14[%c0_21, %c37] : memref<32x896xf32, #tpu.memory_space<vmem>>, vector<16x768xf32>
    %26 = arith.truncf %25 : vector<16x768xf32> to vector<16x768xbf16>
    %c112 = arith.constant 112 : index
    %c0_22 = arith.constant 0 : index
    %27 = vector.load %arg13[%c112, %c0_22] : memref<288x768xbf16, #tpu.memory_space<vmem>>, vector<16x768xbf16>
    tpu.vector_store %arg13[%c112, %c0_22], %26 {strides = array<i32>} : memref<288x768xbf16, #tpu.memory_space<vmem>>, vector<16x768xbf16>,
    %c0_23 = arith.constant 0 : index
    %c38 = arith.constant 38 : index
    %28 = vector.load %arg14[%c0_23, %c38] : memref<32x896xf32, #tpu.memory_space<vmem>>, vector<16x768xf32>
    %29 = arith.truncf %28 : vector<16x768xf32> to vector<16x768xbf16>
    %c128 = arith.constant 128 : index
    %c0_24 = arith.constant 0 : index
    %30 = vector.load %arg13[%c128, %c0_24] : memref<288x768xbf16, #tpu.memory_space<vmem>>, vector<16x768xbf16>
    tpu.vector_store %arg13[%c128, %c0_24], %29 {strides = array<i32>} : memref<288x768xbf16, #tpu.memory_space<vmem>>, vector<16x768xbf16>,
    %c0_25 = arith.constant 0 : index
    %c0_26 = arith.constant 0 : index
    %31 = vector.load %arg2[%c0_25, %c0_26] : memref<32x144xbf16, #tpu.memory_space<vmem>>, vector<32x144xbf16>
    %c0_27 = arith.constant 0 : index
    %c0_28 = arith.constant 0 : index
    %32 = vector.load %arg13[%c0_27, %c0_28] : memref<288x768xbf16, #tpu.memory_space<vmem>>, vector<144x768xbf16>
    %cst_29 = arith.constant dense<0.000000e+00> : vector<32x768xf32>
    %33 = tpu.matmul %31, %32, %cst_29 {dimension_numbers = #tpu.dot_dimension_numbers<[1], [0], [0], [1], [0, 0, 1, 1], [], []>} : vector<32x144xbf16>, vector<144x768xbf16>, vector<32x768xf32> -> vector<32x768xf32>
    %c0_30 = arith.constant 0 : index
    %c0_31 = arith.constant 0 : index
    %34 = vector.load %arg3[%c0_30, %c0_31] : memref<32x1xf32, #tpu.memory_space<vmem>>, vector<32x1xf32>
    %35 = vector.broadcast %34 : vector<32x1xf32> to vector<32x768xf32>
    %36 = arith.addf %33, %35 : vector<32x768xf32>
    %cst_32 = arith.constant 0.000000e+00 : f32
    %37 = vector.broadcast %cst_32 : f32 to vector<32x768xf32>
    %38 = arith.cmpf oge, %36, %37 : vector<32x768xf32>
    %cst_33 = arith.constant 2.000000e-01 : f32
    %39 = vector.broadcast %cst_33 : f32 to vector<32x768xf32>
    %40 = arith.mulf %39, %36 : vector<32x768xf32>
    %41 = arith.select %38, %36, %40 : vector<32x768xi1>, vector<32x768xf32>
    %c0_34 = arith.constant 0 : index
    %c0_35 = arith.constant 0 : index
    %42 = vector.load %arg14[%c0_34, %c0_35] : memref<32x896xf32, #tpu.memory_space<vmem>>, vector<32x768xf32>
    tpu.vector_store %arg14[%c0_34, %c0_35], %41 {strides = array<i32>} : memref<32x896xf32, #tpu.memory_space<vmem>>, vector<32x768xf32>,
    %c0_36 = arith.constant 0 : index
    %c0_37 = arith.constant 0 : index
    %43 = vector.load %arg14[%c0_36, %c0_37] : memref<32x896xf32, #tpu.memory_space<vmem>>, vector<32x768xf32>
    %44 = arith.truncf %43 : vector<32x768xf32> to vector<32x768xbf16>
    %c0_38 = arith.constant 0 : index
    %c0_39 = arith.constant 0 : index
    %45 = vector.load %arg13[%c0_38, %c0_39] : memref<288x768xbf16, #tpu.memory_space<vmem>>, vector<32x768xbf16>
    tpu.vector_store %arg13[%c0_38, %c0_39], %44 {strides = array<i32>} : memref<288x768xbf16, #tpu.memory_space<vmem>>, vector<32x768xbf16>,
    %c0_40 = arith.constant 0 : index
    %c1_41 = arith.constant 1 : index
    %46 = vector.load %arg14[%c0_40, %c1_41] : memref<32x896xf32, #tpu.memory_space<vmem>>, vector<32x768xf32>
    %47 = arith.truncf %46 : vector<32x768xf32> to vector<32x768xbf16>
    %c32_42 = arith.constant 32 : index
    %c0_43 = arith.constant 0 : index
    %48 = vector.load %arg13[%c32_42, %c0_43] : memref<288x768xbf16, #tpu.memory_space<vmem>>, vector<32x768xbf16>
    tpu.vector_store %arg13[%c32_42, %c0_43], %47 {strides = array<i32>} : memref<288x768xbf16, #tpu.memory_space<vmem>>, vector<32x768xbf16>,
    %c0_44 = arith.constant 0 : index
    %c2_45 = arith.constant 2 : index
    %49 = vector.load %arg14[%c0_44, %c2_45] : memref<32x896xf32, #tpu.memory_space<vmem>>, vector<32x768xf32>
    %50 = arith.truncf %49 : vector<32x768xf32> to vector<32x768xbf16>
    %c64_46 = arith.constant 64 : index
    %c0_47 = arith.constant 0 : index
    %51 = vector.load %arg13[%c64_46, %c0_47] : memref<288x768xbf16, #tpu.memory_space<vmem>>, vector<32x768xbf16>
    tpu.vector_store %arg13[%c64_46, %c0_47], %50 {strides = array<i32>} : memref<288x768xbf16, #tpu.memory_space<vmem>>, vector<32x768xbf16>,
    %c0_48 = arith.constant 0 : index
    %c18_49 = arith.constant 18 : index
    %52 = vector.load %arg14[%c0_48, %c18_49] : memref<32x896xf32, #tpu.memory_space<vmem>>, vector<32x768xf32>
    %53 = arith.truncf %52 : vector<32x768xf32> to vector<32x768xbf16>
    %c96_50 = arith.constant 96 : index
    %c0_51 = arith.constant 0 : index
    %54 = vector.load %arg13[%c96_50, %c0_51] : memref<288x768xbf16, #tpu.memory_space<vmem>>, vector<32x768xbf16>
    tpu.vector_store %arg13[%c96_50, %c0_51], %53 {strides = array<i32>} : memref<288x768xbf16, #tpu.memory_space<vmem>>, vector<32x768xbf16>,
    %c0_52 = arith.constant 0 : index
    %c19_53 = arith.constant 19 : index
    %55 = vector.load %arg14[%c0_52, %c19_53] : memref<32x896xf32, #tpu.memory_space<vmem>>, vector<32x768xf32>
    %56 = arith.truncf %55 : vector<32x768xf32> to vector<32x768xbf16>
    %c128_54 = arith.constant 128 : index
    %c0_55 = arith.constant 0 : index
    %57 = vector.load %arg13[%c128_54, %c0_55] : memref<288x768xbf16, #tpu.memory_space<vmem>>, vector<32x768xbf16>
    tpu.vector_store %arg13[%c128_54, %c0_55], %56 {strides = array<i32>} : memref<288x768xbf16, #tpu.memory_space<vmem>>, vector<32x768xbf16>,
    %c0_56 = arith.constant 0 : index
    %c20_57 = arith.constant 20 : index
    %58 = vector.load %arg14[%c0_56, %c20_57] : memref<32x896xf32, #tpu.memory_space<vmem>>, vector<32x768xf32>
    %59 = arith.truncf %58 : vector<32x768xf32> to vector<32x768xbf16>
    %c160 = arith.constant 160 : index
    %c0_58 = arith.constant 0 : index
    %60 = vector.load %arg13[%c160, %c0_58] : memref<288x768xbf16, #tpu.memory_space<vmem>>, vector<32x768xbf16>
    tpu.vector_store %arg13[%c160, %c0_58], %59 {strides = array<i32>} : memref<288x768xbf16, #tpu.memory_space<vmem>>, vector<32x768xbf16>,
    %c0_59 = arith.constant 0 : index
    %c36_60 = arith.constant 36 : index
    %61 = vector.load %arg14[%c0_59, %c36_60] : memref<32x896xf32, #tpu.memory_space<vmem>>, vector<32x768xf32>
    %62 = arith.truncf %61 : vector<32x768xf32> to vector<32x768xbf16>
    %c192 = arith.constant 192 : index
    %c0_61 = arith.constant 0 : index
    %63 = vector.load %arg13[%c192, %c0_61] : memref<288x768xbf16, #tpu.memory_space<vmem>>, vector<32x768xbf16>
    tpu.vector_store %arg13[%c192, %c0_61], %62 {strides = array<i32>} : memref<288x768xbf16, #tpu.memory_space<vmem>>, vector<32x768xbf16>,
    %c0_62 = arith.constant 0 : index
    %c37_63 = arith.constant 37 : index
    %64 = vector.load %arg14[%c0_62, %c37_63] : memref<32x896xf32, #tpu.memory_space<vmem>>, vector<32x768xf32>
    %65 = arith.truncf %64 : vector<32x768xf32> to vector<32x768xbf16>
    %c224 = arith.constant 224 : index
    %c0_64 = arith.constant 0 : index
    %66 = vector.load %arg13[%c224, %c0_64] : memref<288x768xbf16, #tpu.memory_space<vmem>>, vector<32x768xbf16>
    tpu.vector_store %arg13[%c224, %c0_64], %65 {strides = array<i32>} : memref<288x768xbf16, #tpu.memory_space<vmem>>, vector<32x768xbf16>,
    %c0_65 = arith.constant 0 : index
    %c38_66 = arith.constant 38 : index
    %67 = vector.load %arg14[%c0_65, %c38_66] : memref<32x896xf32, #tpu.memory_space<vmem>>, vector<32x768xf32>
    %68 = arith.truncf %67 : vector<32x768xf32> to vector<32x768xbf16>
    %c256 = arith.constant 256 : index
    %c0_67 = arith.constant 0 : index
    %69 = vector.load %arg13[%c256, %c0_67] : memref<288x768xbf16, #tpu.memory_space<vmem>>, vector<32x768xbf16>
    tpu.vector_store %arg13[%c256, %c0_67], %68 {strides = array<i32>} : memref<288x768xbf16, #tpu.memory_space<vmem>>, vector<32x768xbf16>,
    %c0_68 = arith.constant 0 : index
    %c0_69 = arith.constant 0 : index
    %70 = vector.load %arg4[%c0_68, %c0_69] : memref<32x288xbf16, #tpu.memory_space<vmem>>, vector<32x288xbf16>
    %c0_70 = arith.constant 0 : index
    %c0_71 = arith.constant 0 : index
    %71 = vector.load %arg13[%c0_70, %c0_71] : memref<288x768xbf16, #tpu.memory_space<vmem>>, vector<288x768xbf16>
    %cst_72 = arith.constant dense<0.000000e+00> : vector<32x768xf32>
    %72 = tpu.matmul %70, %71, %cst_72 {dimension_numbers = #tpu.dot_dimension_numbers<[1], [0], [0], [1], [0, 0, 1, 1], [], []>} : vector<32x288xbf16>, vector<288x768xbf16>, vector<32x768xf32> -> vector<32x768xf32>
    %c0_73 = arith.constant 0 : index
    %c0_74 = arith.constant 0 : index
    %73 = vector.load %arg5[%c0_73, %c0_74] : memref<32x1xf32, #tpu.memory_space<vmem>>, vector<32x1xf32>
    %74 = vector.broadcast %73 : vector<32x1xf32> to vector<32x768xf32>
    %75 = arith.addf %72, %74 : vector<32x768xf32>
    %cst_75 = arith.constant 0.000000e+00 : f32
    %76 = vector.broadcast %cst_75 : f32 to vector<32x768xf32>
    %77 = arith.cmpf oge, %75, %76 : vector<32x768xf32>
    %cst_76 = arith.constant 2.000000e-01 : f32
    %78 = vector.broadcast %cst_76 : f32 to vector<32x768xf32>
    %79 = arith.mulf %78, %75 : vector<32x768xf32>
    %80 = arith.select %77, %75, %79 : vector<32x768xi1>, vector<32x768xf32>
    %c0_77 = arith.constant 0 : index
    %c0_78 = arith.constant 0 : index
    %81 = vector.load %arg14[%c0_77, %c0_78] : memref<32x896xf32, #tpu.memory_space<vmem>>, vector<32x768xf32>
    tpu.vector_store %arg14[%c0_77, %c0_78], %80 {strides = array<i32>} : memref<32x896xf32, #tpu.memory_space<vmem>>, vector<32x768xf32>,
    %c0_79 = arith.constant 0 : index
    %c0_80 = arith.constant 0 : index
    %82 = vector.load %arg14[%c0_79, %c0_80] : memref<32x896xf32, #tpu.memory_space<vmem>>, vector<32x768xf32>
    %83 = arith.truncf %82 : vector<32x768xf32> to vector<32x768xbf16>
    %c0_81 = arith.constant 0 : index
    %c0_82 = arith.constant 0 : index
    %84 = vector.load %arg13[%c0_81, %c0_82] : memref<288x768xbf16, #tpu.memory_space<vmem>>, vector<32x768xbf16>
    tpu.vector_store %arg13[%c0_81, %c0_82], %83 {strides = array<i32>} : memref<288x768xbf16, #tpu.memory_space<vmem>>, vector<32x768xbf16>,
    %c0_83 = arith.constant 0 : index
    %c1_84 = arith.constant 1 : index
    %85 = vector.load %arg14[%c0_83, %c1_84] : memref<32x896xf32, #tpu.memory_space<vmem>>, vector<32x768xf32>
    %86 = arith.truncf %85 : vector<32x768xf32> to vector<32x768xbf16>
    %c32_85 = arith.constant 32 : index
    %c0_86 = arith.constant 0 : index
    %87 = vector.load %arg13[%c32_85, %c0_86] : memref<288x768xbf16, #tpu.memory_space<vmem>>, vector<32x768xbf16>
    tpu.vector_store %arg13[%c32_85, %c0_86], %86 {strides = array<i32>} : memref<288x768xbf16, #tpu.memory_space<vmem>>, vector<32x768xbf16>,
    %c0_87 = arith.constant 0 : index
    %c2_88 = arith.constant 2 : index
    %88 = vector.load %arg14[%c0_87, %c2_88] : memref<32x896xf32, #tpu.memory_space<vmem>>, vector<32x768xf32>
    %89 = arith.truncf %88 : vector<32x768xf32> to vector<32x768xbf16>
    %c64_89 = arith.constant 64 : index
    %c0_90 = arith.constant 0 : index
    %90 = vector.load %arg13[%c64_89, %c0_90] : memref<288x768xbf16, #tpu.memory_space<vmem>>, vector<32x768xbf16>
    tpu.vector_store %arg13[%c64_89, %c0_90], %89 {strides = array<i32>} : memref<288x768xbf16, #tpu.memory_space<vmem>>, vector<32x768xbf16>,
    %c0_91 = arith.constant 0 : index
    %c18_92 = arith.constant 18 : index
    %91 = vector.load %arg14[%c0_91, %c18_92] : memref<32x896xf32, #tpu.memory_space<vmem>>, vector<32x768xf32>
    %92 = arith.truncf %91 : vector<32x768xf32> to vector<32x768xbf16>
    %c96_93 = arith.constant 96 : index
    %c0_94 = arith.constant 0 : index
    %93 = vector.load %arg13[%c96_93, %c0_94] : memref<288x768xbf16, #tpu.memory_space<vmem>>, vector<32x768xbf16>
    tpu.vector_store %arg13[%c96_93, %c0_94], %92 {strides = array<i32>} : memref<288x768xbf16, #tpu.memory_space<vmem>>, vector<32x768xbf16>,
    %c0_95 = arith.constant 0 : index
    %c19_96 = arith.constant 19 : index
    %94 = vector.load %arg14[%c0_95, %c19_96] : memref<32x896xf32, #tpu.memory_space<vmem>>, vector<32x768xf32>
    %95 = arith.truncf %94 : vector<32x768xf32> to vector<32x768xbf16>
    %c128_97 = arith.constant 128 : index
    %c0_98 = arith.constant 0 : index
    %96 = vector.load %arg13[%c128_97, %c0_98] : memref<288x768xbf16, #tpu.memory_space<vmem>>, vector<32x768xbf16>
    tpu.vector_store %arg13[%c128_97, %c0_98], %95 {strides = array<i32>} : memref<288x768xbf16, #tpu.memory_space<vmem>>, vector<32x768xbf16>,
    %c0_99 = arith.constant 0 : index
    %c20_100 = arith.constant 20 : index
    %97 = vector.load %arg14[%c0_99, %c20_100] : memref<32x896xf32, #tpu.memory_space<vmem>>, vector<32x768xf32>
    %98 = arith.truncf %97 : vector<32x768xf32> to vector<32x768xbf16>
    %c160_101 = arith.constant 160 : index
    %c0_102 = arith.constant 0 : index
    %99 = vector.load %arg13[%c160_101, %c0_102] : memref<288x768xbf16, #tpu.memory_space<vmem>>, vector<32x768xbf16>
    tpu.vector_store %arg13[%c160_101, %c0_102], %98 {strides = array<i32>} : memref<288x768xbf16, #tpu.memory_space<vmem>>, vector<32x768xbf16>,
    %c0_103 = arith.constant 0 : index
    %c36_104 = arith.constant 36 : index
    %100 = vector.load %arg14[%c0_103, %c36_104] : memref<32x896xf32, #tpu.memory_space<vmem>>, vector<32x768xf32>
    %101 = arith.truncf %100 : vector<32x768xf32> to vector<32x768xbf16>
    %c192_105 = arith.constant 192 : index
    %c0_106 = arith.constant 0 : index
    %102 = vector.load %arg13[%c192_105, %c0_106] : memref<288x768xbf16, #tpu.memory_space<vmem>>, vector<32x768xbf16>
    tpu.vector_store %arg13[%c192_105, %c0_106], %101 {strides = array<i32>} : memref<288x768xbf16, #tpu.memory_space<vmem>>, vector<32x768xbf16>,
    %c0_107 = arith.constant 0 : index
    %c37_108 = arith.constant 37 : index
    %103 = vector.load %arg14[%c0_107, %c37_108] : memref<32x896xf32, #tpu.memory_space<vmem>>, vector<32x768xf32>
    %104 = arith.truncf %103 : vector<32x768xf32> to vector<32x768xbf16>
    %c224_109 = arith.constant 224 : index
    %c0_110 = arith.constant 0 : index
    %105 = vector.load %arg13[%c224_109, %c0_110] : memref<288x768xbf16, #tpu.memory_space<vmem>>, vector<32x768xbf16>
    tpu.vector_store %arg13[%c224_109, %c0_110], %104 {strides = array<i32>} : memref<288x768xbf16, #tpu.memory_space<vmem>>, vector<32x768xbf16>,
    %c0_111 = arith.constant 0 : index
    %c38_112 = arith.constant 38 : index
    %106 = vector.load %arg14[%c0_111, %c38_112] : memref<32x896xf32, #tpu.memory_space<vmem>>, vector<32x768xf32>
    %107 = arith.truncf %106 : vector<32x768xf32> to vector<32x768xbf16>
    %c256_113 = arith.constant 256 : index
    %c0_114 = arith.constant 0 : index
    %108 = vector.load %arg13[%c256_113, %c0_114] : memref<288x768xbf16, #tpu.memory_space<vmem>>, vector<32x768xbf16>
    tpu.vector_store %arg13[%c256_113, %c0_114], %107 {strides = array<i32>} : memref<288x768xbf16, #tpu.memory_space<vmem>>, vector<32x768xbf16>,
    %c0_115 = arith.constant 0 : index
    %c0_116 = arith.constant 0 : index
    %109 = vector.load %arg6[%c0_115, %c0_116] : memref<32x288xbf16, #tpu.memory_space<vmem>>, vector<32x288xbf16>
    %c0_117 = arith.constant 0 : index
    %c0_118 = arith.constant 0 : index
    %110 = vector.load %arg13[%c0_117, %c0_118] : memref<288x768xbf16, #tpu.memory_space<vmem>>, vector<288x768xbf16>
    %cst_119 = arith.constant dense<0.000000e+00> : vector<32x768xf32>
    %111 = tpu.matmul %109, %110, %cst_119 {dimension_numbers = #tpu.dot_dimension_numbers<[1], [0], [0], [1], [0, 0, 1, 1], [], []>} : vector<32x288xbf16>, vector<288x768xbf16>, vector<32x768xf32> -> vector<32x768xf32>
    %c0_120 = arith.constant 0 : index
    %c0_121 = arith.constant 0 : index
    %112 = vector.load %arg7[%c0_120, %c0_121] : memref<32x1xf32, #tpu.memory_space<vmem>>, vector<32x1xf32>
    %113 = vector.broadcast %112 : vector<32x1xf32> to vector<32x768xf32>
    %114 = arith.addf %111, %113 : vector<32x768xf32>
    %cst_122 = arith.constant 0.000000e+00 : f32
    %115 = vector.broadcast %cst_122 : f32 to vector<32x768xf32>
    %116 = arith.cmpf oge, %114, %115 : vector<32x768xf32>
    %cst_123 = arith.constant 2.000000e-01 : f32
    %117 = vector.broadcast %cst_123 : f32 to vector<32x768xf32>
    %118 = arith.mulf %117, %114 : vector<32x768xf32>
    %119 = arith.select %116, %114, %118 : vector<32x768xi1>, vector<32x768xf32>
    %c0_124 = arith.constant 0 : index
    %c0_125 = arith.constant 0 : index
    %120 = vector.load %arg14[%c0_124, %c0_125] : memref<32x896xf32, #tpu.memory_space<vmem>>, vector<32x768xf32>
    tpu.vector_store %arg14[%c0_124, %c0_125], %119 {strides = array<i32>} : memref<32x896xf32, #tpu.memory_space<vmem>>, vector<32x768xf32>,
    %c0_126 = arith.constant 0 : index
    %c0_127 = arith.constant 0 : index
    %121 = vector.load %arg14[%c0_126, %c0_127] : memref<32x896xf32, #tpu.memory_space<vmem>>, vector<32x768xf32>
    %122 = arith.truncf %121 : vector<32x768xf32> to vector<32x768xbf16>
    %c0_128 = arith.constant 0 : index
    %c0_129 = arith.constant 0 : index
    %123 = vector.load %arg13[%c0_128, %c0_129] : memref<288x768xbf16, #tpu.memory_space<vmem>>, vector<32x768xbf16>
    tpu.vector_store %arg13[%c0_128, %c0_129], %122 {strides = array<i32>} : memref<288x768xbf16, #tpu.memory_space<vmem>>, vector<32x768xbf16>,
    %c0_130 = arith.constant 0 : index
    %c1_131 = arith.constant 1 : index
    %124 = vector.load %arg14[%c0_130, %c1_131] : memref<32x896xf32, #tpu.memory_space<vmem>>, vector<32x768xf32>
    %125 = arith.truncf %124 : vector<32x768xf32> to vector<32x768xbf16>
    %c32_132 = arith.constant 32 : index
    %c0_133 = arith.constant 0 : index
    %126 = vector.load %arg13[%c32_132, %c0_133] : memref<288x768xbf16, #tpu.memory_space<vmem>>, vector<32x768xbf16>
    tpu.vector_store %arg13[%c32_132, %c0_133], %125 {strides = array<i32>} : memref<288x768xbf16, #tpu.memory_space<vmem>>, vector<32x768xbf16>,
    %c0_134 = arith.constant 0 : index
    %c2_135 = arith.constant 2 : index
    %127 = vector.load %arg14[%c0_134, %c2_135] : memref<32x896xf32, #tpu.memory_space<vmem>>, vector<32x768xf32>
    %128 = arith.truncf %127 : vector<32x768xf32> to vector<32x768xbf16>
    %c64_136 = arith.constant 64 : index
    %c0_137 = arith.constant 0 : index
    %129 = vector.load %arg13[%c64_136, %c0_137] : memref<288x768xbf16, #tpu.memory_space<vmem>>, vector<32x768xbf16>
    tpu.vector_store %arg13[%c64_136, %c0_137], %128 {strides = array<i32>} : memref<288x768xbf16, #tpu.memory_space<vmem>>, vector<32x768xbf16>,
    %c0_138 = arith.constant 0 : index
    %c18_139 = arith.constant 18 : index
    %130 = vector.load %arg14[%c0_138, %c18_139] : memref<32x896xf32, #tpu.memory_space<vmem>>, vector<32x768xf32>
    %131 = arith.truncf %130 : vector<32x768xf32> to vector<32x768xbf16>
    %c96_140 = arith.constant 96 : index
    %c0_141 = arith.constant 0 : index
    %132 = vector.load %arg13[%c96_140, %c0_141] : memref<288x768xbf16, #tpu.memory_space<vmem>>, vector<32x768xbf16>
    tpu.vector_store %arg13[%c96_140, %c0_141], %131 {strides = array<i32>} : memref<288x768xbf16, #tpu.memory_space<vmem>>, vector<32x768xbf16>,
    %c0_142 = arith.constant 0 : index
    %c19_143 = arith.constant 19 : index
    %133 = vector.load %arg14[%c0_142, %c19_143] : memref<32x896xf32, #tpu.memory_space<vmem>>, vector<32x768xf32>
    %134 = arith.truncf %133 : vector<32x768xf32> to vector<32x768xbf16>
    %c128_144 = arith.constant 128 : index
    %c0_145 = arith.constant 0 : index
    %135 = vector.load %arg13[%c128_144, %c0_145] : memref<288x768xbf16, #tpu.memory_space<vmem>>, vector<32x768xbf16>
    tpu.vector_store %arg13[%c128_144, %c0_145], %134 {strides = array<i32>} : memref<288x768xbf16, #tpu.memory_space<vmem>>, vector<32x768xbf16>,
    %c0_146 = arith.constant 0 : index
    %c20_147 = arith.constant 20 : index
    %136 = vector.load %arg14[%c0_146, %c20_147] : memref<32x896xf32, #tpu.memory_space<vmem>>, vector<32x768xf32>
    %137 = arith.truncf %136 : vector<32x768xf32> to vector<32x768xbf16>
    %c160_148 = arith.constant 160 : index
    %c0_149 = arith.constant 0 : index
    %138 = vector.load %arg13[%c160_148, %c0_149] : memref<288x768xbf16, #tpu.memory_space<vmem>>, vector<32x768xbf16>
    tpu.vector_store %arg13[%c160_148, %c0_149], %137 {strides = array<i32>} : memref<288x768xbf16, #tpu.memory_space<vmem>>, vector<32x768xbf16>,
    %c0_150 = arith.constant 0 : index
    %c36_151 = arith.constant 36 : index
    %139 = vector.load %arg14[%c0_150, %c36_151] : memref<32x896xf32, #tpu.memory_space<vmem>>, vector<32x768xf32>
    %140 = arith.truncf %139 : vector<32x768xf32> to vector<32x768xbf16>
    %c192_152 = arith.constant 192 : index
    %c0_153 = arith.constant 0 : index
    %141 = vector.load %arg13[%c192_152, %c0_153] : memref<288x768xbf16, #tpu.memory_space<vmem>>, vector<32x768xbf16>
    tpu.vector_store %arg13[%c192_152, %c0_153], %140 {strides = array<i32>} : memref<288x768xbf16, #tpu.memory_space<vmem>>, vector<32x768xbf16>,
    %c0_154 = arith.constant 0 : index
    %c37_155 = arith.constant 37 : index
    %142 = vector.load %arg14[%c0_154, %c37_155] : memref<32x896xf32, #tpu.memory_space<vmem>>, vector<32x768xf32>
    %143 = arith.truncf %142 : vector<32x768xf32> to vector<32x768xbf16>
    %c224_156 = arith.constant 224 : index
    %c0_157 = arith.constant 0 : index
    %144 = vector.load %arg13[%c224_156, %c0_157] : memref<288x768xbf16, #tpu.memory_space<vmem>>, vector<32x768xbf16>
    tpu.vector_store %arg13[%c224_156, %c0_157], %143 {strides = array<i32>} : memref<288x768xbf16, #tpu.memory_space<vmem>>, vector<32x768xbf16>,
    %c0_158 = arith.constant 0 : index
    %c38_159 = arith.constant 38 : index
    %145 = vector.load %arg14[%c0_158, %c38_159] : memref<32x896xf32, #tpu.memory_space<vmem>>, vector<32x768xf32>
    %146 = arith.truncf %145 : vector<32x768xf32> to vector<32x768xbf16>
    %c256_160 = arith.constant 256 : index
    %c0_161 = arith.constant 0 : index
    %147 = vector.load %arg13[%c256_160, %c0_161] : memref<288x768xbf16, #tpu.memory_space<vmem>>, vector<32x768xbf16>
    tpu.vector_store %arg13[%c256_160, %c0_161], %146 {strides = array<i32>} : memref<288x768xbf16, #tpu.memory_space<vmem>>, vector<32x768xbf16>,
    %c0_162 = arith.constant 0 : index
    %c0_163 = arith.constant 0 : index
    %148 = vector.load %arg8[%c0_162, %c0_163] : memref<32x288xbf16, #tpu.memory_space<vmem>>, vector<32x288xbf16>
    %c0_164 = arith.constant 0 : index
    %c0_165 = arith.constant 0 : index
    %149 = vector.load %arg13[%c0_164, %c0_165] : memref<288x768xbf16, #tpu.memory_space<vmem>>, vector<288x768xbf16>
    %cst_166 = arith.constant dense<0.000000e+00> : vector<32x768xf32>
    %150 = tpu.matmul %148, %149, %cst_166 {dimension_numbers = #tpu.dot_dimension_numbers<[1], [0], [0], [1], [0, 0, 1, 1], [], []>} : vector<32x288xbf16>, vector<288x768xbf16>, vector<32x768xf32> -> vector<32x768xf32>
    %c0_167 = arith.constant 0 : index
    %c0_168 = arith.constant 0 : index
    %151 = vector.load %arg9[%c0_167, %c0_168] : memref<32x1xf32, #tpu.memory_space<vmem>>, vector<32x1xf32>
    %152 = vector.broadcast %151 : vector<32x1xf32> to vector<32x768xf32>
    %153 = arith.addf %150, %152 : vector<32x768xf32>
    %cst_169 = arith.constant 0.000000e+00 : f32
    %154 = vector.broadcast %cst_169 : f32 to vector<32x768xf32>
    %155 = arith.cmpf oge, %153, %154 : vector<32x768xf32>
    %cst_170 = arith.constant 2.000000e-01 : f32
    %156 = vector.broadcast %cst_170 : f32 to vector<32x768xf32>
    %157 = arith.mulf %156, %153 : vector<32x768xf32>
    %158 = arith.select %155, %153, %157 : vector<32x768xi1>, vector<32x768xf32>
    %c0_171 = arith.constant 0 : index
    %c0_172 = arith.constant 0 : index
    %159 = vector.load %arg14[%c0_171, %c0_172] : memref<32x896xf32, #tpu.memory_space<vmem>>, vector<32x768xf32>
    tpu.vector_store %arg14[%c0_171, %c0_172], %158 {strides = array<i32>} : memref<32x896xf32, #tpu.memory_space<vmem>>, vector<32x768xf32>,
    %c0_173 = arith.constant 0 : index
    %c0_174 = arith.constant 0 : index
    %160 = vector.load %arg14[%c0_173, %c0_174] : memref<32x896xf32, #tpu.memory_space<vmem>>, vector<32x768xf32>
    %161 = arith.truncf %160 : vector<32x768xf32> to vector<32x768xbf16>
    %c0_175 = arith.constant 0 : index
    %c0_176 = arith.constant 0 : index
    %162 = vector.load %arg13[%c0_175, %c0_176] : memref<288x768xbf16, #tpu.memory_space<vmem>>, vector<32x768xbf16>
    tpu.vector_store %arg13[%c0_175, %c0_176], %161 {strides = array<i32>} : memref<288x768xbf16, #tpu.memory_space<vmem>>, vector<32x768xbf16>,
    %c0_177 = arith.constant 0 : index
    %c1_178 = arith.constant 1 : index
    %163 = vector.load %arg14[%c0_177, %c1_178] : memref<32x896xf32, #tpu.memory_space<vmem>>, vector<32x768xf32>
    %164 = arith.truncf %163 : vector<32x768xf32> to vector<32x768xbf16>
    %c32_179 = arith.constant 32 : index
    %c0_180 = arith.constant 0 : index
    %165 = vector.load %arg13[%c32_179, %c0_180] : memref<288x768xbf16, #tpu.memory_space<vmem>>, vector<32x768xbf16>
    tpu.vector_store %arg13[%c32_179, %c0_180], %164 {strides = array<i32>} : memref<288x768xbf16, #tpu.memory_space<vmem>>, vector<32x768xbf16>,
    %c0_181 = arith.constant 0 : index
    %c2_182 = arith.constant 2 : index
    %166 = vector.load %arg14[%c0_181, %c2_182] : memref<32x896xf32, #tpu.memory_space<vmem>>, vector<32x768xf32>
    %167 = arith.truncf %166 : vector<32x768xf32> to vector<32x768xbf16>
    %c64_183 = arith.constant 64 : index
    %c0_184 = arith.constant 0 : index
    %168 = vector.load %arg13[%c64_183, %c0_184] : memref<288x768xbf16, #tpu.memory_space<vmem>>, vector<32x768xbf16>
    tpu.vector_store %arg13[%c64_183, %c0_184], %167 {strides = array<i32>} : memref<288x768xbf16, #tpu.memory_space<vmem>>, vector<32x768xbf16>,
    %c0_185 = arith.constant 0 : index
    %c18_186 = arith.constant 18 : index
    %169 = vector.load %arg14[%c0_185, %c18_186] : memref<32x896xf32, #tpu.memory_space<vmem>>, vector<32x768xf32>
    %170 = arith.truncf %169 : vector<32x768xf32> to vector<32x768xbf16>
    %c96_187 = arith.constant 96 : index
    %c0_188 = arith.constant 0 : index
    %171 = vector.load %arg13[%c96_187, %c0_188] : memref<288x768xbf16, #tpu.memory_space<vmem>>, vector<32x768xbf16>
    tpu.vector_store %arg13[%c96_187, %c0_188], %170 {strides = array<i32>} : memref<288x768xbf16, #tpu.memory_space<vmem>>, vector<32x768xbf16>,
    %c0_189 = arith.constant 0 : index
    %c19_190 = arith.constant 19 : index
    %172 = vector.load %arg14[%c0_189, %c19_190] : memref<32x896xf32, #tpu.memory_space<vmem>>, vector<32x768xf32>
    %173 = arith.truncf %172 : vector<32x768xf32> to vector<32x768xbf16>
    %c128_191 = arith.constant 128 : index
    %c0_192 = arith.constant 0 : index
    %174 = vector.load %arg13[%c128_191, %c0_192] : memref<288x768xbf16, #tpu.memory_space<vmem>>, vector<32x768xbf16>
    tpu.vector_store %arg13[%c128_191, %c0_192], %173 {strides = array<i32>} : memref<288x768xbf16, #tpu.memory_space<vmem>>, vector<32x768xbf16>,
    %c0_193 = arith.constant 0 : index
    %c20_194 = arith.constant 20 : index
    %175 = vector.load %arg14[%c0_193, %c20_194] : memref<32x896xf32, #tpu.memory_space<vmem>>, vector<32x768xf32>
    %176 = arith.truncf %175 : vector<32x768xf32> to vector<32x768xbf16>
    %c160_195 = arith.constant 160 : index
    %c0_196 = arith.constant 0 : index
    %177 = vector.load %arg13[%c160_195, %c0_196] : memref<288x768xbf16, #tpu.memory_space<vmem>>, vector<32x768xbf16>
    tpu.vector_store %arg13[%c160_195, %c0_196], %176 {strides = array<i32>} : memref<288x768xbf16, #tpu.memory_space<vmem>>, vector<32x768xbf16>,
    %c0_197 = arith.constant 0 : index
    %c36_198 = arith.constant 36 : index
    %178 = vector.load %arg14[%c0_197, %c36_198] : memref<32x896xf32, #tpu.memory_space<vmem>>, vector<32x768xf32>
    %179 = arith.truncf %178 : vector<32x768xf32> to vector<32x768xbf16>
    %c192_199 = arith.constant 192 : index
    %c0_200 = arith.constant 0 : index
    %180 = vector.load %arg13[%c192_199, %c0_200] : memref<288x768xbf16, #tpu.memory_space<vmem>>, vector<32x768xbf16>
    tpu.vector_store %arg13[%c192_199, %c0_200], %179 {strides = array<i32>} : memref<288x768xbf16, #tpu.memory_space<vmem>>, vector<32x768xbf16>,
    %c0_201 = arith.constant 0 : index
    %c37_202 = arith.constant 37 : index
    %181 = vector.load %arg14[%c0_201, %c37_202] : memref<32x896xf32, #tpu.memory_space<vmem>>, vector<32x768xf32>
    %182 = arith.truncf %181 : vector<32x768xf32> to vector<32x768xbf16>
    %c224_203 = arith.constant 224 : index
    %c0_204 = arith.constant 0 : index
    %183 = vector.load %arg13[%c224_203, %c0_204] : memref<288x768xbf16, #tpu.memory_space<vmem>>, vector<32x768xbf16>
    tpu.vector_store %arg13[%c224_203, %c0_204], %182 {strides = array<i32>} : memref<288x768xbf16, #tpu.memory_space<vmem>>, vector<32x768xbf16>,
    %c0_205 = arith.constant 0 : index
    %c38_206 = arith.constant 38 : index
    %184 = vector.load %arg14[%c0_205, %c38_206] : memref<32x896xf32, #tpu.memory_space<vmem>>, vector<32x768xf32>
    %185 = arith.truncf %184 : vector<32x768xf32> to vector<32x768xbf16>
    %c256_207 = arith.constant 256 : index
    %c0_208 = arith.constant 0 : index
    %186 = vector.load %arg13[%c256_207, %c0_208] : memref<288x768xbf16, #tpu.memory_space<vmem>>, vector<32x768xbf16>
    tpu.vector_store %arg13[%c256_207, %c0_208], %185 {strides = array<i32>} : memref<288x768xbf16, #tpu.memory_space<vmem>>, vector<32x768xbf16>,
    %c0_209 = arith.constant 0 : index
    %c0_210 = arith.constant 0 : index
    %187 = vector.load %arg10[%c0_209, %c0_210] : memref<8x288xbf16, #tpu.memory_space<vmem>>, vector<8x288xbf16>
    %c0_211 = arith.constant 0 : index
    %c0_212 = arith.constant 0 : index
    %188 = vector.load %arg13[%c0_211, %c0_212] : memref<288x768xbf16, #tpu.memory_space<vmem>>, vector<288x768xbf16>
    %cst_213 = arith.constant dense<0.000000e+00> : vector<8x768xf32>
    %189 = tpu.matmul %187, %188, %cst_213 {dimension_numbers = #tpu.dot_dimension_numbers<[1], [0], [0], [1], [0, 0, 1, 1], [], []>} : vector<8x288xbf16>, vector<288x768xbf16>, vector<8x768xf32> -> vector<8x768xf32>
    %190 = vector.extract_strided_slice %189 {offsets = [0, 0], sizes = [1, 768], strides = [1, 1]} : vector<8x768xf32> to vector<1x768xf32>
    %c0_214 = arith.constant 0 : index
    %c0_215 = arith.constant 0 : index
    %191 = vector.load %arg11[%c0_214, %c0_215] : memref<1x1xf32, #tpu.memory_space<vmem>>, vector<1x1xf32>
    %192 = vector.broadcast %191 : vector<1x1xf32> to vector<1x768xf32>
    %193 = arith.addf %190, %192 : vector<1x768xf32>
    %c0_216 = arith.constant 0 : index
    %c0_217 = arith.constant 0 : index
    %194 = vector.load %arg12[%c0_216, %c0_217] : memref<1x768xf32, #tpu.memory_space<vmem>>, vector<1x768xf32>
    tpu.vector_store %arg12[%c0_216, %c0_217], %193 {strides = array<i32>} : memref<1x768xf32, #tpu.memory_space<vmem>>, vector<1x768xf32>,
    return
  }
  func.func @transform_0(%arg0: i32) -> (i32, i32) {
    %c0_i32 = arith.constant 0 : i32
    %c0_i32_0 = arith.constant 0 : i32
    %c0_i32_1 = arith.constant 0 : i32
    return %c0_i32, %c0_i32_0 : i32, i32
  }
  func.func @transform_1(%arg0: i32) -> (i32, i32) {
    %c0_i32 = arith.constant 0 : i32
    %c0_i32_0 = arith.constant 0 : i32
    %c0_i32_1 = arith.constant 0 : i32
    return %c0_i32, %c0_i32_0 : i32, i32
  }
  func.func @transform_2(%arg0: i32) -> (i32, i32) {
    %c0_i32 = arith.constant 0 : i32
    %c0_i32_0 = arith.constant 0 : i32
    %c0_i32_1 = arith.constant 0 : i32
    return %c0_i32, %c0_i32_0 : i32, i32
  }
  func.func @transform_3(%arg0: i32) -> (i32, i32) {
    %c0_i32 = arith.constant 0 : i32
    %c0_i32_0 = arith.constant 0 : i32
    %c0_i32_1 = arith.constant 0 : i32
    return %c0_i32, %c0_i32_0 : i32, i32
  }
  func.func @transform_4(%arg0: i32) -> (i32, i32) {
    %c0_i32 = arith.constant 0 : i32
    %c0_i32_0 = arith.constant 0 : i32
    %c0_i32_1 = arith.constant 0 : i32
    return %c0_i32, %c0_i32_0 : i32, i32
  }
  func.func @transform_5(%arg0: i32) -> (i32, i32) {
    %c0_i32 = arith.constant 0 : i32
    %c0_i32_0 = arith.constant 0 : i32
    %c0_i32_1 = arith.constant 0 : i32
    return %c0_i32, %c0_i32_0 : i32, i32
  }
  func.func @transform_6(%arg0: i32) -> (i32, i32) {
    %c0_i32 = arith.constant 0 : i32
    %c0_i32_0 = arith.constant 0 : i32
    %c0_i32_1 = arith.constant 0 : i32
    return %c0_i32, %c0_i32_0 : i32, i32
  }
  func.func @transform_7(%arg0: i32) -> (i32, i32) {
    %c0_i32 = arith.constant 0 : i32
    %c0_i32_0 = arith.constant 0 : i32
    %c0_i32_1 = arith.constant 0 : i32
    return %c0_i32, %c0_i32_0 : i32, i32
  }
  func.func @transform_8(%arg0: i32) -> (i32, i32) {
    %c0_i32 = arith.constant 0 : i32
    %c0_i32_0 = arith.constant 0 : i32
    %c0_i32_1 = arith.constant 0 : i32
    return %c0_i32, %c0_i32_0 : i32, i32
  }
  func.func @transform_9(%arg0: i32) -> (i32, i32) {
    %c0_i32 = arith.constant 0 : i32
    %c0_i32_0 = arith.constant 0 : i32
    %c0_i32_1 = arith.constant 0 : i32
    return %c0_i32, %c0_i32_0 : i32, i32
  }
  func.func @transform_10(%arg0: i32) -> (i32, i32) {
    %c0_i32 = arith.constant 0 : i32
    %c0_i32_0 = arith.constant 0 : i32
    %c0_i32_1 = arith.constant 0 : i32
    return %c0_i32, %c0_i32_0 : i32, i32
  }
  func.func @transform_11(%arg0: i32) -> (i32, i32) {
    %c0_i32 = arith.constant 0 : i32
    %c0_i32_0 = arith.constant 0 : i32
    %c0_i32_1 = arith.constant 0 : i32
    return %c0_i32, %c0_i32_0 : i32, i32
  }
}

</mosaic_0001>

<bundles_post_ra>
// kernel: discriminator_forward.1
= control target key start
LH: loop header
LB: loop body
LE: loop exit
PB: predicated region body
PF: predicated region fallthrough
CT: control target
= control target key end

     0   :  { %s14550_s14 = smov 91   ;;  %s14551_s15 = smov 92   ;;  %vm1310_vm0 = vcmask 130048   ;;  %v20328_v19 = vmov 0.0|0.0   ;;  %vm221_vm1 = vcmask 1043456   ;;  %vm817_vm2 = vcmask 744448   ;;  %s20314_s0 = inlined_call_operand.vmem [shape: f32[16,768], index: 0, kind: input, shape index: {}]   ;;  %s20315_s1 = inlined_call_operand.vmem [shape: bf16[32,144], index: 1, kind: input, shape index: {}]   ;;  %s20316_s2 = inlined_call_operand.vmem [shape: f32[32,1], index: 2, kind: input, shape index: {}]   ;;  %s20317_s3 = inlined_call_operand.vmem [shape: bf16[32,288], index: 3, kind: input, shape index: {}]   ;;  %s20318_s4 = inlined_call_operand.vmem [shape: f32[32,1], index: 4, kind: input, shape index: {}]   ;;  %s20319_s5 = inlined_call_operand.vmem [shape: bf16[32,288], index: 5, kind: input, shape index: {}]   ;;  %s20320_s6 = inlined_call_operand.vmem [shape: f32[32,1], index: 6, kind: input, shape index: {}]   ;;  %s20321_s7 = inlined_call_operand.vmem [shape: bf16[32,288], index: 7, kind: input, shape index: {}]   ;;  %s20322_s8 = inlined_call_operand.vmem [shape: f32[32,1], index: 8, kind: input, shape index: {}]   ;;  %s20323_s10 = inlined_call_operand.<no memory space> [shape: f32[1,1], index: 10, kind: input, shape index: {}]   ;;  %s20324_s9 = inlined_call_operand.vmem [shape: bf16[8,288], index: 9, kind: input, shape index: {}]   ;;  %s20325_s11 = inlined_call_operand.vmem [shape: f32[1,768], index: 11, kind: output, shape index: {}]  }
   0x1   :  { %v14624_v0 = vld [vmem:[%s20314_s0 + $0x30] sm:$0xff]  ;;  %v14629_v1 = vld [vmem:[%s20314_s0 + $0x38] sm:$0xff]  ;;  %v14634_v2 = vld [vmem:[%s20314_s0] sm:$0xff]  ;;  %s14552_s24 = smov 108   ;;  %s14554_s25 = smov 110   ;;  %vm718_vm3 = vcmask 752640  }
   0x2   :  { %v14638_v3 = vpack.c.bf16 %v14629_v1, %v14624_v0  ;;  %v14643_v4 = vld [vmem:[%s20314_s0 + $0x8] sm:$0xff]  ;;  %v14648_v5 = vld [vmem:[%s20314_s0 + $0x40] sm:$0xff]  ;;  %v14662_v8 = vld [vmem:[%s20314_s0 + $0x10] sm:$0xff]  ;;  %s14555_s26 = smov 126   ;;  %s14556_s27 = smov 127   ;;  %v20326_v62 = vmov 0  }
   0x3   :  { %v14653_v6 = vld [vmem:[%s20314_s0 + $0x48] sm:$0xff]  ;;  %v14657_v7 = vpack.c.bf16 %v14643_v4, %v14634_v2  ;;  %v14667_v9 = vld [vmem:[%s20314_s0 + $0x18] sm:$0xff]  ;;  %v14688_v12 = vld [vmem:[%s20314_s0 + $0x50] sm:$0xff]  ;;  %s14557_s30 = smov 90   ;;  %14512 = vset.pattern.permute.xlu1 %v20326_v62  ;;  %14511 = vset.pattern.permute.xlu0 %v20326_v62  ;;  %vm619_vm4 = vcmask 883712   ;;  %vm520_vm5 = vcmask 891904  }
   0x4   :  { %800 = vrot.lane.b32.xlu1 %v14638_v3, %s14550_s14  ;;  %v14673_v10 = vpack.c.bf16 %v14653_v6, %v14648_v5  ;;  %v13817_v11 = vpack.c.bf16 %v14667_v9, %v14662_v8  ;;  %v14693_v13 = vld [vmem:[%s20314_s0 + $0x58] sm:$0xff]  ;;  %v14698_v14 = vld [vmem:[%s20314_s0 + $0x20] sm:$0xff]  ;;  %v14703_v15 = vld [vmem:[%s20314_s0 + $0x28] sm:$0xff]  ;;  %s14553_s0 = smov 109   ;;  %vm421_vm6 = vcmask 900096   ;;  %vm322_vm7 = vcmask 1031168  }
   0x5   :  { %792 = vrot.lane.b32.xlu0 %v14657_v7, %s14550_s14  ;;  %v13821_v16 = vpack.c.bf16 %v14693_v13, %v14688_v12  ;;  %v13818_v17 = vpack.c.bf16 %v14703_v15, %v14698_v14  ;;  %v14765_v18 = vld [vmem:[%s20315_s1 + $0x4] ss:$8 sps:$4 sm:$0xff]   ;;  %v1001_v63 = vld [vmem:[%s20316_s2 + $0x18] sm:$0xff]  ;;  %vm223_vm8 = vcmask 1039360   ;;  %vm916_vm9 = vcmask 736256  }
   0x6   :  { %12776 = vmatprep.mubr.msk.bf16.mxu0 %vm1310_vm0, %v14765_v18  ;;  %12778 = vmatprep.mubr.msk.bf16.mxu1 %vm1310_vm0, %v14765_v18 }
   0x8   :  { %802 = vrot.lane.b32.xlu1 %v14673_v10, %s14550_s14 }
   0x9   :  { %794 = vrot.lane.b32.xlu0 %v13817_v11, %s14550_s14 }
   0xc   :  { %695 = vrot.lane.b32.xlu1 %v13817_v11, %s14551_s15 }
   0xd   :  { %693 = vrot.lane.b32.xlu0 %v14657_v7, %s14551_s15 }
  0x10   :  { %703 = vrot.lane.b32.xlu1 %v14673_v10, %s14551_s15 }
  0x11   :  { %701 = vrot.lane.b32.xlu0 %v14638_v3, %s14551_s15 }
  0x14   :  { %804 = vrot.lane.b32.xlu1 %v13821_v16, %s14550_s14 }
  0x15   :  { %796 = vrot.lane.b32.xlu0 %v13818_v17, %s14550_s14 }
  0x18   :  { %596 = vrot.lane.b32.xlu1 %v13817_v11, %s14552_s24 }
  0x19   :  { %594 = vrot.lane.b32.xlu0 %v14657_v7, %s14552_s24 }
  0x1c   :  { %604 = vrot.lane.b32.xlu1 %v14673_v10, %s14552_s24 }
  0x1d   :  { %602 = vrot.lane.b32.xlu0 %v14638_v3, %s14552_s24 }
  0x20   :  { %705 = vrot.lane.b32.xlu1 %v13821_v16, %s14551_s15 }
  0x21   :  { %697 = vrot.lane.b32.xlu0 %v13818_v17, %s14551_s15 }
  0x24   :  { %497 = vrot.lane.b32.xlu1 %v13817_v11, %s14553_s0 }
  0x25   :  { %495 = vrot.lane.b32.xlu0 %v14657_v7, %s14553_s0 }
  0x28   :  { %505 = vrot.lane.b32.xlu1 %v14673_v10, %s14553_s0 }
  0x29   :  { %503 = vrot.lane.b32.xlu0 %v14638_v3, %s14553_s0 }
  0x2c   :  { %606 = vrot.lane.b32.xlu1 %v13821_v16, %s14552_s24 }
  0x2d   :  { %598 = vrot.lane.b32.xlu0 %v13818_v17, %s14552_s24 }
  0x30   :  { %398 = vrot.lane.b32.xlu1 %v13817_v11, %s14554_s25 }
  0x31   :  { %396 = vrot.lane.b32.xlu0 %v14657_v7, %s14554_s25 }
  0x34   :  { %406 = vrot.lane.b32.xlu1 %v14673_v10, %s14554_s25 }
  0x35   :  { %404 = vrot.lane.b32.xlu0 %v14638_v3, %s14554_s25 }
  0x38   :  { %507 = vrot.lane.b32.xlu1 %v13821_v16, %s14553_s0 }
  0x39   :  { %499 = vrot.lane.b32.xlu0 %v13818_v17, %s14553_s0 }
  0x3c   :  { %299 = vrot.lane.b32.xlu1 %v13817_v11, %s14555_s26 }
  0x3d   :  { %297 = vrot.lane.b32.xlu0 %v14657_v7, %s14555_s26 }
  0x40   :  { %307 = vrot.lane.b32.xlu1 %v14673_v10, %s14555_s26 }
  0x41   :  { %305 = vrot.lane.b32.xlu0 %v14638_v3, %s14555_s26 }
  0x44   :  { %408 = vrot.lane.b32.xlu1 %v13821_v16, %s14554_s25 }
  0x45   :  { %400 = vrot.lane.b32.xlu0 %v13818_v17, %s14554_s25 }
  0x48   :  { %199 = vrot.lane.b32.xlu1 %v13817_v11, %s14556_s27 }
  0x49   :  { %197 = vrot.lane.b32.xlu0 %v14657_v7, %s14556_s27 }
  0x4c   :  { %207 = vrot.lane.b32.xlu1 %v14673_v10, %s14556_s27 }
  0x4d   :  { %205 = vrot.lane.b32.xlu0 %v14638_v3, %s14556_s27 }
  0x50   :  { %309 = vrot.lane.b32.xlu1 %v13821_v16, %s14555_s26 }
  0x51   :  { %301 = vrot.lane.b32.xlu0 %v13818_v17, %s14555_s26 }
  0x54   :  { %209 = vrot.lane.b32.xlu1 %v13821_v16, %s14556_s27 }
  0x55   :  { %201 = vrot.lane.b32.xlu0 %v13818_v17, %s14556_s27 }
  0x58   :  { %893 = vrot.lane.b32.xlu1 %v13817_v11, %s14557_s30  ;;  %v999_v11 = vld [vmem:[%s20316_s2 + $0x8] sm:$0xff] }
  0x59   :  { %891 = vrot.lane.b32.xlu0 %v14657_v7, %s14557_s30 }
  0x5c   :  { %901 = vrot.lane.b32.xlu1 %v14673_v10, %s14557_s30  ;;  %v998_v10 = vld [vmem:[%s20316_s2] sm:$0xff] }
  0x5d   :  { %899 = vrot.lane.b32.xlu0 %v14638_v3, %s14557_s30  ;;  %v1000_v3 = vld [vmem:[%s20316_s2 + $0x10] sm:$0xff] }
  0x60   :  { %806 = vrot.lane.b32.xlu1 %v20328_v19, %s14550_s14 }
  0x61   :  { %798 = vrot.lane.b32.xlu0 %v20328_v19, %s14550_s14 }
  0x64   :  { %903 = vrot.lane.b32.xlu1 %v13821_v16, %s14557_s30 }
  0x65   :  { %895 = vrot.lane.b32.xlu0 %v13818_v17, %s14557_s30 }
  0x68   :  { %707 = vrot.lane.b32.xlu1 %v20328_v19, %s14551_s15 }
  0x69   :  { %699 = vrot.lane.b32.xlu0 %v20328_v19, %s14551_s15 }
  0x6c   :  { %608 = vrot.lane.b32.xlu1 %v20328_v19, %s14552_s24 }
  0x6d   :  { %600 = vrot.lane.b32.xlu0 %v20328_v19, %s14552_s24 }
  0x70   :  { %509 = vrot.lane.b32.xlu1 %v20328_v19, %s14553_s0 }
  0x71   :  { %501 = vrot.lane.b32.xlu0 %v20328_v19, %s14553_s0 }
  0x74   :  { %410 = vrot.lane.b32.xlu1 %v20328_v19, %s14554_s25 }
  0x75   :  { %402 = vrot.lane.b32.xlu0 %v20328_v19, %s14554_s25 }
  0x76   :  { %v801_v20 = vpop.permute.xlu1 %800 }
  0x77   :  { %v793_v21 = vpop.permute.xlu0 %792  ;;  %v812_v23 = vrot.slane %v801_v20, 4 }
  0x78   :  { %311 = vrot.lane.b32.xlu1 %v20328_v19, %s14555_s26  ;;  %v808_v26 = vrot.slane %v793_v21, 4 }
  0x79   :  { %303 = vrot.lane.b32.xlu0 %v20328_v19, %s14555_s26 }
  0x7a   :  { %v803_v22 = vpop.permute.xlu1 %802 }
  0x7b   :  { %v813_v24 = vrot.slane %v803_v22, 4  ;;  %v795_v25 = vpop.permute.xlu0 %794 }
  0x7c   :  { %v809_v27 = vrot.slane %v795_v25, 4  ;;  %211 = vrot.lane.b32.xlu1 %v20328_v19, %s14556_s27 }
  0x7d   :  { %203 = vrot.lane.b32.xlu0 %v20328_v19, %s14556_s27  ;;  %v823_v28 = vsel %vm221_vm1, %v812_v23, %v813_v24 }
  0x7e   :  { %v14809_v29 = vpop.permute.xlu1 %695  ;;  %v816_v30 = vsel %vm221_vm1, %v808_v26, %v809_v27  ;;  %v824_v31 = vsel %vm817_vm2, %v801_v20, %v823_v28 }
  0x7f   :  { %v694_v32 = vpop.permute.xlu0 %693  ;;  %v818_v33 = vsel %vm817_vm2, %v793_v21, %v816_v30  ;;  %v710_v34 = vrot.slane %v14809_v29, 4 }
  0x80   :  { %v709_v35 = vrot.slane %v694_v32, 4  ;;  %905 = vrot.lane.b32.xlu1 %v20328_v19, %s14557_s30  ;;  %v12765_v36 = vcombine.high %v818_v33, %v824_v31  ;;  %v12764_v37 = vcombine.low %v818_v33, %v824_v31 }
  0x81   :  { %897 = vrot.lane.b32.xlu0 %v20328_v19, %s14557_s30 }
  0x82   :  { %1317 = vmatprep.subr.bf16.mxu0 %v12765_v36  ;;  %v704_v38 = vpop.permute.xlu1 %703  ;;  %v717_v41 = vsel %vm221_vm1, %v709_v35, %v710_v34 }
  0x83   :  { %v714_v39 = vrot.slane %v704_v38, 4  ;;  %1318 = vmatpush1.bf16.msra.mxu0 %v12764_v37  ;;  %v702_v40 = vpop.permute.xlu0 %701  ;;  %v719_v45 = vsel %vm718_vm3, %v694_v32, %v717_v41 }
  0x84   :  { %v713_v42 = vrot.slane %v702_v40, 4  ;;  %1019 = vperm.xlu1 %14512, %v1001_v63  }
  0x85   :  { %1014 = vperm.xlu0 %14511, %v1000_v3  }
  0x86   :  { %v724_v43 = vsel %vm221_vm1, %v713_v42, %v714_v39  ;;  %v14823_v44 = vpop.permute.xlu1 %804 }
  0x87   :  { %v725_v46 = vsel %vm718_vm3, %v702_v40, %v724_v43  ;;  %v814_v47 = vrot.slane %v14823_v44, 4  ;;  %v14828_v48 = vpop.permute.xlu0 %796 }
  0x88   :  { %v810_v49 = vrot.slane %v14828_v48, 4  ;;  %v12759_v50 = vcombine.high %v719_v45, %v725_v46  ;;  %v12758_v51 = vcombine.low %v719_v45, %v725_v46  ;;  %1004 = vperm.xlu1 %14512, %v998_v10  }
  0x89   :  { %v825_v52 = vsel %vm221_vm1, %v813_v24, %v814_v47  ;;  %1009 = vperm.xlu0 %14511, %v999_v11  }
  0x8a   :  { %1319 = vmatprep.subr.bf16.mxu0 %v12759_v50  ;;  %v14834_v53 = vpop.permute.xlu1 %596  ;;  %v819_v54 = vsel %vm221_vm1, %v809_v27, %v810_v49  ;;  %v826_v55 = vsel %vm817_vm2, %v803_v22, %v825_v52 }
  0x8b   :  { %1320 = vmatpush1.bf16.msra.mxu0 %v12758_v51  ;;  %v595_v56 = vpop.permute.xlu0 %594  ;;  %v820_v57 = vsel %vm817_vm2, %v795_v25, %v819_v54  ;;  %v611_v58 = vrot.slane %v14834_v53, 4 }
  0x8c   :  { %v610_v59 = vrot.slane %v595_v56, 4  ;;  %v12767_v60 = vcombine.high %v820_v57, %v826_v55  ;;  %v12766_v61 = vcombine.low %v820_v57, %v826_v55 }
  0x8e   :  { %1370 = vmatprep.subr.bf16.mxu1 %v12767_v60  ;;  %v605_v7 = vpop.permute.xlu1 %604  ;;  %v618_v20 = vsel %vm221_vm1, %v610_v59, %v611_v58 }
  0x8f   :  { %v615_v16 = vrot.slane %v605_v7, 4  ;;  %1371 = vmatpush1.bf16.msra.mxu1 %v12766_v61  ;;  %v603_v17 = vpop.permute.xlu0 %602  ;;  %v620_v24 = vsel %vm619_vm4, %v595_v56, %v618_v20 }
  0x90   :  { %v614_v21 = vrot.slane %v603_v17, 4 }
  0x92   :  { %v625_v22 = vsel %vm221_vm1, %v614_v21, %v615_v16  ;;  %v14860_v23 = vpop.permute.xlu1 %705 }
  0x93   :  { %v626_v25 = vsel %vm619_vm4, %v603_v17, %v625_v22  ;;  %v715_v26 = vrot.slane %v14860_v23, 4  ;;  %v14865_v27 = vpop.permute.xlu0 %697 }
  0x94   :  { %v711_v28 = vrot.slane %v14865_v27, 4  ;;  %v12753_v30 = vcombine.high %v620_v24, %v626_v25  ;;  %v12752_v31 = vcombine.low %v620_v24, %v626_v25 }
  0x95   :  { %v726_v32 = vsel %vm221_vm1, %v714_v39, %v715_v26 }
  0x96   :  { %1321 = vmatprep.subr.bf16.mxu0 %v12753_v30  ;;  %v14871_v33 = vpop.permute.xlu1 %497  ;;  %v720_v35 = vsel %vm221_vm1, %v710_v34, %v711_v28  ;;  %v727_v36 = vsel %vm718_vm3, %v704_v38, %v726_v32 }
  0x97   :  { %1322 = vmatpush1.bf16.msra.mxu0 %v12752_v31  ;;  %v496_v37 = vpop.permute.xlu0 %495  ;;  %v721_v40 = vsel %vm718_vm3, %v14809_v29, %v720_v35  ;;  %v512_v41 = vrot.slane %v14871_v33, 4 }
  0x98   :  { %v511_v42 = vrot.slane %v496_v37, 4  ;;  %v12761_v39 = vcombine.high %v721_v40, %v727_v36  ;;  %v12760_v43 = vcombine.low %v721_v40, %v727_v36 }
  0x9a   :  { %1372 = vmatprep.subr.bf16.mxu1 %v12761_v39  ;;  %v506_v45 = vpop.permute.xlu1 %505  ;;  %v519_v34 = vsel %vm221_vm1, %v511_v42, %v512_v41 }
  0x9b   :  { %v516_v46 = vrot.slane %v506_v45, 4  ;;  %1373 = vmatpush1.bf16.msra.mxu1 %v12760_v43  ;;  %v504_v50 = vpop.permute.xlu0 %503  ;;  %v521_v29 = vsel %vm520_vm5, %v496_v37, %v519_v34 }
  0x9c   :  { %v515_v51 = vrot.slane %v504_v50, 4 }
  0x9e   :  { %v526_v38 = vsel %vm221_vm1, %v515_v51, %v516_v46  ;;  %v14884_v52 = vpop.permute.xlu1 %606 }
  0x9f   :  { %v527_v54 = vsel %vm520_vm5, %v504_v50, %v526_v38  ;;  %v616_v55 = vrot.slane %v14884_v52, 4  ;;  %v14889_v56 = vpop.permute.xlu0 %598 }
  0xa0   :  { %v612_v57 = vrot.slane %v14889_v56, 4  ;;  %v12747_v59 = vcombine.high %v521_v29, %v527_v54  ;;  %v12746_v60 = vcombine.low %v521_v29, %v527_v54 }
  0xa1   :  { %v627_v61 = vsel %vm221_vm1, %v615_v16, %v616_v55 }
  0xa2   :  { %1323 = vmatprep.subr.bf16.mxu0 %v12747_v59  ;;  %v14895_v63 = vpop.permute.xlu1 %398  ;;  %v621_v3 = vsel %vm221_vm1, %v611_v58, %v612_v57  ;;  %v628_v10 = vsel %vm619_vm4, %v605_v7, %v627_v61 }
  0xa3   :  { %1324 = vmatpush1.bf16.msra.mxu0 %v12746_v60  ;;  %v397_v11 = vpop.permute.xlu0 %396  ;;  %v622_v17 = vsel %vm619_vm4, %v14834_v53, %v621_v3  ;;  %v413_v20 = vrot.slane %v14895_v63, 4 }
  0xa4   :  { %v412_v21 = vrot.slane %v397_v11, 4  ;;  %v12755_v16 = vcombine.high %v622_v17, %v628_v10  ;;  %v12754_v22 = vcombine.low %v622_v17, %v628_v10 }
  0xa6   :  { %1374 = vmatprep.subr.bf16.mxu1 %v12755_v16  ;;  %v407_v24 = vpop.permute.xlu1 %406  ;;  %v420_v58 = vsel %vm221_vm1, %v412_v21, %v413_v20 }
  0xa7   :  { %v417_v25 = vrot.slane %v407_v24, 4  ;;  %1375 = vmatpush1.bf16.msra.mxu1 %v12754_v22  ;;  %v405_v30 = vpop.permute.xlu0 %404  ;;  %v422_v53 = vsel %vm421_vm6, %v397_v11, %v420_v58 }
  0xa8   :  { %v416_v31 = vrot.slane %v405_v30, 4 }
  0xaa   :  { %v427_v7 = vsel %vm221_vm1, %v416_v31, %v417_v25  ;;  %v14908_v32 = vpop.permute.xlu1 %507 }
  0xab   :  { %v428_v35 = vsel %vm421_vm6, %v405_v30, %v427_v7  ;;  %v517_v36 = vrot.slane %v14908_v32, 4  ;;  %v14913_v37 = vpop.permute.xlu0 %499 }
  0xac   :  { %v513_v40 = vrot.slane %v14913_v37, 4  ;;  %v12741_v42 = vcombine.high %v422_v53, %v428_v35  ;;  %v12740_v39 = vcombine.low %v422_v53, %v428_v35 }
  0xad   :  { %v528_v43 = vsel %vm221_vm1, %v516_v46, %v517_v36 }
  0xae   :  { %1325 = vmatprep.subr.bf16.mxu0 %v12741_v42  ;;  %v14919_v50 = vpop.permute.xlu1 %299  ;;  %v522_v34 = vsel %vm221_vm1, %v512_v41, %v513_v40  ;;  %v529_v51 = vsel %vm520_vm5, %v506_v45, %v528_v43 }
  0xaf   :  { %1326 = vmatpush1.bf16.msra.mxu0 %v12740_v39  ;;  %v298_v38 = vpop.permute.xlu0 %297  ;;  %v523_v29 = vsel %vm520_vm5, %v14871_v33, %v522_v34  ;;  %v314_v54 = vrot.slane %v14919_v50, 4 }
  0xb0   :  { %v313_v59 = vrot.slane %v298_v38, 4  ;;  %v12749_v60 = vcombine.high %v523_v29, %v529_v51  ;;  %v12748_v61 = vcombine.low %v523_v29, %v529_v51 }
  0xb2   :  { %1376 = vmatprep.subr.bf16.mxu1 %v12749_v60  ;;  %v308_v46 = vpop.permute.xlu1 %307  ;;  %v321_v41 = vsel %vm221_vm1, %v313_v59, %v314_v54 }
  0xb3   :  { %v318_v3 = vrot.slane %v308_v46, 4  ;;  %1377 = vmatpush1.bf16.msra.mxu1 %v12748_v61  ;;  %v306_v10 = vpop.permute.xlu0 %305  ;;  %v323_v33 = vsel %vm322_vm7, %v298_v38, %v321_v41 }
  0xb4   :  { %v317_v11 = vrot.slane %v306_v10, 4 }
  0xb6   :  { %v328_v45 = vsel %vm221_vm1, %v317_v11, %v318_v3  ;;  %v14930_v17 = vpop.permute.xlu1 %408 }
  0xb7   :  { %v329_v21 = vsel %vm322_vm7, %v306_v10, %v328_v45  ;;  %v418_v16 = vrot.slane %v14930_v17, 4  ;;  %v14935_v22 = vpop.permute.xlu0 %400 }
  0xb8   :  { %v414_v30 = vrot.slane %v14935_v22, 4  ;;  %v12735_v58 = vcombine.high %v323_v33, %v329_v21  ;;  %v12734_v31 = vcombine.low %v323_v33, %v329_v21 }
  0xb9   :  { %v429_v7 = vsel %vm221_vm1, %v417_v25, %v418_v16 }
  0xba   :  { %1327 = vmatprep.subr.bf16.mxu0 %v12735_v58  ;;  %v200_v53 = vpop.permute.xlu1 %199  ;;  %v423_v35 = vsel %vm221_vm1, %v413_v20, %v414_v30  ;;  %v430_v42 = vsel %vm421_vm6, %v407_v24, %v429_v7 }
  0xbb   :  { %1328 = vmatpush1.bf16.msra.mxu0 %v12734_v31  ;;  %v198_v39 = vpop.permute.xlu0 %197  ;;  %v424_v43 = vsel %vm421_vm6, %v14895_v63, %v423_v35  ;;  %v214_v34 = vrot.slane %v200_v53, 4  ;;  %v14447_v31 = vpack.c.bf16 %v14629_v1, %v14643_v4  ;;  %v14446_v4 = vpack.c.bf16 %v14624_v0, %v14634_v2 }
  0xbc   :  { %v213_v51 = vrot.slane %v198_v39, 4  ;;  %v12743_v38 = vcombine.high %v424_v43, %v430_v42  ;;  %v12742_v29 = vcombine.low %v424_v43, %v430_v42  ;;  %v14449_v2 = vpack.c.bf16 %v14653_v6, %v14667_v9 }
  0xbe   :  { %1378 = vmatprep.subr.bf16.mxu1 %v12743_v38  ;;  %v208_v59 = vpop.permute.xlu1 %207  ;;  %v222_v61 = vsel %vm221_vm1, %v213_v51, %v214_v34 }
  0xbf   :  { %v218_v25 = vrot.slane %v208_v59, 4  ;;  %1379 = vmatpush1.bf16.msra.mxu1 %v12742_v29  ;;  %v206_v60 = vpop.permute.xlu0 %205  ;;  %v224_v41 = vsel %vm223_vm8, %v198_v39, %v222_v61 }
  0xc0   :  { %v217_v20 = vrot.slane %v206_v60, 4 }
  0xc2   :  { %v229_v24 = vsel %vm221_vm1, %v217_v20, %v218_v25  ;;  %v14949_v10 = vpop.permute.xlu1 %309 }
  0xc3   :  { %v230_v63 = vsel %vm223_vm8, %v206_v60, %v229_v24  ;;  %v319_v11 = vrot.slane %v14949_v10, 4  ;;  %v14954_v45 = vpop.permute.xlu0 %301 }
  0xc4   :  { %v315_v33 = vrot.slane %v14954_v45, 4  ;;  %v12729_v21 = vcombine.high %v224_v41, %v230_v63  ;;  %v12728_v58 = vcombine.low %v224_v41, %v230_v63 }
  0xc5   :  { %v330_v7 = vsel %vm221_vm1, %v318_v3, %v319_v11 }
  0xc6   :  { %1329 = vmatprep.subr.bf16.mxu0 %v12729_v21  ;;  %v14962_v35 = vpop.permute.xlu1 %209  ;;  %v324_v42 = vsel %vm221_vm1, %v314_v54, %v315_v33  ;;  %v331_v39 = vsel %vm322_vm7, %v308_v46, %v330_v7 }
  0xc7   :  { %v219_v43 = vrot.slane %v14962_v35, 4  ;;  %1330 = vmatpush1.bf16.msra.mxu0 %v12728_v58  ;;  %v14969_v51 = vpop.permute.xlu0 %201  ;;  %v325_v1 = vsel %vm322_vm7, %v14919_v50, %v324_v42 }
  0xc8   :  { %v215_v3 = vrot.slane %v14969_v51, 4  ;;  %v12737_v38 = vcombine.high %v325_v1, %v331_v39  ;;  %v12736_v29 = vcombine.low %v325_v1, %v331_v39  ;;  %1331 = vmatprep.subr.bf16.mxu0 %v14447_v31 }
  0xc9   :  { %v231_v54 = vsel %vm221_vm1, %v218_v25, %v219_v43 }
  0xca   :  { %1380 = vmatprep.subr.bf16.mxu1 %v12737_v38  ;;  %v894_v46 = vpop.permute.xlu1 %893  ;;  %v225_v60 = vsel %vm221_vm1, %v214_v34, %v215_v3  ;;  %v232_v50 = vsel %vm223_vm8, %v208_v59, %v231_v54  ;;  %v14448_v34 = vpack.c.bf16 %v14648_v5, %v14662_v8  ;;  %v15003_v54 = vld [vmem:[%s20315_s1] ss:$8 sps:$4 sm:$0xff]  }
  0xcb   :  { %1381 = vmatpush1.bf16.msra.mxu1 %v12736_v29  ;;  %v892_v61 = vpop.permute.xlu0 %891  ;;  %v226_v0 = vsel %vm223_vm8, %v200_v53, %v225_v60  ;;  %1332 = vmatpush1.bf16.msra.mxu0 %v14446_v4  ;;  %v908_v20 = vrot.slane %v894_v46, 4 }
  0xcc   :  { %v907_v24 = vrot.slane %v892_v61, 4  ;;  %v12731_v41 = vcombine.high %v226_v0, %v232_v50  ;;  %v12730_v25 = vcombine.low %v226_v0, %v232_v50 }
  0xce   :  { %1382 = vmatprep.subr.bf16.mxu1 %v12731_v41  ;;  %v902_v63 = vpop.permute.xlu1 %901  ;;  %v915_v59 = vsel %vm221_vm1, %v907_v24, %v908_v20 }
  0xcf   :  { %v912_v21 = vrot.slane %v902_v63, 4  ;;  %1383 = vmatpush1.bf16.msra.mxu1 %v12730_v25  ;;  %v900_v58 = vpop.permute.xlu0 %899  ;;  %v917_v9 = vsel %vm916_vm9, %v892_v61, %v915_v59 }
  0xd0   :  { %v911_v53 = vrot.slane %v900_v58, 4  ;;  %1384 = vmatprep.subr.bf16.mxu1 %v14449_v2 }
  0xd2   :  { %v922_v31 = vsel %vm221_vm1, %v911_v53, %v912_v21  ;;  %v807_v6 = vpop.permute.xlu1 %806 }
  0xd3   :  { %v923_v7 = vsel %vm916_vm9, %v900_v58, %v922_v31  ;;  %v815_v42 = vrot.slane %v807_v6, 4  ;;  %v799_v39 = vpop.permute.xlu0 %798  ;;  %1385 = vmatpush1.bf16.msra.mxu1 %v14448_v34 }
  0xd4   :  { %v811_v1 = vrot.slane %v799_v39, 4  ;;  %v12771_v4 = vcombine.high %v917_v9, %v923_v7  ;;  %v12770_v38 = vcombine.low %v917_v9, %v923_v7 }
  0xd5   :  { %v827_v5 = vsel %vm221_vm1, %v814_v47, %v815_v42 }
  0xd6   :  { %v821_v8 = vsel %vm221_vm1, %v810_v49, %v811_v1  ;;  %1347 = vmatprep.subr.bf16.mxu0 %v12771_v4  ;;  %v14998_v29 = vpop.permute.xlu1 %903  ;;  %v828_v60 = vsel %vm817_vm2, %v14823_v44, %v827_v5  ;;  %v15015_v49 = vld [vmem:[%s20315_s1 + $0x14] ss:$8 sps:$4 sm:$0xff]  }
  0xd7   :  { %v913_v50 = vrot.slane %v14998_v29, 4  ;;  %1348 = vmatpush2.bf16.msra.mxu0 %v12770_v38  ;;  %v15008_v61 = vpop.permute.xlu0 %895  ;;  %v822_v47 = vsel %vm817_vm2, %v14828_v48, %v821_v8 }
  0xd8   :  { %v909_v0 = vrot.slane %v15008_v61, 4  ;;  %v12768_v2 = vcombine.low %v822_v47, %v828_v60  ;;  %v12769_v24 = vcombine.high %v822_v47, %v828_v60 }
  0xd9   :  { %v924_v44 = vsel %vm221_vm1, %v912_v21, %v913_v50 }
  0xda   :  { %1350 = vmatmul.mubr.bf16.vlgmr.msra.gmra.mxu0 %v15003_v54  ;;  %1423 = vmatprep.subr.bf16.mxu0 %v12769_v24  ;;  %v708_v41 = vpop.permute.xlu1 %707  ;;  %v918_v48 = vsel %vm221_vm1, %v908_v20, %v909_v0  ;;  %v925_v25 = vsel %vm916_vm9, %v902_v63, %v924_v44 }
  0xdb   :  { %v716_v58 = vrot.slane %v708_v41, 4  ;;  %1424 = vmatpush1.bf16.msra.mxu0 %v12768_v2  ;;  %v700_v34 = vpop.permute.xlu0 %699  ;;  %v919_v59 = vsel %vm916_vm9, %v894_v46, %v918_v48  ;;  %12777 = vmatprep.mubr.msk.bf16.mxu0 %vm1310_vm0, %v15015_v49  ;;  %v15038_v46 = vld [vmem:[%s20315_s1 + $0x10] ss:$8 sps:$4 sm:$0xff]  }
  0xdc   :  { %v712_v53 = vrot.slane %v700_v34, 4  ;;  %v12773_v21 = vcombine.high %v919_v59, %v925_v25  ;;  %v12772_v31 = vcombine.low %v919_v59, %v925_v25 }
  0xdd   :  { %v728_v6 = vsel %vm221_vm1, %v715_v26, %v716_v58 }
  0xde   :  { %v722_v20 = vsel %vm221_vm1, %v711_v28, %v712_v53  ;;  %1400 = vmatprep.subr.bf16.mxu1 %v12773_v21  ;;  %v609_v63 = vpop.permute.xlu1 %608  ;;  %v729_v9 = vsel %vm718_vm3, %v14860_v23, %v728_v6 }
  0xdf   :  { %v617_v7 = vrot.slane %v609_v63, 4  ;;  %1401 = vmatpush2.bf16.msra.mxu1 %v12772_v31  ;;  %v601_v42 = vpop.permute.xlu0 %600  ;;  %v723_v26 = vsel %vm718_vm3, %v14865_v27, %v722_v20 }
  0xe0   :  { %v613_v39 = vrot.slane %v601_v42, 4  ;;  %v12762_v1 = vcombine.low %v723_v26, %v729_v9  ;;  %v12763_v4 = vcombine.high %v723_v26, %v729_v9 }
  0xe1   :  { %v629_v28 = vsel %vm221_vm1, %v616_v55, %v617_v7 }
  0xe2   :  { %v623_v38 = vsel %vm221_vm1, %v612_v57, %v613_v39  ;;  %1360 = vmatmul.mubr.bf16.gmra.mxu0 %v15038_v46  ;;  %1403 = vmatmul.mubr.bf16.vlgmr.msra.gmra.mxu1 %v15003_v54  ;;  %v510_v23 = vpop.permute.xlu1 %509  ;;  %v630_v5 = vsel %vm619_vm4, %v14884_v52, %v629_v28 }
  0xe3   :  { %1425 = vmatprep.subr.bf16.mxu0 %v12763_v4  ;;  %v518_v27 = vrot.slane %v510_v23, 4  ;;  %v502_v8 = vpop.permute.xlu0 %501  ;;  %v624_v60 = vsel %vm619_vm4, %v14889_v56, %v623_v38  ;;  %12779 = vmatprep.mubr.msk.bf16.mxu1 %vm1310_vm0, %v15015_v49 }
  0xe4   :  { %1426 = vmatpush1.bf16.msra.mxu0 %v12762_v1  ;;  %v514_v55 = vrot.slane %v502_v8, 4  ;;  %v12756_v57 = vcombine.low %v624_v60, %v630_v5  ;;  %v12757_v47 = vcombine.high %v624_v60, %v630_v5  ;;  %12780 = vmatprep.mubr.msk.bf16.mxu0 %vm1310_vm0, %v14765_v18 }
  0xe5   :  { %v530_v52 = vsel %vm221_vm1, %v517_v36, %v518_v27 }
  0xe6   :  { %v524_v2 = vsel %vm221_vm1, %v513_v40, %v514_v55  ;;  %1427 = vmatprep.subr.bf16.mxu0 %v12757_v47  ;;  %v411_v56 = vpop.permute.xlu1 %410  ;;  %v531_v24 = vsel %vm520_vm5, %v14908_v32, %v530_v52 }
  0xe7   :  { %v419_v44 = vrot.slane %v411_v56, 4  ;;  %v403_v41 = vpop.permute.xlu0 %402  ;;  %v525_v48 = vsel %vm520_vm5, %v14913_v37, %v524_v2 }
  0xe8   :  { %1428 = vmatpush1.bf16.msra.mxu0 %v12756_v57  ;;  %v415_v18 = vrot.slane %v403_v41, 4  ;;  %v12750_v25 = vcombine.low %v525_v48, %v531_v24  ;;  %v12751_v58 = vcombine.high %v525_v48, %v531_v24 }
  0xe9   :  { %v431_v36 = vsel %vm221_vm1, %v418_v16, %v419_v44 }
  0xea   :  { %v425_v40 = vsel %vm221_vm1, %v414_v30, %v415_v18  ;;  %1413 = vmatmul.mubr.bf16.gmra.mxu1 %v15038_v46  ;;  %1429 = vmatprep.subr.bf16.mxu0 %v12751_v58  ;;  %v312_v32 = vpop.permute.xlu1 %311  ;;  %v432_v34 = vsel %vm421_vm6, %v14930_v17, %v431_v36 }
  0xeb   :  { %v320_v37 = vrot.slane %v312_v32, 4  ;;  %v304_v59 = vpop.permute.xlu0 %303  ;;  %v426_v53 = vsel %vm421_vm6, %v14935_v22, %v425_v40 }
  0xec   :  { %1430 = vmatpush1.bf16.msra.mxu0 %v12750_v25  ;;  %v316_v21 = vrot.slane %v304_v59, 4  ;;  %v12744_v31 = vcombine.low %v426_v53, %v432_v34  ;;  %v12745_v16 = vcombine.high %v426_v53, %v432_v34 }
  0xed   :  { %v332_v30 = vsel %vm221_vm1, %v319_v11, %v320_v37 }
  0xee   :  { %v326_v6 = vsel %vm221_vm1, %v315_v33, %v316_v21  ;;  %1431 = vmatprep.subr.bf16.mxu0 %v12745_v16  ;;  %v212_v20 = vpop.permute.xlu1 %211  ;;  %v333_v17 = vsel %vm322_vm7, %v14949_v10, %v332_v30 }
  0xef   :  { %v220_v63 = vrot.slane %v212_v20, 4  ;;  %v204_v9 = vpop.permute.xlu0 %203  ;;  %v327_v22 = vsel %vm322_vm7, %v14954_v45, %v326_v6 }
  0xf0   :  { %1432 = vmatpush1.bf16.msra.mxu0 %v12744_v31  ;;  %v216_v7 = vrot.slane %v204_v9, 4  ;;  %v12738_v42 = vcombine.low %v327_v22, %v333_v17  ;;  %v12739_v26 = vcombine.high %v327_v22, %v333_v17 }
  0xf1   :  { %v233_v11 = vsel %vm221_vm1, %v219_v43, %v220_v63 }
  0xf2   :  { %v227_v33 = vsel %vm221_vm1, %v215_v3, %v216_v7  ;;  %1433 = vmatprep.subr.bf16.mxu0 %v12739_v26  ;;  %v906_v39 = vpop.permute.xlu1 %905  ;;  %v234_v10 = vsel %vm223_vm8, %v14962_v35, %v233_v11  ;;  %v14451_v3 = vpack.c.bf16 %v14693_v13, %v14703_v15 }
  0xf3   :  { %v914_v1 = vrot.slane %v906_v39, 4  ;;  %v898_v4 = vpop.permute.xlu0 %897  ;;  %v228_v45 = vsel %vm223_vm8, %v14969_v51, %v227_v33  ;;  %v14450_v51 = vpack.c.bf16 %v14688_v12, %v14698_v14 }
  0xf4   :  { %1434 = vmatpush1.bf16.msra.mxu0 %v12738_v42  ;;  %v910_v28 = vrot.slane %v898_v4, 4  ;;  %v12732_v38 = vcombine.low %v228_v45, %v234_v10  ;;  %v12733_v23 = vcombine.high %v228_v45, %v234_v10 }
  0xf5   :  { %v926_v43 = vsel %vm221_vm1, %v913_v50, %v914_v1 }
  0xf6   :  { %v920_v35 = vsel %vm221_vm1, %v909_v0, %v910_v28  ;;  %1435 = vmatprep.subr.bf16.mxu0 %v12733_v23  ;;  %v927_v27 = vsel %vm916_vm9, %v14998_v29, %v926_v43 }
  0xf7   :  { %v921_v5 = vsel %vm916_vm9, %v15008_v61, %v920_v35 }
  0xf8   :  { %1436 = vmatpush1.bf16.msra.mxu0 %v12732_v38  ;;  %v12775_v50 = vcombine.high %v921_v5, %v927_v27  ;;  %v12774_v13 = vcombine.low %v921_v5, %v927_v27 }
  0xf9   :  { %1437 = vmatprep.subr.bf16.mxu0 %v14451_v3 }
  0xfc   :  { %1438 = vmatpush1.bf16.msra.mxu0 %v14450_v51 }
  0xfd   :  { %1453 = vmatprep.subr.bf16.mxu0 %v12775_v50 }
  0xff   :  { %v15119_v12 = vpop.permute.xlu1 %1019 }
 0x100   :  { %1454 = vmatpush2.bf16.msra.mxu0 %v12774_v13  ;;  %v15121_v14 = vpop.permute.xlu0 %1014 }
 0x103   :  { %1456 = vmatmul.mubr.bf16.vlgmr.msra.gmra.mxu0 %v15003_v54  ;;  %v15123_v15 = vpop.permute.xlu1 %1004 }
 0x104   :  { %12781 = vmatprep.mubr.msk.bf16.mxu0 %vm1310_vm0, %v15015_v49  ;;  %v15126_v8 = vpop.permute.xlu0 %1009 }
 0x10b   :  { %1466 = vmatmul.mubr.bf16.gmra.mxu0 %v15038_v46 }
 0x19a   :  { %v1351_v29 = vpop.f32.mrf.mxu0 }
 0x19b   :  { %v1352_v61 = vadd.f32 %v1351_v29, %v15123_v15 }
 0x19c   :  { %v1353_v0 = vpop.f32.mrf.mxu0 }
 0x19d   :  { %v1354_v60 = vadd.f32 %v1353_v0, %v15123_v15  ;;  %vm1476_vm10 = vcmp.ge.f32.partialorder %v1352_v61, 0.0  ;;  %v1500_v54 = vmul.f32 0.2, %v1352_v61 }
 0x19e   :  { %v1355_v55 = vpop.f32.mrf.mxu0 }
 0x19f   :  { %vm1477_vm11 = vcmp.ge.f32.partialorder %v1354_v60, 0.0  ;;  %v1501_v49 = vmul.f32 0.2, %v1354_v60  ;;  %v15129_v46 = vsel %vm1476_vm10, %v1352_v61, %v1500_v54  ;;  %v1356_v57 = vadd.f32 %v1355_v55, %v15126_v8 }
 0x1a0   :  { %v1357_v47 = vpop.f32.mrf.mxu0 }
 0x1a1   :  { %v15132_v52 = vsel %vm1477_vm11, %v1354_v60, %v1501_v49  ;;  %v1358_v2 = vadd.f32 %v1357_v47, %v15126_v8  ;;  %vm1482_vm12 = vcmp.ge.f32.partialorder %v1356_v57, 0.0  ;;  %v1506_v56 = vmul.f32 0.2, %v1356_v57 }
 0x1a2   :  { %v15137_v24 = vpack.c.bf16 %v15132_v52, %v15129_v46  ;;  %v1361_v44 = vpop.f32.mrf.mxu0  ;;  %v1404_v41 = vpop.f32.mrf.mxu1 }
 0x1a3   :  { %v1507_v48 = vmul.f32 0.2, %v1358_v2  ;;  %v15139_v18 = vsel %vm1482_vm12, %v1356_v57, %v1506_v56  ;;  %v1362_v25 = vadd.f32 %v1361_v44, %v15121_v14  ;;  %vm1483_vm13 = vcmp.ge.f32.partialorder %v1358_v2, 0.0 }
 0x1a4   :  { %v1405_v58 = vadd.f32 %v1404_v41, %v15123_v15  ;;  %v1363_v36 = vpop.f32.mrf.mxu0  ;;  %2172 = vrot.lane.b32.xlu1 %v15137_v24, %s14554_s25  ;;  %v1406_v40 = vpop.f32.mrf.mxu1 }
 0x1a5   :  { %vm1488_vm14 = vcmp.ge.f32.partialorder %v1362_v25, 0.0  ;;  %v1512_v34 = vmul.f32 0.2, %v1362_v25  ;;  %v1364_v37 = vadd.f32 %v1363_v36, %v15121_v14  ;;  %v1407_v53 = vadd.f32 %v1406_v40, %v15123_v15 }
 0x1a6   :  { %vm1478_vm15 = vcmp.ge.f32.partialorder %v1405_v58, 0.0  ;;  %v1502_v59 = vmul.f32 0.2, %v1405_v58  ;;  %v1365_v21 = vpop.f32.mrf.mxu0  ;;  %v1408_v31 = vpop.f32.mrf.mxu1  ;;  %v15149_v16 = vsel %vm1483_vm13, %v1358_v2, %v1507_v48 }
 0x1a7   :  { %vm1489_vm0 = vcmp.ge.f32.partialorder %v1364_v37, 0.0  ;;  %v1513_v30 = vmul.f32 0.2, %v1364_v37  ;;  %v1366_v6 = vadd.f32 %v1365_v21, %v15119_v12  ;;  %v15152_v20 = vsel %vm1488_vm14, %v1362_v25, %v1512_v34 }
 0x1a8   :  { %vm1479_vm10 = vcmp.ge.f32.partialorder %v1407_v53, 0.0  ;;  %v1503_v17 = vmul.f32 0.2, %v1407_v53  ;;  %v1409_v63 = vadd.f32 %v1408_v31, %v15126_v8  ;;  %v1367_v9 = vpop.f32.mrf.mxu0  ;;  %1976 = vrot.lane.b32.xlu1 %v15137_v24, %s14555_s26  ;;  %v1410_v22 = vpop.f32.mrf.mxu1  ;;  %v15158_v7 = vsel %vm1478_vm15, %v1405_v58, %v1502_v59 }
 0x1a9   :  { %20688 = vst [vmem:[#allocation5_spill] sm:$0xff] %v15158_v7  ;;  %vm1494_vm11 = vcmp.ge.f32.partialorder %v1366_v6, 0.0  ;;  %v1518_v42 = vmul.f32 0.2, %v1366_v6  ;;  %v1368_v26 = vadd.f32 %v1367_v9, %v15119_v12  ;;  %v15161_v11 = vsel %vm1489_vm0, %v1364_v37, %v1513_v30 }
 0x1aa   :  { %v15163_v33 = vsel %vm1479_vm10, %v1407_v53, %v1503_v17  ;;  %vm1484_vm12 = vcmp.ge.f32.partialorder %v1409_v63, 0.0  ;;  %v1508_v39 = vmul.f32 0.2, %v1409_v63  ;;  %v1414_v10 = vpop.f32.mrf.mxu1  ;;  %v1411_v23 = vadd.f32 %v1410_v22, %v15126_v8 }
 0x1ab   :  { %20689 = vst [vmem:[#allocation6_spill] sm:$0xff] %v15163_v33  ;;  %v15167_v1 = vpack.c.bf16 %v15163_v33, %v15158_v7  ;;  %v15169_v4 = vsel %vm1494_vm11, %v1366_v6, %v1518_v42  ;;  %vm1495_vm13 = vcmp.ge.f32.partialorder %v1368_v26, 0.0  ;;  %v1519_v45 = vmul.f32 0.2, %v1368_v26 }
 0x1ac   :  { %v15173_v38 = vsel %vm1484_vm12, %v1409_v63, %v1508_v39  ;;  %v1415_v43 = vadd.f32 %v1414_v10, %v15121_v14  ;;  %1780 = vrot.lane.b32.xlu1 %v15137_v24, %s14556_s27  ;;  %v1416_v3 = vpop.f32.mrf.mxu1  ;;  %vm1485_vm14 = vcmp.ge.f32.partialorder %v1411_v23, 0.0  ;;  %v1509_v50 = vmul.f32 0.2, %v1411_v23 }
 0x1ad   :  { %20690 = vst [vmem:[#allocation7_spill] sm:$0xff] %v15173_v38  ;;  %v15181_v51 = vsel %vm1495_vm13, %v1368_v26, %v1519_v45  ;;  %v1417_v5 = vadd.f32 %v1416_v3, %v15121_v14  ;;  %2174 = vrot.lane.b32.xlu0 %v15167_v1, %s14554_s25  ;;  %v15226_v36 = vpack.c.bf16 %v15149_v16, %v15139_v18 }
 0x1ae   :  { %v1418_v13 = vpop.f32.mrf.mxu1  ;;  %vm1490_vm15 = vcmp.ge.f32.partialorder %v1415_v43, 0.0  ;;  %v1514_v29 = vmul.f32 0.2, %v1415_v43  ;;  %v15189_v0 = vsel %vm1485_vm14, %v1411_v23, %v1509_v50 }
 0x1af   :  { %v1419_v61 = vadd.f32 %v1418_v13, %v15119_v12  ;;  %20691 = vst [vmem:[#allocation8_spill] sm:$0xff] %v15189_v0  ;;  %v1515_v60 = vmul.f32 0.2, %v1417_v5  ;;  %vm1491_vm0 = vcmp.ge.f32.partialorder %v1417_v5, 0.0  ;;  %v15240_v53 = vpack.c.bf16 %v15189_v0, %v15173_v38 }
 0x1b0   :  { %2956 = vrot.lane.b32.xlu1 %v15137_v24, %s14550_s14  ;;  %v1420_v54 = vpop.f32.mrf.mxu1  ;;  %v15197_v49 = vsel %vm1490_vm15, %v1415_v43, %v1514_v29 }
 0x1b1   :  { %vm1496_vm10 = vcmp.ge.f32.partialorder %v1419_v61, 0.0  ;;  %1978 = vrot.lane.b32.xlu0 %v15167_v1, %s14555_s26  ;;  %20692 = vst [vmem:[#allocation9_spill] sm:$0xff] %v15197_v49  ;;  %v1520_v57 = vmul.f32 0.2, %v1419_v61  ;;  %v1421_v47 = vadd.f32 %v1420_v54, %v15119_v12  ;;  %v15202_v56 = vsel %vm1491_vm0, %v1417_v5, %v1515_v60 }
 0x1b2   :  { %20693 = vst [vmem:[#allocation10_spill] sm:$0xff] %v15202_v56 }
 0x1b3   :  { %v15204_v44 = vsel %vm1496_vm10, %v1419_v61, %v1520_v57  ;;  %vm1497_vm11 = vcmp.ge.f32.partialorder %v1421_v47, 0.0  ;;  %v1521_v41 = vmul.f32 0.2, %v1421_v47 }
 0x1b4   :  { %20694 = vst [vmem:[#allocation11_spill] sm:$0xff] %v15204_v44  ;;  %2760 = vrot.lane.b32.xlu1 %v15137_v24, %s14551_s15 }
 0x1b5   :  { %1782 = vrot.lane.b32.xlu0 %v15167_v1, %s14556_s27  ;;  %v15212_v25 = vsel %vm1497_vm11, %v1421_v47, %v1521_v41 }
 0x1b6   :  { %20695 = vst [vmem:[#allocation12_spill] sm:$0xff] %v15212_v25 }
 0x1b8   :  { %2564 = vrot.lane.b32.xlu1 %v15137_v24, %s14552_s24 }
 0x1b9   :  { %2958 = vrot.lane.b32.xlu0 %v15167_v1, %s14550_s14 }
 0x1bc   :  { %2368 = vrot.lane.b32.xlu1 %v15137_v24, %s14553_s0 }
 0x1bd   :  { %2762 = vrot.lane.b32.xlu0 %v15167_v1, %s14551_s15 }
 0x1c0   :  { %2180 = vrot.lane.b32.xlu1 %v15226_v36, %s14554_s25 }
 0x1c1   :  { %2566 = vrot.lane.b32.xlu0 %v15167_v1, %s14552_s24 }
 0x1c3   :  { %v1457_v40 = vpop.f32.mrf.mxu0 }
 0x1c4   :  { %v1458_v34 = vadd.f32 %v1457_v40, %v15123_v15  ;;  %1984 = vrot.lane.b32.xlu1 %v15226_v36, %s14555_s26 }
 0x1c5   :  { %2370 = vrot.lane.b32.xlu0 %v15167_v1, %s14553_s0  ;;  %v1459_v37 = vpop.f32.mrf.mxu0 }
 0x1c6   :  { %v1460_v59 = vadd.f32 %v1459_v37, %v15123_v15  ;;  %v1504_v21 = vmul.f32 0.2, %v1458_v34  ;;  %vm1480_vm12 = vcmp.ge.f32.partialorder %v1458_v34, 0.0  ;;  %v13892_v37 = vpack.c.bf16 %v15161_v11, %v15152_v20 }
 0x1c7   :  { %v1461_v31 = vpop.f32.mrf.mxu0 }
 0x1c8   :  { %v1462_v30 = vadd.f32 %v1461_v31, %v15126_v8  ;;  %1788 = vrot.lane.b32.xlu1 %v15226_v36, %s14556_s27  ;;  %v1505_v17 = vmul.f32 0.2, %v1460_v59  ;;  %v15248_v9 = vsel %vm1480_vm12, %v1458_v34, %v1504_v21  ;;  %vm1481_vm14 = vcmp.ge.f32.partialorder %v1460_v59, 0.0 }
 0x1c9   :  { %v1463_v6 = vpop.f32.mrf.mxu0  ;;  %2182 = vrot.lane.b32.xlu0 %v15240_v53, %s14554_s25  ;;  %20696 = vst [vmem:[#allocation13_spill] sm:$0xff] %v15248_v9  ;;  %v13895_v21 = vpack.c.bf16 %v15181_v51, %v15169_v4  ;;  %v13896_v31 = vpack.c.bf16 %v15212_v25, %v15204_v44 }
 0x1ca   :  { %vm1486_vm13 = vcmp.ge.f32.partialorder %v1462_v30, 0.0  ;;  %v1510_v63 = vmul.f32 0.2, %v1462_v30  ;;  %v1464_v15 = vadd.f32 %v1463_v6, %v15126_v8  ;;  %v15259_v8 = vsel %vm1481_vm14, %v1460_v59, %v1505_v17 }
 0x1cb   :  { %v1467_v22 = vpop.f32.mrf.mxu0  ;;  %20698 = vst [vmem:[#allocation15_spill] sm:$0xff] %v15259_v8  ;;  %v13893_v59 = vpack.c.bf16 %v15202_v56, %v15197_v49 }
 0x1cc   :  { %v15250_v42 = vsel %vm1486_vm13, %v1462_v30, %v1510_v63  ;;  %vm1487_vm15 = vcmp.ge.f32.partialorder %v1464_v15, 0.0  ;;  %v1511_v26 = vmul.f32 0.2, %v1464_v15  ;;  %v1468_v39 = vadd.f32 %v1467_v22, %v15121_v14  ;;  %2964 = vrot.lane.b32.xlu1 %v15226_v36, %s14550_s14 }
 0x1cd   :  { %20697 = vst [vmem:[#allocation14_spill] sm:$0xff] %v15250_v42  ;;  %v1469_v45 = vpop.f32.mrf.mxu0  ;;  %1986 = vrot.lane.b32.xlu0 %v15240_v53, %s14555_s26  ;;  %v15332_v30 = vpack.c.bf16 %v15259_v8, %v15248_v9  ;;  %vm3958_vm13 = vcmask 261120  }
 0x1ce   :  { %v15261_v23 = vsel %vm1487_vm15, %v1464_v15, %v1511_v26  ;;  %v1470_v43 = vadd.f32 %v1469_v45, %v15121_v14  ;;  %v1516_v50 = vmul.f32 0.2, %v1468_v39  ;;  %vm1492_vm0 = vcmp.ge.f32.partialorder %v1468_v39, 0.0 }
 0x1cf   :  { %20699 = vst [vmem:[#allocation16_spill] sm:$0xff] %v15261_v23  ;;  %v1471_v3 = vpop.f32.mrf.mxu0  ;;  %v15346_v63 = vpack.c.bf16 %v15261_v23, %v15250_v42  ;;  %v20709_v42 = vmov 0.0|0.0  }
 0x1d0   :  { %v1472_v13 = vadd.f32 %v1471_v3, %v15119_v12  ;;  %2768 = vrot.lane.b32.xlu1 %v15226_v36, %s14551_s15  ;;  %v1517_v61 = vmul.f32 0.2, %v1470_v43  ;;  %vm1493_vm11 = vcmp.ge.f32.partialorder %v1470_v43, 0.0  ;;  %v15272_v54 = vsel %vm1492_vm0, %v1468_v39, %v1516_v50 }
 0x1d1   :  { %v1473_v29 = vpop.f32.mrf.mxu0  ;;  %1790 = vrot.lane.b32.xlu0 %v15240_v53, %s14556_s27  ;;  %20700 = vst [vmem:[#allocation17_spill] sm:$0xff] %v15272_v54 }
 0x1d2   :  { %vm1498_vm10 = vcmp.ge.f32.partialorder %v1472_v13, 0.0  ;;  %v1522_v60 = vmul.f32 0.2, %v1472_v13  ;;  %v1474_v14 = vadd.f32 %v1473_v29, %v15119_v12  ;;  %v15282_v40 = vsel %vm1493_vm11, %v1470_v43, %v1517_v61 }
 0x1d3   :  { %20702 = vst [vmem:[#allocation19_spill] sm:$0xff] %v15282_v40  ;;  %v13894_v26 = vpack.c.bf16 %v15282_v40, %v15272_v54 }
 0x1d4   :  { %v15274_v57 = vsel %vm1498_vm10, %v1472_v13, %v1522_v60  ;;  %vm1499_vm12 = vcmp.ge.f32.partialorder %v1474_v14, 0.0  ;;  %v1523_v47 = vmul.f32 0.2, %v1474_v14  ;;  %2572 = vrot.lane.b32.xlu1 %v15226_v36, %s14552_s24 }
 0x1d5   :  { %20701 = vst [vmem:[#allocation18_spill] sm:$0xff] %v15274_v57  ;;  %2966 = vrot.lane.b32.xlu0 %v15240_v53, %s14550_s14 }
 0x1d6   :  { %v15284_v34 = vsel %vm1499_vm12, %v1474_v14, %v1523_v47 }
 0x1d7   :  { %20703 = vst [vmem:[#allocation20_spill] sm:$0xff] %v15284_v34  ;;  %v13897_v13 = vpack.c.bf16 %v15284_v34, %v15274_v57 }
 0x1d8   :  { %2376 = vrot.lane.b32.xlu1 %v15226_v36, %s14553_s0 }
 0x1d9   :  { %2770 = vrot.lane.b32.xlu0 %v15240_v53, %s14551_s15 }
 0x1dc   :  { %2188 = vrot.lane.b32.xlu1 %v13892_v37, %s14554_s25 }
 0x1dd   :  { %2574 = vrot.lane.b32.xlu0 %v15240_v53, %s14552_s24 }
 0x1e0   :  { %1992 = vrot.lane.b32.xlu1 %v13892_v37, %s14555_s26 }
 0x1e1   :  { %2378 = vrot.lane.b32.xlu0 %v15240_v53, %s14553_s0 }
 0x1e4   :  { %1796 = vrot.lane.b32.xlu1 %v13892_v37, %s14556_s27 }
 0x1e5   :  { %2190 = vrot.lane.b32.xlu0 %v13893_v59, %s14554_s25 }
 0x1e8   :  { %2972 = vrot.lane.b32.xlu1 %v13892_v37, %s14550_s14 }
 0x1e9   :  { %1994 = vrot.lane.b32.xlu0 %v13893_v59, %s14555_s26 }
 0x1ec   :  { %2776 = vrot.lane.b32.xlu1 %v13892_v37, %s14551_s15 }
 0x1ed   :  { %1798 = vrot.lane.b32.xlu0 %v13893_v59, %s14556_s27 }
 0x1f0   :  { %2580 = vrot.lane.b32.xlu1 %v13892_v37, %s14552_s24 }
 0x1f1   :  { %2974 = vrot.lane.b32.xlu0 %v13893_v59, %s14550_s14 }
 0x1f4   :  { %2384 = vrot.lane.b32.xlu1 %v13892_v37, %s14553_s0 }
 0x1f5   :  { %2778 = vrot.lane.b32.xlu0 %v13893_v59, %s14551_s15 }
 0x1f8   :  { %2196 = vrot.lane.b32.xlu1 %v13895_v21, %s14554_s25 }
 0x1f9   :  { %2582 = vrot.lane.b32.xlu0 %v13893_v59, %s14552_s24 }
 0x1fc   :  { %2000 = vrot.lane.b32.xlu1 %v13895_v21, %s14555_s26 }
 0x1fd   :  { %2386 = vrot.lane.b32.xlu0 %v13893_v59, %s14553_s0 }
 0x200   :  { %1804 = vrot.lane.b32.xlu1 %v13895_v21, %s14556_s27 }
 0x201   :  { %2198 = vrot.lane.b32.xlu0 %v13896_v31, %s14554_s25 }
 0x204   :  { %2980 = vrot.lane.b32.xlu1 %v13895_v21, %s14550_s14 }
 0x205   :  { %2002 = vrot.lane.b32.xlu0 %v13896_v31, %s14555_s26 }
 0x208   :  { %2784 = vrot.lane.b32.xlu1 %v13895_v21, %s14551_s15 }
 0x209   :  { %1806 = vrot.lane.b32.xlu0 %v13896_v31, %s14556_s27 }
 0x20c   :  { %2588 = vrot.lane.b32.xlu1 %v13895_v21, %s14552_s24 }
 0x20d   :  { %2982 = vrot.lane.b32.xlu0 %v13896_v31, %s14550_s14 }
 0x210   :  { %2392 = vrot.lane.b32.xlu1 %v13895_v21, %s14553_s0 }
 0x211   :  { %2786 = vrot.lane.b32.xlu0 %v13896_v31, %s14551_s15 }
 0x214   :  { %2176 = vrot.lane.b32.xlu1 %v15332_v30, %s14554_s25 }
 0x215   :  { %2590 = vrot.lane.b32.xlu0 %v13896_v31, %s14552_s24 }
 0x216   :  { %v15337_v6 = vpop.permute.xlu1 %2172 }
 0x217   :  { %v2204_v34 = vrot.slane %v15337_v6, 4 }
 0x218   :  { %1980 = vrot.lane.b32.xlu1 %v15332_v30, %s14555_s26 }
 0x219   :  { %2394 = vrot.lane.b32.xlu0 %v13896_v31, %s14553_s0 }
 0x21a   :  { %v15342_v17 = vpop.permute.xlu1 %1976 }
 0x21c   :  { %1784 = vrot.lane.b32.xlu1 %v15332_v30, %s14556_s27 }
 0x21d   :  { %2184 = vrot.lane.b32.xlu0 %v15346_v63, %s14554_s25 }
 0x21e   :  { %v15352_v15 = vpop.permute.xlu1 %1780 }
 0x21f   :  { %v15354_v22 = vpop.permute.xlu0 %2174 }
 0x220   :  { %2960 = vrot.lane.b32.xlu1 %v15332_v30, %s14550_s14 }
 0x221   :  { %1988 = vrot.lane.b32.xlu0 %v15346_v63, %s14555_s26 }
 0x222   :  { %v15362_v39 = vpop.permute.xlu1 %2956 }
 0x223   :  { %v15364_v45 = vpop.permute.xlu0 %1978 }
 0x224   :  { %2192 = vrot.lane.b32.xlu1 %v13894_v26, %s14554_s25 }
 0x225   :  { %1792 = vrot.lane.b32.xlu0 %v15346_v63, %s14556_s27 }
 0x226   :  { %v15369_v43 = vpop.permute.xlu1 %2760 }
 0x227   :  { %v15371_v3 = vpop.permute.xlu0 %1782 }
 0x228   :  { %3168 = vrot.lane.b32.xlu1 %v13892_v37, %s14557_s30 }
 0x229   :  { %2968 = vrot.lane.b32.xlu0 %v15346_v63, %s14550_s14 }
 0x22a   :  { %v15376_v50 = vpop.permute.xlu1 %2564 }
 0x22b   :  { %v15380_v29 = vpop.permute.xlu0 %2958 }
 0x22c   :  { %1996 = vrot.lane.b32.xlu1 %v13894_v26, %s14555_s26 }
 0x22d   :  { %2200 = vrot.lane.b32.xlu0 %v13897_v13, %s14554_s25 }
 0x22e   :  { %v15384_v61 = vpop.permute.xlu1 %2368 }
 0x22f   :  { %v15386_v60 = vpop.permute.xlu0 %2762 }
 0x230   :  { %1800 = vrot.lane.b32.xlu1 %v13894_v26, %s14556_s27 }
 0x231   :  { %3170 = vrot.lane.b32.xlu0 %v13893_v59, %s14557_s30  ;;  %v14521_v59 = vld [vmem:[%s20317_s3 + $0x4] ss:$12 sps:$4 sm:$0xff]  }
 0x232   :  { %v15390_v14 = vpop.permute.xlu1 %2180  ;;  %3997 = vmatprep.mubr.bf16.mxu1 %v14521_v59  ;;  %4103 = vmatprep.mubr.bf16.mxu0 %v14521_v59 }
 0x233   :  { %v15392_v47 = vpop.permute.xlu0 %2566 }
 0x234   :  { %2976 = vrot.lane.b32.xlu1 %v13894_v26, %s14550_s14 }
 0x235   :  { %2004 = vrot.lane.b32.xlu0 %v13897_v13, %s14555_s26 }
 0x236   :  { %v15396_v37 = vpop.permute.xlu1 %1984 }
 0x237   :  { %v15398_v10 = vpop.permute.xlu0 %2370 }
 0x238   :  { %20704 = vst [vmem:[#allocation21_spill] sm:$0xff] %v15398_v10  ;;  %2780 = vrot.lane.b32.xlu1 %v13894_v26, %s14551_s15 }
 0x239   :  { %3178 = vrot.lane.b32.xlu0 %v13896_v31, %s14557_s30 }
 0x23a   :  { %v15402_v5 = vpop.permute.xlu1 %1788 }
 0x23b   :  { %v15407_v41 = vpop.permute.xlu0 %2182 }
 0x23c   :  { %20705 = vst [vmem:[#allocation22_spill] sm:$0xff] %v15407_v41  ;;  %3176 = vrot.lane.b32.xlu1 %v13895_v21, %s14557_s30  ;;  %v20348_v57 = vrot.slane %v15407_v41, 4 }
 0x23d   :  { %1808 = vrot.lane.b32.xlu0 %v13897_v13, %s14556_s27 }
 0x23e   :  { %v15411_v12 = vpop.permute.xlu1 %2964 }
 0x23f   :  { %v15413_v62 = vpop.permute.xlu0 %1986 }
 0x240   :  { %2764 = vrot.lane.b32.xlu1 %v15332_v30, %s14551_s15 }
 0x241   :  { %2772 = vrot.lane.b32.xlu0 %v15346_v63, %s14551_s15 }
 0x242   :  { %v15419_v31 = vpop.permute.xlu1 %2768 }
 0x243   :  { %v15421_v35 = vpop.permute.xlu0 %1790 }
 0x244   :  { %3152 = vrot.lane.b32.xlu1 %v15137_v24, %s14557_s30 }
 0x245   :  { %3154 = vrot.lane.b32.xlu0 %v15167_v1, %s14557_s30 }
 0x246   :  { %v15427_v21 = vpop.permute.xlu1 %2572 }
 0x247   :  { %v15429_v59 = vpop.permute.xlu0 %2966 }
 0x248   :  { %3160 = vrot.lane.b32.xlu1 %v15226_v36, %s14557_s30 }
 0x249   :  { %3162 = vrot.lane.b32.xlu0 %v15240_v53, %s14557_s30 }
 0x24a   :  { %v15435_v2 = vpop.permute.xlu1 %2376 }
 0x24b   :  { %20706 = vst [vmem:[#allocation23_spill] sm:$0xff] %v15435_v2  ;;  %v15437_v48 = vpop.permute.xlu0 %2770 }
 0x24c   :  { %2584 = vrot.lane.b32.xlu1 %v13894_v26, %s14552_s24 }
 0x24d   :  { %2984 = vrot.lane.b32.xlu0 %v13897_v13, %s14550_s14 }
 0x24e   :  { %v2189_v24 = vpop.permute.xlu1 %2188 }
 0x24f   :  { %v15441_v1 = vpop.permute.xlu0 %2574  ;;  %v2212_v38 = vrot.slane %v2189_v24, 4 }
 0x250   :  { %2568 = vrot.lane.b32.xlu1 %v15332_v30, %s14552_s24 }
 0x251   :  { %2576 = vrot.lane.b32.xlu0 %v15346_v63, %s14552_s24 }
 0x252   :  { %v15447_v36 = vpop.permute.xlu1 %1992 }
 0x253   :  { %v15449_v53 = vpop.permute.xlu0 %2378 }
 0x254   :  { %20707 = vst [vmem:[#allocation24_spill] sm:$0xff] %v15449_v53  ;;  %2388 = vrot.lane.b32.xlu1 %v13894_v26, %s14553_s0 }
 0x255   :  { %2788 = vrot.lane.b32.xlu0 %v13897_v13, %s14551_s15 }
 0x256   :  { %v15453_v58 = vpop.permute.xlu1 %1796 }
 0x257   :  { %v15455_v32 = vpop.permute.xlu0 %2190 }
 0x258   :  { %20708 = vst [vmem:[#allocation25_spill] sm:$0xff] %v15455_v32  ;;  %3172 = vrot.lane.b32.xlu1 %v13894_v26, %s14557_s30  ;;  %v20713_v25 = vrot.slane %v15455_v32, 4 }
 0x259   :  { %2380 = vrot.lane.b32.xlu0 %v15346_v63, %s14553_s0 }
 0x25a   :  { %v15460_v27 = vpop.permute.xlu1 %2972  ;;  %v2232_v7 = vsel %vm221_vm1, %v2212_v38, %v20713_v25  ;;  %v20359_v38 = vrot.slane %v15413_v62, 4  ;;  %v2016_v25 = vrot.slane %v15447_v36, 4 }
 0x25b   :  { %v15462_v28 = vpop.permute.xlu0 %1994 }
 0x25c   :  { %2372 = vrot.lane.b32.xlu1 %v15332_v30, %s14553_s0 }
 0x25d   :  { %2592 = vrot.lane.b32.xlu0 %v13897_v13, %s14552_s24 }
 0x25e   :  { %v15467_v55 = vpop.permute.xlu1 %2776 }
 0x25f   :  { %v15469_v19 = vpop.permute.xlu0 %1798 }
 0x260   :  { %3156 = vrot.lane.b32.xlu1 %v15332_v30, %s14557_s30 }
 0x261   :  { %2396 = vrot.lane.b32.xlu0 %v13897_v13, %s14553_s0 }
 0x262   :  { %v15474_v26 = vpop.permute.xlu1 %2580 }
 0x263   :  { %v15476_v9 = vpop.permute.xlu0 %2974 }
 0x264   :  { %2194 = vrot.lane.b32.xlu1 %v20709_v42, %s14554_s25 }
 0x265   :  { %3180 = vrot.lane.b32.xlu0 %v13897_v13, %s14557_s30 }
 0x266   :  { %v15481_v8 = vpop.permute.xlu1 %2384 }
 0x267   :  { %20710 = vst [vmem:[#allocation26_spill] sm:$0xff] %v15481_v8  ;;  %v15483_v23 = vpop.permute.xlu0 %2778  ;;  %v2233_v8 = vsel %vm421_vm6, %v2189_v24, %v2232_v7  ;;  %v2012_v7 = vrot.slane %v15396_v37, 4 }
 0x268   :  { %2178 = vrot.lane.b32.xlu1 %v20709_v42, %s14554_s25 }
 0x269   :  { %3164 = vrot.lane.b32.xlu0 %v15346_v63, %s14557_s30  ;;  %v2208_v63 = vrot.slane %v15390_v14, 4 }
 0x26a   :  { %v2197_v30 = vpop.permute.xlu1 %2196 }
 0x26b   :  { %v15489_v54 = vpop.permute.xlu0 %2582  ;;  %v2226_v49 = vsel %vm221_vm1, %v2208_v63, %v20348_v57  ;;  %v2216_v44 = vrot.slane %v2197_v30, 4  ;;  %v20714_v57 = vrot.slane %v15354_v22, 4 }
 0x26c   :  { %1998 = vrot.lane.b32.xlu1 %v20709_v42, %s14555_s26  ;;  %v2227_v53 = vsel %vm421_vm6, %v15390_v14, %v2226_v49 }
 0x26d   :  { %2202 = vrot.lane.b32.xlu0 %v20709_v42, %s14554_s25 }
 0x26e   :  { %v2001_v13 = vpop.permute.xlu1 %2000 }
 0x26f   :  { %v15496_v40 = vpop.permute.xlu0 %2386 }
 0x270   :  { %20711 = vst [vmem:[#allocation27_spill] sm:$0xff] %v15496_v40  ;;  %1982 = vrot.lane.b32.xlu1 %v20709_v42, %s14555_s26  ;;  %v2220_v40 = vsel %vm221_vm1, %v2204_v34, %v20714_v57 }
 0x271   :  { %2186 = vrot.lane.b32.xlu0 %v20709_v42, %s14554_s25  ;;  %v2221_v14 = vsel %vm421_vm6, %v15337_v6, %v2220_v40  ;;  %v2008_v40 = vrot.slane %v15342_v17, 4 }
 0x272   :  { %v15505_v33 = vpop.permute.xlu1 %1804 }
 0x273   :  { %v15507_v0 = vpop.permute.xlu0 %2198 }
 0x274   :  { %20712 = vst [vmem:[#allocation28_spill] sm:$0xff] %v15507_v0  ;;  %v20357_v56 = vrot.slane %v15507_v0, 4  ;;  %1802 = vrot.lane.b32.xlu1 %v20709_v42, %s14556_s27  ;;  %v2020_v0 = vrot.slane %v2001_v13, 4 }
 0x275   :  { %2006 = vrot.lane.b32.xlu0 %v20709_v42, %s14555_s26 }
 0x276   :  { %v15522_v2 = vpop.permute.xlu1 %2980  ;;  %v2238_v63 = vsel %vm221_vm1, %v2216_v44, %v20357_v56 }
 0x277   :  { %v15534_v41 = vpop.permute.xlu0 %2002  ;;  %v2239_v32 = vsel %vm421_vm6, %v2197_v30, %v2238_v63  ;;  %v12965_v30 = vcombine.high %v2221_v14, %v2227_v53  ;;  %v20715_v63 = vrot.slane %v15462_v28, 4 }
 0x278   :  { %v20358_v44 = vrot.slane %v15534_v41, 4  ;;  %1786 = vrot.lane.b32.xlu1 %v20709_v42, %s14556_s27  ;;  %v12970_v57 = vcombine.low %v2233_v8, %v2239_v32  ;;  %v12971_v34 = vcombine.high %v2233_v8, %v2239_v32 }
 0x279   :  { %1990 = vrot.lane.b32.xlu0 %v20709_v42, %s14555_s26  ;;  %v2036_v56 = vsel %vm221_vm1, %v2016_v25, %v20715_v63  ;;  %v2030_v25 = vsel %vm221_vm1, %v2012_v7, %v20359_v38 }
 0x27a   :  { %3965 = vmatprep.subr.bf16.mxu1 %v12971_v34  ;;  %v15547_v24 = vpop.permute.xlu1 %2784  ;;  %v2042_v32 = vsel %vm221_vm1, %v2020_v0, %v20358_v44  ;;  %v12964_v34 = vcombine.low %v2221_v14, %v2227_v53  ;;  %v2037_v0 = vsel %vm322_vm7, %v15447_v36, %v2036_v56  ;;  %v2031_v53 = vsel %vm322_vm7, %v15396_v37, %v2030_v25 }
 0x27b   :  { %3966 = vmatpush1.bf16.msra.mxu1 %v12970_v57  ;;  %v15555_v8 = vpop.permute.xlu0 %1806  ;;  %v2043_v49 = vsel %vm322_vm7, %v2001_v13, %v2042_v32  ;;  %v20366_v13 = vrot.slane %v15469_v19, 4  ;;  %v1824_v57 = vrot.slane %v15505_v33, 4  ;;  %v20716_v32 = vrot.slane %v15364_v45, 4 }
 0x27c   :  { %v20362_v6 = vrot.slane %v15555_v8, 4  ;;  %3967 = vmatprep.subr.bf16.mxu1 %v12965_v30  ;;  %2978 = vrot.lane.b32.xlu1 %v20709_v42, %s14550_s14  ;;  %v12959_v30 = vcombine.high %v2037_v0, %v2043_v49  ;;  %v20368_v14 = vrot.slane %v15421_v35, 4  ;;  %v1820_v56 = vrot.slane %v15453_v58, 4 }
 0x27d   :  { %1810 = vrot.lane.b32.xlu0 %v20709_v42, %s14556_s27  ;;  %v2024_v44 = vsel %vm221_vm1, %v2008_v40, %v20716_v32  ;;  %v12958_v38 = vcombine.low %v2037_v0, %v2043_v49  ;;  %v20361_v37 = vrot.slane %v15371_v3, 4  ;;  %v1816_v25 = vrot.slane %v15402_v5, 4 }
 0x27e   :  { %v15571_v63 = vpop.permute.xlu1 %2588  ;;  %v1846_v36 = vsel %vm221_vm1, %v1824_v57, %v20362_v6  ;;  %v2025_v40 = vsel %vm322_vm7, %v15342_v17, %v2024_v44  ;;  %v1840_v32 = vsel %vm221_vm1, %v1820_v56, %v20366_v13  ;;  %v1812_v0 = vrot.slane %v15352_v15, 4 }
 0x27f   :  { %3968 = vmatpush1.bf16.msra.mxu1 %v12964_v34  ;;  %v15576_v7 = vpop.permute.xlu0 %2982  ;;  %v1847_v49 = vsel %vm223_vm8, %v15505_v33, %v1846_v36  ;;  %v1834_v17 = vsel %vm221_vm1, %v1816_v25, %v20368_v14  ;;  %v12952_v44 = vcombine.low %v2025_v40, %v2031_v53  ;;  %v20721_v6 = vpack.c.bf16 %v15149_v16, %v15132_v52 }
 0x280   :  { %3969 = vmatprep.subr.bf16.mxu1 %v12959_v30  ;;  %2962 = vrot.lane.b32.xlu1 %v20709_v42, %s14550_s14  ;;  %v12953_v30 = vcombine.high %v2025_v40, %v2031_v53  ;;  %v1828_v36 = vsel %vm221_vm1, %v1812_v0, %v20361_v37  ;;  %v1835_v25 = vsel %vm223_vm8, %v15402_v5, %v1834_v17  ;;  %v20370_v52 = vrot.slane %v15437_v48, 4 }
 0x281   :  { %1794 = vrot.lane.b32.xlu0 %v20709_v42, %s14556_s27  ;;  %v20369_v16 = vrot.slane %v15483_v23, 4 }
 0x282   :  { %v15593_v34 = vpop.permute.xlu1 %2392 }
 0x283   :  { %3970 = vmatpush1.bf16.msra.mxu1 %v12958_v38  ;;  %v15598_v57 = vpop.permute.xlu0 %2786  ;;  %v1841_v38 = vsel %vm223_vm8, %v15453_v58, %v1840_v32  ;;  %v1829_v58 = vsel %vm223_vm8, %v15352_v15, %v1828_v36  ;;  %v3000_v15 = vrot.slane %v15522_v2, 4  ;;  %v2996_v36 = vrot.slane %v15460_v27, 4 }
 0x284   :  { %3971 = vmatprep.subr.bf16.mxu1 %v12953_v30  ;;  %2782 = vrot.lane.b32.xlu1 %v20709_v42, %s14551_s15  ;;  %v12947_v33 = vcombine.high %v1841_v38, %v1847_v49  ;;  %v12946_v53 = vcombine.low %v1841_v38, %v1847_v49  ;;  %v12941_v32 = vcombine.high %v1829_v58, %v1835_v25  ;;  %v20364_v49 = vrot.slane %v15476_v9, 4 }
 0x285   :  { %2986 = vrot.lane.b32.xlu0 %v20709_v42, %s14550_s14  ;;  %v12940_v5 = vcombine.low %v1829_v58, %v1835_v25  ;;  %v20363_v58 = vrot.slane %v15380_v29, 4  ;;  %v20367_v37 = vrot.slane %v15598_v57, 4 }
 0x286   :  { %v15612_v56 = vpop.permute.xlu1 %2176 }
 0x287   :  { %20717 = vst [vmem:[#allocation29_spill] sm:$0xff] %v15612_v56  ;;  %3972 = vmatpush1.bf16.msra.mxu1 %v12952_v44  ;;  %v15617_v30 = vpop.permute.xlu0 %2590  ;;  %v20360_v44 = vrot.slane %v15576_v7, 4 }
 0x288   :  { %3973 = vmatprep.subr.bf16.mxu1 %v12947_v33  ;;  %2766 = vrot.lane.b32.xlu1 %v20709_v42, %s14551_s15  ;;  %v20365_v33 = vrot.slane %v15429_v59, 4 }
 0x289   :  { %2970 = vrot.lane.b32.xlu0 %v20709_v42, %s14550_s14  ;;  %v3022_v25 = vsel %vm221_vm1, %v3000_v15, %v20360_v44 }
 0x28a   :  { %v15627_v40 = vpop.permute.xlu1 %1980  ;;  %v3023_v44 = vsel %vm817_vm2, %v15522_v2, %v3022_v25  ;;  %v2804_v2 = vrot.slane %v15547_v24, 4 }
 0x28b   :  { %3974 = vmatpush1.bf16.msra.mxu1 %v12946_v53  ;;  %v15629_v0 = vpop.permute.xlu0 %2394  ;;  %v20719_v53 = vpack.c.bf16 %v15181_v51, %v15161_v11  ;;  %v3016_v11 = vsel %vm221_vm1, %v2996_v36, %v20364_v49  ;;  %v2988_v51 = vrot.slane %v15362_v39, 4  ;;  %v2800_v49 = vrot.slane %v15467_v55, 4 }
 0x28c   :  { %3975 = vmatprep.subr.bf16.mxu1 %v12941_v32  ;;  %2586 = vrot.lane.b32.xlu1 %v20709_v42, %s14552_s24  ;;  %v2992_v32 = vrot.slane %v15411_v12, 4 }
 0x28d   :  { %2790 = vrot.lane.b32.xlu0 %v20709_v42, %s14551_s15 }
 0x28e   :  { %v15638_v17 = vpop.permute.xlu1 %1784  ;;  %v3010_v36 = vsel %vm221_vm1, %v2992_v32, %v20365_v33  ;;  %v20371_v32 = vrot.slane %v15386_v60, 4 }
 0x28f   :  { %3976 = vmatpush1.bf16.msra.mxu1 %v12940_v5  ;;  %v15640_v38 = vpop.permute.xlu0 %2184 }
 0x290   :  { %20718 = vst [vmem:[#allocation30_spill] sm:$0xff] %v15640_v38  ;;  %3977 = vmatprep.subr.bf16.mxu1 %v20719_v53  ;;  %2570 = vrot.lane.b32.xlu1 %v20709_v42, %s14552_s24  ;;  %v20720_v53 = vpack.c.bf16 %v15169_v4, %v15152_v20  ;;  %v3017_v20 = vsel %vm817_vm2, %v15460_v27, %v3016_v11 }
 0x291   :  { %2774 = vrot.lane.b32.xlu0 %v20709_v42, %s14551_s15  ;;  %v3004_v4 = vsel %vm221_vm1, %v2988_v51, %v20363_v58  ;;  %v13019_v25 = vcombine.high %v3017_v20, %v3023_v44  ;;  %v3011_v11 = vsel %vm817_vm2, %v15411_v12, %v3010_v36  ;;  %v20374_v51 = vrot.slane %v15392_v47, 4 }
 0x292   :  { %v15656_v5 = vpop.permute.xlu1 %2960  ;;  %v2796_v58 = vrot.slane %v15419_v31, 4  ;;  %v13018_v33 = vcombine.low %v3017_v20, %v3023_v44  ;;  %v3005_v12 = vsel %vm817_vm2, %v15362_v39, %v3004_v4  ;;  %v20373_v36 = vrot.slane %v15441_v1, 4 }
 0x293   :  { %3978 = vmatpush1.bf16.msra.mxu1 %v20720_v53  ;;  %v15665_v15 = vpop.permute.xlu0 %1988  ;;  %v20723_v53 = vpack.c.bf16 %v15139_v18, %v15129_v46  ;;  %v2826_v46 = vsel %vm221_vm1, %v2804_v2, %v20367_v37  ;;  %v2792_v18 = vrot.slane %v15369_v43, 4  ;;  %v13013_v13 = vcombine.high %v3005_v12, %v3011_v11 }
 0x294   :  { %3979 = vmatprep.subr.bf16.mxu1 %v20721_v6  ;;  %2390 = vrot.lane.b32.xlu1 %v20709_v42, %s14553_s0  ;;  %v2820_v2 = vsel %vm221_vm1, %v2800_v49, %v20369_v16  ;;  %v2814_v37 = vsel %vm221_vm1, %v2796_v58, %v20370_v52  ;;  %v20372_v20 = vrot.slane %v15617_v30, 4  ;;  %v2827_v39 = vsel %vm718_vm3, %v15547_v24, %v2826_v46 }
 0x295   :  { %2594 = vrot.lane.b32.xlu0 %v20709_v42, %s14552_s24  ;;  %v2808_v4 = vsel %vm221_vm1, %v2792_v18, %v20371_v32  ;;  %v2600_v49 = vrot.slane %v15427_v21, 4  ;;  %v2608_v24 = vrot.slane %v15571_v63, 4  ;;  %v13012_v46 = vcombine.low %v3005_v12, %v3011_v11 }
 0x296   :  { %v15688_v6 = vpop.permute.xlu1 %2192  ;;  %v2821_v18 = vsel %vm718_vm3, %v15467_v55, %v2820_v2  ;;  %v2815_v52 = vsel %vm718_vm3, %v15419_v31, %v2814_v37  ;;  %v2809_v55 = vsel %vm718_vm3, %v15369_v43, %v2808_v4  ;;  %v2604_v2 = vrot.slane %v15474_v26, 4 }
 0x297   :  { %20722 = vst [vmem:[#allocation31_spill] sm:$0xff] %v15688_v6  ;;  %3980 = vmatpush1.bf16.msra.mxu1 %v20723_v53  ;;  %v15694_v27 = vpop.permute.xlu0 %1792  ;;  %v2596_v53 = vrot.slane %v15376_v50, 4  ;;  %v20375_v58 = vrot.slane %v15688_v6, 4  ;;  %v13007_v16 = vcombine.high %v2821_v18, %v2827_v39  ;;  %v2618_v11 = vsel %vm221_vm1, %v2600_v49, %v20373_v36 }
 0x298   :  { %3981 = vmatprep.subr.bf16.mxu1 %v13019_v25  ;;  %3174 = vrot.lane.b32.xlu1 %v20709_v42, %s14557_s30  ;;  %v2630_v31 = vsel %vm221_vm1, %v2608_v24, %v20372_v20  ;;  %v20727_v24 = vrot.slane %v15640_v38, 4  ;;  %v20728_v20 = vld [vmem:[#allocation22_spill] sm:$0xff]  ;;  %v15785_v32 = vsel %vm619_vm4, %v15427_v21, %v2618_v11  ;;  %v20733_v21 = vrot.slane %v15354_v22, 4 }
 0x299   :  { %2578 = vrot.lane.b32.xlu0 %v20709_v42, %s14552_s24  ;;  %v20729_v36 = vrot.slane %v20728_v20, 4 }
 0x29a   :  { %v15713_v25 = vpop.permute.xlu1 %3168 }
 0x29b   :  { %3982 = vmatpush2.bf16.msra.mxu1 %v13018_v33  ;;  %v15723_v14 = vpop.permute.xlu0 %2968  ;;  %v2612_v33 = vsel %vm221_vm1, %v2596_v53, %v20374_v51  ;;  %v13001_v51 = vcombine.high %v2809_v55, %v2815_v52  ;;  %v3366_v53 = vld [vmem:[%s20318_s4 + $0x10] sm:$0xff] }
 0x29c   :  { %3983 = vmatprep.subr.bf16.mxu1 %v13013_v13  ;;  %2374 = vrot.lane.b32.xlu1 %v20709_v42, %s14553_s0  ;;  %v20379_v13 = vrot.slane %v15489_v54, 4  ;;  %v15762_v37 = vsel %vm619_vm4, %v15376_v50, %v2612_v33  ;;  %v2228_v50 = vsel %vm221_vm1, %v20729_v36, %v20727_v24  ;;  %v13006_v33 = vcombine.low %v2821_v18, %v2827_v39 }
 0x29d   :  { %2398 = vrot.lane.b32.xlu0 %v20709_v42, %s14553_s0  ;;  %v2631_v18 = vsel %vm619_vm4, %v15571_v63, %v2630_v31  ;;  %v2229_v63 = vsel %vm421_vm6, %v20728_v20, %v2228_v50  ;;  %v2412_v24 = vrot.slane %v15593_v34, 4  ;;  %v20740_v31 = vld [vmem:[#allocation26_spill] sm:$0xff] }
 0x29e   :  { %v15747_v44 = vpop.permute.xlu1 %1996 }
 0x29f   :  { %3984 = vmatpush2.bf16.msra.mxu1 %v13012_v46  ;;  %v15753_v12 = vpop.permute.xlu0 %2200  ;;  %v20725_v46 = vld [vmem:[#allocation25_spill] sm:$0xff] }
 0x2a0   :  { %20724 = vst [vmem:[#allocation32_spill] sm:$0xff] %v15753_v12  ;;  %v20378_v49 = vrot.slane %v15753_v12, 4  ;;  %3985 = vmatprep.subr.bf16.mxu1 %v13007_v16  ;;  %3158 = vrot.lane.b32.xlu1 %v20709_v42, %s14557_s30  ;;  %v20726_v43 = vrot.slane %v20725_v46, 4  ;;  %v13000_v16 = vcombine.low %v2809_v55, %v2815_v52  ;;  %v2624_v52 = vsel %vm221_vm1, %v2604_v2, %v20379_v13 }
 0x2a1   :  { %3182 = vrot.lane.b32.xlu0 %v20709_v42, %s14557_s30  ;;  %v20732_v55 = vrot.slane %v15612_v56, 4  ;;  %v20742_v56 = vrot.slane %v15462_v28, 4 }
 0x2a2   :  { %v2234_v4 = vsel %vm221_vm1, %v20726_v43, %v20375_v58  ;;  %v15787_v43 = vpop.permute.xlu1 %1800  ;;  %v20730_v58 = vld [vmem:[#allocation28_spill] sm:$0xff] }
 0x2a3   :  { %v20731_v36 = vrot.slane %v20730_v58, 4  ;;  %v2222_v11 = vsel %vm221_vm1, %v20733_v21, %v20732_v55  ;;  %3986 = vmatpush2.bf16.msra.mxu1 %v13006_v33  ;;  %v15805_v38 = vpop.permute.xlu0 %3170  ;;  %v20734_v33 = vld [vmem:[#allocation24_spill] sm:$0xff] }
 0x2a4   :  { %3987 = vmatprep.subr.bf16.mxu1 %v13001_v51  ;;  %3380 = vperm.xlu1 %14512, %v3366_v53   ;;  %v2223_v20 = vsel %vm421_vm6, %v15354_v22, %v2222_v11  ;;  %v12989_v22 = vcombine.high %v15762_v37, %v15785_v32  ;;  %v20739_v51 = vrot.slane %v15384_v61, 4 }
 0x2a5   :  { %v2240_v39 = vsel %vm221_vm1, %v20731_v36, %v20378_v49  ;;  %v2235_v36 = vsel %vm421_vm6, %v20725_v46, %v2234_v4  ;;  %2382 = vrot.lane.b32.xlu0 %v20709_v42, %s14553_s0  ;;  %v20735_v46 = vld [vmem:[#allocation27_spill] sm:$0xff]  ;;  %v2408_v49 = vrot.slane %v20740_v31, 4 }
 0x2a6   :  { %v2241_v2 = vsel %vm421_vm6, %v20730_v58, %v2240_v39  ;;  %v2625_v58 = vsel %vm619_vm4, %v15474_v26, %v2624_v52  ;;  %v15825_v53 = vpop.permute.xlu1 %2976  ;;  %v12967_v39 = vcombine.high %v2223_v20, %v2229_v63  ;;  %v20737_v52 = vrot.slane %v15629_v0, 4 }
 0x2a7   :  { %v12972_v55 = vcombine.low %v2235_v36, %v2241_v2  ;;  %v12973_v21 = vcombine.high %v2235_v36, %v2241_v2  ;;  %v12995_v50 = vcombine.high %v2625_v58, %v2631_v18  ;;  %v3364_v36 = vld [vmem:[%s20318_s4] sm:$0xff]  ;;  %v20736_v2 = vld [vmem:[#allocation23_spill] sm:$0xff]  ;;  %3988 = vmatpush2.bf16.msra.mxu1 %v13000_v16  ;;  %v15831_v26 = vpop.permute.xlu0 %2004 }
 0x2a8   :  { %v2404_v13 = vrot.slane %v20736_v2, 4  ;;  %v2434_v11 = vsel %vm221_vm1, %v2412_v24, %v20737_v52  ;;  %v2022_v16 = vrot.slane %v15831_v26, 4  ;;  %v20743_v24 = vrot.slane %v15665_v15, 4  ;;  %3370 = vperm.xlu1 %14512, %v3364_v36  }
 0x2a9   :  { %4071 = vmatprep.subr.bf16.mxu0 %v12973_v21  ;;  %v20738_v21 = vrot.slane %v15398_v10, 4  ;;  %3989 = vmatprep.subr.bf16.mxu1 %v12995_v50  ;;  %v20744_v52 = vrot.slane %v15413_v62, 4  ;;  %v12994_v10 = vcombine.low %v2625_v58, %v2631_v18  ;;  %v20745_v50 = vrot.slane %v20734_v33, 4 }
 0x2aa   :  { %4072 = vmatpush1.bf16.msra.mxu0 %v12972_v55  ;;  %v20741_v55 = vrot.slane %v15747_v44, 4  ;;  %3166 = vrot.lane.b32.xlu0 %v20709_v42, %s14557_s30  ;;  %v20749_v36 = vrot.slane %v15364_v45, 4 }
 0x2ab   :  { %v2416_v4 = vsel %vm221_vm1, %v20739_v51, %v20738_v21  ;;  %4073 = vmatprep.subr.bf16.mxu0 %v12967_v39  ;;  %v2032_v6 = vsel %vm221_vm1, %v20744_v52, %v20743_v24  ;;  %v12966_v51 = vcombine.low %v2223_v20, %v2229_v63  ;;  %v2422_v39 = vsel %vm221_vm1, %v2404_v13, %v20745_v50  ;;  %v15860_v21 = vpop.permute.xlu1 %2780  ;;  %v15881_v50 = vpop.permute.xlu0 %3178 }
 0x2ac   :  { %v2038_v12 = vsel %vm221_vm1, %v20742_v56, %v20741_v55  ;;  %v3367_v56 = vld [vmem:[%s20318_s4 + $0x18] sm:$0xff]  ;;  %v20746_v55 = vrot.slane %v15534_v41, 4  ;;  %v20747_v63 = vrot.slane %v20735_v46, 4  ;;  %v2435_v20 = vsel %vm520_vm5, %v15593_v34, %v2434_v11  ;;  %3990 = vmatpush2.bf16.msra.mxu1 %v12994_v10  ;;  %5001 = vrot.lane.b32.xlu1 %v20709_v42, %s14554_s25 }
 0x2ad   :  { %v20748_v13 = vrot.slane %v15627_v40, 4  ;;  %v20388_v52 = vrot.slane %v15694_v27, 4  ;;  %v2033_v34 = vsel %vm322_vm7, %v15413_v62, %v2032_v6  ;;  %v20403_v11 = vrot.slane %v15787_v43, 4  ;;  %3991 = vmatprep.subr.bf16.mxu1 %v12989_v22 }
 0x2ae   :  { %v2044_v18 = vsel %vm221_vm1, %v20746_v55, %v2022_v16  ;;  %v2428_v58 = vsel %vm221_vm1, %v2408_v49, %v20747_v63  ;;  %4074 = vmatpush1.bf16.msra.mxu0 %v12966_v51  ;;  %v2039_v55 = vsel %vm322_vm7, %v15462_v28, %v2038_v12  ;;  %v12988_v63 = vcombine.low %v15762_v37, %v15785_v32 }
 0x2af   :  { %v2026_v24 = vsel %vm221_vm1, %v20749_v36, %v20748_v13  ;;  %v2045_v49 = vsel %vm322_vm7, %v15534_v41, %v2044_v18  ;;  %3385 = vperm.xlu0 %14511, %v3367_v56   ;;  %v2429_v51 = vsel %vm520_vm5, %v20740_v31, %v2428_v58  ;;  %v2423_v41 = vsel %vm520_vm5, %v20736_v2, %v2422_v39  ;;  %v3177_v32 = vpop.permute.xlu1 %3176  ;;  %v3365_v31 = vld [vmem:[%s20318_s4 + $0x8] sm:$0xff]  ;;  %v15906_v2 = vpop.permute.xlu0 %1808 }
 0x2b0   :  { %v12960_v13 = vcombine.low %v2039_v55, %v2045_v49  ;;  %v12961_v10 = vcombine.high %v2039_v55, %v2045_v49  ;;  %v2027_v28 = vsel %vm322_vm7, %v15364_v45, %v2026_v24  ;;  %v20389_v62 = vrot.slane %v15638_v17, 4  ;;  %3992 = vmatpush2.bf16.msra.mxu1 %v12988_v63  ;;  %4985 = vrot.lane.b32.xlu1 %v20709_v42, %s14554_s25 }
 0x2b1   :  { %v3193_v6 = vrot.slane %v15805_v38, 4  ;;  %v12983_v12 = vcombine.high %v2429_v51, %v2435_v20  ;;  %v12955_v37 = vcombine.high %v2027_v28, %v2033_v34  ;;  %v3197_v45 = vrot.slane %v15881_v50, 4 }
 0x2b2   :  { %4075 = vmatprep.subr.bf16.mxu0 %v12961_v10  ;;  %v3196_v22 = vrot.slane %v3177_v32, 4  ;;  %v2417_v39 = vsel %vm520_vm5, %v15384_v61, %v2416_v4  ;;  %v20750_v56 = vrot.slane %v15421_v35, 4  ;;  %v3192_v58 = vrot.slane %v15713_v25, 4 }
 0x2b3   :  { %4076 = vmatpush1.bf16.msra.mxu0 %v12960_v13  ;;  %v20402_v36 = vrot.slane %v15906_v2, 4  ;;  %3993 = vmatprep.subr.bf16.mxu1 %v12983_v12  ;;  %v12977_v24 = vcombine.high %v2417_v39, %v2423_v41  ;;  %v20751_v55 = vrot.slane %v15469_v19, 4  ;;  %v12982_v4 = vcombine.low %v2429_v51, %v2435_v20  ;;  %v15930_v10 = vpop.permute.xlu1 %2764 }
 0x2b4   :  { %v1836_v18 = vsel %vm221_vm1, %v20750_v56, %v20388_v52  ;;  %4077 = vmatprep.subr.bf16.mxu0 %v12955_v37  ;;  %v3218_v61 = vsel %vm221_vm1, %v3196_v22, %v3197_v45  ;;  %v12954_v63 = vcombine.low %v2027_v28, %v2033_v34  ;;  %3375 = vperm.xlu0 %14511, %v3365_v31   ;;  %v20752_v12 = vrot.slane %v15555_v8, 4  ;;  %v15945_v31 = vpop.permute.xlu0 %2772  ;;  %v20761_v52 = vld [vmem:[#allocation8_spill] sm:$0xff] }
 0x2b5   :  { %v1842_v49 = vsel %vm221_vm1, %v20751_v55, %v20403_v11  ;;  %v3212_v13 = vsel %vm221_vm1, %v3192_v58, %v3193_v6  ;;  %v20753_v20 = vrot.slane %v15371_v3, 4  ;;  %v1837_v51 = vsel %vm223_vm8, %v15421_v35, %v1836_v18  ;;  %3994 = vmatpush2.bf16.msra.mxu1 %v12982_v4  ;;  %4805 = vrot.lane.b32.xlu1 %v20709_v42, %s14555_s26  ;;  %v15962_v18 = vld [vmem:[%s20317_s3] ss:$12 sps:$4 sm:$0xff]  }
 0x2b6   :  { %v1848_v37 = vsel %vm221_vm1, %v20752_v12, %v20402_v36  ;;  %v3219_v28 = vsel %vm916_vm9, %v3177_v32, %v3218_v61  ;;  %v1843_v22 = vsel %vm223_vm8, %v15469_v19, %v1842_v49  ;;  %3995 = vmatprep.subr.bf16.mxu1 %v12977_v24  ;;  %v3213_v12 = vsel %vm916_vm9, %v15713_v25, %v3212_v13 }
 0x2b7   :  { %v1830_v34 = vsel %vm221_vm1, %v20753_v20, %v20389_v62  ;;  %4078 = vmatpush1.bf16.msra.mxu0 %v12954_v63  ;;  %v1849_v56 = vsel %vm223_vm8, %v15555_v8, %v1848_v37  ;;  %v12976_v20 = vcombine.low %v2417_v39, %v2423_v41  ;;  %v3153_v19 = vpop.permute.xlu1 %3152  ;;  %v13031_v32 = vcombine.high %v3213_v12, %v3219_v28  ;;  %v15970_v39 = vld [vmem:[%s20317_s3 + $0x1c] ss:$12 sps:$4 sm:$0xff]  }
 0x2b8   :  { %v12948_v58 = vcombine.low %v1843_v22, %v1849_v56  ;;  %v12949_v55 = vcombine.high %v1843_v22, %v1849_v56  ;;  %v1831_v35 = vsel %vm223_vm8, %v15371_v3, %v1830_v34  ;;  %5009 = vrot.lane.b32.xlu0 %v20709_v42, %s14554_s25  ;;  %v15964_v25 = vpop.permute.xlu0 %3154  ;;  %v3184_v3 = vrot.slane %v3153_v19, 4  ;;  %v20754_v22 = vld [vmem:[#allocation12_spill] sm:$0xff] }
 0x2b9   :  { %v12943_v8 = vcombine.high %v1831_v35, %v1837_v51  ;;  %3996 = vmatpush2.bf16.msra.mxu1 %v12976_v20  ;;  %v3185_v41 = vrot.slane %v15964_v25, 4  ;;  %v13030_v24 = vcombine.low %v3213_v12, %v3219_v28  ;;  %v12942_v49 = vcombine.low %v1831_v35, %v1837_v51  ;;  %v20755_v28 = vld [vmem:[#allocation10_spill] sm:$0xff]  ;;  %v15995_v12 = vld [vmem:[%s20317_s3 + $0x18] ss:$12 sps:$4 sm:$0xff]  }
 0x2ba   :  { %4079 = vmatprep.subr.bf16.mxu0 %v12949_v55  ;;  %4030 = vmatprep.subr.bf16.mxu1 %v13031_v32  ;;  %v20390_v4 = vrot.slane %v15723_v14, 4  ;;  %v20393_v37 = vrot.slane %v15825_v53, 4  ;;  %v20756_v51 = vpack.c.bf16 %v20754_v22, %v20755_v28  ;;  %v20757_v35 = vld [vmem:[#allocation11_spill] sm:$0xff]  ;;  %v20758_v32 = vld [vmem:[#allocation9_spill] sm:$0xff]  ;;  %v20760_v22 = vrot.slane %v15429_v59, 4 }
 0x2bb   :  { %4080 = vmatpush1.bf16.msra.mxu0 %v12948_v58  ;;  %v3161_v61 = vpop.permute.xlu1 %3160  ;;  %v3200_v56 = vsel %vm221_vm1, %v3184_v3, %v3185_v41  ;;  %v20391_v58 = vrot.slane %v15656_v5, 4 }
 0x2bc   :  { %4081 = vmatprep.subr.bf16.mxu0 %v12943_v8  ;;  %4993 = vrot.lane.b32.xlu0 %v20709_v42, %s14554_s25  ;;  %v3188_v63 = vrot.slane %v3161_v61, 4  ;;  %v15976_v13 = vpop.permute.xlu0 %3162  ;;  %v20759_v8 = vpack.c.bf16 %v20757_v35, %v20758_v32  ;;  %v3012_v28 = vsel %vm221_vm1, %v20760_v22, %v20390_v4  ;;  %v20768_v22 = vld [vmem:[#allocation5_spill] sm:$0xff] }
 0x2bd   :  { %3998 = vmatmul.mubr.bf16.vlgmr.msra.gmra.mxu1 %v15962_v18  ;;  %v3189_v34 = vrot.slane %v15976_v13, 4  ;;  %v3013_v4 = vsel %vm817_vm2, %v15429_v59, %v3012_v28  ;;  %v20771_v28 = vrot.slane %v15483_v23, 4 }
 0x2be   :  { %4031 = vmatpush1.bf16.msra.mxu1 %v13030_v24  ;;  %4007 = vmatprep.mubr.bf16.mxu1 %v15970_v39  ;;  %v3201_v24 = vsel %vm916_vm9, %v3153_v19, %v3200_v56  ;;  %v20764_v19 = vrot.slane %v15476_v9, 4 }
 0x2bf   :  { %4082 = vmatpush1.bf16.msra.mxu0 %v12942_v49  ;;  %v15990_v55 = vpop.permute.xlu1 %2584  ;;  %v3206_v20 = vsel %vm221_vm1, %v3188_v63, %v3189_v34  ;;  %v20762_v63 = vld [vmem:[#allocation6_spill] sm:$0xff] }
 0x2c0   :  { %4083 = vmatprep.subr.bf16.mxu0 %v20756_v51  ;;  %4813 = vrot.lane.b32.xlu0 %v20709_v42, %s14555_s26  ;;  %v16003_v3 = vpop.permute.xlu0 %2984  ;;  %v3207_v49 = vsel %vm916_vm9, %v3161_v61, %v3206_v20  ;;  %v20763_v62 = vpack.c.bf16 %v20761_v52, %v20762_v63  ;;  %v3018_v61 = vsel %vm221_vm1, %v20764_v19, %v20393_v37  ;;  %v20765_v20 = vrot.slane %v15576_v7, 4 }
 0x2c1   :  { %v20392_v51 = vrot.slane %v16003_v3, 4  ;;  %v13024_v35 = vcombine.low %v3201_v24, %v3207_v49  ;;  %v13025_v32 = vcombine.high %v3201_v24, %v3207_v49  ;;  %v20397_v24 = vrot.slane %v15860_v21, 4  ;;  %v20767_v49 = vld [vmem:[#allocation7_spill] sm:$0xff] }
 0x2c2   :  { %v20769_v63 = vpack.c.bf16 %v20767_v49, %v20768_v22  ;;  %v3019_v19 = vsel %vm817_vm2, %v15476_v9, %v3018_v61  ;;  %v20770_v37 = vmov 0  }
 0x2c3   :  { %4084 = vmatpush1.bf16.msra.mxu0 %v20759_v8  ;;  %4032 = vmatprep.subr.bf16.mxu1 %v13025_v32  ;;  %v16022_v56 = vpop.permute.xlu1 %2568  ;;  %v3024_v52 = vsel %vm221_vm1, %v20765_v20, %v20392_v51  ;;  %v2822_v61 = vsel %vm221_vm1, %v20771_v28, %v20397_v24 }
 0x2c4   :  { %4085 = vmatprep.subr.bf16.mxu0 %v20763_v62  ;;  %v20766_v62 = vrot.slane %v15380_v29, 4  ;;  %4033 = vmatpush1.bf16.msra.mxu1 %v13024_v35  ;;  %v16038_v32 = vpop.permute.xlu0 %2576  ;;  %v3025_v20 = vsel %vm817_vm2, %v15576_v7, %v3024_v52  ;;  %v16056_v7 = vld [vmem:[%s20317_s3 + $0x8] ss:$12 sps:$4 sm:$0xff]  }
 0x2c5   :  { %4008 = vmatmul.mubr.bf16.gmra.mxu1 %v15995_v12  ;;  %v13020_v35 = vcombine.low %v3019_v19, %v3025_v20  ;;  %v13021_v51 = vcombine.high %v3019_v19, %v3025_v20 }
 0x2c6   :  { %v3006_v8 = vsel %vm221_vm1, %v20766_v62, %v20391_v58  ;;  %v20394_v62 = vrot.slane %v15930_v10, 4  ;;  %v20395_v58 = vrot.slane %v15945_v31, 4  ;;  %4050 = vmatprep.mubr.bf16.mxu1 %v20770_v37 }
 0x2c7   :  { %4086 = vmatpush1.bf16.msra.mxu0 %v20769_v63  ;;  %v3007_v49 = vsel %vm817_vm2, %v15380_v29, %v3006_v8  ;;  %v16051_v22 = vpop.permute.xlu1 %2388  ;;  %v20773_v8 = vrot.slane %v15437_v48, 4 }
 0x2c8   :  { %4087 = vmatprep.subr.bf16.mxu0 %v13021_v51  ;;  %v13015_v9 = vcombine.high %v3007_v49, %v3013_v4  ;;  %v16058_v59 = vpop.permute.xlu0 %2788  ;;  %v20772_v51 = vrot.slane %v15386_v60, 4  ;;  %v13014_v19 = vcombine.low %v3007_v49, %v3013_v4  ;;  %v20405_v24 = vrot.slane %v16051_v22, 4 }
 0x2c9   :  { %v20396_v29 = vrot.slane %v16058_v59, 4  ;;  %v2816_v63 = vsel %vm221_vm1, %v20773_v8, %v20395_v58  ;;  %v20400_v8 = vrot.slane %v16038_v32, 4 }
 0x2ca   :  { %v2810_v52 = vsel %vm221_vm1, %v20772_v51, %v20394_v62  ;;  %v20399_v51 = vrot.slane %v15990_v55, 4 }
 0x2cb   :  { %4088 = vmatpush2.bf16.msra.mxu0 %v13020_v35  ;;  %v16078_v20 = vpop.permute.xlu1 %3172  ;;  %v2823_v35 = vsel %vm718_vm3, %v15483_v23, %v2822_v61  ;;  %v2811_v49 = vsel %vm718_vm3, %v15386_v60, %v2810_v52  ;;  %v2817_v23 = vsel %vm718_vm3, %v15437_v48, %v2816_v63  ;;  %v20398_v61 = vrot.slane %v16022_v56, 4 }
 0x2cc   :  { %4089 = vmatprep.subr.bf16.mxu0 %v13015_v9  ;;  %v20774_v9 = vrot.slane %v15598_v57, 4  ;;  %v16088_v62 = vpop.permute.xlu0 %2380  ;;  %v20775_v48 = vrot.slane %v15489_v54, 4 }
 0x2cd   :  { %13036 = vmatmul.mubr.msk.bf16.vlgmr.msra.gmra.mxu1 %vm3958_vm13, %v16056_v7 }
 0x2ce   :  { %v2828_v28 = vsel %vm221_vm1, %v20774_v9, %v20396_v29  ;;  %4060 = vmatprep.mubr.bf16.mxu1 %v20770_v37  ;;  %v13003_v29 = vcombine.high %v2811_v49, %v2817_v23  ;;  %v2626_v52 = vsel %vm221_vm1, %v20775_v48, %v20399_v51  ;;  %v20406_v51 = vrot.slane %v16078_v20, 4 }
 0x2cf   :  { %4090 = vmatpush2.bf16.msra.mxu0 %v13014_v19  ;;  %v2829_v4 = vsel %vm718_vm3, %v15598_v57, %v2828_v28  ;;  %v16099_v19 = vpop.permute.xlu1 %2372  ;;  %v16104_v57 = vld [vmem:[%s20317_s3 + $0x20] ss:$12 sps:$4 sm:$0xff]   ;;  %v20777_v28 = vrot.slane %v15441_v1, 4 }
 0x2d0   :  { %v13008_v9 = vcombine.low %v2823_v35, %v2829_v4  ;;  %v13009_v58 = vcombine.high %v2823_v35, %v2829_v4  ;;  %v16106_v60 = vpop.permute.xlu0 %2592 }
 0x2d1   :  { %v20401_v63 = vrot.slane %v16106_v60, 4  ;;  %v2620_v4 = vsel %vm221_vm1, %v20777_v28, %v20400_v8 }
 0x2d2   :  { %4091 = vmatprep.subr.bf16.mxu0 %v13009_v58  ;;  %v20776_v58 = vrot.slane %v15392_v47, 4 }
 0x2d3   :  { %4092 = vmatpush2.bf16.msra.mxu0 %v13008_v9  ;;  %v13002_v9 = vcombine.low %v2811_v49, %v2817_v23  ;;  %v16127_v48 = vpop.permute.xlu1 %3156 }
 0x2d4   :  { %4093 = vmatprep.subr.bf16.mxu0 %v13003_v29  ;;  %v2614_v35 = vsel %vm221_vm1, %v20776_v58, %v20398_v61  ;;  %v2627_v29 = vsel %vm619_vm4, %v15489_v54, %v2626_v52  ;;  %v20778_v58 = vrot.slane %v15617_v30, 4  ;;  %v16137_v49 = vpop.permute.xlu0 %2396  ;;  %v2621_v54 = vsel %vm619_vm4, %v15441_v1, %v2620_v4 }
 0x2d5   :  { %13037 = vmatmul.mubr.msk.bf16.gmra.mxu1 %vm3958_vm13, %v16104_v57  ;;  %v2615_v28 = vsel %vm619_vm4, %v15392_v47, %v2614_v35  ;;  %v20407_v52 = vrot.slane %v16099_v19, 4  ;;  %v20779_v47 = vrot.slane %v20735_v46, 4  ;;  %v20780_v1 = vrot.slane %v15629_v0, 4 }
 0x2d6   :  { %v2632_v61 = vsel %vm221_vm1, %v20778_v58, %v20401_v63  ;;  %4156 = vmatprep.mubr.bf16.mxu1 %v20770_v37  ;;  %v20404_v58 = vrot.slane %v16137_v49, 4  ;;  %v12991_v11 = vcombine.high %v2615_v28, %v2621_v54  ;;  %v3186_v35 = vrot.slane %v16127_v48, 4 }
 0x2d7   :  { %4094 = vmatpush2.bf16.msra.mxu0 %v13002_v9  ;;  %v2633_v23 = vsel %vm619_vm4, %v15617_v30, %v2632_v61  ;;  %v20408_v9 = vrot.slane %v16088_v62, 4  ;;  %v2195_v36 = vpop.permute.xlu1 %2194  ;;  %v2430_v30 = vsel %vm221_vm1, %v20779_v47, %v20405_v24  ;;  %v20781_v47 = vld [vmem:[#allocation21_spill] sm:$0xff] }
 0x2d8   :  { %v12996_v8 = vcombine.low %v2627_v29, %v2633_v23  ;;  %v12997_v63 = vcombine.high %v2627_v29, %v2633_v23  ;;  %v2436_v61 = vsel %vm221_vm1, %v20780_v1, %v20404_v58  ;;  %v16160_v4 = vpop.permute.xlu0 %3180  ;;  %v3214_v23 = vsel %vm221_vm1, %v3193_v6, %v20406_v51 }
 0x2d9   :  { %v3198_v29 = vrot.slane %v16160_v4, 4  ;;  %v20782_v1 = vrot.slane %v20781_v47, 4  ;;  %v12990_v58 = vcombine.low %v2615_v28, %v2621_v54  ;;  %v2431_v24 = vsel %vm520_vm5, %v20735_v46, %v2430_v30 }
 0x2da   :  { %4095 = vmatprep.subr.bf16.mxu0 %v12997_v63  ;;  %v2437_v63 = vsel %vm520_vm5, %v15629_v0, %v2436_v61  ;;  %v20783_v6 = vrot.slane %v20734_v33, 4  ;;  %v3215_v46 = vsel %vm916_vm9, %v15805_v38, %v3214_v23  ;;  %v2215_v30 = vrot.slane %v2195_v36, 4 }
 0x2db   :  { %4096 = vmatpush2.bf16.msra.mxu0 %v12996_v8  ;;  %v2418_v8 = vsel %vm221_vm1, %v20782_v1, %v20407_v52  ;;  %v2179_v0 = vpop.permute.xlu1 %2178  ;;  %v12985_v61 = vcombine.high %v2431_v24, %v2437_v63 }
 0x2dc   :  { %4097 = vmatprep.subr.bf16.mxu0 %v12991_v11  ;;  %v3220_v11 = vsel %vm221_vm1, %v3197_v45, %v3198_v29  ;;  %v2424_v51 = vsel %vm221_vm1, %v20783_v6, %v20408_v9  ;;  %v16187_v1 = vpop.permute.xlu0 %3164  ;;  %v2419_v54 = vsel %vm520_vm5, %v20781_v47, %v2418_v8  ;;  %v3202_v45 = vsel %vm221_vm1, %v3185_v41, %v3186_v35 }
 0x2dd   :  { %v3221_v28 = vsel %vm916_vm9, %v15881_v50, %v3220_v11  ;;  %v12984_v9 = vcombine.low %v2431_v24, %v2437_v63  ;;  %v2425_v38 = vsel %vm520_vm5, %v20734_v33, %v2424_v51  ;;  %v2207_v41 = vrot.slane %v2179_v0, 4  ;;  %v20784_v33 = vld [vmem:[#allocation31_spill] sm:$0xff] }
 0x2de   :  { %v13032_v6 = vcombine.low %v3215_v46, %v3221_v28  ;;  %v13033_v52 = vcombine.high %v3215_v46, %v3221_v28  ;;  %v12979_v23 = vcombine.high %v2419_v54, %v2425_v38  ;;  %v3203_v8 = vsel %vm916_vm9, %v15964_v25, %v3202_v45 }
 0x2df   :  { %4098 = vmatpush2.bf16.msra.mxu0 %v12990_v58  ;;  %v3190_v58 = vrot.slane %v16187_v1, 4  ;;  %v1999_v50 = vpop.permute.xlu1 %1998  ;;  %v20785_v51 = vrot.slane %v20784_v33, 4  ;;  %v12978_v46 = vcombine.low %v2419_v54, %v2425_v38 }
 0x2e0   :  { %4099 = vmatprep.subr.bf16.mxu0 %v12985_v61  ;;  %4136 = vmatprep.subr.bf16.mxu1 %v13033_v52  ;;  %v2203_v36 = vpop.permute.xlu0 %2202  ;;  %v2019_v54 = vrot.slane %v1999_v50, 4 }
 0x2e1   :  { %v3208_v47 = vsel %vm221_vm1, %v3189_v34, %v3190_v58  ;;  %4137 = vmatpush1.bf16.msra.mxu1 %v13032_v6  ;;  %v2236_v52 = vsel %vm221_vm1, %v20785_v51, %v2215_v30  ;;  %v2219_v63 = vrot.slane %v2203_v36, 4  ;;  %v20786_v34 = vld [vmem:[#allocation32_spill] sm:$0xff]  ;;  %v20788_v6 = vld [vmem:[#allocation29_spill] sm:$0xff] }
 0x2e2   :  { %v3209_v24 = vsel %vm916_vm9, %v15976_v13, %v3208_v47  ;;  %v20787_v0 = vrot.slane %v20786_v34, 4  ;;  %v20789_v25 = vrot.slane %v20788_v6, 4  ;;  %v2237_v30 = vsel %vm421_vm6, %v20784_v33, %v2236_v52 }
 0x2e3   :  { %4100 = vmatpush2.bf16.msra.mxu0 %v12984_v9  ;;  %v13026_v61 = vcombine.low %v3203_v8, %v3209_v24  ;;  %v13027_v11 = vcombine.high %v3203_v8, %v3209_v24  ;;  %v1983_v28 = vpop.permute.xlu1 %1982  ;;  %v20790_v8 = vld [vmem:[#allocation30_spill] sm:$0xff] }
 0x2e4   :  { %4101 = vmatprep.subr.bf16.mxu0 %v12979_v23  ;;  %v2242_v9 = vsel %vm221_vm1, %v20787_v0, %v2219_v63  ;;  %v2224_v45 = vsel %vm221_vm1, %v20789_v25, %v2207_v41  ;;  %v2187_v13 = vpop.permute.xlu0 %2186  ;;  %v20791_v24 = vrot.slane %v20790_v8, 4  ;;  %v2011_v63 = vrot.slane %v1983_v28, 4 }
 0x2e5   :  { %4138 = vmatprep.subr.bf16.mxu1 %v13027_v11  ;;  %v2243_v23 = vsel %vm421_vm6, %v20786_v34, %v2242_v9  ;;  %v2211_v38 = vrot.slane %v2187_v13, 4  ;;  %v2225_v52 = vsel %vm421_vm6, %v20788_v6, %v2224_v45  ;;  %v20793_v6 = vrot.slane %v15627_v40, 4 }
 0x2e6   :  { %4139 = vmatpush1.bf16.msra.mxu1 %v13026_v61  ;;  %v12974_v47 = vcombine.low %v2237_v30, %v2243_v23  ;;  %v12975_v36 = vcombine.high %v2237_v30, %v2243_v23  ;;  %v20792_v61 = vrot.slane %v15747_v44, 4 }
 0x2e7   :  { %4102 = vmatpush2.bf16.msra.mxu0 %v12978_v46  ;;  %v2230_v51 = vsel %vm221_vm1, %v20791_v24, %v2211_v38  ;;  %v1803_v41 = vpop.permute.xlu1 %1802  ;;  %v2028_v25 = vsel %vm221_vm1, %v20793_v6, %v2011_v63 }
 0x2e8   :  { %4177 = vmatprep.subr.bf16.mxu1 %v12975_v36  ;;  %v2007_v33 = vpop.permute.xlu0 %2006  ;;  %v2231_v50 = vsel %vm421_vm6, %v20790_v8, %v2230_v51  ;;  %v2040_v11 = vsel %vm221_vm1, %v20792_v61, %v2019_v54  ;;  %v1823_v23 = vrot.slane %v1803_v41, 4  ;;  %v20795_v41 = vrot.slane %v15787_v43, 4  ;;  %v14546_v61 = vld [vmem:[%s20317_s3 + $0x4] ss:$12 sps:$4 sm:$0xff]  }
 0x2e9   :  { %13038 = vmatmul.mubr.msk.bf16.vlgmr.msra.gmra.mxu1 %vm3958_vm13, %v16056_v7  ;;  %v2023_v46 = vrot.slane %v2007_v33, 4  ;;  %v12968_v34 = vcombine.low %v2225_v52, %v2231_v50  ;;  %v12969_v0 = vcombine.high %v2225_v52, %v2231_v50  ;;  %v2041_v13 = vsel %vm322_vm7, %v15747_v44, %v2040_v11 }
 0x2ea   :  { %4104 = vmatmul.mubr.bf16.vlgmr.msra.gmra.mxu0 %v15962_v18  ;;  %4178 = vmatpush1.bf16.msra.mxu1 %v12974_v47  ;;  %v2029_v44 = vsel %vm322_vm7, %v15627_v40, %v2028_v25  ;;  %v1844_v63 = vsel %vm221_vm1, %v20795_v41, %v1823_v23  ;;  %v20796_v40 = vrot.slane %v15906_v2, 4 }
 0x2eb   :  { %4113 = vmatprep.mubr.bf16.mxu0 %v15970_v39  ;;  %4166 = vmatprep.mubr.bf16.mxu1 %v20770_v37  ;;  %v2046_v9 = vsel %vm221_vm1, %v2022_v16, %v2023_v46  ;;  %v1787_v28 = vpop.permute.xlu1 %1786  ;;  %v20794_v16 = vrot.slane %v15665_v15, 4  ;;  %v20797_v46 = vrot.slane %v15638_v17, 4 }
 0x2ec   :  { %4179 = vmatprep.subr.bf16.mxu1 %v12969_v0  ;;  %v1991_v45 = vpop.permute.xlu0 %1990  ;;  %v2047_v30 = vsel %vm322_vm7, %v15831_v26, %v2046_v9  ;;  %v1815_v24 = vrot.slane %v1787_v28, 4  ;;  %v1845_v9 = vsel %vm223_vm8, %v15787_v43, %v1844_v63 }
 0x2ed   :  { %v2015_v54 = vrot.slane %v1991_v45, 4  ;;  %v12962_v38 = vcombine.low %v2041_v13, %v2047_v30  ;;  %v12963_v47 = vcombine.high %v2041_v13, %v2047_v30  ;;  %v20798_v30 = vrot.slane %v15694_v27, 4 }
 0x2ee   :  { %4180 = vmatpush1.bf16.msra.mxu1 %v12968_v34  ;;  %v1832_v34 = vsel %vm221_vm1, %v20797_v46, %v1815_v24 }
 0x2ef   :  { %v2034_v36 = vsel %vm221_vm1, %v20794_v16, %v2015_v54  ;;  %4181 = vmatprep.subr.bf16.mxu1 %v12963_v47  ;;  %v2979_v8 = vpop.permute.xlu1 %2978  ;;  %v1833_v47 = vsel %vm223_vm8, %v15638_v17, %v1832_v34 }
 0x2f0   :  { %v1811_v51 = vpop.permute.xlu0 %1810  ;;  %v2035_v26 = vsel %vm322_vm7, %v15665_v15, %v2034_v36  ;;  %v2999_v6 = vrot.slane %v2979_v8, 4 }
 0x2f1   :  { %13039 = vmatmul.mubr.msk.bf16.gmra.mxu1 %vm3958_vm13, %v16104_v57  ;;  %v1827_v33 = vrot.slane %v1811_v51, 4  ;;  %v12956_v52 = vcombine.low %v2029_v44, %v2035_v26  ;;  %v12957_v50 = vcombine.high %v2029_v44, %v2035_v26  ;;  %v20800_v51 = vrot.slane %v16003_v3, 4 }
 0x2f2   :  { %4114 = vmatmul.mubr.bf16.gmra.mxu0 %v15995_v12  ;;  %4182 = vmatpush1.bf16.msra.mxu1 %v12962_v38 }
 0x2f3   :  { %4262 = vmatprep.mubr.bf16.mxu0 %v20770_v37  ;;  %4209 = vmatprep.mubr.bf16.mxu1 %v14546_v61  ;;  %v1850_v11 = vsel %vm221_vm1, %v20796_v40, %v1827_v33  ;;  %v2963_v15 = vpop.permute.xlu1 %2962  ;;  %v20801_v61 = vld [vmem:[#allocation20_spill] sm:$0xff]  ;;  %v20802_v40 = vld [vmem:[#allocation19_spill] sm:$0xff] }
 0x2f4   :  { %4183 = vmatprep.subr.bf16.mxu1 %v12957_v50  ;;  %v1795_v0 = vpop.permute.xlu0 %1794  ;;  %v1851_v28 = vsel %vm223_vm8, %v15906_v2, %v1850_v11  ;;  %v20799_v2 = vrot.slane %v15825_v53, 4  ;;  %v20803_v11 = vpack.c.bf16 %v20801_v61, %v20802_v40  ;;  %v2991_v34 = vrot.slane %v2963_v15, 4 }
 0x2f5   :  { %v1819_v25 = vrot.slane %v1795_v0, 4  ;;  %v12950_v45 = vcombine.low %v1845_v9, %v1851_v28  ;;  %v12951_v13 = vcombine.high %v1845_v9, %v1851_v28  ;;  %v20804_v9 = vrot.slane %v15860_v21, 4 }
 0x2f6   :  { %4184 = vmatpush1.bf16.msra.mxu1 %v12956_v52  ;;  %v3020_v16 = vsel %vm221_vm1, %v20799_v2, %v2999_v6  ;;  %v20806_v6 = vld [vmem:[#allocation17_spill] sm:$0xff]  ;;  %v20812_v15 = vrot.slane %v16058_v59, 4 }
 0x2f7   :  { %v1838_v23 = vsel %vm221_vm1, %v20798_v30, %v1819_v25  ;;  %4185 = vmatprep.subr.bf16.mxu1 %v12951_v13  ;;  %v2783_v54 = vpop.permute.xlu1 %2782  ;;  %v3021_v17 = vsel %vm817_vm2, %v15825_v53, %v3020_v16  ;;  %v20805_v53 = vld [vmem:[#allocation18_spill] sm:$0xff]  ;;  %v20809_v30 = vld [vmem:[#allocation16_spill] sm:$0xff] }
 0x2f8   :  { %v2987_v38 = vpop.permute.xlu0 %2986  ;;  %v1839_v43 = vsel %vm223_vm8, %v15694_v27, %v1838_v23  ;;  %v2803_v63 = vrot.slane %v2783_v54, 4  ;;  %v20807_v25 = vpack.c.bf16 %v20805_v53, %v20806_v6  ;;  %v20810_v23 = vld [vmem:[#allocation15_spill] sm:$0xff] }
 0x2f9   :  { %v3003_v36 = vrot.slane %v2987_v38, 4  ;;  %v12944_v8 = vcombine.low %v1833_v47, %v1839_v43  ;;  %v12945_v24 = vcombine.high %v1833_v47, %v1839_v43  ;;  %v20811_v54 = vpack.c.bf16 %v20809_v30, %v20810_v23 }
 0x2fa   :  { %4186 = vmatpush1.bf16.msra.mxu1 %v12950_v45  ;;  %v2824_v28 = vsel %vm221_vm1, %v20804_v9, %v2803_v63  ;;  %v20808_v45 = vrot.slane %v15723_v14, 4  ;;  %v20813_v43 = vrot.slane %v15656_v5, 4  ;;  %v20818_v9 = vrot.slane %v15945_v31, 4 }
 0x2fb   :  { %v3026_v44 = vsel %vm221_vm1, %v20800_v51, %v3003_v36  ;;  %4187 = vmatprep.subr.bf16.mxu1 %v12945_v24  ;;  %v2767_v26 = vpop.permute.xlu1 %2766  ;;  %v2825_v36 = vsel %vm718_vm3, %v15860_v21, %v2824_v28  ;;  %v20814_v51 = vld [vmem:[#allocation14_spill] sm:$0xff] }
 0x2fc   :  { %v2971_v41 = vpop.permute.xlu0 %2970  ;;  %v3027_v27 = vsel %vm817_vm2, %v16003_v3, %v3026_v44  ;;  %v3008_v2 = vsel %vm221_vm1, %v20813_v43, %v2991_v34  ;;  %v20815_v44 = vld [vmem:[#allocation13_spill] sm:$0xff]  ;;  %v2795_v21 = vrot.slane %v2767_v26, 4  ;;  %v20820_v26 = vrot.slane %v15930_v10, 4 }
 0x2fd   :  { %v13022_v33 = vcombine.low %v3021_v17, %v3027_v27  ;;  %v13023_v52 = vcombine.high %v3021_v17, %v3027_v27  ;;  %v2995_v50 = vrot.slane %v2971_v41, 4  ;;  %v20816_v41 = vpack.c.bf16 %v20814_v51, %v20815_v44 }
 0x2fe   :  { %4188 = vmatpush1.bf16.msra.mxu1 %v12944_v8  ;;  %v3009_v40 = vsel %vm817_vm2, %v15656_v5, %v3008_v2  ;;  %v2812_v6 = vsel %vm221_vm1, %v20820_v26, %v2795_v21  ;;  %v20823_v51 = vrot.slane %v16137_v49, 4  ;;  %v20824_v44 = vrot.slane %v16022_v56, 4 }
 0x2ff   :  { %4189 = vmatprep.subr.bf16.mxu1 %v20803_v11  ;;  %v2587_v46 = vpop.permute.xlu1 %2586  ;;  %v3014_v13 = vsel %vm221_vm1, %v20808_v45, %v2995_v50 }
 0x300   :  { %v2791_v0 = vpop.permute.xlu0 %2790  ;;  %v2607_v24 = vrot.slane %v2587_v46, 4  ;;  %v3015_v17 = vsel %vm817_vm2, %v15723_v14, %v3014_v13 }
 0x301   :  { %v2807_v3 = vrot.slane %v2791_v0, 4  ;;  %v13017_v34 = vcombine.high %v3009_v40, %v3015_v17  ;;  %v13016_v53 = vcombine.low %v3009_v40, %v3015_v17  ;;  %v20825_v17 = vrot.slane %v16078_v20, 4 }
 0x302   :  { %4190 = vmatpush1.bf16.msra.mxu1 %v20807_v25 }
 0x303   :  { %4191 = vmatprep.subr.bf16.mxu1 %v20811_v54  ;;  %v2830_v38 = vsel %vm221_vm1, %v20812_v15, %v2807_v3  ;;  %v2571_v47 = vpop.permute.xlu1 %2570  ;;  %v2813_v15 = vsel %vm718_vm3, %v15930_v10, %v2812_v6  ;;  %v20827_v6 = vrot.slane %v16099_v19, 4 }
 0x304   :  { %v2775_v16 = vpop.permute.xlu0 %2774  ;;  %v2831_v8 = vsel %vm718_vm3, %v16058_v59, %v2830_v38  ;;  %v20817_v59 = vrot.slane %v15990_v55, 4  ;;  %v2599_v38 = vrot.slane %v2571_v47, 4 }
 0x305   :  { %v13010_v27 = vcombine.low %v2825_v36, %v2831_v8  ;;  %v13011_v63 = vcombine.high %v2825_v36, %v2831_v8  ;;  %v2799_v50 = vrot.slane %v2775_v16, 4  ;;  %v20821_v36 = vrot.slane %v16051_v22, 4 }
 0x306   :  { %4192 = vmatpush1.bf16.msra.mxu1 %v20816_v41  ;;  %v2628_v46 = vsel %vm221_vm1, %v20817_v59, %v2607_v24  ;;  %v2616_v41 = vsel %vm221_vm1, %v20824_v44, %v2599_v38 }
 0x307   :  { %4193 = vmatprep.subr.bf16.mxu1 %v13023_v52  ;;  %v2391_v61 = vpop.permute.xlu1 %2390  ;;  %v2818_v14 = vsel %vm221_vm1, %v20818_v9, %v2799_v50  ;;  %v20819_v52 = vrot.slane %v16106_v60, 4 }
 0x308   :  { %v2595_v11 = vpop.permute.xlu0 %2594  ;;  %v2411_v45 = vrot.slane %v2391_v61, 4  ;;  %v2819_v13 = vsel %vm718_vm3, %v15945_v31, %v2818_v14  ;;  %v20822_v31 = vrot.slane %v16038_v32, 4 }
 0x309   :  { %v2611_v0 = vrot.slane %v2595_v11, 4  ;;  %v13004_v47 = vcombine.low %v2813_v15, %v2819_v13 }
 0x30a   :  { %4194 = vmatpush2.bf16.msra.mxu1 %v13022_v33  ;;  %v2629_v33 = vsel %vm619_vm4, %v15990_v55, %v2628_v46  ;;  %v13005_v55 = vcombine.high %v2813_v15, %v2819_v13 }
 0x30b   :  { %4195 = vmatprep.subr.bf16.mxu1 %v13017_v34  ;;  %v2634_v28 = vsel %vm221_vm1, %v20819_v52, %v2611_v0  ;;  %v3175_v5 = vpop.permute.xlu1 %3174  ;;  %v2617_v0 = vsel %vm619_vm4, %v16022_v56, %v2616_v41 }
 0x30c   :  { %v2579_v25 = vpop.permute.xlu0 %2578  ;;  %v2635_v3 = vsel %vm619_vm4, %v16106_v60, %v2634_v28  ;;  %v3195_v43 = vrot.slane %v3175_v5, 4  ;;  %v2432_v60 = vsel %vm221_vm1, %v20821_v36, %v2411_v45 }
 0x30d   :  { %v12998_v30 = vcombine.low %v2629_v33, %v2635_v3  ;;  %v12999_v23 = vcombine.high %v2629_v33, %v2635_v3  ;;  %v2603_v54 = vrot.slane %v2579_v25, 4  ;;  %v2433_v50 = vsel %vm520_vm5, %v16051_v22, %v2432_v60 }
 0x30e   :  { %4196 = vmatpush2.bf16.msra.mxu1 %v13016_v53 }
 0x30f   :  { %4197 = vmatprep.subr.bf16.mxu1 %v13011_v63  ;;  %v2375_v2 = vpop.permute.xlu1 %2374  ;;  %v2622_v24 = vsel %vm221_vm1, %v20822_v31, %v2603_v54  ;;  %v3216_v63 = vsel %vm221_vm1, %v20825_v17, %v3195_v43 }
 0x310   :  { %v2399_v16 = vpop.permute.xlu0 %2398  ;;  %v2623_v21 = vsel %vm619_vm4, %v16038_v32, %v2622_v24  ;;  %v2403_v22 = vrot.slane %v2375_v2, 4 }
 0x311   :  { %v2415_v8 = vrot.slane %v2399_v16, 4  ;;  %v12993_v14 = vcombine.high %v2617_v0, %v2623_v21  ;;  %v12992_v56 = vcombine.low %v2617_v0, %v2623_v21 }
 0x312   :  { %4198 = vmatpush2.bf16.msra.mxu1 %v13010_v27  ;;  %v2420_v25 = vsel %vm221_vm1, %v20827_v6, %v2403_v22 }
 0x313   :  { %4199 = vmatprep.subr.bf16.mxu1 %v13005_v55  ;;  %v2438_v10 = vsel %vm221_vm1, %v20823_v51, %v2415_v8  ;;  %v3159_v59 = vpop.permute.xlu1 %3158  ;;  %v2421_v13 = vsel %vm520_vm5, %v16099_v19, %v2420_v25 }
 0x314   :  { %v3183_v27 = vpop.permute.xlu0 %3182  ;;  %v2439_v61 = vsel %vm520_vm5, %v16137_v49, %v2438_v10  ;;  %v3217_v49 = vsel %vm916_vm9, %v16078_v20, %v3216_v63  ;;  %v3187_v52 = vrot.slane %v3159_v59, 4 }
 0x315   :  { %v3199_v40 = vrot.slane %v3183_v27, 4  ;;  %v12986_v11 = vcombine.low %v2433_v50, %v2439_v61  ;;  %v12987_v34 = vcombine.high %v2433_v50, %v2439_v61 }
 0x316   :  { %4200 = vmatpush2.bf16.msra.mxu1 %v13004_v47 }
 0x317   :  { %4201 = vmatprep.subr.bf16.mxu1 %v12999_v23  ;;  %v3222_v46 = vsel %vm221_vm1, %v3198_v29, %v3199_v40  ;;  %v20826_v29 = vrot.slane %v16088_v62, 4 }
 0x318   :  { %v2383_v9 = vpop.permute.xlu0 %2382  ;;  %v3223_v32 = vsel %vm916_vm9, %v16160_v4, %v3222_v46  ;;  %v3204_v4 = vsel %vm221_vm1, %v3186_v35, %v3187_v52 }
 0x319   :  { %v2407_v28 = vrot.slane %v2383_v9, 4  ;;  %v13034_v53 = vcombine.low %v3217_v49, %v3223_v32  ;;  %v13035_v5 = vcombine.high %v3217_v49, %v3223_v32  ;;  %v3205_v23 = vsel %vm916_vm9, %v16127_v48, %v3204_v4 }
 0x31a   :  { %4202 = vmatpush2.bf16.msra.mxu1 %v12998_v30 }
 0x31b   :  { %4203 = vmatprep.subr.bf16.mxu1 %v12993_v14  ;;  %v2426_v26 = vsel %vm221_vm1, %v20826_v29, %v2407_v28  ;;  %4242 = vmatprep.subr.bf16.mxu0 %v13035_v5 }
 0x31c   :  { %4243 = vmatpush1.bf16.msra.mxu0 %v13034_v53  ;;  %v3167_v20 = vpop.permute.xlu0 %3166  ;;  %v2427_v3 = vsel %vm520_vm5, %v16088_v62, %v2426_v26 }
 0x31d   :  { %v3191_v33 = vrot.slane %v3167_v20, 4  ;;  %v12981_v30 = vcombine.high %v2421_v13, %v2427_v3  ;;  %v12980_v62 = vcombine.low %v2421_v13, %v2427_v3 }
 0x31e   :  { %4204 = vmatpush2.bf16.msra.mxu1 %v12992_v56 }
 0x31f   :  { %4205 = vmatprep.subr.bf16.mxu1 %v12987_v34  ;;  %v3210_v45 = vsel %vm221_vm1, %v3190_v58, %v3191_v33  ;;  %v16405_v38 = vpop.permute.xlu1 %3380 }
 0x320   :  { %v3211_v35 = vsel %vm916_vm9, %v16187_v1, %v3210_v45 }
 0x321   :  { %v13028_v54 = vcombine.low %v3205_v23, %v3211_v35  ;;  %v13029_v15 = vcombine.high %v3205_v23, %v3211_v35 }
 0x322   :  { %4206 = vmatpush2.bf16.msra.mxu1 %v12986_v11 }
 0x323   :  { %4207 = vmatprep.subr.bf16.mxu1 %v12981_v30  ;;  %4244 = vmatprep.subr.bf16.mxu0 %v13029_v15  ;;  %v16409_v16 = vpop.permute.xlu1 %3370 }
 0x324   :  { %4245 = vmatpush1.bf16.msra.mxu0 %v13028_v54 }
 0x326   :  { %4208 = vmatpush2.bf16.msra.mxu1 %v12980_v62 }
 0x327   :  { %13040 = vmatmul.mubr.msk.bf16.vlgmr.msra.gmra.mxu0 %vm3958_vm13, %v16056_v7 }
 0x328   :  { %4272 = vmatprep.mubr.bf16.mxu0 %v20770_v37 }
 0x329   :  { %4210 = vmatmul.mubr.bf16.vlgmr.msra.gmra.mxu1 %v15962_v18 }
 0x32a   :  { %4219 = vmatprep.mubr.bf16.mxu1 %v15970_v39  ;;  %v16407_v18 = vpop.permute.xlu0 %3385 }
 0x32f   :  { %13041 = vmatmul.mubr.msk.bf16.gmra.mxu0 %vm3958_vm13, %v16104_v57  ;;  %v16413_v60 = vpop.permute.xlu0 %3375 }
 0x331   :  { %4220 = vmatmul.mubr.bf16.gmra.mxu1 %v15995_v12 }
 0x332   :  { %6856 = vmatprep.mubr.bf16.mxu1 %v20770_v37 }
 0x37d   :  { %v3999_v19 = vpop.f32.mrf.mxu1 }
 0x37e   :  { %v4000_v57 = vadd.f32 %v3999_v19, %v16409_v16 }
 0x37f   :  { %v4001_v48 = vpop.f32.mrf.mxu1 }
 0x380   :  { %v4002_v12 = vadd.f32 %v4001_v48, %v16409_v16 }
 0x381   :  { %v4003_v1 = vpop.f32.mrf.mxu1 }
 0x382   :  { %v4004_v31 = vadd.f32 %v4003_v1, %v16413_v60 }
 0x383   :  { %v4005_v58 = vpop.f32.mrf.mxu1 }
 0x384   :  { %v4006_v47 = vadd.f32 %v4005_v58, %v16413_v60 }
 0x385   :  { %v4009_v7 = vpop.f32.mrf.mxu1 }
 0x386   :  { %v4010_v17 = vadd.f32 %v4009_v7, %v16405_v38 }
 0x387   :  { %v4011_v43 = vpop.f32.mrf.mxu1 }
 0x388   :  { %v4012_v21 = vadd.f32 %v4011_v43, %v16405_v38 }
 0x389   :  { %v4013_v2 = vpop.f32.mrf.mxu1 }
 0x38a   :  { %v4014_v22 = vadd.f32 %v4013_v2, %v16407_v18 }
 0x38b   :  { %v4015_v39 = vpop.f32.mrf.mxu1 }
 0x38c   :  { %v4016_v5 = vadd.f32 %v4015_v39, %v16407_v18 }
 0x38d   :  { %v4052_v55 = vpop.f32.mrf.mxu1 }
 0x38e   :  { %v4053_v36 = vadd.f32 %v4052_v55, %v4000_v57 }
 0x38f   :  { %v4054_v8 = vpop.f32.mrf.mxu1 }
 0x390   :  { %vm4283_vm14 = vcmp.ge.f32.partialorder %v4053_v36, 0.0  ;;  %v4307_v24 = vmul.f32 0.2, %v4053_v36  ;;  %v4055_v51 = vadd.f32 %v4054_v8, %v4002_v12 }
 0x391   :  { %v4056_v10 = vpop.f32.mrf.mxu1 }
 0x392   :  { %vm4284_vm15 = vcmp.ge.f32.partialorder %v4055_v51, 0.0  ;;  %v4308_v44 = vmul.f32 0.2, %v4055_v51  ;;  %v4057_v41 = vadd.f32 %v4056_v10, %v4004_v31  ;;  %v16418_v63 = vsel %vm4283_vm14, %v4053_v36, %v4307_v24 }
 0x393   :  { %v4058_v27 = vpop.f32.mrf.mxu1 }
 0x394   :  { %v16420_v50 = vsel %vm4284_vm15, %v4055_v51, %v4308_v44  ;;  %vm4289_vm0 = vcmp.ge.f32.partialorder %v4057_v41, 0.0  ;;  %v4313_v61 = vmul.f32 0.2, %v4057_v41  ;;  %v4059_v40 = vadd.f32 %v4058_v27, %v4006_v47 }
 0x395   :  { %v16425_v11 = vpack.c.bf16 %v16420_v50, %v16418_v63  ;;  %v4062_v34 = vpop.f32.mrf.mxu1 }
 0x396   :  { %v16427_v59 = vsel %vm4289_vm0, %v4057_v41, %v4313_v61  ;;  %vm4290_vm10 = vcmp.ge.f32.partialorder %v4059_v40, 0.0  ;;  %v4314_v46 = vmul.f32 0.2, %v4059_v40  ;;  %v4063_v0 = vadd.f32 %v4062_v34, %v4010_v17 }
 0x397   :  { %v4064_v14 = vpop.f32.mrf.mxu1  ;;  %4979 = vrot.lane.b32.xlu1 %v16425_v11, %s14554_s25 }
 0x398   :  { %v16434_v49 = vsel %vm4290_vm10, %v4059_v40, %v4314_v46  ;;  %vm4295_vm11 = vcmp.ge.f32.partialorder %v4063_v0, 0.0  ;;  %v4319_v32 = vmul.f32 0.2, %v4063_v0  ;;  %v4065_v52 = vadd.f32 %v4064_v14, %v4012_v21 }
 0x399   :  { %v4066_v28 = vpop.f32.mrf.mxu1  ;;  %v14029_v40 = vpack.c.bf16 %v16434_v49, %v16427_v59 }
 0x39a   :  { %vm4296_vm12 = vcmp.ge.f32.partialorder %v4065_v52, 0.0  ;;  %v4320_v29 = vmul.f32 0.2, %v4065_v52  ;;  %v4067_v26 = vadd.f32 %v4066_v28, %v4014_v22  ;;  %v16439_v56 = vsel %vm4295_vm11, %v4063_v0, %v4319_v32 }
 0x39b   :  { %v4068_v6 = vpop.f32.mrf.mxu1  ;;  %4783 = vrot.lane.b32.xlu1 %v16425_v11, %s14555_s26 }
 0x39c   :  { %v16443_v25 = vsel %vm4296_vm12, %v4065_v52, %v4320_v29  ;;  %vm4301_vm14 = vcmp.ge.f32.partialorder %v4067_v26, 0.0  ;;  %v4325_v20 = vmul.f32 0.2, %v4067_v26  ;;  %v4069_v4 = vadd.f32 %v4068_v6, %v4016_v5 }
 0x39d   :  { %v16447_v33 = vpack.c.bf16 %v16443_v25, %v16439_v56 }
 0x39e   :  { %v16449_v3 = vsel %vm4301_vm14, %v4067_v26, %v4325_v20  ;;  %vm4302_vm15 = vcmp.ge.f32.partialorder %v4069_v4, 0.0  ;;  %v4326_v45 = vmul.f32 0.2, %v4069_v4 }
 0x39f   :  { %4587 = vrot.lane.b32.xlu1 %v16425_v11, %s14556_s27 }
 0x3a0   :  { %v16455_v30 = vsel %vm4302_vm15, %v4069_v4, %v4326_v45 }
 0x3a1   :  { %v16459_v23 = vpack.c.bf16 %v16455_v30, %v16449_v3 }
 0x3a3   :  { %5763 = vrot.lane.b32.xlu1 %v16425_v11, %s14550_s14 }
 0x3a7   :  { %5567 = vrot.lane.b32.xlu1 %v16425_v11, %s14551_s15 }
 0x3a9   :  { %v4158_v15 = vpop.f32.mrf.mxu1 }
 0x3aa   :  { %v4105_v54 = vpop.f32.mrf.mxu0 }
 0x3ab   :  { %v4106_v62 = vadd.f32 %v4105_v54, %v16409_v16  ;;  %5371 = vrot.lane.b32.xlu1 %v16425_v11, %s14552_s24  ;;  %v4160_v48 = vpop.f32.mrf.mxu1 }
 0x3ac   :  { %v4107_v19 = vpop.f32.mrf.mxu0 }
 0x3ad   :  { %v4159_v1 = vadd.f32 %v4158_v15, %v4106_v62  ;;  %v4108_v58 = vadd.f32 %v4107_v19, %v16409_v16  ;;  %v4162_v43 = vpop.f32.mrf.mxu1 }
 0x3ae   :  { %v4109_v7 = vpop.f32.mrf.mxu0 }
 0x3af   :  { %vm4285_vm0 = vcmp.ge.f32.partialorder %v4159_v1, 0.0  ;;  %v4309_v2 = vmul.f32 0.2, %v4159_v1  ;;  %v4161_v39 = vadd.f32 %v4160_v48, %v4108_v58  ;;  %v4110_v57 = vadd.f32 %v4109_v7, %v16413_v60  ;;  %5175 = vrot.lane.b32.xlu1 %v16425_v11, %s14553_s0  ;;  %v4164_v8 = vpop.f32.mrf.mxu1 }
 0x3b0   :  { %v4111_v55 = vpop.f32.mrf.mxu0 }
 0x3b1   :  { %vm4286_vm10 = vcmp.ge.f32.partialorder %v4161_v39, 0.0  ;;  %v4310_v12 = vmul.f32 0.2, %v4161_v39  ;;  %v4163_v36 = vadd.f32 %v4162_v43, %v4110_v57  ;;  %v16474_v31 = vsel %vm4285_vm0, %v4159_v1, %v4309_v2  ;;  %v4168_v41 = vpop.f32.mrf.mxu1 }
 0x3b2   :  { %20828 = vst [vmem:[#allocation25_spill] sm:$0xff] %v16474_v31  ;;  %v4112_v24 = vadd.f32 %v4111_v55, %v16413_v60  ;;  %v4115_v51 = vpop.f32.mrf.mxu0 }
 0x3b3   :  { %v16477_v10 = vsel %vm4286_vm10, %v4161_v39, %v4310_v12  ;;  %vm4291_vm11 = vcmp.ge.f32.partialorder %v4163_v36, 0.0  ;;  %v4315_v47 = vmul.f32 0.2, %v4163_v36  ;;  %v4116_v44 = vadd.f32 %v4115_v51, %v16405_v38  ;;  %5959 = vrot.lane.b32.xlu1 %v16425_v11, %s14557_s30  ;;  %v4170_v46 = vpop.f32.mrf.mxu1 }
 0x3b4   :  { %20829 = vst [vmem:[#allocation22_spill] sm:$0xff] %v16477_v10  ;;  %v14027_v17 = vpack.c.bf16 %v16477_v10, %v16474_v31  ;;  %v4165_v27 = vadd.f32 %v4164_v8, %v4112_v24  ;;  %v4117_v61 = vpop.f32.mrf.mxu0 }
 0x3b5   :  { %v16486_v21 = vsel %vm4291_vm11, %v4163_v36, %v4315_v47  ;;  %v4118_v34 = vadd.f32 %v4117_v61, %v16405_v38  ;;  %v4169_v14 = vadd.f32 %v4168_v41, %v4116_v44  ;;  %v4172_v52 = vpop.f32.mrf.mxu1 }
 0x3b6   :  { %20830 = vst [vmem:[#allocation28_spill] sm:$0xff] %v16486_v21  ;;  %vm4292_vm12 = vcmp.ge.f32.partialorder %v4165_v27, 0.0  ;;  %v4316_v22 = vmul.f32 0.2, %v4165_v27  ;;  %v4119_v32 = vpop.f32.mrf.mxu0  ;;  %4981 = vrot.lane.b32.xlu0 %v14027_v17, %s14554_s25 }
 0x3b7   :  { %v4120_v11 = vadd.f32 %v4119_v32, %v16407_v18  ;;  %v4171_v5 = vadd.f32 %v4170_v46, %v4118_v34  ;;  %4987 = vrot.lane.b32.xlu1 %v14029_v40, %s14554_s25  ;;  %v4174_v26 = vpop.f32.mrf.mxu1  ;;  %v4321_v6 = vmul.f32 0.2, %v4169_v14  ;;  %vm4297_vm14 = vcmp.ge.f32.partialorder %v4169_v14, 0.0 }
 0x3b8   :  { %v16493_v28 = vsel %vm4292_vm12, %v4165_v27, %v4316_v22  ;;  %v4121_v29 = vpop.f32.mrf.mxu0 }
 0x3b9   :  { %20831 = vst [vmem:[#allocation24_spill] sm:$0xff] %v16493_v28  ;;  %v4122_v20 = vadd.f32 %v4121_v29, %v16407_v18  ;;  %v4173_v4 = vadd.f32 %v4172_v52, %v4120_v11  ;;  %v4322_v54 = vmul.f32 0.2, %v4171_v5  ;;  %vm4298_vm0 = vcmp.ge.f32.partialorder %v4171_v5, 0.0 }
 0x3ba   :  { %4785 = vrot.lane.b32.xlu0 %v14027_v17, %s14555_s26  ;;  %v16501_v19 = vsel %vm4297_vm14, %v4169_v14, %v4321_v6  ;;  %v14030_v39 = vpack.c.bf16 %v16493_v28, %v16486_v21 }
 0x3bb   :  { %vm4303_vm15 = vcmp.ge.f32.partialorder %v4173_v4, 0.0  ;;  %v4327_v15 = vmul.f32 0.2, %v4173_v4  ;;  %v4175_v62 = vadd.f32 %v4174_v26, %v4122_v20  ;;  %4791 = vrot.lane.b32.xlu1 %v14029_v40, %s14555_s26  ;;  %20832 = vst [vmem:[#allocation27_spill] sm:$0xff] %v16501_v19  ;;  %v16508_v7 = vsel %vm4298_vm0, %v4171_v5, %v4322_v54 }
 0x3bc   :  { %20834 = vst [vmem:[#allocation26_spill] sm:$0xff] %v16508_v7 }
 0x3bd   :  { %v16503_v48 = vsel %vm4303_vm15, %v4173_v4, %v4327_v15  ;;  %vm4304_vm10 = vcmp.ge.f32.partialorder %v4175_v62, 0.0  ;;  %v4328_v1 = vmul.f32 0.2, %v4175_v62 }
 0x3be   :  { %20833 = vst [vmem:[#allocation23_spill] sm:$0xff] %v16503_v48  ;;  %4589 = vrot.lane.b32.xlu0 %v14027_v17, %s14556_s27 }
 0x3bf   :  { %v16510_v43 = vsel %vm4304_vm10, %v4175_v62, %v4328_v1  ;;  %4595 = vrot.lane.b32.xlu1 %v14029_v40, %s14556_s27 }
 0x3c0   :  { %20835 = vst [vmem:[#allocation12_spill] sm:$0xff] %v16510_v43 }
 0x3c2   :  { %5765 = vrot.lane.b32.xlu0 %v14027_v17, %s14550_s14 }
 0x3c3   :  { %5771 = vrot.lane.b32.xlu1 %v14029_v40, %s14550_s14 }
 0x3c6   :  { %5569 = vrot.lane.b32.xlu0 %v14027_v17, %s14551_s15 }
 0x3c7   :  { %5575 = vrot.lane.b32.xlu1 %v14029_v40, %s14551_s15 }
 0x3ca   :  { %5373 = vrot.lane.b32.xlu0 %v14027_v17, %s14552_s24 }
 0x3cb   :  { %5379 = vrot.lane.b32.xlu1 %v14029_v40, %s14552_s24 }
 0x3ce   :  { %5177 = vrot.lane.b32.xlu0 %v14027_v17, %s14553_s0 }
 0x3cf   :  { %5183 = vrot.lane.b32.xlu1 %v14029_v40, %s14553_s0 }
 0x3d2   :  { %5961 = vrot.lane.b32.xlu0 %v14027_v17, %s14557_s30 }
 0x3d3   :  { %5967 = vrot.lane.b32.xlu1 %v14029_v40, %s14557_s30 }
 0x3d6   :  { %4989 = vrot.lane.b32.xlu0 %v14030_v39, %s14554_s25 }
 0x3d7   :  { %4995 = vrot.lane.b32.xlu1 %v16447_v33, %s14554_s25 }
 0x3da   :  { %4793 = vrot.lane.b32.xlu0 %v14030_v39, %s14555_s26 }
 0x3db   :  { %4799 = vrot.lane.b32.xlu1 %v16447_v33, %s14555_s26 }
 0x3de   :  { %4597 = vrot.lane.b32.xlu0 %v14030_v39, %s14556_s27 }
 0x3df   :  { %4603 = vrot.lane.b32.xlu1 %v16447_v33, %s14556_s27 }
 0x3e2   :  { %5773 = vrot.lane.b32.xlu0 %v14030_v39, %s14550_s14 }
 0x3e3   :  { %5779 = vrot.lane.b32.xlu1 %v16447_v33, %s14550_s14 }
 0x3e6   :  { %5577 = vrot.lane.b32.xlu0 %v14030_v39, %s14551_s15 }
 0x3e7   :  { %5583 = vrot.lane.b32.xlu1 %v16447_v33, %s14551_s15  ;;  %v4264_v57 = vpop.f32.mrf.mxu0 }
 0x3e9   :  { %v4211_v55 = vpop.f32.mrf.mxu1  ;;  %v4266_v36 = vpop.f32.mrf.mxu0 }
 0x3ea   :  { %5381 = vrot.lane.b32.xlu0 %v14030_v39, %s14552_s24  ;;  %v4212_v12 = vadd.f32 %v4211_v55, %v16409_v16 }
 0x3eb   :  { %5387 = vrot.lane.b32.xlu1 %v16447_v33, %s14552_s24  ;;  %v4213_v8 = vpop.f32.mrf.mxu1  ;;  %v4268_v51 = vpop.f32.mrf.mxu0 }
 0x3ec   :  { %v4214_v24 = vadd.f32 %v4213_v8, %v16409_v16  ;;  %v4265_v47 = vadd.f32 %v4264_v57, %v4212_v12  ;;  %v16555_v16 = vpack.c.bf16 %v16508_v7, %v16501_v19 }
 0x3ed   :  { %v4215_v44 = vpop.f32.mrf.mxu1  ;;  %v4270_v27 = vpop.f32.mrf.mxu0 }
 0x3ee   :  { %5185 = vrot.lane.b32.xlu0 %v14030_v39, %s14553_s0  ;;  %v4216_v41 = vadd.f32 %v4215_v44, %v16413_v60  ;;  %v4267_v17 = vadd.f32 %v4266_v36, %v4214_v24  ;;  %v4311_v46 = vmul.f32 0.2, %v4265_v47  ;;  %vm4287_vm11 = vcmp.ge.f32.partialorder %v4265_v47, 0.0 }
 0x3ef   :  { %5191 = vrot.lane.b32.xlu1 %v16447_v33, %s14553_s0  ;;  %v4217_v61 = vpop.f32.mrf.mxu1  ;;  %v4274_v34 = vpop.f32.mrf.mxu0 }
 0x3f0   :  { %v4218_v40 = vadd.f32 %v4217_v61, %v16413_v60  ;;  %v4269_v22 = vadd.f32 %v4268_v51, %v4216_v41  ;;  %v4312_v32 = vmul.f32 0.2, %v4267_v17  ;;  %vm4288_vm12 = vcmp.ge.f32.partialorder %v4267_v17, 0.0 }
 0x3f1   :  { %v4221_v14 = vpop.f32.mrf.mxu1  ;;  %v4276_v5 = vpop.f32.mrf.mxu0  ;;  %v16563_v4 = vsel %vm4287_vm11, %v4265_v47, %v4311_v46 }
 0x3f2   :  { %5969 = vrot.lane.b32.xlu0 %v14030_v39, %s14557_s30  ;;  %v4222_v11 = vadd.f32 %v4221_v14, %v16405_v38  ;;  %v4271_v52 = vadd.f32 %v4270_v27, %v4218_v40  ;;  %vm4293_vm14 = vcmp.ge.f32.partialorder %v4269_v22, 0.0  ;;  %v4317_v60 = vmul.f32 0.2, %v4269_v22  ;;  %20836 = vst [vmem:[#allocation10_spill] sm:$0xff] %v16563_v4 }
 0x3f3   :  { %5975 = vrot.lane.b32.xlu1 %v16447_v33, %s14557_s30  ;;  %v4223_v29 = vpop.f32.mrf.mxu1  ;;  %v4278_v20 = vpop.f32.mrf.mxu0  ;;  %v16567_v33 = vsel %vm4288_vm12, %v4267_v17, %v4312_v32 }
 0x3f4   :  { %vm4294_vm15 = vcmp.ge.f32.partialorder %v4271_v52, 0.0  ;;  %v4318_v26 = vmul.f32 0.2, %v4271_v52  ;;  %v4224_v6 = vadd.f32 %v4223_v29, %v16405_v38  ;;  %v16565_v54 = vsel %vm4293_vm14, %v4269_v22, %v4317_v60  ;;  %20838 = vst [vmem:[#allocation9_spill] sm:$0xff] %v16567_v33  ;;  %v16575_v38 = vpop.permute.xlu1 %5001 }
 0x3f5   :  { %20837 = vst [vmem:[#allocation11_spill] sm:$0xff] %v16565_v54  ;;  %v4275_v15 = vadd.f32 %v4274_v34, %v4222_v11  ;;  %v4225_v62 = vpop.f32.mrf.mxu1  ;;  %20840 = vst [vmem:[#allocation6_spill] sm:$0xff] %v16575_v38  ;;  %v4280_v36 = vpop.f32.mrf.mxu0  ;;  %v14036_v60 = vpack.c.bf16 %v16510_v43, %v16503_v48 }
 0x3f6   :  { %4997 = vrot.lane.b32.xlu0 %v16555_v16, %s14554_s25  ;;  %v16571_v39 = vsel %vm4294_vm15, %v4271_v52, %v4318_v26  ;;  %v4226_v57 = vadd.f32 %v4225_v62, %v16407_v18  ;;  %v4277_v55 = vadd.f32 %v4276_v5, %v4224_v6  ;;  %v16636_v26 = vpop.permute.xlu0 %5009 }
 0x3f7   :  { %20839 = vst [vmem:[#allocation8_spill] sm:$0xff] %v16571_v39  ;;  %5003 = vrot.lane.b32.xlu1 %v16459_v23, %s14554_s25  ;;  %v4227_v12 = vpop.f32.mrf.mxu1  ;;  %v4323_v51 = vmul.f32 0.2, %v4275_v15  ;;  %vm4299_vm0 = vcmp.ge.f32.partialorder %v4275_v15, 0.0  ;;  %20847 = vst [vmem:[#allocation30_spill] sm:$0xff] %v16636_v26  ;;  %v16713_v14 = vpack.c.bf16 %v16571_v39, %v16565_v54 }
 0x3f8   :  { %v4228_v24 = vadd.f32 %v4227_v12, %v16407_v18  ;;  %v4279_v47 = vadd.f32 %v4278_v20, %v4226_v57  ;;  %v4324_v44 = vmul.f32 0.2, %v4277_v55  ;;  %vm4300_vm10 = vcmp.ge.f32.partialorder %v4277_v55, 0.0  ;;  %v16587_v18 = vpop.permute.xlu1 %4985 }
 0x3f9   :  { %20841 = vst [vmem:[#allocation7_spill] sm:$0xff] %v16587_v18  ;;  %v16589_v61 = vsel %vm4299_vm0, %v4275_v15, %v4323_v51 }
 0x3fa   :  { %4801 = vrot.lane.b32.xlu0 %v16555_v16, %s14555_s26  ;;  %v4281_v41 = vadd.f32 %v4280_v36, %v4228_v24  ;;  %vm4305_vm11 = vcmp.ge.f32.partialorder %v4279_v47, 0.0  ;;  %v4329_v17 = vmul.f32 0.2, %v4279_v47  ;;  %20842 = vst [vmem:[#allocation5_spill] sm:$0xff] %v16589_v61  ;;  %v16593_v34 = vsel %vm4300_vm10, %v4277_v55, %v4324_v44 }
 0x3fb   :  { %4789 = vrot.lane.b32.xlu1 %v20709_v42, %s14555_s26  ;;  %20844 = vst [vmem:[#allocation31_spill] sm:$0xff] %v16593_v34 }
 0x3fc   :  { %vm4306_vm12 = vcmp.ge.f32.partialorder %v4281_v41, 0.0  ;;  %v4330_v27 = vmul.f32 0.2, %v4281_v41  ;;  %v16591_v40 = vsel %vm4305_vm11, %v4279_v47, %v4329_v17  ;;  %v16607_v32 = vpop.permute.xlu1 %4805 }
 0x3fd   :  { %20843 = vst [vmem:[#allocation21_spill] sm:$0xff] %v16591_v40  ;;  %20846 = vst [vmem:[#allocation29_spill] sm:$0xff] %v16607_v32 }
 0x3fe   :  { %4605 = vrot.lane.b32.xlu0 %v16555_v16, %s14556_s27  ;;  %v16597_v22 = vsel %vm4306_vm12, %v4281_v41, %v4330_v27  ;;  %v14034_v41 = vpack.c.bf16 %v16593_v34, %v16589_v61 }
 0x3ff   :  { %20845 = vst [vmem:[#allocation32_spill] sm:$0xff] %v16597_v22  ;;  %4807 = vrot.lane.b32.xlu1 %v16459_v23, %s14555_s26 }
 0x402   :  { %5781 = vrot.lane.b32.xlu0 %v16555_v16, %s14550_s14 }
 0x403   :  { %4611 = vrot.lane.b32.xlu1 %v16459_v23, %s14556_s27 }
 0x406   :  { %5585 = vrot.lane.b32.xlu0 %v16555_v16, %s14551_s15 }
 0x407   :  { %5787 = vrot.lane.b32.xlu1 %v16459_v23, %s14550_s14 }
 0x409   :  { %v16613_v11 = vpop.permute.xlu1 %4979 }
 0x40a   :  { %5389 = vrot.lane.b32.xlu0 %v16555_v16, %s14552_s24 }
 0x40b   :  { %5591 = vrot.lane.b32.xlu1 %v16459_v23, %s14551_s15 }
 0x40d   :  { %v16619_v52 = vpop.permute.xlu1 %4783 }
 0x40e   :  { %5193 = vrot.lane.b32.xlu0 %v16555_v16, %s14553_s0 }
 0x40f   :  { %5395 = vrot.lane.b32.xlu1 %v16459_v23, %s14552_s24 }
 0x411   :  { %v16625_v5 = vpop.permute.xlu1 %4587 }
 0x412   :  { %5977 = vrot.lane.b32.xlu0 %v16555_v16, %s14557_s30  ;;  %v16646_v16 = vpop.permute.xlu0 %4993 }
 0x413   :  { %5199 = vrot.lane.b32.xlu1 %v16459_v23, %s14553_s0  ;;  %20848 = vst [vmem:[#allocation20_spill] sm:$0xff] %v16646_v16 }
 0x415   :  { %v16633_v29 = vpop.permute.xlu1 %5763 }
 0x416   :  { %5005 = vrot.lane.b32.xlu0 %v14036_v60, %s14554_s25  ;;  %v16661_v62 = vpop.permute.xlu0 %4813 }
 0x417   :  { %5983 = vrot.lane.b32.xlu1 %v16459_v23, %s14557_s30  ;;  %v16655_v23 = vpack.c.bf16 %v16567_v33, %v16563_v4  ;;  %20851 = vst [vmem:[#allocation17_spill] sm:$0xff] %v16661_v62  ;;  %v16750_v4 = vld [vmem:[%s20319_s5 + $0x4] ss:$12 sps:$4 sm:$0xff]   ;;  %v16759_v33 = vpack.c.bf16 %v16597_v22, %v16591_v40 }
 0x418   :  { %20859 = vst [vmem:[#allocation36_spill] sm:$0xff] %v16750_v4  ;;  %6803 = vmatprep.mubr.bf16.mxu0 %v16750_v4 }
 0x419   :  { %v16640_v6 = vpop.permute.xlu1 %5567 }
 0x41a   :  { %4797 = vrot.lane.b32.xlu0 %v20709_v42, %s14555_s26 }
 0x41b   :  { %4609 = vrot.lane.b32.xlu1 %v20709_v42, %s14556_s27 }
 0x41d   :  { %v16648_v20 = vpop.permute.xlu1 %5371 }
 0x41e   :  { %20849 = vst [vmem:[#allocation19_spill] sm:$0xff] %v16648_v20  ;;  %4809 = vrot.lane.b32.xlu0 %v14036_v60, %s14555_s26 }
 0x41f   :  { %4593 = vrot.lane.b32.xlu1 %v20709_v42, %s14556_s27 }
 0x421   :  { %v16657_v15 = vpop.permute.xlu1 %5175 }
 0x422   :  { %20850 = vst [vmem:[#allocation18_spill] sm:$0xff] %v16657_v15  ;;  %4617 = vrot.lane.b32.xlu0 %v20709_v42, %s14556_s27 }
 0x423   :  { %4983 = vrot.lane.b32.xlu1 %v16655_v23, %s14554_s25 }
 0x425   :  { %v16665_v57 = vpop.permute.xlu1 %5959 }
 0x426   :  { %4613 = vrot.lane.b32.xlu0 %v14036_v60, %s14556_s27 }
 0x427   :  { %5963 = vrot.lane.b32.xlu1 %v16655_v23, %s14557_s30 }
 0x428   :  { %v16670_v55 = vpop.permute.xlu0 %4981 }
 0x429   :  { %v16674_v12 = vpop.permute.xlu1 %4987 }
 0x42a   :  { %4601 = vrot.lane.b32.xlu0 %v20709_v42, %s14556_s27 }
 0x42b   :  { %4787 = vrot.lane.b32.xlu1 %v16655_v23, %s14555_s26 }
 0x42c   :  { %v16678_v36 = vpop.permute.xlu0 %4785 }
 0x42d   :  { %v16681_v24 = vpop.permute.xlu1 %4791 }
 0x42e   :  { %5789 = vrot.lane.b32.xlu0 %v14036_v60, %s14550_s14 }
 0x42f   :  { %4591 = vrot.lane.b32.xlu1 %v16655_v23, %s14556_s27 }
 0x430   :  { %v16685_v51 = vpop.permute.xlu0 %4589 }
 0x431   :  { %v16688_v47 = vpop.permute.xlu1 %4595 }
 0x432   :  { %5593 = vrot.lane.b32.xlu0 %v14036_v60, %s14551_s15 }
 0x433   :  { %5767 = vrot.lane.b32.xlu1 %v16655_v23, %s14550_s14 }
 0x434   :  { %v16692_v44 = vpop.permute.xlu0 %5765 }
 0x435   :  { %20852 = vst [vmem:[#allocation16_spill] sm:$0xff] %v16692_v44  ;;  %v16697_v17 = vpop.permute.xlu1 %5771 }
 0x436   :  { %5397 = vrot.lane.b32.xlu0 %v14036_v60, %s14552_s24 }
 0x437   :  { %4999 = vrot.lane.b32.xlu1 %v14034_v41, %s14554_s25 }
 0x438   :  { %v16700_v27 = vpop.permute.xlu0 %5569 }
 0x439   :  { %20853 = vst [vmem:[#allocation15_spill] sm:$0xff] %v16700_v27  ;;  %v16703_v1 = vpop.permute.xlu1 %5575 }
 0x43a   :  { %5201 = vrot.lane.b32.xlu0 %v14036_v60, %s14553_s0 }
 0x43b   :  { %5979 = vrot.lane.b32.xlu1 %v14034_v41, %s14557_s30 }
 0x43c   :  { %v16706_v8 = vpop.permute.xlu0 %5373 }
 0x43d   :  { %20854 = vst [vmem:[#allocation14_spill] sm:$0xff] %v16706_v8  ;;  %v16709_v46 = vpop.permute.xlu1 %5379  ;;  %v5011_v8 = vrot.slane %v16613_v11, 4 }
 0x43e   :  { %5985 = vrot.lane.b32.xlu0 %v14036_v60, %s14557_s30  ;;  %20855 = vst [vmem:[#allocation13_spill] sm:$0xff] %v16709_v46  ;;  %v20877_v46 = vrot.slane %v16670_v55, 4 }
 0x43f   :  { %4803 = vrot.lane.b32.xlu1 %v14034_v41, %s14555_s26 }
 0x440   :  { %v16716_v0 = vpop.permute.xlu0 %5177 }
 0x441   :  { %20856 = vst [vmem:[#allocation33_spill] sm:$0xff] %v16716_v0  ;;  %v16720_v45 = vpop.permute.xlu1 %5183 }
 0x442   :  { %4991 = vrot.lane.b32.xlu0 %v16713_v14, %s14554_s25  ;;  %20857 = vst [vmem:[#allocation34_spill] sm:$0xff] %v16720_v45 }
 0x443   :  { %5571 = vrot.lane.b32.xlu1 %v16655_v23, %s14551_s15 }
 0x444   :  { %v16724_v58 = vpop.permute.xlu0 %5961 }
 0x445   :  { %v16728_v60 = vpop.permute.xlu1 %5967 }
 0x446   :  { %5971 = vrot.lane.b32.xlu0 %v16713_v14, %s14557_s30  ;;  %20858 = vst [vmem:[#allocation35_spill] sm:$0xff] %v16728_v60 }
 0x447   :  { %4607 = vrot.lane.b32.xlu1 %v14034_v41, %s14556_s27 }
 0x448   :  { %v16731_v2 = vpop.permute.xlu0 %4989 }
 0x449   :  { %v16735_v9 = vpop.permute.xlu1 %4995 }
 0x44a   :  { %4795 = vrot.lane.b32.xlu0 %v16713_v14, %s14555_s26  ;;  %v5019_v20 = vrot.slane %v16735_v9, 4 }
 0x44b   :  { %5783 = vrot.lane.b32.xlu1 %v14034_v41, %s14550_s14 }
 0x44c   :  { %v16738_v53 = vpop.permute.xlu0 %4793 }
 0x44d   :  { %v16742_v13 = vpop.permute.xlu1 %4799 }
 0x44e   :  { %4599 = vrot.lane.b32.xlu0 %v16713_v14, %s14556_s27 }
 0x44f   :  { %5587 = vrot.lane.b32.xlu1 %v14034_v41, %s14551_s15 }
 0x450   :  { %v16745_v35 = vpop.permute.xlu0 %4597 }
 0x451   :  { %v16754_v54 = vpop.permute.xlu1 %4603 }
 0x452   :  { %5775 = vrot.lane.b32.xlu0 %v16713_v14, %s14550_s14 }
 0x453   :  { %5785 = vrot.lane.b32.xlu1 %v20709_v42, %s14550_s14 }
 0x454   :  { %v16763_v39 = vpop.permute.xlu0 %5773 }
 0x455   :  { %20860 = vst [vmem:[#allocation37_spill] sm:$0xff] %v16763_v39  ;;  %v16767_v61 = vpop.permute.xlu1 %5779 }
 0x456   :  { %5007 = vrot.lane.b32.xlu0 %v16759_v33, %s14554_s25 }
 0x457   :  { %5391 = vrot.lane.b32.xlu1 %v14034_v41, %s14552_s24 }
 0x458   :  { %v16770_v34 = vpop.permute.xlu0 %5577 }
 0x459   :  { %20861 = vst [vmem:[#allocation38_spill] sm:$0xff] %v16770_v34  ;;  %v16774_v31 = vpop.permute.xlu1 %5583 }
 0x45a   :  { %5987 = vrot.lane.b32.xlu0 %v16759_v33, %s14557_s30 }
 0x45b   :  { %5769 = vrot.lane.b32.xlu1 %v20709_v42, %s14550_s14 }
 0x45c   :  { %v16778_v40 = vpop.permute.xlu0 %5381 }
 0x45d   :  { %20862 = vst [vmem:[#allocation39_spill] sm:$0xff] %v16778_v40  ;;  %v16782_v22 = vpop.permute.xlu1 %5387 }
 0x45e   :  { %4811 = vrot.lane.b32.xlu0 %v16759_v33, %s14555_s26  ;;  %20863 = vst [vmem:[#allocation40_spill] sm:$0xff] %v16782_v22  ;;  %v20876_v22 = vrot.slane %v16731_v2, 4 }
 0x45f   :  { %5375 = vrot.lane.b32.xlu1 %v16655_v23, %s14552_s24 }
 0x460   :  { %v16786_v21 = vpop.permute.xlu0 %5185 }
 0x461   :  { %20864 = vst [vmem:[#allocation41_spill] sm:$0xff] %v16786_v21  ;;  %v16790_v10 = vpop.permute.xlu1 %5191  ;;  %v5015_v21 = vrot.slane %v16674_v12, 4 }
 0x462   :  { %5579 = vrot.lane.b32.xlu0 %v16713_v14, %s14551_s15  ;;  %20865 = vst [vmem:[#allocation42_spill] sm:$0xff] %v16790_v10 }
 0x463   :  { %5589 = vrot.lane.b32.xlu1 %v20709_v42, %s14551_s15  ;;  %v5033_v40 = vsel %vm221_vm1, %v5015_v21, %v20876_v22 }
 0x464   :  { %v16794_v28 = vpop.permute.xlu0 %5969  ;;  %v5034_v22 = vsel %vm421_vm6, %v16674_v12, %v5033_v40  ;;  %v4823_v40 = vrot.slane %v16742_v13, 4  ;;  %v4815_v12 = vrot.slane %v16619_v52, 4 }
 0x465   :  { %v16798_v19 = vpop.permute.xlu1 %5975 }
 0x466   :  { %4615 = vrot.lane.b32.xlu0 %v16759_v33, %s14556_s27  ;;  %20866 = vst [vmem:[#allocation43_spill] sm:$0xff] %v16798_v19 }
 0x467   :  { %5195 = vrot.lane.b32.xlu1 %v14034_v41, %s14553_s0 }
 0x468   :  { %v16801_v48 = vpop.permute.xlu0 %4997 }
 0x469   :  { %20867 = vst [vmem:[#allocation44_spill] sm:$0xff] %v16801_v48  ;;  %v5004_v7 = vpop.permute.xlu1 %5003 }
 0x46a   :  { %5793 = vrot.lane.b32.xlu0 %v20709_v42, %s14550_s14  ;;  %v5023_v0 = vrot.slane %v5004_v7, 4 }
 0x46b   :  { %5573 = vrot.lane.b32.xlu1 %v20709_v42, %s14551_s15 }
 0x46c   :  { %v16807_v43 = vpop.permute.xlu0 %4801 }
 0x46d   :  { %v16809_v32 = vpop.permute.xlu1 %4789 }
 0x46e   :  { %20868 = vst [vmem:[#allocation45_spill] sm:$0xff] %v16809_v32  ;;  %5777 = vrot.lane.b32.xlu0 %v20709_v42, %s14550_s14 }
 0x46f   :  { %5179 = vrot.lane.b32.xlu1 %v16655_v23, %s14553_s0 }
 0x470   :  { %v16815_v41 = vpop.permute.xlu0 %4605 }
 0x471   :  { %v16817_v62 = vpop.permute.xlu1 %4807 }
 0x472   :  { %5383 = vrot.lane.b32.xlu0 %v16713_v14, %s14552_s24 }
 0x473   :  { %5393 = vrot.lane.b32.xlu1 %v20709_v42, %s14552_s24 }
 0x474   :  { %v16823_v18 = vpop.permute.xlu0 %5781 }
 0x475   :  { %v16825_v16 = vpop.permute.xlu1 %4611 }
 0x476   :  { %5791 = vrot.lane.b32.xlu0 %v16759_v33, %s14550_s14 }
 0x477   :  { %5377 = vrot.lane.b32.xlu1 %v20709_v42, %s14552_s24 }
 0x478   :  { %v16831_v23 = vpop.permute.xlu0 %5585 }
 0x479   :  { %20869 = vst [vmem:[#allocation46_spill] sm:$0xff] %v16831_v23  ;;  %v16833_v32 = vpop.permute.xlu1 %5787 }
 0x47a   :  { %5597 = vrot.lane.b32.xlu0 %v20709_v42, %s14551_s15 }
 0x47b   :  { %5197 = vrot.lane.b32.xlu1 %v20709_v42, %s14553_s0 }
 0x47c   :  { %v16839_v38 = vpop.permute.xlu0 %5389 }
 0x47d   :  { %20870 = vst [vmem:[#allocation47_spill] sm:$0xff] %v16839_v38  ;;  %v16841_v26 = vpop.permute.xlu1 %5591 }
 0x47e   :  { %5595 = vrot.lane.b32.xlu0 %v16759_v33, %s14551_s15 }
 0x47f   :  { %5981 = vrot.lane.b32.xlu1 %v20709_v42, %s14557_s30 }
 0x480   :  { %v16847_v4 = vpop.permute.xlu0 %5193 }
 0x481   :  { %20871 = vst [vmem:[#allocation48_spill] sm:$0xff] %v16847_v4  ;;  %v16849_v37 = vpop.permute.xlu1 %5395  ;;  %v20875_v4 = vrot.slane %v16801_v48, 4 }
 0x482   :  { %20872 = vst [vmem:[#allocation49_spill] sm:$0xff] %v16849_v37  ;;  %5581 = vrot.lane.b32.xlu0 %v20709_v42, %s14551_s15 }
 0x483   :  { %5181 = vrot.lane.b32.xlu1 %v20709_v42, %s14553_s0  ;;  %v5039_v38 = vsel %vm221_vm1, %v5019_v20, %v20875_v4  ;;  %v20449_v20 = vrot.slane %v16807_v43, 4 }
 0x484   :  { %v16855_v15 = vpop.permute.xlu0 %5977  ;;  %v5040_v4 = vsel %vm421_vm6, %v16735_v9, %v5039_v38  ;;  %v4819_v38 = vrot.slane %v16681_v24, 4 }
 0x485   :  { %20873 = vst [vmem:[#allocation50_spill] sm:$0xff] %v16855_v15  ;;  %v16859_v45 = vpop.permute.xlu1 %5199  ;;  %v5027_v15 = vsel %vm221_vm1, %v5011_v8, %v20877_v46 }
 0x486   :  { %20874 = vst [vmem:[#allocation51_spill] sm:$0xff] %v16859_v45  ;;  %5399 = vrot.lane.b32.xlu0 %v16759_v33, %s14552_s24  ;;  %v6173_v45 = vld [vmem:[%s20320_s6 + $0x10] sm:$0xff]  ;;  %v5028_v9 = vsel %vm421_vm6, %v16613_v11, %v5027_v15  ;;  %v4843_v11 = vsel %vm221_vm1, %v4823_v40, %v20449_v20 }
 0x487   :  { %5965 = vrot.lane.b32.xlu1 %v20709_v42, %s14557_s30  ;;  %v13225_v46 = vcombine.high %v5028_v9, %v5034_v22  ;;  %v13224_v15 = vcombine.low %v5028_v9, %v5034_v22 }
 0x488   :  { %v16869_v37 = vpop.permute.xlu0 %5005 }
 0x489   :  { %v20447_v10 = vrot.slane %v16869_v37, 4  ;;  %v16881_v19 = vpop.permute.xlu1 %5983 }
 0x48a   :  { %5187 = vrot.lane.b32.xlu0 %v16713_v14, %s14553_s0  ;;  %v20450_v14 = vrot.slane %v16738_v53, 4 }
 0x48b   :  { %v5045_v60 = vsel %vm221_vm1, %v5023_v0, %v20447_v10  ;;  %6187 = vperm.xlu1 %14512, %v6173_v45   ;;  %v6171_v45 = vld [vmem:[%s20320_s6] sm:$0xff] }
 0x48c   :  { %v16891_v48 = vpop.permute.xlu0 %4797  ;;  %v5046_v21 = vsel %vm421_vm6, %v5004_v7, %v5045_v60  ;;  %v20453_v7 = vrot.slane %v16678_v36, 4 }
 0x48d   :  { %v13230_v0 = vcombine.low %v5040_v4, %v5046_v21  ;;  %v13231_v10 = vcombine.high %v5040_v4, %v5046_v21  ;;  %v16903_v8 = vpop.permute.xlu1 %4609  ;;  %v4827_v4 = vrot.slane %v16817_v62, 4 }
 0x48e   :  { %5203 = vrot.lane.b32.xlu0 %v16759_v33, %s14553_s0 }
 0x48f   :  { %6771 = vmatprep.subr.bf16.mxu0 %v13231_v10  ;;  %6177 = vperm.xlu1 %14512, %v6171_v45   ;;  %v4837_v10 = vsel %vm221_vm1, %v4819_v38, %v20450_v14  ;;  %v4831_v45 = vsel %vm221_vm1, %v4815_v12, %v20453_v7  ;;  %v4844_v38 = vsel %vm322_vm7, %v16742_v13, %v4843_v11  ;;  %v20456_v12 = vrot.slane %v16685_v51, 4 }
 0x490   :  { %6772 = vmatpush1.bf16.msra.mxu0 %v13230_v0  ;;  %v16913_v60 = vpop.permute.xlu0 %4809  ;;  %v4838_v9 = vsel %vm322_vm7, %v16681_v24, %v4837_v10  ;;  %v4832_v13 = vsel %vm322_vm7, %v16619_v52, %v4831_v45  ;;  %v4627_v24 = vrot.slane %v16754_v54, 4  ;;  %v4619_v10 = vrot.slane %v16625_v5, 4 }
 0x491   :  { %v20448_v33 = vrot.slane %v16913_v60, 4  ;;  %6773 = vmatprep.subr.bf16.mxu0 %v13225_v46  ;;  %v16923_v21 = vpop.permute.xlu1 %4593  ;;  %v20452_v46 = vrot.slane %v16745_v35, 4  ;;  %v13213_v11 = vcombine.high %v4832_v13, %v4838_v9 }
 0x492   :  { %5401 = vrot.lane.b32.xlu0 %v20709_v42, %s14552_s24 }
 0x493   :  { %v4849_v0 = vsel %vm221_vm1, %v4827_v4, %v20448_v33  ;;  %v20451_v4 = vrot.slane %v16815_v41, 4 }
 0x494   :  { %6774 = vmatpush1.bf16.msra.mxu0 %v13224_v15  ;;  %v16933_v40 = vpop.permute.xlu0 %4617  ;;  %v4850_v22 = vsel %vm322_vm7, %v16817_v62, %v4849_v0  ;;  %v4623_v62 = vrot.slane %v16688_v47, 4  ;;  %v4631_v0 = vrot.slane %v16825_v16, 4 }
 0x495   :  { %v13218_v33 = vcombine.low %v4844_v38, %v4850_v22  ;;  %v13219_v20 = vcombine.high %v4844_v38, %v4850_v22  ;;  %v16943_v14 = vpop.permute.xlu1 %4983  ;;  %v4647_v52 = vsel %vm221_vm1, %v4627_v24, %v20451_v4 }
 0x496   :  { %5385 = vrot.lane.b32.xlu0 %v20709_v42, %s14552_s24  ;;  %v4641_v45 = vsel %vm221_vm1, %v4623_v62, %v20452_v46  ;;  %v4648_v62 = vsel %vm223_vm8, %v16754_v54, %v4647_v52 }
 0x497   :  { %6775 = vmatprep.subr.bf16.mxu0 %v13219_v20  ;;  %v13212_v20 = vcombine.low %v4832_v13, %v4838_v9  ;;  %v4642_v13 = vsel %vm223_vm8, %v16688_v47, %v4641_v45  ;;  %v20457_v45 = vrot.slane %v16823_v18, 4 }
 0x498   :  { %6776 = vmatpush1.bf16.msra.mxu0 %v13218_v33  ;;  %v16953_v15 = vpop.permute.xlu0 %4613 }
 0x499   :  { %v20455_v38 = vrot.slane %v16953_v15, 4  ;;  %6777 = vmatprep.subr.bf16.mxu0 %v13213_v11  ;;  %v16963_v22 = vpop.permute.xlu1 %5963  ;;  %v4635_v11 = vsel %vm221_vm1, %v4619_v10, %v20456_v12  ;;  %v20884_v12 = vpack.c.bf16 %v16434_v49, %v16420_v50  ;;  %v20887_v49 = vld [vmem:[#allocation50_spill] sm:$0xff] }
 0x49a   :  { %20878 = vst [vmem:[#allocation52_spill] sm:$0xff] %v16963_v22  ;;  %5205 = vrot.lane.b32.xlu0 %v20709_v42, %s14553_s0  ;;  %v4636_v10 = vsel %vm223_vm8, %v16625_v5, %v4635_v11  ;;  %v20881_v11 = vpack.c.bf16 %v16455_v30, %v16443_v25  ;;  %v6174_v25 = vld [vmem:[%s20320_s6 + $0x18] sm:$0xff] }
 0x49b   :  { %v4653_v33 = vsel %vm221_vm1, %v4631_v0, %v20455_v38  ;;  %v13201_v0 = vcombine.high %v4636_v10, %v4642_v13  ;;  %v13200_v52 = vcombine.low %v4636_v10, %v4642_v13  ;;  %v5795_v10 = vrot.slane %v16633_v29, 4 }
 0x49c   :  { %6778 = vmatpush1.bf16.msra.mxu0 %v13212_v20  ;;  %v16973_v24 = vpop.permute.xlu0 %4601  ;;  %v4654_v9 = vsel %vm223_vm8, %v16825_v16, %v4653_v33  ;;  %v5807_v20 = vrot.slane %v16833_v32, 4  ;;  %v5803_v33 = vrot.slane %v16767_v61, 4 }
 0x49d   :  { %v13206_v4 = vcombine.low %v4648_v62, %v4654_v9  ;;  %v13207_v46 = vcombine.high %v4648_v62, %v4654_v9  ;;  %v16981_v7 = vpop.permute.xlu1 %4787  ;;  %v20459_v9 = vrot.slane %v16700_v27, 4 }
 0x49e   :  { %5989 = vrot.lane.b32.xlu0 %v20709_v42, %s14557_s30  ;;  %v5823_v30 = vsel %vm221_vm1, %v5803_v33, %v20457_v45 }
 0x49f   :  { %6779 = vmatprep.subr.bf16.mxu0 %v13207_v46  ;;  %v20458_v46 = vrot.slane %v16692_v44, 4 }
 0x4a0   :  { %6780 = vmatpush1.bf16.msra.mxu0 %v13206_v4  ;;  %v16987_v54 = vpop.permute.xlu0 %5789  ;;  %v20460_v4 = vrot.slane %v16763_v39, 4 }
 0x4a1   :  { %20879 = vst [vmem:[#allocation53_spill] sm:$0xff] %v16987_v54  ;;  %v20454_v16 = vrot.slane %v16987_v54, 4  ;;  %6781 = vmatprep.subr.bf16.mxu0 %v13201_v0  ;;  %v16990_v47 = vpop.permute.xlu1 %4591  ;;  %v5799_v0 = vrot.slane %v16697_v17, 4  ;;  %v5811_v33 = vsel %vm221_vm1, %v5795_v10, %v20458_v46 }
 0x4a2   :  { %5189 = vrot.lane.b32.xlu0 %v20709_v42, %s14553_s0 }
 0x4a3   :  { %v5829_v62 = vsel %vm221_vm1, %v5807_v20, %v20454_v16  ;;  %v20882_v20 = vpack.c.bf16 %v16449_v3, %v16439_v56  ;;  %v5817_v56 = vsel %vm221_vm1, %v5799_v0, %v20460_v4  ;;  %v5991_v3 = vrot.slane %v16665_v57, 4  ;;  %v6172_v0 = vld [vmem:[%s20320_s6 + $0x8] sm:$0xff] }
 0x4a4   :  { %6782 = vmatpush1.bf16.msra.mxu0 %v13200_v52  ;;  %v16996_v5 = vpop.permute.xlu0 %5593  ;;  %v5599_v52 = vrot.slane %v16640_v6, 4  ;;  %v5830_v16 = vsel %vm817_vm2, %v16833_v32, %v5829_v62  ;;  %v5824_v32 = vsel %vm817_vm2, %v16767_v61, %v5823_v30  ;;  %v5611_v62 = vrot.slane %v16841_v26, 4 }
 0x4a5   :  { %20880 = vst [vmem:[#allocation54_spill] sm:$0xff] %v16996_v5  ;;  %6783 = vmatprep.subr.bf16.mxu0 %v20881_v11  ;;  %v17008_v13 = vpop.permute.xlu1 %5767  ;;  %v20464_v38 = vrot.slane %v16996_v5, 4  ;;  %v13279_v10 = vcombine.high %v5824_v32, %v5830_v16  ;;  %v20885_v61 = vpack.c.bf16 %v16427_v59, %v16418_v63  ;;  %v5607_v4 = vrot.slane %v16774_v31, 4  ;;  %v20888_v59 = vld [vmem:[#allocation13_spill] sm:$0xff] }
 0x4a6   :  { %5973 = vrot.lane.b32.xlu0 %v20709_v42, %s14557_s30  ;;  %v5615_v50 = vsel %vm221_vm1, %v5599_v52, %v20459_v9  ;;  %v5812_v52 = vsel %vm817_vm2, %v16633_v29, %v5811_v33  ;;  %v5818_v9 = vsel %vm817_vm2, %v16697_v17, %v5817_v56  ;;  %v13278_v33 = vcombine.low %v5824_v32, %v5830_v16 }
 0x4a7   :  { %v5633_v46 = vsel %vm221_vm1, %v5611_v62, %v20464_v38  ;;  %v17071_v63 = vsel %vm718_vm3, %v16640_v6, %v5615_v50  ;;  %v20891_v17 = vrot.slane %v16724_v58, 4  ;;  %v13273_v27 = vcombine.high %v5812_v52, %v5818_v9 }
 0x4a8   :  { %6784 = vmatpush1.bf16.msra.mxu0 %v20882_v20  ;;  %v17024_v11 = vpop.permute.xlu0 %5397  ;;  %v20889_v20 = vld [vmem:[#allocation35_spill] sm:$0xff]  ;;  %v20893_v62 = vrot.slane %v16831_v23, 4  ;;  %v20894_v50 = vrot.slane %v16770_v34, 4  ;;  %v6003_v23 = vrot.slane %v16881_v19, 4 }
 0x4a9   :  { %20883 = vst [vmem:[#allocation55_spill] sm:$0xff] %v17024_v11  ;;  %6785 = vmatprep.subr.bf16.mxu0 %v20884_v12  ;;  %v17040_v45 = vpop.permute.xlu1 %4999  ;;  %v5995_v29 = vrot.slane %v20889_v20, 4  ;;  %v6007_v56 = vsel %vm221_vm1, %v5991_v3, %v20891_v17  ;;  %v5634_v3 = vsel %vm718_vm3, %v16841_v26, %v5633_v46  ;;  %v20895_v17 = vrot.slane %v16794_v28, 4 }
 0x4aa   :  { %6192 = vperm.xlu0 %14511, %v6174_v25   ;;  %v5603_v25 = vrot.slane %v16703_v1, 4  ;;  %v5627_v6 = vsel %vm221_vm1, %v5607_v4, %v20893_v62  ;;  %v20900_v62 = vld [vmem:[#allocation49_spill] sm:$0xff]  ;;  %v20904_v54 = vrot.slane %v17024_v11, 4 }
 0x4ab   :  { %v6013_v5 = vsel %vm221_vm1, %v5995_v29, %v20895_v17  ;;  %v5628_v46 = vsel %vm718_vm3, %v16774_v31, %v5627_v6  ;;  %v20899_v17 = vld [vmem:[#allocation47_spill] sm:$0xff]  ;;  %v20903_v6 = vrot.slane %v16670_v55, 4 }
 0x4ac   :  { %6786 = vmatpush1.bf16.msra.mxu0 %v20885_v61  ;;  %v17058_v30 = vpop.permute.xlu0 %5201  ;;  %v5407_v61 = vrot.slane %v20888_v59, 4  ;;  %v5621_v38 = vsel %vm221_vm1, %v5603_v25, %v20894_v50  ;;  %v20896_v25 = vrot.slane %v20887_v49, 4  ;;  %v20897_v50 = vld [vmem:[#allocation39_spill] sm:$0xff]  ;;  %v13267_v34 = vcombine.high %v5628_v46, %v5634_v3 }
 0x4ad   :  { %20886 = vst [vmem:[#allocation56_spill] sm:$0xff] %v17058_v30  ;;  %6787 = vmatprep.subr.bf16.mxu0 %v13279_v10  ;;  %v17075_v42 = vpop.permute.xlu1 %5979  ;;  %v20892_v10 = vld [vmem:[#allocation43_spill] sm:$0xff]  ;;  %v5622_v29 = vsel %vm718_vm3, %v16703_v1, %v5621_v38  ;;  %v6014_v1 = vsel %vm916_vm9, %v20889_v20, %v6013_v5  ;;  %v20902_v38 = vrot.slane %v16943_v14, 4  ;;  %v6008_v20 = vsel %vm916_vm9, %v16665_v57, %v6007_v56 }
 0x4ae   :  { %20890 = vst [vmem:[#allocation50_spill] sm:$0xff] %v17075_v42  ;;  %6182 = vperm.xlu0 %14511, %v6172_v0   ;;  %v5999_v12 = vrot.slane %v20892_v10, 4  ;;  %v13272_v0 = vcombine.low %v5812_v52, %v5818_v9  ;;  %v20898_v52 = vld [vmem:[#allocation40_spill] sm:$0xff]  ;;  %v13261_v5 = vcombine.high %v17071_v63, %v5622_v29 }
 0x4af   :  { %v5411_v16 = vrot.slane %v20898_v52, 4  ;;  %v5029_v4 = vsel %vm221_vm1, %v20903_v6, %v20902_v38  ;;  %v13285_v38 = vcombine.high %v6008_v20, %v6014_v1 }
 0x4b0   :  { %6788 = vmatpush2.bf16.msra.mxu0 %v13278_v33  ;;  %v17088_v32 = vpop.permute.xlu0 %5985  ;;  %v6019_v33 = vsel %vm221_vm1, %v5999_v12, %v20896_v25 }
 0x4b1   :  { %6789 = vmatprep.subr.bf16.mxu0 %v13273_v27  ;;  %v17103_v26 = vpop.permute.xlu1 %4803  ;;  %v5415_v27 = vrot.slane %v20900_v62, 4  ;;  %v20901_v44 = vrot.slane %v17088_v32, 4  ;;  %v6020_v9 = vsel %vm916_vm9, %v20892_v10, %v6019_v33  ;;  %v20905_v33 = vld [vmem:[#allocation14_spill] sm:$0xff] }
 0x4b3   :  { %v6025_v12 = vsel %vm221_vm1, %v6003_v23, %v20901_v44  ;;  %v5437_v10 = vsel %vm221_vm1, %v5415_v27, %v20904_v54  ;;  %v20909_v27 = vld [vmem:[#allocation19_spill] sm:$0xff] }
 0x4b4   :  { %6790 = vmatpush2.bf16.msra.mxu0 %v13272_v0  ;;  %v17114_v25 = vpop.permute.xlu0 %4991  ;;  %v6026_v31 = vsel %vm916_vm9, %v16881_v19, %v6025_v12  ;;  %v20478_v19 = vrot.slane %v20905_v33, 4  ;;  %v13266_v12 = vcombine.low %v5628_v46, %v5634_v3  ;;  %v20908_v3 = vrot.slane %v16731_v2, 4 }
 0x4b5   :  { %v20477_v44 = vrot.slane %v17114_v25, 4  ;;  %6791 = vmatprep.subr.bf16.mxu0 %v13267_v34  ;;  %v13290_v23 = vcombine.low %v6020_v9, %v6026_v31  ;;  %v13291_v0 = vcombine.high %v6020_v9, %v6026_v31  ;;  %v17132_v39 = vpop.permute.xlu1 %5571  ;;  %v20906_v34 = vrot.slane %v20899_v17, 4 }
 0x4b6   :  { %v20907_v31 = vrot.slane %v20897_v50, 4  ;;  %v5403_v6 = vrot.slane %v20909_v27, 4  ;;  %v5438_v56 = vsel %vm619_vm4, %v20900_v62, %v5437_v10  ;;  %v13260_v10 = vcombine.low %v17071_v63, %v5622_v29  ;;  %v17181_v63 = vld [vmem:[%s20319_s5 + $0x8] ss:$12 sps:$4 sm:$0xff]  }
 0x4b7   :  { %6836 = vmatprep.subr.bf16.mxu1 %v13291_v0  ;;  %v5431_v9 = vsel %vm221_vm1, %v5411_v16, %v20906_v34  ;;  %v5035_v46 = vsel %vm221_vm1, %v20908_v3, %v20477_v44  ;;  %v17155_v16 = vsel %vm421_vm6, %v16670_v55, %v5029_v4  ;;  %v20484_v0 = vrot.slane %v16981_v7, 4  ;;  %v20914_v29 = vld [vmem:[#allocation34_spill] sm:$0xff] }
 0x4b8   :  { %v5425_v54 = vsel %vm221_vm1, %v5407_v61, %v20907_v31  ;;  %6792 = vmatpush2.bf16.msra.mxu0 %v13266_v12  ;;  %6837 = vmatpush1.bf16.msra.mxu1 %v13290_v23  ;;  %v17149_v57 = vpop.permute.xlu0 %5971  ;;  %v17159_v61 = vsel %vm421_vm6, %v16731_v2, %v5035_v46  ;;  %v20483_v34 = vrot.slane %v17058_v30, 4  ;;  %v13284_v55 = vcombine.low %v6008_v20, %v6014_v1  ;;  %v20912_v31 = vld [vmem:[#allocation48_spill] sm:$0xff]  ;;  %v20913_v46 = vld [vmem:[#allocation51_spill] sm:$0xff]  ;;  %v20915_v20 = vld [vmem:[#allocation42_spill] sm:$0xff] }
 0x4b9   :  { %20910 = vst [vmem:[#allocation13_spill] sm:$0xff] %v17149_v57  ;;  %6793 = vmatprep.subr.bf16.mxu0 %v13261_v5  ;;  %6838 = vmatprep.subr.bf16.mxu1 %v13285_v38  ;;  %v17168_v4 = vpop.permute.xlu1 %4607  ;;  %v5432_v2 = vsel %vm619_vm4, %v20898_v52, %v5431_v9  ;;  %v5419_v12 = vsel %vm221_vm1, %v5403_v6, %v20478_v19  ;;  %v20911_v5 = vld [vmem:[#allocation41_spill] sm:$0xff]  ;;  %v5219_v44 = vrot.slane %v20913_v46, 4  ;;  %v5211_v1 = vrot.slane %v20914_v29, 4 }
 0x4ba   :  { %v13255_v23 = vcombine.high %v5432_v2, %v5438_v56  ;;  %v5215_v52 = vrot.slane %v20915_v20, 4  ;;  %v5426_v6 = vsel %vm619_vm4, %v20888_v59, %v5425_v54  ;;  %v20916_v3 = vrot.slane %v16678_v36, 4 }
 0x4bb   :  { %v5241_v38 = vsel %vm221_vm1, %v5219_v44, %v20483_v34  ;;  %v13254_v11 = vcombine.low %v5432_v2, %v5438_v56  ;;  %v5420_v59 = vsel %vm619_vm4, %v20909_v27, %v5419_v12  ;;  %v20919_v44 = vrot.slane %v20911_v5, 4 }
 0x4bc   :  { %6794 = vmatpush2.bf16.msra.mxu0 %v13260_v10  ;;  %6839 = vmatpush1.bf16.msra.mxu1 %v13284_v55  ;;  %v17185_v9 = vpop.permute.xlu0 %4795  ;;  %v4833_v10 = vsel %vm221_vm1, %v20916_v3, %v20484_v0  ;;  %v20917_v55 = vld [vmem:[#allocation33_spill] sm:$0xff]  ;;  %v13249_v54 = vcombine.high %v5420_v59, %v5426_v6  ;;  %v20920_v56 = vrot.slane %v16738_v53, 4  ;;  %v20921_v3 = vld [vmem:[#allocation18_spill] sm:$0xff]  ;;  %v20929_v0 = vrot.slane %v16869_v37, 4 }
 0x4bd   :  { %v20485_v62 = vrot.slane %v17185_v9, 4  ;;  %6795 = vmatprep.subr.bf16.mxu0 %v13255_v23  ;;  %v20486_v33 = vrot.slane %v20917_v55, 4  ;;  %v17200_v50 = vpop.permute.xlu1 %5783  ;;  %v20918_v23 = vrot.slane %v20912_v31, 4  ;;  %v5229_v34 = vsel %vm221_vm1, %v5211_v1, %v20919_v44 }
 0x4be   :  { %v5207_v27 = vrot.slane %v20921_v3, 4  ;;  %v17225_v1 = vsel %vm322_vm7, %v16678_v36, %v4833_v10  ;;  %v13248_v10 = vcombine.low %v5420_v59, %v5426_v6 }
 0x4bf   :  { %v5235_v19 = vsel %vm221_vm1, %v5215_v52, %v20918_v23  ;;  %13296 = vmatmul.mubr.msk.bf16.vlgmr.msra.gmra.mxu1 %vm3958_vm13, %v17181_v63  ;;  %v4839_v2 = vsel %vm221_vm1, %v20920_v56, %v20485_v62  ;;  %v5242_v52 = vsel %vm520_vm5, %v20913_v46, %v5241_v38  ;;  %v20922_v23 = vmov 0  }
 0x4c0   :  { %6796 = vmatpush2.bf16.msra.mxu0 %v13254_v11  ;;  %v17218_v12 = vpop.permute.xlu0 %4599  ;;  %6866 = vmatprep.mubr.bf16.mxu1 %v20922_v23  ;;  %v17229_v44 = vsel %vm322_vm7, %v16738_v53, %v4839_v2  ;;  %v20923_v38 = vrot.slane %v16990_v47, 4  ;;  %v20924_v46 = vrot.slane %v16685_v51, 4  ;;  %v5236_v53 = vsel %vm520_vm5, %v20915_v20, %v5235_v19  ;;  %v17251_v11 = vld [vmem:[%s20319_s5 + $0x20] ss:$12 sps:$4 sm:$0xff]  }
 0x4c1   :  { %v20487_v56 = vrot.slane %v17218_v12, 4  ;;  %6797 = vmatprep.subr.bf16.mxu0 %v13249_v54  ;;  %v17241_v62 = vpop.permute.xlu1 %5587  ;;  %v13243_v2 = vcombine.high %v5236_v53, %v5242_v52  ;;  %v5223_v54 = vsel %vm221_vm1, %v5207_v27, %v20486_v33  ;;  %v5230_v19 = vsel %vm520_vm5, %v20914_v29, %v5229_v34 }
 0x4c2   :  { %v4637_v36 = vsel %vm221_vm1, %v20924_v46, %v20923_v38  ;;  %v20925_v38 = vrot.slane %v16745_v35, 4  ;;  %v5021_v46 = vrot.slane %v17040_v45, 4  ;;  %v13242_v33 = vcombine.low %v5236_v53, %v5242_v52  ;;  %v20927_v52 = vld [vmem:[#allocation44_spill] sm:$0xff] }
 0x4c3   :  { %v17264_v20 = vsel %vm223_vm8, %v16685_v51, %v4637_v36  ;;  %v5224_v51 = vsel %vm520_vm5, %v20921_v3, %v5223_v54  ;;  %v20926_v36 = vld [vmem:[#allocation36_spill] sm:$0xff]  ;;  %v20928_v53 = vrot.slane %v20927_v52, 4  ;;  %v20931_v54 = vrot.slane %v20887_v49, 4 }
 0x4c4   :  { %v4643_v6 = vsel %vm221_vm1, %v20925_v38, %v20487_v56  ;;  %6798 = vmatpush2.bf16.msra.mxu0 %v13248_v10  ;;  %v17258_v59 = vpop.permute.xlu0 %5775  ;;  %v13237_v34 = vcombine.high %v5224_v51, %v5230_v19  ;;  %v13236_v10 = vcombine.low %v5224_v51, %v5230_v19 }
 0x4c5   :  { %v17268_v27 = vsel %vm223_vm8, %v16745_v35, %v4643_v6  ;;  %6799 = vmatprep.subr.bf16.mxu0 %v13243_v2  ;;  %v17275_v56 = vpop.permute.xlu1 %5785  ;;  %v5041_v38 = vsel %vm221_vm1, %v20928_v53, %v5021_v46  ;;  %v20930_v53 = vrot.slane %v17075_v42, 4 }
 0x4c6   :  { %v5042_v19 = vsel %vm421_vm6, %v20927_v52, %v5041_v38  ;;  %v20932_v38 = vrot.slane %v17149_v57, 4  ;;  %v20933_v52 = vrot.slane %v16794_v28, 4  ;;  %v20937_v57 = vrot.slane %v16724_v58, 4 }
 0x4c7   :  { %13297 = vmatmul.mubr.msk.bf16.gmra.mxu1 %vm3958_vm13, %v17251_v11  ;;  %v6021_v55 = vsel %vm221_vm1, %v20931_v54, %v20930_v53  ;;  %v20935_v53 = vrot.slane %v17088_v32, 4 }
 0x4c8   :  { %6800 = vmatpush2.bf16.msra.mxu0 %v13242_v33  ;;  %v5008_v29 = vpop.permute.xlu0 %5007  ;;  %6909 = vmatprep.mubr.bf16.mxu1 %v20926_v36  ;;  %v17293_v33 = vld [vmem:[%s20319_s5] ss:$12 sps:$4 sm:$0xff]   ;;  %v6022_v54 = vsel %vm916_vm9, %v20887_v49, %v6021_v55 }
 0x4c9   :  { %v5025_v6 = vrot.slane %v5008_v29, 4  ;;  %6801 = vmatprep.subr.bf16.mxu0 %v13237_v34  ;;  %v17287_v3 = vpop.permute.xlu1 %5391 }
 0x4cb   :  { %v5047_v2 = vsel %vm221_vm1, %v20929_v0, %v5025_v6  ;;  %v17313_v0 = vld [vmem:[%s20319_s5 + $0x1c] ss:$12 sps:$4 sm:$0xff]  }
 0x4cc   :  { %6802 = vmatpush2.bf16.msra.mxu0 %v13236_v10  ;;  %v17299_v35 = vpop.permute.xlu0 %5987  ;;  %v5048_v51 = vsel %vm421_vm6, %v16869_v37, %v5047_v2  ;;  %v6015_v37 = vsel %vm221_vm1, %v20933_v52, %v20932_v38  ;;  %v20934_v2 = vld [vmem:[#allocation30_spill] sm:$0xff] }
 0x4cd   :  { %v20496_v10 = vrot.slane %v17299_v35, 4  ;;  %v13232_v34 = vcombine.low %v5042_v19, %v5048_v51  ;;  %v13233_v30 = vcombine.high %v5042_v19, %v5048_v51  ;;  %v5026_v42 = vrot.slane %v20934_v2, 4  ;;  %v20938_v52 = vld [vmem:[#allocation6_spill] sm:$0xff]  ;;  %v17336_v5 = vpop.permute.xlu1 %5769 }
 0x4ce   :  { %v20936_v51 = vrot.slane %v16963_v22, 4  ;;  %v5022_v2 = vrot.slane %v20938_v52, 4  ;;  %v6016_v55 = vsel %vm916_vm9, %v16794_v28, %v6015_v37  ;;  %v20941_v52 = vcombine.high %v17155_v16, %v17159_v61 }
 0x4cf   :  { %6804 = vmatmul.mubr.bf16.vlgmr.msra.gmra.mxu0 %v17293_v33  ;;  %6877 = vmatprep.subr.bf16.mxu1 %v13233_v30  ;;  %v6027_v19 = vsel %vm221_vm1, %v20935_v53, %v20496_v10  ;;  %v20939_v53 = vrot.slane %v17103_v26, 4  ;;  %v20940_v10 = vrot.slane %v16807_v43, 4 }
 0x4d0   :  { %v6009_v38 = vsel %vm221_vm1, %v20937_v57, %v20936_v51  ;;  %6878 = vmatpush1.bf16.msra.mxu1 %v13232_v34  ;;  %v17338_v30 = vpop.permute.xlu0 %4811  ;;  %v6028_v49 = vsel %vm916_vm9, %v17088_v32, %v6027_v19  ;;  %6813 = vmatprep.mubr.bf16.mxu0 %v17313_v0  ;;  %v5049_v51 = vsel %vm221_vm1, %v5025_v6, %v5026_v42  ;;  %v20942_v42 = vrot.slane %v16913_v60, 4 }
 0x4d1   :  { %v4845_v57 = vsel %vm221_vm1, %v20940_v10, %v20939_v53  ;;  %v4829_v34 = vrot.slane %v17338_v30, 4  ;;  %6879 = vmatprep.subr.bf16.mxu1 %v20941_v52  ;;  %v13292_v32 = vcombine.low %v6022_v54, %v6028_v49  ;;  %v13293_v19 = vcombine.high %v6022_v54, %v6028_v49  ;;  %v17361_v10 = vld [vmem:[%s20319_s5 + $0x18] ss:$12 sps:$4 sm:$0xff]  }
 0x4d2   :  { %v6010_v28 = vsel %vm916_vm9, %v16724_v58, %v6009_v38  ;;  %v5043_v37 = vsel %vm221_vm1, %v5021_v46, %v5022_v2  ;;  %v5050_v53 = vsel %vm421_vm6, %v5008_v29, %v5049_v51  ;;  %v20943_v54 = vcombine.low %v17155_v16, %v17159_v61  ;;  %v17379_v51 = vpop.permute.xlu1 %5375  ;;  %v20944_v61 = vld [vmem:[#allocation20_spill] sm:$0xff] }
 0x4d3   :  { %6942 = vmatprep.subr.bf16.mxu0 %v13293_v19  ;;  %v13287_v22 = vcombine.high %v6010_v28, %v6016_v55  ;;  %v4851_v6 = vsel %vm221_vm1, %v20942_v42, %v4829_v34  ;;  %v4846_v46 = vsel %vm322_vm7, %v16807_v43, %v4845_v57  ;;  %v4629_v2 = vrot.slane %v17168_v4, 4  ;;  %v20945_v57 = vld [vmem:[#allocation7_spill] sm:$0xff] }
 0x4d4   :  { %6880 = vmatpush1.bf16.msra.mxu1 %v20943_v54  ;;  %6943 = vmatpush1.bf16.msra.mxu0 %v13292_v32  ;;  %v17370_v58 = vpop.permute.xlu0 %5579  ;;  %v4852_v38 = vsel %vm322_vm7, %v16913_v60, %v4851_v6  ;;  %v5044_v29 = vsel %vm421_vm6, %v17040_v45, %v5043_v37  ;;  %v13286_v16 = vcombine.low %v6010_v28, %v6016_v55  ;;  %v5018_v32 = vrot.slane %v20944_v61, 4  ;;  %v20949_v37 = vld [vmem:[#allocation17_spill] sm:$0xff] }
 0x4d5   :  { %6944 = vmatprep.subr.bf16.mxu0 %v13287_v22  ;;  %v13220_v49 = vcombine.low %v4846_v46, %v4852_v38  ;;  %v13221_v52 = vcombine.high %v4846_v46, %v4852_v38  ;;  %v13235_v43 = vcombine.high %v5044_v29, %v5050_v53  ;;  %v5014_v19 = vrot.slane %v20945_v57, 4 }
 0x4d6   :  { %v20946_v22 = vrot.slane %v17114_v25, 4  ;;  %v20947_v45 = vcombine.high %v17225_v1, %v17229_v44  ;;  %v20948_v55 = vrot.slane %v16815_v41, 4  ;;  %v4830_v54 = vrot.slane %v20949_v37, 4  ;;  %v17405_v61 = vpop.permute.xlu1 %5589 }
 0x4d7   :  { %6814 = vmatmul.mubr.bf16.gmra.mxu0 %v17361_v10  ;;  %6881 = vmatprep.subr.bf16.mxu1 %v13221_v52  ;;  %v20950_v46 = vrot.slane %v16943_v14, 4 }
 0x4d8   :  { %6882 = vmatpush1.bf16.msra.mxu1 %v13220_v49  ;;  %6945 = vmatpush1.bf16.msra.mxu0 %v13286_v16  ;;  %v4616_v60 = vpop.permute.xlu0 %4615  ;;  %v5037_v42 = vsel %vm221_vm1, %v20946_v22, %v5018_v32  ;;  %v4649_v28 = vsel %vm221_vm1, %v20948_v55, %v4629_v2  ;;  %v20951_v49 = vrot.slane %v16953_v15, 4  ;;  %v20952_v32 = vcombine.low %v17225_v1, %v17229_v44  ;;  %v20953_v22 = vld [vmem:[#allocation29_spill] sm:$0xff] }
 0x4d9   :  { %v4633_v6 = vrot.slane %v4616_v60, 4  ;;  %6883 = vmatprep.subr.bf16.mxu1 %v20947_v45  ;;  %6983 = vmatprep.subr.bf16.mxu0 %v13235_v43  ;;  %v5031_v38 = vsel %vm221_vm1, %v20950_v46, %v5014_v19  ;;  %v5038_v16 = vsel %vm421_vm6, %v17114_v25, %v5037_v42  ;;  %v4650_v57 = vsel %vm223_vm8, %v16815_v41, %v4649_v28 }
 0x4da   :  { %6962 = vmatprep.mubr.bf16.mxu0 %v20922_v23  ;;  %v4826_v45 = vrot.slane %v20953_v22, 4  ;;  %v4853_v55 = vsel %vm221_vm1, %v4829_v34, %v4830_v54  ;;  %v5032_v42 = vsel %vm421_vm6, %v16943_v14, %v5031_v38  ;;  %v13234_v46 = vcombine.low %v5044_v29, %v5050_v53  ;;  %v20955_v14 = vld [vmem:[#allocation45_spill] sm:$0xff] }
 0x4db   :  { %v4655_v52 = vsel %vm221_vm1, %v20951_v49, %v4633_v6  ;;  %v4822_v1 = vrot.slane %v16891_v48, 4  ;;  %v20954_v44 = vrot.slane %v17103_v26, 4  ;;  %v13229_v41 = vcombine.high %v5032_v42, %v5038_v16 }
 0x4dc   :  { %6884 = vmatpush1.bf16.msra.mxu1 %v20952_v32  ;;  %v17410_v43 = vpop.permute.xlu0 %5793  ;;  %v4656_v19 = vsel %vm223_vm8, %v16953_v15, %v4655_v52  ;;  %v4854_v15 = vsel %vm322_vm7, %v17338_v30, %v4853_v55  ;;  %v4818_v53 = vrot.slane %v20955_v14, 4  ;;  %v20956_v48 = vrot.slane %v17185_v9, 4  ;;  %v17439_v30 = vpop.permute.xlu1 %5195 }
 0x4dd   :  { %v13208_v37 = vcombine.low %v4650_v57, %v4656_v19  ;;  %v13209_v25 = vcombine.high %v4650_v57, %v4656_v19  ;;  %v4847_v49 = vsel %vm221_vm1, %v20954_v44, %v4826_v45  ;;  %v20957_v28 = vcombine.high %v17264_v20, %v17268_v27 }
 0x4de   :  { %v4841_v29 = vsel %vm221_vm1, %v20956_v48, %v4822_v1  ;;  %v4848_v54 = vsel %vm322_vm7, %v17103_v26, %v4847_v49  ;;  %v13228_v38 = vcombine.low %v5032_v42, %v5038_v16  ;;  %v4634_v52 = vrot.slane %v16933_v40, 4  ;;  %v20967_v48 = vld [vmem:[#allocation24_spill] sm:$0xff] }
 0x4df   :  { %6885 = vmatprep.subr.bf16.mxu1 %v13209_v25  ;;  %13298 = vmatmul.mubr.msk.bf16.vlgmr.msra.gmra.mxu0 %vm3958_vm13, %v17181_v63  ;;  %v20958_v32 = vrot.slane %v16981_v7, 4  ;;  %v13223_v19 = vcombine.high %v4848_v54, %v4854_v15  ;;  %v4842_v22 = vsel %vm322_vm7, %v17185_v9, %v4841_v29  ;;  %v20959_v45 = vcombine.low %v17264_v20, %v17268_v27  ;;  %v20961_v25 = vld [vmem:[#allocation26_spill] sm:$0xff] }
 0x4e0   :  { %6984 = vmatpush1.bf16.msra.mxu0 %v13234_v46  ;;  %6886 = vmatpush1.bf16.msra.mxu1 %v13208_v37  ;;  %v17428_v34 = vpop.permute.xlu0 %5777  ;;  %v4630_v16 = vrot.slane %v16903_v8, 4  ;;  %v5805_v55 = vrot.slane %v17200_v50, 4  ;;  %v4657_v40 = vsel %vm221_vm1, %v4633_v6, %v4634_v52  ;;  %v20960_v37 = vld [vmem:[#allocation12_spill] sm:$0xff]  ;;  %v4622_v9 = vrot.slane %v16923_v21, 4  ;;  %v17471_v49 = vpop.permute.xlu1 %5573  ;;  %v20968_v29 = vld [vmem:[#allocation22_spill] sm:$0xff] }
 0x4e1   :  { %6985 = vmatprep.subr.bf16.mxu0 %v13229_v41  ;;  %6887 = vmatprep.subr.bf16.mxu1 %v20957_v28  ;;  %v4835_v57 = vsel %vm221_vm1, %v20958_v32, %v4818_v53  ;;  %v20962_v42 = vpack.c.bf16 %v20960_v37, %v20961_v25  ;;  %v5801_v20 = vrot.slane %v17258_v59, 4  ;;  %v13222_v27 = vcombine.low %v4848_v54, %v4854_v15  ;;  %v20964_v41 = vld [vmem:[#allocation27_spill] sm:$0xff]  ;;  %v20971_v32 = vld [vmem:[#allocation37_spill] sm:$0xff] }
 0x4e2   :  { %6972 = vmatprep.mubr.bf16.mxu0 %v20922_v23  ;;  %v4836_v46 = vsel %vm322_vm7, %v16981_v7, %v4835_v57  ;;  %v4626_v1 = vrot.slane %v16973_v24, 4  ;;  %v5797_v8 = vrot.slane %v17008_v13, 4  ;;  %v4651_v6 = vsel %vm221_vm1, %v4629_v2, %v4630_v16  ;;  %v20963_v7 = vld [vmem:[#allocation23_spill] sm:$0xff]  ;;  %v20974_v37 = vld [vmem:[#allocation53_spill] sm:$0xff] }
 0x4e3   :  { %v13217_v44 = vcombine.high %v4836_v46, %v4842_v22  ;;  %v4658_v21 = vsel %vm223_vm8, %v4616_v60, %v4657_v40  ;;  %v20965_v15 = vpack.c.bf16 %v20963_v7, %v20964_v41  ;;  %v20966_v14 = vrot.slane %v17218_v12, 4 }
 0x4e4   :  { %6986 = vmatpush1.bf16.msra.mxu0 %v13228_v38  ;;  %6888 = vmatpush1.bf16.msra.mxu1 %v20959_v45  ;;  %v17451_v26 = vpop.permute.xlu0 %5383  ;;  %v20969_v28 = vpack.c.bf16 %v20967_v48, %v20968_v29  ;;  %v20970_v60 = vrot.slane %v16823_v18, 4  ;;  %v4652_v38 = vsel %vm223_vm8, %v17168_v4, %v4651_v6  ;;  %v13216_v52 = vcombine.low %v4836_v46, %v4842_v22  ;;  %v20976_v4 = vld [vmem:[#allocation16_spill] sm:$0xff]  ;;  %v17526_v29 = vpop.permute.xlu1 %5179 }
 0x4e5   :  { %6987 = vmatprep.subr.bf16.mxu0 %v13223_v19  ;;  %6889 = vmatprep.subr.bf16.mxu1 %v20962_v42  ;;  %v4645_v53 = vsel %vm221_vm1, %v20966_v14, %v4626_v1  ;;  %v20972_v57 = vrot.slane %v20971_v32, 4  ;;  %v20973_v45 = vrot.slane %v16990_v47, 4  ;;  %v13211_v40 = vcombine.high %v4652_v38, %v4658_v21  ;;  %v20979_v1 = vld [vmem:[#allocation25_spill] sm:$0xff] }
 0x4e6   :  { %v5825_v54 = vsel %vm221_vm1, %v20970_v60, %v5805_v55  ;;  %v20975_v25 = vrot.slane %v20974_v37, 4  ;;  %v20977_v22 = vrot.slane %v20976_v4, 4  ;;  %v5609_v41 = vrot.slane %v17241_v62, 4 }
 0x4e7   :  { %13299 = vmatmul.mubr.msk.bf16.gmra.mxu0 %vm3958_vm13, %v17251_v11  ;;  %v5819_v19 = vsel %vm221_vm1, %v20972_v57, %v5801_v20  ;;  %v4639_v16 = vsel %vm221_vm1, %v20973_v45, %v4622_v9  ;;  %v13210_v48 = vcombine.low %v4652_v38, %v4658_v21 }
 0x4e8   :  { %6988 = vmatpush1.bf16.msra.mxu0 %v13222_v27  ;;  %6890 = vmatpush1.bf16.msra.mxu1 %v20965_v15  ;;  %v17476_v24 = vpop.permute.xlu0 %5791  ;;  %v5813_v46 = vsel %vm221_vm1, %v20977_v22, %v5797_v8  ;;  %v4646_v27 = vsel %vm223_vm8, %v17218_v12, %v4645_v53  ;;  %v5605_v15 = vrot.slane %v17370_v58, 4  ;;  %v5820_v12 = vsel %vm817_vm2, %v20971_v32, %v5819_v19  ;;  %v20983_v19 = vld [vmem:[#allocation38_spill] sm:$0xff] }
 0x4e9   :  { %6989 = vmatprep.subr.bf16.mxu0 %v13217_v44  ;;  %v5809_v2 = vrot.slane %v17476_v24, 4  ;;  %6891 = vmatprep.subr.bf16.mxu1 %v20969_v28  ;;  %v5826_v44 = vsel %vm817_vm2, %v16823_v18, %v5825_v54  ;;  %v4640_v53 = vsel %vm223_vm8, %v16990_v47, %v4639_v16  ;;  %v5814_v60 = vsel %vm817_vm2, %v20976_v4, %v5813_v46  ;;  %v20981_v47 = vld [vmem:[#allocation46_spill] sm:$0xff] }
 0x4ea   :  { %7015 = vmatprep.mubr.bf16.mxu0 %v20926_v36  ;;  %v20978_v36 = vld [vmem:[#allocation28_spill] sm:$0xff]  ;;  %v13205_v18 = vcombine.high %v4640_v53, %v4646_v27  ;;  %v5601_v54 = vrot.slane %v17132_v39, 4  ;;  %v13275_v57 = vcombine.high %v5814_v60, %v5820_v12  ;;  %v20982_v21 = vrot.slane %v20981_v47, 4  ;;  %v20985_v46 = vld [vmem:[#allocation54_spill] sm:$0xff] }
 0x4eb   :  { %v5831_v42 = vsel %vm221_vm1, %v20975_v25, %v5809_v2  ;;  %v20980_v6 = vpack.c.bf16 %v20978_v36, %v20979_v1  ;;  %v20984_v45 = vrot.slane %v20983_v19, 4  ;;  %v13274_v25 = vcombine.low %v5814_v60, %v5820_v12 }
 0x4ec   :  { %6990 = vmatpush1.bf16.msra.mxu0 %v13216_v52  ;;  %v17514_v9 = vpop.permute.xlu0 %5597  ;;  %v5832_v7 = vsel %vm817_vm2, %v20974_v37, %v5831_v42  ;;  %v5629_v38 = vsel %vm221_vm1, %v20982_v21, %v5609_v41  ;;  %v5806_v37 = vrot.slane %v17275_v56, 4  ;;  %v5413_v42 = vrot.slane %v17287_v3, 4 }
 0x4ed   :  { %6892 = vmatpush1.bf16.msra.mxu1 %v20980_v6  ;;  %6991 = vmatprep.subr.bf16.mxu0 %v13211_v40  ;;  %v13280_v14 = vcombine.low %v5826_v44, %v5832_v7  ;;  %v13281_v28 = vcombine.high %v5826_v44, %v5832_v7  ;;  %v5623_v16 = vsel %vm221_vm1, %v20984_v45, %v5605_v15  ;;  %v5798_v4 = vrot.slane %v17336_v5, 4  ;;  %v17551_v6 = vpop.permute.xlu1 %5393  ;;  %v20987_v5 = vld [vmem:[#allocation15_spill] sm:$0xff] }
 0x4ee   :  { %v13204_v40 = vcombine.low %v4640_v53, %v4646_v27  ;;  %v5810_v22 = vrot.slane %v17410_v43, 4  ;;  %v20986_v36 = vrot.slane %v20985_v46, 4  ;;  %v5630_v56 = vsel %vm718_vm3, %v20981_v47, %v5629_v38 }
 0x4ef   :  { %6893 = vmatprep.subr.bf16.mxu1 %v13281_v28  ;;  %v20988_v7 = vrot.slane %v20987_v5, 4  ;;  %v5802_v12 = vrot.slane %v17428_v34, 4  ;;  %v5409_v53 = vrot.slane %v17451_v26, 4  ;;  %v20989_v28 = vld [vmem:[#allocation32_spill] sm:$0xff]  ;;  %v5827_v47 = vsel %vm221_vm1, %v5805_v55, %v5806_v37  ;;  %v20993_v55 = vld [vmem:[#allocation21_spill] sm:$0xff] }
 0x4f0   :  { %6992 = vmatpush1.bf16.msra.mxu0 %v13210_v48  ;;  %v17531_v52 = vpop.permute.xlu0 %5595  ;;  %v5833_v48 = vsel %vm221_vm1, %v5809_v2, %v5810_v22  ;;  %v5815_v38 = vsel %vm221_vm1, %v5797_v8, %v5798_v4  ;;  %v20992_v2 = vrot.slane %v20899_v17, 4  ;;  %v5405_v45 = vrot.slane %v17379_v51, 4 }
 0x4f1   :  { %6894 = vmatpush2.bf16.msra.mxu1 %v13280_v14  ;;  %6993 = vmatprep.subr.bf16.mxu0 %v13205_v18  ;;  %v5613_v32 = vrot.slane %v17531_v52, 4  ;;  %v5617_v43 = vsel %vm221_vm1, %v20988_v7, %v5601_v54  ;;  %v5624_v14 = vsel %vm718_vm3, %v20983_v19, %v5623_v16  ;;  %v20990_v18 = vld [vmem:[#allocation31_spill] sm:$0xff]  ;;  %v5834_v16 = vsel %vm817_vm2, %v17476_v24, %v5833_v48 }
 0x4f2   :  { %6895 = vmatprep.subr.bf16.mxu1 %v13275_v57  ;;  %v20991_v60 = vpack.c.bf16 %v20989_v28, %v20990_v18  ;;  %v5618_v34 = vsel %vm718_vm3, %v20987_v5, %v5617_v43  ;;  %v5433_v19 = vsel %vm221_vm1, %v20992_v2, %v5413_v42  ;;  %v5821_v4 = vsel %vm221_vm1, %v5801_v20, %v5802_v12  ;;  %v17608_v43 = vpop.permute.xlu1 %5377 }
 0x4f3   :  { %v5635_v1 = vsel %vm221_vm1, %v20986_v36, %v5613_v32  ;;  %v5828_v22 = vsel %vm817_vm2, %v17200_v50, %v5827_v47  ;;  %v20997_v36 = vld [vmem:[#allocation9_spill] sm:$0xff]  ;;  %v5610_v7 = vrot.slane %v17405_v61, 4  ;;  %v13262_v20 = vcombine.low %v5618_v34, %v5624_v14  ;;  %v21003_v47 = vld [vmem:[#allocation11_spill] sm:$0xff] }
 0x4f4   :  { %6994 = vmatpush1.bf16.msra.mxu0 %v13204_v40  ;;  %v17553_v44 = vpop.permute.xlu0 %5581  ;;  %v5636_v27 = vsel %vm718_vm3, %v20985_v46, %v5635_v1  ;;  %v20994_v40 = vld [vmem:[#allocation5_spill] sm:$0xff]  ;;  %v20996_v46 = vld [vmem:[#allocation8_spill] sm:$0xff]  ;;  %v5434_v50 = vsel %vm619_vm4, %v20899_v17, %v5433_v19  ;;  %v5816_v12 = vsel %vm817_vm2, %v17008_v13, %v5815_v38  ;;  %v5217_v48 = vrot.slane %v17439_v30, 4 }
 0x4f5   :  { %6896 = vmatpush2.bf16.msra.mxu1 %v13274_v25  ;;  %6995 = vmatprep.subr.bf16.mxu0 %v20991_v60  ;;  %v13268_v57 = vcombine.low %v5630_v56, %v5636_v27  ;;  %v13269_v21 = vcombine.high %v5630_v56, %v5636_v27  ;;  %v20995_v37 = vpack.c.bf16 %v20993_v55, %v20994_v40  ;;  %v20999_v56 = vld [vmem:[#allocation39_spill] sm:$0xff]  ;;  %v5614_v28 = vrot.slane %v17514_v9, 4  ;;  %v21006_v9 = vld [vmem:[#allocation14_spill] sm:$0xff] }
 0x4f6   :  { %v13263_v25 = vcombine.high %v5618_v34, %v5624_v14  ;;  %v20998_v1 = vpack.c.bf16 %v20996_v46, %v20997_v36  ;;  %v21000_v27 = vrot.slane %v20999_v56, 4  ;;  %v13283_v18 = vcombine.high %v5828_v22, %v5834_v16  ;;  %v21001_v60 = vld [vmem:[#allocation55_spill] sm:$0xff]  ;;  %v21004_v14 = vld [vmem:[#allocation10_spill] sm:$0xff] }
 0x4f7   :  { %6897 = vmatprep.subr.bf16.mxu1 %v13269_v21  ;;  %v21005_v21 = vpack.c.bf16 %v21003_v47, %v21004_v14  ;;  %v5822_v17 = vsel %vm817_vm2, %v17258_v59, %v5821_v4  ;;  %v21007_v38 = vrot.slane %v21006_v9, 4  ;;  %v5637_v55 = vsel %vm221_vm1, %v5613_v32, %v5614_v28 }
 0x4f8   :  { %6996 = vmatpush1.bf16.msra.mxu0 %v20995_v37  ;;  %v17591_v8 = vpop.permute.xlu0 %5399  ;;  %v5427_v5 = vsel %vm221_vm1, %v21000_v27, %v5409_v53  ;;  %v5606_v40 = vrot.slane %v17553_v44, 4  ;;  %v5631_v59 = vsel %vm221_vm1, %v5609_v41, %v5610_v7  ;;  %v5602_v4 = vrot.slane %v17471_v49, 4 }
 0x4f9   :  { %6898 = vmatpush2.bf16.msra.mxu1 %v13268_v57  ;;  %6997 = vmatprep.subr.bf16.mxu0 %v20998_v1  ;;  %v5417_v24 = vrot.slane %v17591_v8, 4  ;;  %v21002_v57 = vrot.slane %v21001_v60, 4  ;;  %v5421_v2 = vsel %vm221_vm1, %v21007_v38, %v5405_v45  ;;  %v5428_v19 = vsel %vm619_vm4, %v20999_v56, %v5427_v5  ;;  %v5198_v5 = vpop.permute.xlu1 %5197 }
 0x4fa   :  { %6899 = vmatprep.subr.bf16.mxu1 %v13263_v25  ;;  %v13282_v46 = vcombine.low %v5828_v22, %v5834_v16  ;;  %v5209_v1 = vrot.slane %v17526_v29, 4  ;;  %v13277_v56 = vcombine.high %v5816_v12, %v5822_v17  ;;  %v5422_v32 = vsel %vm619_vm4, %v21006_v9, %v5421_v2 }
 0x4fb   :  { %v5439_v61 = vsel %vm221_vm1, %v21002_v57, %v5417_v24  ;;  %v21008_v44 = vrot.slane %v20912_v31, 4  ;;  %v5414_v41 = vrot.slane %v17551_v6, 4  ;;  %v5638_v49 = vsel %vm718_vm3, %v17531_v52, %v5637_v55 }
 0x4fc   :  { %6998 = vmatpush1.bf16.msra.mxu0 %v21005_v21  ;;  %v17624_v34 = vpop.permute.xlu0 %5187  ;;  %v5440_v13 = vsel %vm619_vm4, %v21001_v60, %v5439_v61  ;;  %v13251_v22 = vcombine.high %v5422_v32, %v5428_v19  ;;  %v5632_v7 = vsel %vm718_vm3, %v17241_v62, %v5631_v59  ;;  %v5619_v6 = vsel %vm221_vm1, %v5601_v54, %v5602_v4  ;;  %v21009_v62 = vld [vmem:[#allocation41_spill] sm:$0xff]  ;;  %v21011_v61 = vld [vmem:[#allocation56_spill] sm:$0xff] }
 0x4fd   :  { %6900 = vmatpush2.bf16.msra.mxu1 %v13262_v20  ;;  %6999 = vmatprep.subr.bf16.mxu0 %v13283_v18  ;;  %v13256_v37 = vcombine.low %v5434_v50, %v5440_v13  ;;  %v13257_v25 = vcombine.high %v5434_v50, %v5440_v13  ;;  %v5213_v36 = vrot.slane %v17624_v34, 4  ;;  %v5237_v27 = vsel %vm221_vm1, %v21008_v44, %v5217_v48  ;;  %v21013_v54 = vld [vmem:[#allocation33_spill] sm:$0xff] }
 0x4fe   :  { %v5625_v20 = vsel %vm221_vm1, %v5605_v15, %v5606_v40  ;;  %v13276_v52 = vcombine.low %v5816_v12, %v5822_v17  ;;  %v5238_v28 = vsel %vm520_vm5, %v20912_v31, %v5237_v27  ;;  %v21010_v18 = vrot.slane %v21009_v62, 4 }
 0x4ff   :  { %6901 = vmatprep.subr.bf16.mxu1 %v13257_v25  ;;  %v13250_v15 = vcombine.low %v5422_v32, %v5428_v19  ;;  %v13271_v57 = vcombine.high %v5632_v7, %v5638_v49  ;;  %v21012_v47 = vrot.slane %v21011_v61, 4  ;;  %v21014_v12 = vrot.slane %v21013_v54, 4 }
 0x500   :  { %7000 = vmatpush2.bf16.msra.mxu0 %v13282_v46  ;;  %v17655_v16 = vpop.permute.xlu0 %5203  ;;  %v5231_v60 = vsel %vm221_vm1, %v21010_v18, %v5213_v36  ;;  %v5435_v31 = vsel %vm221_vm1, %v5413_v42, %v5414_v41  ;;  %v5406_v13 = vrot.slane %v17608_v43, 4  ;;  %v5626_v38 = vsel %vm718_vm3, %v17370_v58, %v5625_v20  ;;  %v5982_v42 = vpop.permute.xlu1 %5981 }
 0x501   :  { %6902 = vmatpush2.bf16.msra.mxu1 %v13256_v37  ;;  %7001 = vmatprep.subr.bf16.mxu0 %v13277_v56  ;;  %v5221_v50 = vrot.slane %v17655_v16, 4  ;;  %v5225_v21 = vsel %vm221_vm1, %v21014_v12, %v5209_v1  ;;  %v5232_v40 = vsel %vm520_vm5, %v21009_v62, %v5231_v60  ;;  %v13270_v37 = vcombine.low %v5632_v7, %v5638_v49 }
 0x502   :  { %6903 = vmatprep.subr.bf16.mxu1 %v13251_v22  ;;  %v5620_v43 = vsel %vm718_vm3, %v17132_v39, %v5619_v6  ;;  %v5226_v58 = vsel %vm520_vm5, %v21013_v54, %v5225_v21  ;;  %v5436_v56 = vsel %vm619_vm4, %v17287_v3, %v5435_v31  ;;  %v5423_v39 = vsel %vm221_vm1, %v5405_v45, %v5406_v13 }
 0x503   :  { %v5243_v14 = vsel %vm221_vm1, %v21012_v47, %v5221_v50  ;;  %v13265_v59 = vcombine.high %v5620_v43, %v5626_v38  ;;  %v13239_v46 = vcombine.high %v5226_v58, %v5232_v40  ;;  %v5218_v44 = vrot.slane %v5198_v5, 4 }
 0x504   :  { %7002 = vmatpush2.bf16.msra.mxu0 %v13276_v52  ;;  %v5402_v17 = vpop.permute.xlu0 %5401  ;;  %v5244_v9 = vsel %vm520_vm5, %v21011_v61, %v5243_v14  ;;  %v13264_v41 = vcombine.low %v5620_v43, %v5626_v38  ;;  %v13238_v22 = vcombine.low %v5226_v58, %v5232_v40  ;;  %v5182_v3 = vpop.permute.xlu1 %5181  ;;  %v6002_v20 = vrot.slane %v5982_v42, 4 }
 0x505   :  { %6904 = vmatpush2.bf16.msra.mxu1 %v13250_v15  ;;  %7003 = vmatprep.subr.bf16.mxu0 %v13271_v57  ;;  %v5418_v2 = vrot.slane %v5402_v17, 4  ;;  %v13244_v19 = vcombine.low %v5238_v28, %v5244_v9  ;;  %v13245_v55 = vcombine.high %v5238_v28, %v5244_v9  ;;  %v5239_v5 = vsel %vm221_vm1, %v5217_v48, %v5218_v44  ;;  %v21015_v48 = vld [vmem:[#allocation50_spill] sm:$0xff] }
 0x506   :  { %v5210_v62 = vrot.slane %v5182_v3, 4  ;;  %v21016_v60 = vrot.slane %v21015_v48, 4  ;;  %v21017_v14 = vrot.slane %v17299_v35, 4 }
 0x507   :  { %v5441_v25 = vsel %vm221_vm1, %v5417_v24, %v5418_v2  ;;  %6905 = vmatprep.subr.bf16.mxu1 %v13245_v55  ;;  %v21018_v55 = vld [vmem:[#allocation52_spill] sm:$0xff] }
 0x508   :  { %7004 = vmatpush2.bf16.msra.mxu0 %v13270_v37  ;;  %v5386_v4 = vpop.permute.xlu0 %5385  ;;  %v5442_v32 = vsel %vm619_vm4, %v17591_v8, %v5441_v25  ;;  %v5424_v8 = vsel %vm619_vm4, %v17379_v51, %v5423_v39  ;;  %v6023_v15 = vsel %vm221_vm1, %v21016_v60, %v6002_v20  ;;  %v21019_v40 = vrot.slane %v21018_v55, 4 }
 0x509   :  { %6906 = vmatpush2.bf16.msra.mxu1 %v13244_v19  ;;  %7005 = vmatprep.subr.bf16.mxu0 %v13265_v59  ;;  %v5410_v24 = vrot.slane %v5386_v4, 4  ;;  %v13259_v27 = vcombine.high %v5436_v56, %v5442_v32  ;;  %v6024_v12 = vsel %vm916_vm9, %v21015_v48, %v6023_v15 }
 0x50a   :  { %6907 = vmatprep.subr.bf16.mxu1 %v13239_v46 }
 0x50b   :  { %v5429_v49 = vsel %vm221_vm1, %v5409_v53, %v5410_v24  ;;  %v13258_v53 = vcombine.low %v5436_v56, %v5442_v32 }
 0x50c   :  { %7006 = vmatpush2.bf16.msra.mxu0 %v13264_v41  ;;  %v5206_v7 = vpop.permute.xlu0 %5205  ;;  %v5430_v45 = vsel %vm619_vm4, %v17451_v26, %v5429_v49  ;;  %v5240_v26 = vsel %vm520_vm5, %v17439_v30, %v5239_v5  ;;  %v5227_v30 = vsel %vm221_vm1, %v5209_v1, %v5210_v62 }
 0x50d   :  { %6908 = vmatpush2.bf16.msra.mxu1 %v13238_v22  ;;  %7007 = vmatprep.subr.bf16.mxu0 %v13259_v27  ;;  %v5222_v6 = vrot.slane %v5206_v7, 4  ;;  %v13253_v52 = vcombine.high %v5424_v8, %v5430_v45  ;;  %v13252_v47 = vcombine.low %v5424_v8, %v5430_v45  ;;  %v5228_v19 = vsel %vm520_vm5, %v17526_v29, %v5227_v30 }
 0x50f   :  { %v5245_v28 = vsel %vm221_vm1, %v5221_v50, %v5222_v6  ;;  %v5966_v50 = vpop.permute.xlu1 %5965 }
 0x510   :  { %6910 = vmatmul.mubr.bf16.vlgmr.msra.gmra.mxu1 %v17293_v33  ;;  %7008 = vmatpush2.bf16.msra.mxu0 %v13258_v53  ;;  %v5990_v51 = vpop.permute.xlu0 %5989  ;;  %v5246_v18 = vsel %vm520_vm5, %v17655_v16, %v5245_v28  ;;  %v5994_v31 = vrot.slane %v5966_v50, 4 }
 0x511   :  { %7009 = vmatprep.subr.bf16.mxu0 %v13253_v52  ;;  %v6006_v57 = vrot.slane %v5990_v51, 4  ;;  %v13247_v61 = vcombine.high %v5240_v26, %v5246_v18  ;;  %6919 = vmatprep.mubr.bf16.mxu1 %v17313_v0  ;;  %v13246_v38 = vcombine.low %v5240_v26, %v5246_v18 }
 0x512   :  { %v6011_v37 = vsel %vm221_vm1, %v21019_v40, %v5994_v31 }
 0x513   :  { %v6029_v54 = vsel %vm221_vm1, %v21017_v14, %v6006_v57  ;;  %v6012_v29 = vsel %vm916_vm9, %v21018_v55, %v6011_v37  ;;  %v17763_v39 = vpop.permute.xlu1 %6187 }
 0x514   :  { %7010 = vmatpush2.bf16.msra.mxu0 %v13252_v47  ;;  %v5190_v16 = vpop.permute.xlu0 %5189  ;;  %v6030_v21 = vsel %vm916_vm9, %v17299_v35, %v6029_v54 }
 0x515   :  { %7011 = vmatprep.subr.bf16.mxu0 %v13247_v61  ;;  %v5214_v13 = vrot.slane %v5190_v16, 4  ;;  %v13294_v17 = vcombine.low %v6024_v12, %v6030_v21  ;;  %v13295_v9 = vcombine.high %v6024_v12, %v6030_v21 }
 0x517   :  { %v5233_v2 = vsel %vm221_vm1, %v5213_v36, %v5214_v13  ;;  %7048 = vmatprep.subr.bf16.mxu1 %v13295_v9  ;;  %v21020_v36 = vld [vmem:[#allocation13_spill] sm:$0xff] }
 0x518   :  { %6920 = vmatmul.mubr.bf16.gmra.mxu1 %v17361_v10  ;;  %7012 = vmatpush2.bf16.msra.mxu0 %v13246_v38  ;;  %v5974_v1 = vpop.permute.xlu0 %5973  ;;  %v5234_v35 = vsel %vm520_vm5, %v17624_v34, %v5233_v2  ;;  %v21021_v59 = vrot.slane %v21020_v36, 4 }
 0x519   :  { %7049 = vmatpush1.bf16.msra.mxu1 %v13294_v17  ;;  %v5998_v42 = vrot.slane %v5974_v1, 4  ;;  %v13240_v43 = vcombine.low %v5228_v19, %v5234_v35  ;;  %v13241_v25 = vcombine.high %v5228_v19, %v5234_v35  ;;  %7068 = vmatprep.mubr.bf16.mxu1 %v20922_v23 }
 0x51b   :  { %v6017_v58 = vsel %vm221_vm1, %v21021_v59, %v5998_v42  ;;  %7013 = vmatprep.subr.bf16.mxu0 %v13241_v25 }
 0x51c   :  { %7014 = vmatpush2.bf16.msra.mxu0 %v13240_v43  ;;  %v6018_v34 = vsel %vm916_vm9, %v21020_v36, %v6017_v58 }
 0x51d   :  { %v13288_v4 = vcombine.low %v6012_v29, %v6018_v34  ;;  %v13289_v46 = vcombine.high %v6012_v29, %v6018_v34 }
 0x51f   :  { %7016 = vmatmul.mubr.bf16.vlgmr.msra.gmra.mxu0 %v17293_v33  ;;  %7050 = vmatprep.subr.bf16.mxu1 %v13289_v46 }
 0x520   :  { %7051 = vmatpush1.bf16.msra.mxu1 %v13288_v4  ;;  %7025 = vmatprep.mubr.bf16.mxu0 %v17313_v0  ;;  %v17767_v0 = vpop.permute.xlu1 %6177 }
 0x523   :  { %13300 = vmatmul.mubr.msk.bf16.vlgmr.msra.gmra.mxu1 %vm3958_vm13, %v17181_v63 }
 0x524   :  { %7078 = vmatprep.mubr.bf16.mxu1 %v20922_v23 }
 0x525   :  { %v17765_v44 = vpop.permute.xlu0 %6192 }
 0x527   :  { %7026 = vmatmul.mubr.bf16.gmra.mxu0 %v17361_v10 }
 0x528   :  { %9662 = vmatprep.mubr.bf16.mxu0 %v20922_v23 }
 0x529   :  { %v17771_v3 = vpop.permute.xlu0 %6182 }
 0x52b   :  { %13301 = vmatmul.mubr.msk.bf16.gmra.mxu1 %vm3958_vm13, %v17251_v11 }
 0x57f   :  { %v6858_v56 = vpop.f32.mrf.mxu1 }
 0x581   :  { %v6860_v32 = vpop.f32.mrf.mxu1 }
 0x583   :  { %v6862_v33 = vpop.f32.mrf.mxu1 }
 0x585   :  { %v6864_v27 = vpop.f32.mrf.mxu1 }
 0x587   :  { %v6868_v22 = vpop.f32.mrf.mxu1 }
 0x589   :  { %v6870_v52 = vpop.f32.mrf.mxu1 }
 0x58b   :  { %v6872_v50 = vpop.f32.mrf.mxu1 }
 0x58d   :  { %v6874_v13 = vpop.f32.mrf.mxu1 }
 0x58f   :  { %v6805_v24 = vpop.f32.mrf.mxu0 }
 0x590   :  { %v6806_v63 = vadd.f32 %v6805_v24, %v17767_v0 }
 0x591   :  { %v6807_v41 = vpop.f32.mrf.mxu0 }
 0x592   :  { %v6859_v10 = vadd.f32 %v6858_v56, %v6806_v63  ;;  %v6808_v49 = vadd.f32 %v6807_v41, %v17767_v0 }
 0x593   :  { %v6809_v11 = vpop.f32.mrf.mxu0 }
 0x594   :  { %vm7089_vm14 = vcmp.ge.f32.partialorder %v6859_v10, 0.0  ;;  %v7113_v7 = vmul.f32 0.2, %v6859_v10  ;;  %v6861_v8 = vadd.f32 %v6860_v32, %v6808_v49  ;;  %v6810_v45 = vadd.f32 %v6809_v11, %v17771_v3 }
 0x595   :  { %v6811_v5 = vpop.f32.mrf.mxu0 }
 0x596   :  { %vm7090_vm15 = vcmp.ge.f32.partialorder %v6861_v8, 0.0  ;;  %v7114_v20 = vmul.f32 0.2, %v6861_v8  ;;  %v6863_v6 = vadd.f32 %v6862_v33, %v6810_v45  ;;  %v17774_v53 = vsel %vm7089_vm14, %v6859_v10, %v7113_v7 }
 0x597   :  { %21022 = vst [vmem:[#allocation35_spill] sm:$0xff] %v17774_v53  ;;  %v6812_v28 = vadd.f32 %v6811_v5, %v17771_v3  ;;  %v6815_v62 = vpop.f32.mrf.mxu0 }
 0x598   :  { %v17777_v51 = vsel %vm7090_vm15, %v6861_v8, %v7114_v20  ;;  %vm7095_vm0 = vcmp.ge.f32.partialorder %v6863_v6, 0.0  ;;  %v7119_v26 = vmul.f32 0.2, %v6863_v6  ;;  %v6816_v18 = vadd.f32 %v6815_v62, %v17763_v39 }
 0x599   :  { %v17782_v48 = vpack.c.bf16 %v17777_v51, %v17774_v53  ;;  %v6865_v60 = vadd.f32 %v6864_v27, %v6812_v28  ;;  %v6817_v15 = vpop.f32.mrf.mxu0 }
 0x59a   :  { %v17784_v57 = vsel %vm7095_vm0, %v6863_v6, %v7119_v26  ;;  %v6818_v61 = vadd.f32 %v6817_v15, %v17763_v39  ;;  %v6869_v14 = vadd.f32 %v6868_v22, %v6816_v18 }
 0x59b   :  { %21023 = vst [vmem:[#allocation43_spill] sm:$0xff] %v17784_v57  ;;  %vm7096_vm10 = vcmp.ge.f32.partialorder %v6865_v60, 0.0  ;;  %v7120_v47 = vmul.f32 0.2, %v6865_v60  ;;  %v6819_v54 = vpop.f32.mrf.mxu0  ;;  %7785 = vrot.lane.b32.xlu1 %v17782_v48, %s14554_s25 }
 0x59c   :  { %v6820_v16 = vadd.f32 %v6819_v54, %v17765_v44  ;;  %v6871_v21 = vadd.f32 %v6870_v52, %v6818_v61  ;;  %v7125_v17 = vmul.f32 0.2, %v6869_v14  ;;  %vm7101_vm11 = vcmp.ge.f32.partialorder %v6869_v14, 0.0 }
 0x59d   :  { %v17792_v12 = vsel %vm7096_vm10, %v6865_v60, %v7120_v47  ;;  %v6821_v31 = vpop.f32.mrf.mxu0 }
 0x59e   :  { %v6822_v9 = vadd.f32 %v6821_v31, %v17765_v44  ;;  %v6873_v38 = vadd.f32 %v6872_v50, %v6820_v16  ;;  %v7126_v1 = vmul.f32 0.2, %v6871_v21  ;;  %vm7102_vm14 = vcmp.ge.f32.partialorder %v6871_v21, 0.0 }
 0x59f   :  { %8765 = vrot.lane.b32.xlu1 %v17782_v48, %s14557_s30  ;;  %v17799_v55 = vsel %vm7101_vm11, %v6869_v14, %v7125_v17  ;;  %v17823_v59 = vpack.c.bf16 %v17792_v12, %v17784_v57  ;;  %v6964_v58 = vpop.f32.mrf.mxu0 }
 0x5a0   :  { %vm7107_vm12 = vcmp.ge.f32.partialorder %v6873_v38, 0.0  ;;  %v7131_v19 = vmul.f32 0.2, %v6873_v38  ;;  %v6875_v35 = vadd.f32 %v6874_v13, %v6822_v9  ;;  %v17807_v43 = vsel %vm7102_vm14, %v6871_v21, %v7126_v1 }
 0x5a1   :  { %v6966_v29 = vpop.f32.mrf.mxu0  ;;  %v17841_v32 = vpack.c.bf16 %v17807_v43, %v17799_v55  ;;  %v21046_v21 = vmov 0.0|0.0  }
 0x5a2   :  { %v17801_v40 = vsel %vm7107_vm12, %v6873_v38, %v7131_v19  ;;  %vm7108_vm15 = vcmp.ge.f32.partialorder %v6875_v35, 0.0  ;;  %v7132_v37 = vmul.f32 0.2, %v6875_v35 }
 0x5a3   :  { %7589 = vrot.lane.b32.xlu1 %v17782_v48, %s14555_s26  ;;  %v6968_v34 = vpop.f32.mrf.mxu0 }
 0x5a4   :  { %v17809_v25 = vsel %vm7108_vm15, %v6875_v35, %v7132_v37 }
 0x5a5   :  { %v6970_v4 = vpop.f32.mrf.mxu0 }
 0x5a7   :  { %7393 = vrot.lane.b32.xlu1 %v17782_v48, %s14556_s27  ;;  %v6974_v46 = vpop.f32.mrf.mxu0 }
 0x5a9   :  { %v6976_v41 = vpop.f32.mrf.mxu0 }
 0x5ab   :  { %8569 = vrot.lane.b32.xlu1 %v17782_v48, %s14550_s14  ;;  %v6978_v5 = vpop.f32.mrf.mxu0 }
 0x5ad   :  { %v6980_v47 = vpop.f32.mrf.mxu0 }
 0x5af   :  { %8373 = vrot.lane.b32.xlu1 %v17782_v48, %s14551_s15 }
 0x5b3   :  { %8177 = vrot.lane.b32.xlu1 %v17782_v48, %s14552_s24 }
 0x5b7   :  { %7793 = vrot.lane.b32.xlu1 %v17823_v59, %s14554_s25 }
 0x5bb   :  { %8773 = vrot.lane.b32.xlu1 %v17823_v59, %s14557_s30 }
 0x5bf   :  { %7597 = vrot.lane.b32.xlu1 %v17823_v59, %s14555_s26 }
 0x5c3   :  { %7401 = vrot.lane.b32.xlu1 %v17823_v59, %s14556_s27 }
 0x5c7   :  { %8577 = vrot.lane.b32.xlu1 %v17823_v59, %s14550_s14 }
 0x5cb   :  { %8381 = vrot.lane.b32.xlu1 %v17823_v59, %s14551_s15 }
 0x5cf   :  { %8185 = vrot.lane.b32.xlu1 %v17823_v59, %s14552_s24 }
 0x5d0   :  { %v6911_v56 = vpop.f32.mrf.mxu1 }
 0x5d1   :  { %v6912_v33 = vadd.f32 %v6911_v56, %v17767_v0 }
 0x5d2   :  { %v6913_v24 = vpop.f32.mrf.mxu1 }
 0x5d3   :  { %v6965_v63 = vadd.f32 %v6964_v58, %v6912_v33  ;;  %v6914_v27 = vadd.f32 %v6913_v24, %v17767_v0  ;;  %7801 = vrot.lane.b32.xlu1 %v17841_v32, %s14554_s25 }
 0x5d4   :  { %v6915_v10 = vpop.f32.mrf.mxu1 }
 0x5d5   :  { %vm7091_vm0 = vcmp.ge.f32.partialorder %v6965_v63, 0.0  ;;  %v7115_v49 = vmul.f32 0.2, %v6965_v63  ;;  %v6967_v22 = vadd.f32 %v6966_v29, %v6914_v27  ;;  %v6916_v11 = vadd.f32 %v6915_v10, %v17771_v3 }
 0x5d6   :  { %v6917_v7 = vpop.f32.mrf.mxu1 }
 0x5d7   :  { %vm7092_vm10 = vcmp.ge.f32.partialorder %v6967_v22, 0.0  ;;  %v7116_v8 = vmul.f32 0.2, %v6967_v22  ;;  %v6969_v45 = vadd.f32 %v6968_v34, %v6916_v11  ;;  %8781 = vrot.lane.b32.xlu1 %v17841_v32, %s14557_s30  ;;  %v17850_v20 = vsel %vm7091_vm0, %v6965_v63, %v7115_v49 }
 0x5d8   :  { %21024 = vst [vmem:[#allocation40_spill] sm:$0xff] %v17850_v20  ;;  %v6918_v6 = vadd.f32 %v6917_v7, %v17771_v3  ;;  %v6921_v52 = vpop.f32.mrf.mxu1 }
 0x5d9   :  { %v17853_v28 = vsel %vm7092_vm10, %v6967_v22, %v7116_v8  ;;  %vm7097_vm11 = vcmp.ge.f32.partialorder %v6969_v45, 0.0  ;;  %v7121_v62 = vmul.f32 0.2, %v6969_v45  ;;  %v6922_v26 = vadd.f32 %v6921_v52, %v17763_v39 }
 0x5da   :  { %21025 = vst [vmem:[#allocation47_spill] sm:$0xff] %v17853_v28  ;;  %v17858_v18 = vpack.c.bf16 %v17853_v28, %v17850_v20  ;;  %v6971_v60 = vadd.f32 %v6970_v4, %v6918_v6  ;;  %v6923_v15 = vpop.f32.mrf.mxu1 }
 0x5db   :  { %v17860_v61 = vsel %vm7097_vm11, %v6969_v45, %v7121_v62  ;;  %v6924_v50 = vadd.f32 %v6923_v15, %v17763_v39  ;;  %7605 = vrot.lane.b32.xlu1 %v17841_v32, %s14555_s26  ;;  %v6975_v54 = vadd.f32 %v6974_v46, %v6922_v26 }
 0x5dc   :  { %21026 = vst [vmem:[#allocation49_spill] sm:$0xff] %v17860_v61  ;;  %vm7098_vm12 = vcmp.ge.f32.partialorder %v6971_v60, 0.0  ;;  %v7122_v14 = vmul.f32 0.2, %v6971_v60  ;;  %v6925_v16 = vpop.f32.mrf.mxu1  ;;  %7787 = vrot.lane.b32.xlu0 %v17858_v18, %s14554_s25 }
 0x5dd   :  { %v6926_v31 = vadd.f32 %v6925_v16, %v17765_v44  ;;  %v6977_v17 = vadd.f32 %v6976_v41, %v6924_v50  ;;  %v7127_v1 = vmul.f32 0.2, %v6975_v54  ;;  %vm7103_vm14 = vcmp.ge.f32.partialorder %v6975_v54, 0.0 }
 0x5de   :  { %v17870_v13 = vsel %vm7098_vm12, %v6971_v60, %v7122_v14  ;;  %v6927_v9 = vpop.f32.mrf.mxu1  ;;  %v17905_v14 = vpack.c.bf16 %v17809_v25, %v17801_v40 }
 0x5df   :  { %21027 = vst [vmem:[#allocation19_spill] sm:$0xff] %v17870_v13  ;;  %v7017_v38 = vpop.f32.mrf.mxu0  ;;  %7409 = vrot.lane.b32.xlu1 %v17841_v32, %s14556_s27  ;;  %v6979_v19 = vadd.f32 %v6978_v5, %v6926_v31  ;;  %v6928_v35 = vadd.f32 %v6927_v9, %v17765_v44  ;;  %v7128_v29 = vmul.f32 0.2, %v6977_v17  ;;  %vm7104_vm0 = vcmp.ge.f32.partialorder %v6977_v17, 0.0 }
 0x5e0   :  { %8767 = vrot.lane.b32.xlu0 %v17858_v18, %s14557_s30  ;;  %v7018_v46 = vadd.f32 %v7017_v38, %v17767_v0  ;;  %v17882_v24 = vsel %vm7103_vm14, %v6975_v54, %v7127_v1 }
 0x5e1   :  { %v7019_v58 = vpop.f32.mrf.mxu0  ;;  %vm7109_vm15 = vcmp.ge.f32.partialorder %v6979_v19, 0.0  ;;  %v7133_v34 = vmul.f32 0.2, %v6979_v19  ;;  %v6981_v4 = vadd.f32 %v6980_v47, %v6928_v35  ;;  %21028 = vst [vmem:[#allocation48_spill] sm:$0xff] %v17882_v24  ;;  %v17891_v7 = vsel %vm7104_vm0, %v6977_v17, %v7128_v29 }
 0x5e2   :  { %v7020_v10 = vadd.f32 %v7019_v58, %v17767_v0  ;;  %21030 = vst [vmem:[#allocation34_spill] sm:$0xff] %v17891_v7 }
 0x5e3   :  { %v7021_v56 = vpop.f32.mrf.mxu0  ;;  %v7070_v33 = vpop.f32.mrf.mxu1  ;;  %8585 = vrot.lane.b32.xlu1 %v17841_v32, %s14550_s14  ;;  %v17884_v63 = vsel %vm7109_vm15, %v6979_v19, %v7133_v34  ;;  %vm7110_vm10 = vcmp.ge.f32.partialorder %v6981_v4, 0.0  ;;  %v7134_v27 = vmul.f32 0.2, %v6981_v4 }
 0x5e4   :  { %21029 = vst [vmem:[#allocation51_spill] sm:$0xff] %v17884_v63  ;;  %7591 = vrot.lane.b32.xlu0 %v17858_v18, %s14555_s26  ;;  %v7071_v49 = vadd.f32 %v7070_v33, %v7018_v46  ;;  %v7022_v45 = vadd.f32 %v7021_v56, %v17771_v3 }
 0x5e5   :  { %v7023_v22 = vpop.f32.mrf.mxu0  ;;  %v7072_v11 = vpop.f32.mrf.mxu1  ;;  %v17893_v8 = vsel %vm7110_vm10, %v6981_v4, %v7134_v27 }
 0x5e6   :  { %21031 = vst [vmem:[#allocation42_spill] sm:$0xff] %v17893_v8  ;;  %v7073_v5 = vadd.f32 %v7072_v11, %v7020_v10  ;;  %v7117_v26 = vmul.f32 0.2, %v7071_v49  ;;  %vm7093_vm11 = vcmp.ge.f32.partialorder %v7071_v49, 0.0  ;;  %v7024_v60 = vadd.f32 %v7023_v22, %v17771_v3 }
 0x5e7   :  { %v7027_v6 = vpop.f32.mrf.mxu0  ;;  %v7074_v52 = vpop.f32.mrf.mxu1  ;;  %8389 = vrot.lane.b32.xlu1 %v17841_v32, %s14551_s15 }
 0x5e8   :  { %7395 = vrot.lane.b32.xlu0 %v17858_v18, %s14556_s27  ;;  %v7075_v0 = vadd.f32 %v7074_v52, %v7022_v45  ;;  %vm7094_vm14 = vcmp.ge.f32.partialorder %v7073_v5, 0.0  ;;  %v7028_v54 = vadd.f32 %v7027_v6, %v17763_v39  ;;  %v17910_v9 = vsel %vm7093_vm11, %v7071_v49, %v7117_v26 }
 0x5e9   :  { %v7029_v15 = vpop.f32.mrf.mxu0  ;;  %v7076_v50 = vpop.f32.mrf.mxu1  ;;  %21032 = vst [vmem:[#allocation18_spill] sm:$0xff] %v17910_v9  ;;  %v7118_v3 = vmul.f32 0.2, %v7073_v5 }
 0x5ea   :  { %vm7099_vm12 = vcmp.ge.f32.partialorder %v7075_v0, 0.0  ;;  %v7123_v47 = vmul.f32 0.2, %v7075_v0  ;;  %v7077_v16 = vadd.f32 %v7076_v50, %v7024_v60  ;;  %v7030_v1 = vadd.f32 %v7029_v15, %v17763_v39 }
 0x5eb   :  { %v7031_v31 = vpop.f32.mrf.mxu0  ;;  %v7080_v17 = vpop.f32.mrf.mxu1  ;;  %8193 = vrot.lane.b32.xlu1 %v17841_v32, %s14552_s24  ;;  %v17925_v39 = vsel %vm7094_vm14, %v7073_v5, %v7118_v3 }
 0x5ec   :  { %v17912_v38 = vsel %vm7099_vm12, %v7075_v0, %v7123_v47  ;;  %8571 = vrot.lane.b32.xlu0 %v17858_v18, %s14550_s14  ;;  %vm7100_vm15 = vcmp.ge.f32.partialorder %v7077_v16, 0.0  ;;  %v7124_v35 = vmul.f32 0.2, %v7077_v16  ;;  %v7081_v58 = vadd.f32 %v7080_v17, %v7028_v54  ;;  %21035 = vst [vmem:[#allocation30_spill] sm:$0xff] %v17925_v39 }
 0x5ed   :  { %21033 = vst [vmem:[#allocation36_spill] sm:$0xff] %v17912_v38  ;;  %v7033_v29 = vpop.f32.mrf.mxu0  ;;  %v7082_v34 = vpop.f32.mrf.mxu1  ;;  %v7032_v56 = vadd.f32 %v7031_v31, %v17765_v44  ;;  %v17942_v0 = vpack.c.bf16 %v17870_v13, %v17860_v61  ;;  %v17974_v54 = vpack.c.bf16 %v17925_v39, %v17910_v9  ;;  %v17990_v17 = vpack.c.bf16 %v17891_v7, %v17882_v24  ;;  %v18154_v39 = vld [vmem:[%s20321_s7 + $0x4] ss:$12 sps:$4 sm:$0xff]  }
 0x5ee   :  { %v7083_v4 = vadd.f32 %v7082_v34, %v7030_v1  ;;  %v17919_v46 = vsel %vm7100_vm15, %v7077_v16, %v7124_v35  ;;  %v7034_v27 = vadd.f32 %v7033_v29, %v17765_v44  ;;  %v7129_v10 = vmul.f32 0.2, %v7081_v58  ;;  %9609 = vmatprep.mubr.bf16.mxu1 %v18154_v39 }
 0x5ef   :  { %21034 = vst [vmem:[#allocation44_spill] sm:$0xff] %v17919_v46  ;;  %v7084_v33 = vpop.f32.mrf.mxu1  ;;  %7809 = vrot.lane.b32.xlu1 %v17905_v14, %s14554_s25  ;;  %vm7105_vm0 = vcmp.ge.f32.partialorder %v7081_v58, 0.0 }
 0x5f0   :  { %8375 = vrot.lane.b32.xlu0 %v17858_v18, %s14551_s15  ;;  %v7085_v49 = vadd.f32 %v7084_v33, %v7032_v56  ;;  %v7130_v45 = vmul.f32 0.2, %v7083_v4  ;;  %vm7106_vm10 = vcmp.ge.f32.partialorder %v7083_v4, 0.0  ;;  %v17936_v5 = vsel %vm7105_vm0, %v7081_v58, %v7129_v10 }
 0x5f1   :  { %v7086_v22 = vpop.f32.mrf.mxu1  ;;  %21036 = vst [vmem:[#allocation6_spill] sm:$0xff] %v17936_v5  ;;  %v14176_v56 = vpack.c.bf16 %v17893_v8, %v17884_v63 }
 0x5f2   :  { %v7087_v6 = vadd.f32 %v7086_v22, %v7034_v27  ;;  %vm7111_vm11 = vcmp.ge.f32.partialorder %v7085_v49, 0.0  ;;  %v7135_v52 = vmul.f32 0.2, %v7085_v49  ;;  %v17944_v60 = vsel %vm7106_vm10, %v7083_v4, %v7130_v45 }
 0x5f3   :  { %8789 = vrot.lane.b32.xlu1 %v17905_v14, %s14557_s30  ;;  %21038 = vst [vmem:[#allocation7_spill] sm:$0xff] %v17944_v60  ;;  %v14174_v1 = vpack.c.bf16 %v17944_v60, %v17936_v5 }
 0x5f4   :  { %vm7112_vm12 = vcmp.ge.f32.partialorder %v7087_v6, 0.0  ;;  %v7136_v44 = vmul.f32 0.2, %v7087_v6  ;;  %8179 = vrot.lane.b32.xlu0 %v17858_v18, %s14552_s24  ;;  %v17938_v26 = vsel %vm7111_vm11, %v7085_v49, %v7135_v52 }
 0x5f5   :  { %21037 = vst [vmem:[#allocation20_spill] sm:$0xff] %v17938_v26 }
 0x5f6   :  { %v17948_v50 = vsel %vm7112_vm12, %v7087_v6, %v7136_v44 }
 0x5f7   :  { %21039 = vst [vmem:[#allocation17_spill] sm:$0xff] %v17948_v50  ;;  %7613 = vrot.lane.b32.xlu1 %v17905_v14, %s14555_s26  ;;  %v14177_v15 = vpack.c.bf16 %v17948_v50, %v17938_v26 }
 0x5f8   :  { %7795 = vrot.lane.b32.xlu0 %v17942_v0, %s14554_s25 }
 0x5fb   :  { %7417 = vrot.lane.b32.xlu1 %v17905_v14, %s14556_s27 }
 0x5fc   :  { %8775 = vrot.lane.b32.xlu0 %v17942_v0, %s14557_s30 }
 0x5ff   :  { %8593 = vrot.lane.b32.xlu1 %v17905_v14, %s14550_s14 }
 0x600   :  { %7599 = vrot.lane.b32.xlu0 %v17942_v0, %s14555_s26 }
 0x603   :  { %8397 = vrot.lane.b32.xlu1 %v17905_v14, %s14551_s15 }
 0x604   :  { %7403 = vrot.lane.b32.xlu0 %v17942_v0, %s14556_s27 }
 0x607   :  { %8201 = vrot.lane.b32.xlu1 %v17905_v14, %s14552_s24 }
 0x608   :  { %8579 = vrot.lane.b32.xlu0 %v17942_v0, %s14550_s14 }
 0x60b   :  { %7789 = vrot.lane.b32.xlu1 %v17974_v54, %s14554_s25 }
 0x60c   :  { %8383 = vrot.lane.b32.xlu0 %v17942_v0, %s14551_s15 }
 0x60d   :  { %v17980_v16 = vpop.permute.xlu1 %7785 }
 0x60f   :  { %7593 = vrot.lane.b32.xlu1 %v17974_v54, %s14555_s26 }
 0x610   :  { %8187 = vrot.lane.b32.xlu0 %v17942_v0, %s14552_s24 }
 0x611   :  { %v17986_v31 = vpop.permute.xlu1 %8765 }
 0x613   :  { %7397 = vrot.lane.b32.xlu1 %v17974_v54, %s14556_s27 }
 0x614   :  { %7803 = vrot.lane.b32.xlu0 %v17990_v17, %s14554_s25 }
 0x615   :  { %v17996_v3 = vpop.permute.xlu1 %7589 }
 0x617   :  { %8573 = vrot.lane.b32.xlu1 %v17974_v54, %s14550_s14 }
 0x618   :  { %8783 = vrot.lane.b32.xlu0 %v17990_v17, %s14557_s30 }
 0x619   :  { %v18004_v35 = vpop.permute.xlu1 %7393 }
 0x61b   :  { %7805 = vrot.lane.b32.xlu1 %v14174_v1, %s14554_s25 }
 0x61c   :  { %7607 = vrot.lane.b32.xlu0 %v17990_v17, %s14555_s26 }
 0x61d   :  { %v18009_v58 = vpop.permute.xlu1 %8569 }
 0x61f   :  { %7997 = vrot.lane.b32.xlu1 %v17841_v32, %s14553_s0 }
 0x620   :  { %7411 = vrot.lane.b32.xlu0 %v17990_v17, %s14556_s27 }
 0x621   :  { %v18015_v29 = vpop.permute.xlu1 %8373 }
 0x622   :  { %21040 = vst [vmem:[#allocation29_spill] sm:$0xff] %v18015_v29 }
 0x623   :  { %7609 = vrot.lane.b32.xlu1 %v14174_v1, %s14555_s26 }
 0x624   :  { %8587 = vrot.lane.b32.xlu0 %v17990_v17, %s14550_s14 }
 0x625   :  { %v18020_v34 = vpop.permute.xlu1 %8177 }
 0x626   :  { %21041 = vst [vmem:[#allocation45_spill] sm:$0xff] %v18020_v34 }
 0x627   :  { %7413 = vrot.lane.b32.xlu1 %v14174_v1, %s14556_s27 }
 0x628   :  { %8391 = vrot.lane.b32.xlu0 %v17990_v17, %s14551_s15 }
 0x629   :  { %v18025_v4 = vpop.permute.xlu1 %7793 }
 0x62b   :  { %8589 = vrot.lane.b32.xlu1 %v14174_v1, %s14550_s14 }
 0x62c   :  { %8195 = vrot.lane.b32.xlu0 %v17990_v17, %s14552_s24 }
 0x62d   :  { %v18030_v32 = vpop.permute.xlu1 %8773 }
 0x62f   :  { %8393 = vrot.lane.b32.xlu1 %v14174_v1, %s14551_s15 }
 0x630   :  { %7811 = vrot.lane.b32.xlu0 %v14176_v56, %s14554_s25 }
 0x631   :  { %v18036_v33 = vpop.permute.xlu1 %7597 }
 0x633   :  { %8005 = vrot.lane.b32.xlu1 %v17905_v14, %s14553_s0 }
 0x634   :  { %8791 = vrot.lane.b32.xlu0 %v14176_v56, %s14557_s30 }
 0x635   :  { %v18041_v27 = vpop.permute.xlu1 %7401 }
 0x637   :  { %8377 = vrot.lane.b32.xlu1 %v17974_v54, %s14551_s15 }
 0x638   :  { %7615 = vrot.lane.b32.xlu0 %v14176_v56, %s14555_s26 }
 0x639   :  { %v18046_v10 = vpop.permute.xlu1 %8577 }
 0x63b   :  { %7981 = vrot.lane.b32.xlu1 %v17782_v48, %s14553_s0 }
 0x63c   :  { %7419 = vrot.lane.b32.xlu0 %v14176_v56, %s14556_s27 }
 0x63d   :  { %v18051_v49 = vpop.permute.xlu1 %8381 }
 0x63e   :  { %21042 = vst [vmem:[#allocation12_spill] sm:$0xff] %v18051_v49 }
 0x63f   :  { %7989 = vrot.lane.b32.xlu1 %v17823_v59, %s14553_s0  ;;  %v18069_v59 = vpack.c.bf16 %v17919_v46, %v17912_v38 }
 0x640   :  { %8595 = vrot.lane.b32.xlu0 %v14176_v56, %s14550_s14 }
 0x641   :  { %v18056_v14 = vpop.permute.xlu1 %8185 }
 0x642   :  { %21043 = vst [vmem:[#allocation26_spill] sm:$0xff] %v18056_v14  ;;  %v7821_v14 = vrot.slane %v18025_v4, 4 }
 0x643   :  { %8197 = vrot.lane.b32.xlu1 %v14174_v1, %s14552_s24 }
 0x644   :  { %8399 = vrot.lane.b32.xlu0 %v14176_v56, %s14551_s15 }
 0x645   :  { %v18060_v22 = vpop.permute.xlu1 %7801 }
 0x647   :  { %8181 = vrot.lane.b32.xlu1 %v17974_v54, %s14552_s24 }
 0x648   :  { %8203 = vrot.lane.b32.xlu0 %v14176_v56, %s14552_s24 }
 0x649   :  { %v18065_v48 = vpop.permute.xlu1 %8781 }
 0x64b   :  { %8001 = vrot.lane.b32.xlu1 %v14174_v1, %s14553_s0 }
 0x64c   :  { %7797 = vrot.lane.b32.xlu0 %v18069_v59, %s14554_s25 }
 0x64d   :  { %v18074_v45 = vpop.permute.xlu1 %7605 }
 0x64e   :  { %v18076_v6 = vpop.permute.xlu0 %7787 }
 0x64f   :  { %8785 = vrot.lane.b32.xlu1 %v14174_v1, %s14557_s30 }
 0x650   :  { %7601 = vrot.lane.b32.xlu0 %v18069_v59, %s14555_s26 }
 0x651   :  { %v18081_v52 = vpop.permute.xlu1 %7409 }
 0x652   :  { %v18083_v44 = vpop.permute.xlu0 %8767 }
 0x653   :  { %21044 = vst [vmem:[#allocation23_spill] sm:$0xff] %v18083_v44  ;;  %7985 = vrot.lane.b32.xlu1 %v17974_v54, %s14553_s0 }
 0x654   :  { %7405 = vrot.lane.b32.xlu0 %v18069_v59, %s14556_s27 }
 0x655   :  { %v18089_v19 = vpop.permute.xlu1 %8585 }
 0x656   :  { %v18091_v11 = vpop.permute.xlu0 %7591 }
 0x657   :  { %8769 = vrot.lane.b32.xlu1 %v17974_v54, %s14557_s30 }
 0x658   :  { %8581 = vrot.lane.b32.xlu0 %v18069_v59, %s14550_s14 }
 0x659   :  { %v18097_v1 = vpop.permute.xlu1 %8389 }
 0x65a   :  { %21045 = vst [vmem:[#allocation27_spill] sm:$0xff] %v18097_v1  ;;  %v18101_v47 = vpop.permute.xlu0 %7395 }
 0x65b   :  { %7807 = vrot.lane.b32.xlu1 %v21046_v21, %s14554_s25 }
 0x65c   :  { %7813 = vrot.lane.b32.xlu0 %v14177_v15, %s14554_s25 }
 0x65d   :  { %v18106_v37 = vpop.permute.xlu1 %8193 }
 0x65e   :  { %21047 = vst [vmem:[#allocation24_spill] sm:$0xff] %v18106_v37  ;;  %v18108_v41 = vpop.permute.xlu0 %8571 }
 0x65f   :  { %7791 = vrot.lane.b32.xlu1 %v21046_v21, %s14554_s25 }
 0x660   :  { %7999 = vrot.lane.b32.xlu0 %v17990_v17, %s14553_s0 }
 0x661   :  { %v18114_v54 = vpop.permute.xlu1 %7809 }
 0x662   :  { %v18116_v62 = vpop.permute.xlu0 %8375  ;;  %v7829_v29 = vrot.slane %v18114_v54, 4 }
 0x663   :  { %21048 = vst [vmem:[#allocation22_spill] sm:$0xff] %v18116_v62  ;;  %7611 = vrot.lane.b32.xlu1 %v21046_v21, %s14555_s26 }
 0x664   :  { %7617 = vrot.lane.b32.xlu0 %v14177_v15, %s14555_s26 }
 0x665   :  { %v18121_v30 = vpop.permute.xlu1 %8789 }
 0x666   :  { %v18123_v2 = vpop.permute.xlu0 %8179 }
 0x667   :  { %21049 = vst [vmem:[#allocation37_spill] sm:$0xff] %v18123_v2  ;;  %7595 = vrot.lane.b32.xlu1 %v21046_v21, %s14555_s26 }
 0x668   :  { %8007 = vrot.lane.b32.xlu0 %v14176_v56, %s14553_s0 }
 0x669   :  { %v18128_v42 = vpop.permute.xlu1 %7613 }
 0x66a   :  { %v18130_v17 = vpop.permute.xlu0 %7795 }
 0x66b   :  { %21050 = vst [vmem:[#allocation53_spill] sm:$0xff] %v18130_v17  ;;  %7415 = vrot.lane.b32.xlu1 %v21046_v21, %s14556_s27 }
 0x66c   :  { %7421 = vrot.lane.b32.xlu0 %v14177_v15, %s14556_s27 }
 0x66d   :  { %v18135_v36 = vpop.permute.xlu1 %7417 }
 0x66e   :  { %v18137_v9 = vpop.permute.xlu0 %8775 }
 0x66f   :  { %21051 = vst [vmem:[#allocation16_spill] sm:$0xff] %v18137_v9  ;;  %7399 = vrot.lane.b32.xlu1 %v21046_v21, %s14556_s27  ;;  %v21071_v1 = vrot.slane %v18137_v9, 4 }
 0x670   :  { %8385 = vrot.lane.b32.xlu0 %v18069_v59, %s14551_s15 }
 0x671   :  { %v18143_v56 = vpop.permute.xlu1 %8593 }
 0x672   :  { %v18145_v38 = vpop.permute.xlu0 %7599 }
 0x673   :  { %8591 = vrot.lane.b32.xlu1 %v21046_v21, %s14550_s14 }
 0x674   :  { %7983 = vrot.lane.b32.xlu0 %v17858_v18, %s14553_s0 }
 0x675   :  { %v18156_v46 = vpop.permute.xlu1 %8397 }
 0x676   :  { %v18158_v5 = vpop.permute.xlu0 %7403 }
 0x677   :  { %8575 = vrot.lane.b32.xlu1 %v21046_v21, %s14550_s14 }
 0x678   :  { %7991 = vrot.lane.b32.xlu0 %v17942_v0, %s14553_s0 }
 0x679   :  { %v18165_v26 = vpop.permute.xlu1 %8201 }
 0x67a   :  { %21052 = vst [vmem:[#allocation28_spill] sm:$0xff] %v18165_v26  ;;  %v18167_v18 = vpop.permute.xlu0 %8579 }
 0x67b   :  { %8395 = vrot.lane.b32.xlu1 %v21046_v21, %s14551_s15 }
 0x67c   :  { %8597 = vrot.lane.b32.xlu0 %v14177_v15, %s14550_s14 }
 0x67d   :  { %v18172_v60 = vpop.permute.xlu1 %7789 }
 0x67e   :  { %21053 = vst [vmem:[#allocation25_spill] sm:$0xff] %v18172_v60  ;;  %v18174_v50 = vpop.permute.xlu0 %8383  ;;  %v7817_v60 = vrot.slane %v17980_v16, 4 }
 0x67f   :  { %8379 = vrot.lane.b32.xlu1 %v21046_v21, %s14551_s15 }
 0x680   :  { %8189 = vrot.lane.b32.xlu0 %v18069_v59, %s14552_s24 }
 0x681   :  { %v18180_v0 = vpop.permute.xlu1 %7593 }
 0x682   :  { %21054 = vst [vmem:[#allocation46_spill] sm:$0xff] %v18180_v0  ;;  %v18182_v20 = vpop.permute.xlu0 %8187 }
 0x683   :  { %21055 = vst [vmem:[#allocation38_spill] sm:$0xff] %v18182_v20  ;;  %8199 = vrot.lane.b32.xlu1 %v21046_v21, %s14552_s24  ;;  %v8809_v20 = vrot.slane %v18121_v30, 4 }
 0x684   :  { %8401 = vrot.lane.b32.xlu0 %v14177_v15, %s14551_s15 }
 0x685   :  { %v18187_v61 = vpop.permute.xlu1 %7397 }
 0x686   :  { %21056 = vst [vmem:[#allocation54_spill] sm:$0xff] %v18187_v61  ;;  %v18189_v28 = vpop.permute.xlu0 %7803 }
 0x687   :  { %21057 = vst [vmem:[#allocation15_spill] sm:$0xff] %v18189_v28  ;;  %8183 = vrot.lane.b32.xlu1 %v21046_v21, %s14552_s24  ;;  %v21068_v49 = vrot.slane %v18189_v28, 4 }
 0x688   :  { %7993 = vrot.lane.b32.xlu0 %v18069_v59, %s14553_s0 }
 0x689   :  { %v18195_v13 = vpop.permute.xlu1 %8573 }
 0x68a   :  { %21058 = vst [vmem:[#allocation32_spill] sm:$0xff] %v18195_v13  ;;  %v18197_v24 = vpop.permute.xlu0 %8783 }
 0x68b   :  { %21059 = vst [vmem:[#allocation31_spill] sm:$0xff] %v18197_v24  ;;  %8003 = vrot.lane.b32.xlu1 %v21046_v21, %s14553_s0 }
 0x68c   :  { %8205 = vrot.lane.b32.xlu0 %v14177_v15, %s14552_s24 }
 0x68d   :  { %v18202_v63 = vpop.permute.xlu1 %7805 }
 0x68e   :  { %21060 = vst [vmem:[#allocation21_spill] sm:$0xff] %v18202_v63  ;;  %v18204_v7 = vpop.permute.xlu0 %7607  ;;  %v8801_v63 = vrot.slane %v18030_v32, 4 }
 0x68f   :  { %8787 = vrot.lane.b32.xlu1 %v21046_v21, %s14557_s30 }
 0x690   :  { %8009 = vrot.lane.b32.xlu0 %v14177_v15, %s14553_s0 }
 0x691   :  { %v18209_v8 = vpop.permute.xlu1 %7997 }
 0x692   :  { %21061 = vst [vmem:[#allocation5_spill] sm:$0xff] %v18209_v8  ;;  %v18211_v61 = vpop.permute.xlu0 %7411  ;;  %v8979_v8 = vld [vmem:[%s20322_s8 + $0x10] sm:$0xff] }
 0x693   :  { %7987 = vrot.lane.b32.xlu1 %v21046_v21, %s14553_s0 }
 0x694   :  { %8793 = vrot.lane.b32.xlu0 %v14177_v15, %s14557_s30  ;;  %v8977_v15 = vld [vmem:[%s20322_s8] sm:$0xff] }
 0x695   :  { %v18216_v13 = vpop.permute.xlu1 %7609 }
 0x696   :  { %21062 = vst [vmem:[#allocation8_spill] sm:$0xff] %v18216_v13  ;;  %v18218_v0 = vpop.permute.xlu0 %8587  ;;  %v8797_v13 = vrot.slane %v17986_v31, 4 }
 0x697   :  { %8771 = vrot.lane.b32.xlu1 %v21046_v21, %s14557_s30 }
 0x698   :  { %8777 = vrot.lane.b32.xlu0 %v18069_v59, %s14557_s30  ;;  %v21067_v59 = vrot.slane %v18130_v17, 4  ;;  %v8819_v17 = vsel %vm221_vm1, %v8801_v63, %v21071_v1  ;;  %v7625_v1 = vrot.slane %v18036_v33, 4 }
 0x699   :  { %v18229_v2 = vpop.permute.xlu1 %7413 }
 0x69a   :  { %v18227_v34 = vpop.permute.xlu0 %8391  ;;  %21063 = vst [vmem:[#allocation9_spill] sm:$0xff] %v18229_v2  ;;  %v7825_v2 = vrot.slane %v18060_v22, 4 }
 0x69b   :  { %8993 = vperm.xlu1 %14512, %v8979_v8   ;;  %v7839_v8 = vsel %vm221_vm1, %v7821_v14, %v21067_v59  ;;  %v21069_v14 = vrot.slane %v18076_v6, 4 }
 0x69c   :  { %7815 = vrot.lane.b32.xlu0 %v21046_v21, %s14554_s25  ;;  %v7845_v62 = vsel %vm221_vm1, %v7825_v2, %v21068_v49  ;;  %v7840_v28 = vsel %vm421_vm6, %v18025_v4, %v7839_v8 }
 0x69d   :  { %v18249_v26 = vpop.permute.xlu1 %8589  ;;  %v7833_v59 = vsel %vm221_vm1, %v7817_v60, %v21069_v14  ;;  %v7846_v60 = vsel %vm421_vm6, %v18060_v22, %v7845_v62  ;;  %v7629_v62 = vrot.slane %v18074_v45, 4 }
 0x69e   :  { %v18237_v37 = vpop.permute.xlu0 %8195  ;;  %21065 = vst [vmem:[#allocation55_spill] sm:$0xff] %v18249_v26  ;;  %v8805_v26 = vrot.slane %v18065_v48, 4 }
 0x69f   :  { %21064 = vst [vmem:[#allocation39_spill] sm:$0xff] %v18237_v37  ;;  %8983 = vperm.xlu1 %14512, %v8977_v15   ;;  %v7621_v37 = vrot.slane %v17996_v3, 4 }
 0x6a0   :  { %7799 = vrot.lane.b32.xlu0 %v21046_v21, %s14554_s25 }
 0x6a1   :  { %v18297_v22 = vpop.permute.xlu1 %8393 }
 0x6a2   :  { %v18251_v15 = vpop.permute.xlu0 %7811 }
 0x6a3   :  { %21066 = vst [vmem:[#allocation11_spill] sm:$0xff] %v18251_v15  ;;  %10613 = vrot.lane.b32.xlu1 %v21046_v21, %s14554_s25  ;;  %v21070_v2 = vrot.slane %v18251_v15, 4  ;;  %v21073_v15 = vrot.slane %v18197_v24, 4 }
 0x6a4   :  { %7619 = vrot.lane.b32.xlu0 %v21046_v21, %s14555_s26 }
 0x6a5   :  { %v7851_v49 = vsel %vm221_vm1, %v7829_v29, %v21070_v2  ;;  %v8825_v29 = vsel %vm221_vm1, %v8805_v26, %v21073_v15  ;;  %v7834_v26 = vsel %vm421_vm6, %v17980_v16, %v7833_v59 }
 0x6a6   :  { %v18282_v57 = vpop.permute.xlu0 %8791  ;;  %v7852_v14 = vsel %vm421_vm6, %v18114_v54, %v7851_v49  ;;  %v21074_v54 = vrot.slane %v18083_v44, 4  ;;  %v8826_v16 = vsel %vm916_vm9, %v18065_v48, %v8825_v29  ;;  %v13484_v48 = vcombine.low %v7834_v26, %v7840_v28 }
 0x6a7   :  { %21072 = vst [vmem:[#allocation10_spill] sm:$0xff] %v18282_v57  ;;  %v20543_v8 = vrot.slane %v18282_v57, 4  ;;  %v13490_v2 = vcombine.low %v7846_v60, %v7852_v14  ;;  %v13491_v63 = vcombine.high %v7846_v60, %v7852_v14  ;;  %10597 = vrot.lane.b32.xlu1 %v21046_v21, %s14554_s25  ;;  %v7633_v60 = vrot.slane %v18128_v42, 4  ;;  %v21112_v57 = vld [vmem:[#allocation8_spill] sm:$0xff] }
 0x6a8   :  { %7603 = vrot.lane.b32.xlu0 %v21046_v21, %s14555_s26  ;;  %v8813_v15 = vsel %vm221_vm1, %v8797_v13, %v21074_v54  ;;  %v13485_v14 = vcombine.high %v7834_v26, %v7840_v28  ;;  %v8820_v13 = vsel %vm916_vm9, %v18030_v32, %v8819_v17  ;;  %v21075_v54 = vrot.slane %v18145_v38, 4 }
 0x6a9   :  { %9577 = vmatprep.subr.bf16.mxu1 %v13491_v63  ;;  %v8831_v4 = vsel %vm221_vm1, %v8809_v20, %v20543_v8  ;;  %v21076_v8 = vrot.slane %v18204_v7, 4  ;;  %v8814_v32 = vsel %vm916_vm9, %v17986_v31, %v8813_v15  ;;  %v20557_v17 = vrot.slane %v18211_v61, 4 }
 0x6aa   :  { %9578 = vmatpush1.bf16.msra.mxu1 %v13490_v2  ;;  %v18311_v53 = vpop.permute.xlu0 %7615  ;;  %v8832_v59 = vsel %vm916_vm9, %v18121_v30, %v8831_v4  ;;  %v7643_v63 = vsel %vm221_vm1, %v7625_v1, %v21075_v54  ;;  %v7433_v30 = vrot.slane %v18081_v52, 4  ;;  %v13545_v29 = vcombine.high %v8814_v32, %v8820_v13 }
 0x6ab   :  { %v20558_v49 = vrot.slane %v18311_v53, 4  ;;  %9579 = vmatprep.subr.bf16.mxu1 %v13485_v14  ;;  %v13550_v20 = vcombine.low %v8826_v16, %v8832_v59  ;;  %v13551_v2 = vcombine.high %v8826_v16, %v8832_v59  ;;  %v7649_v9 = vsel %vm221_vm1, %v7629_v62, %v21076_v8  ;;  %10417 = vrot.lane.b32.xlu1 %v21046_v21, %s14555_s26  ;;  %v18341_v62 = vpop.permute.xlu1 %8005 }
 0x6ac   :  { %7423 = vrot.lane.b32.xlu0 %v21046_v21, %s14556_s27  ;;  %v21077_v8 = vrot.slane %v18091_v11, 4  ;;  %v7437_v28 = vrot.slane %v18135_v36, 4  ;;  %v7650_v31 = vsel %vm322_vm7, %v18074_v45, %v7649_v9  ;;  %v20555_v14 = vrot.slane %v18158_v5, 4 }
 0x6ad   :  { %9642 = vmatprep.subr.bf16.mxu0 %v13551_v2  ;;  %v7655_v4 = vsel %vm221_vm1, %v7633_v60, %v20558_v49  ;;  %v7644_v60 = vsel %vm322_vm7, %v18036_v33, %v7643_v63  ;;  %v7429_v54 = vrot.slane %v18041_v27, 4  ;;  %v20552_v9 = vrot.slane %v18101_v47, 4  ;;  %v21097_v49 = vld [vmem:[#allocation24_spill] sm:$0xff] }
 0x6ae   :  { %v7637_v1 = vsel %vm221_vm1, %v7621_v37, %v21077_v8  ;;  %9580 = vmatpush1.bf16.msra.mxu1 %v13484_v48  ;;  %9643 = vmatpush1.bf16.msra.mxu0 %v13550_v20  ;;  %v18343_v26 = vpop.permute.xlu0 %7419  ;;  %v7656_v15 = vsel %vm322_vm7, %v18128_v42, %v7655_v4  ;;  %v13544_v20 = vcombine.low %v8814_v32, %v8820_v13  ;;  %v18370_v13 = vld [vmem:[%s20321_s7 + $0x8] ss:$12 sps:$4 sm:$0xff]   ;;  %v7425_v48 = vrot.slane %v18004_v35, 4 }
 0x6af   :  { %v20554_v37 = vrot.slane %v18343_v26, 4  ;;  %9644 = vmatprep.subr.bf16.mxu0 %v13545_v29  ;;  %v13478_v16 = vcombine.low %v7650_v31, %v7656_v15  ;;  %v13479_v59 = vcombine.high %v7650_v31, %v7656_v15  ;;  %10401 = vrot.lane.b32.xlu1 %v21046_v21, %s14555_s26  ;;  %v7638_v42 = vsel %vm322_vm7, %v17996_v3, %v7637_v1  ;;  %v18382_v32 = vpop.permute.xlu1 %8377 }
 0x6b0   :  { %7407 = vrot.lane.b32.xlu0 %v21046_v21, %s14556_s27  ;;  %v13473_v33 = vcombine.high %v7638_v42, %v7644_v60  ;;  %v7453_v45 = vsel %vm221_vm1, %v7433_v30, %v20557_v17  ;;  %21078 = vst [vmem:[#allocation14_spill] sm:$0xff] %v18370_v13  ;;  %v7447_v30 = vsel %vm221_vm1, %v7429_v54, %v20555_v14 }
 0x6b1   :  { %9581 = vmatprep.subr.bf16.mxu1 %v13479_v59  ;;  %v7459_v63 = vsel %vm221_vm1, %v7437_v28, %v20554_v37  ;;  %v13472_v29 = vcombine.low %v7638_v42, %v7644_v60  ;;  %v7454_v4 = vsel %vm223_vm8, %v18081_v52, %v7453_v45  ;;  %v7441_v8 = vsel %vm221_vm1, %v7425_v48, %v20552_v9  ;;  %v18407_v60 = vld [vmem:[%s20321_s7 + $0x20] ss:$12 sps:$4 sm:$0xff]  }
 0x6b2   :  { %9582 = vmatpush1.bf16.msra.mxu1 %v13478_v16  ;;  %9645 = vmatpush1.bf16.msra.mxu0 %v13544_v20  ;;  %v18372_v3 = vpop.permute.xlu0 %8595  ;;  %v7460_v2 = vsel %vm223_vm8, %v18135_v36, %v7459_v63  ;;  %v7448_v28 = vsel %vm223_vm8, %v18041_v27, %v7447_v30  ;;  %v7442_v31 = vsel %vm223_vm8, %v18004_v35, %v7441_v8  ;;  %v8613_v35 = vrot.slane %v18143_v56, 4  ;;  %v21101_v37 = vld [vmem:[#allocation37_spill] sm:$0xff] }
 0x6b3   :  { %9583 = vmatprep.subr.bf16.mxu1 %v13473_v33  ;;  %10221 = vrot.lane.b32.xlu1 %v21046_v21, %s14556_s27  ;;  %v13467_v36 = vcombine.high %v7454_v4, %v7460_v2  ;;  %v13466_v52 = vcombine.low %v7454_v4, %v7460_v2  ;;  %v13461_v15 = vcombine.high %v7442_v31, %v7448_v28  ;;  %v18409_v27 = vpop.permute.xlu1 %7981  ;;  %v20547_v59 = vrot.slane %v18372_v3, 4 }
 0x6b4   :  { %8599 = vrot.lane.b32.xlu0 %v21046_v21, %s14550_s14  ;;  %21079 = vst [vmem:[#allocation41_spill] sm:$0xff] %v18407_v60  ;;  %v13460_v54 = vcombine.low %v7442_v31, %v7448_v28  ;;  %v20551_v20 = vrot.slane %v18218_v0, 4  ;;  %v8609_v33 = vrot.slane %v18089_v19, 4  ;;  %v20548_v45 = vrot.slane %v18167_v18, 4 }
 0x6b5   :  { %13556 = vmatmul.mubr.msk.bf16.vlgmr.msra.gmra.mxu0 %vm3958_vm13, %v18370_v13  ;;  %v21081_v63 = vpack.c.bf16 %v17809_v25, %v17807_v43  ;;  %v8635_v2 = vsel %vm221_vm1, %v8613_v35, %v20547_v59  ;;  %v8605_v30 = vrot.slane %v18046_v10, 4  ;;  %v21082_v43 = vpack.c.bf16 %v17801_v40, %v17799_v55  ;;  %v21085_v35 = vld [vmem:[#allocation35_spill] sm:$0xff] }
 0x6b6   :  { %9584 = vmatpush1.bf16.msra.mxu1 %v13472_v29  ;;  %v18393_v1 = vpop.permute.xlu0 %8399  ;;  %9672 = vmatprep.mubr.bf16.mxu0 %v20922_v23  ;;  %v8629_v29 = vsel %vm221_vm1, %v8609_v33, %v20551_v20  ;;  %v8636_v4 = vsel %vm817_vm2, %v18143_v56, %v8635_v2  ;;  %v21083_v28 = vpack.c.bf16 %v17792_v12, %v17777_v51  ;;  %v8417_v40 = vrot.slane %v18156_v46, 4  ;;  %v21087_v2 = vld [vmem:[#allocation27_spill] sm:$0xff] }
 0x6b7   :  { %9585 = vmatprep.subr.bf16.mxu1 %v13467_v36  ;;  %10205 = vrot.lane.b32.xlu1 %v21046_v21, %s14556_s27  ;;  %v18431_v48 = vpop.permute.xlu1 %7989  ;;  %v8601_v36 = vrot.slane %v18009_v58, 4  ;;  %v20549_v8 = vrot.slane %v18393_v1, 4  ;;  %v8630_v55 = vsel %vm817_vm2, %v18089_v19, %v8629_v29  ;;  %v20550_v56 = vrot.slane %v18227_v34, 4  ;;  %v21088_v29 = vld [vmem:[#allocation22_spill] sm:$0xff] }
 0x6b8   :  { %8583 = vrot.lane.b32.xlu0 %v21046_v21, %s14550_s14  ;;  %v13539_v31 = vcombine.high %v8630_v55, %v8636_v4  ;;  %v20553_v12 = vrot.slane %v18174_v50, 4  ;;  %v13538_v59 = vcombine.low %v8630_v55, %v8636_v4  ;;  %v8217_v20 = vrot.slane %v21097_v49, 4 }
 0x6ba   :  { %9586 = vmatpush1.bf16.msra.mxu1 %v13466_v52  ;;  %v18411_v16 = vpop.permute.xlu0 %8203  ;;  %v8623_v52 = vsel %vm221_vm1, %v8605_v30, %v20548_v45  ;;  %v8413_v30 = vrot.slane %v21087_v2, 4 }
 0x6bb   :  { %9587 = vmatprep.subr.bf16.mxu1 %v13461_v15  ;;  %v18465_v15 = vpop.permute.xlu1 %8197  ;;  %v8624_v19 = vsel %vm817_vm2, %v18046_v10, %v8623_v52 }
 0x6bc   :  { %8403 = vrot.lane.b32.xlu0 %v21046_v21, %s14551_s15 }
 0x6bd   :  { %13557 = vmatmul.mubr.msk.bf16.gmra.mxu0 %vm3958_vm13, %v18407_v60  ;;  %v21103_v60 = vld [vmem:[#allocation53_spill] sm:$0xff] }
 0x6be   :  { %9588 = vmatpush1.bf16.msra.mxu1 %v13460_v54  ;;  %v18420_v42 = vpop.permute.xlu0 %7797  ;;  %9715 = vmatprep.mubr.bf16.mxu0 %v18154_v39  ;;  %v20546_v39 = vrot.slane %v18108_v41, 4  ;;  %v21084_v54 = vld [vmem:[#allocation43_spill] sm:$0xff]  ;;  %v21104_v13 = vrot.slane %v21103_v60, 4 }
 0x6bf   :  { %21080 = vst [vmem:[#allocation56_spill] sm:$0xff] %v18420_v42  ;;  %9589 = vmatprep.subr.bf16.mxu1 %v21081_v63  ;;  %v21086_v33 = vpack.c.bf16 %v21084_v54, %v21085_v35  ;;  %v21090_v35 = vld [vmem:[#allocation29_spill] sm:$0xff]  ;;  %v18503_v9 = vpop.permute.xlu1 %8181 }
 0x6c0   :  { %8387 = vrot.lane.b32.xlu0 %v21046_v21, %s14551_s15  ;;  %v8617_v51 = vsel %vm221_vm1, %v8601_v36, %v20546_v39  ;;  %v8439_v36 = vsel %vm221_vm1, %v8417_v40, %v20549_v8  ;;  %v8405_v10 = vrot.slane %v21090_v35, 4  ;;  %v21092_v8 = vld [vmem:[#allocation28_spill] sm:$0xff] }
 0x6c1   :  { %v8618_v54 = vsel %vm817_vm2, %v18009_v58, %v8617_v51  ;;  %v8440_v4 = vsel %vm718_vm3, %v18156_v46, %v8439_v36  ;;  %v20565_v58 = vrot.slane %v18411_v16, 4  ;;  %v21094_v36 = vld [vmem:[#allocation38_spill] sm:$0xff] }
 0x6c2   :  { %9590 = vmatpush1.bf16.msra.mxu1 %v21082_v43  ;;  %v18443_v25 = vpop.permute.xlu0 %7601  ;;  %v20556_v43 = vrot.slane %v21088_v29, 4  ;;  %v13533_v52 = vcombine.high %v8618_v54, %v8624_v19  ;;  %v13532_v46 = vcombine.low %v8618_v54, %v8624_v19 }
 0x6c3   :  { %9591 = vmatprep.subr.bf16.mxu1 %v21083_v28  ;;  %v21089_v28 = vld [vmem:[#allocation12_spill] sm:$0xff] }
 0x6c4   :  { %8207 = vrot.lane.b32.xlu0 %v21046_v21, %s14552_s24  ;;  %v8409_v39 = vrot.slane %v21089_v28, 4 }
 0x6c6   :  { %9592 = vmatpush1.bf16.msra.mxu1 %v21086_v33  ;;  %v18470_v63 = vpop.permute.xlu0 %7405  ;;  %v21091_v33 = vld [vmem:[#allocation21_spill] sm:$0xff]  ;;  %v8427_v55 = vsel %vm221_vm1, %v8409_v39, %v20553_v12 }
 0x6c7   :  { %9593 = vmatprep.subr.bf16.mxu1 %v13539_v31  ;;  %v8433_v31 = vsel %vm221_vm1, %v8413_v30, %v20550_v56  ;;  %v20564_v45 = vrot.slane %v21091_v33, 4  ;;  %v8421_v30 = vsel %vm221_vm1, %v8405_v10, %v20556_v43  ;;  %v21093_v56 = vld [vmem:[#allocation25_spill] sm:$0xff]  ;;  %v8428_v10 = vsel %vm718_vm3, %v21089_v28, %v8427_v55  ;;  %v21096_v43 = vld [vmem:[#allocation26_spill] sm:$0xff] }
 0x6c8   :  { %8191 = vrot.lane.b32.xlu0 %v21046_v21, %s14552_s24  ;;  %v8434_v39 = vsel %vm718_vm3, %v21087_v2, %v8433_v31  ;;  %v8213_v17 = vrot.slane %v21096_v43, 4  ;;  %v8422_v54 = vsel %vm718_vm3, %v21090_v35, %v8421_v30  ;;  %v21099_v2 = vld [vmem:[#allocation15_spill] sm:$0xff]  ;;  %v21105_v30 = vld [vmem:[#allocation45_spill] sm:$0xff] }
 0x6c9   :  { %v13527_v14 = vcombine.high %v8434_v39, %v8440_v4  ;;  %v21100_v31 = vrot.slane %v21099_v2, 4  ;;  %v8209_v33 = vrot.slane %v21105_v30, 4  ;;  %v13526_v44 = vcombine.low %v8434_v39, %v8440_v4 }
 0x6ca   :  { %9594 = vmatpush2.bf16.msra.mxu1 %v13538_v59  ;;  %v18489_v40 = vpop.permute.xlu0 %8581  ;;  %v8221_v59 = vrot.slane %v21092_v8, 4 }
 0x6cb   :  { %9595 = vmatprep.subr.bf16.mxu1 %v13533_v52  ;;  %v21095_v52 = vld [vmem:[#allocation39_spill] sm:$0xff]  ;;  %v7847_v12 = vsel %vm221_vm1, %v21100_v31, %v20564_v45  ;;  %v13521_v31 = vcombine.high %v8422_v54, %v8428_v10  ;;  %v21106_v45 = vrot.slane %v21093_v56, 4 }
 0x6cc   :  { %8011 = vrot.lane.b32.xlu0 %v21046_v21, %s14553_s0  ;;  %v8243_v55 = vsel %vm221_vm1, %v8221_v59, %v20565_v58  ;;  %v7848_v59 = vsel %vm421_vm6, %v21099_v2, %v7847_v12  ;;  %v21108_v58 = vld [vmem:[#allocation11_spill] sm:$0xff]  ;;  %v21110_v4 = vrot.slane %v21095_v52, 4 }
 0x6ce   :  { %9596 = vmatpush2.bf16.msra.mxu1 %v13532_v46  ;;  %v18515_v19 = vpop.permute.xlu0 %7813  ;;  %v21102_v46 = vrot.slane %v18420_v42, 4  ;;  %v8237_v39 = vsel %vm221_vm1, %v8217_v20, %v21110_v4  ;;  %v21111_v42 = vrot.slane %v21094_v36, 4  ;;  %v21113_v4 = vrot.slane %v21101_v37, 4 }
 0x6cf   :  { %21098 = vst [vmem:[#allocation33_spill] sm:$0xff] %v18515_v19  ;;  %v20573_v28 = vrot.slane %v18515_v19, 4  ;;  %9597 = vmatprep.subr.bf16.mxu1 %v13527_v14  ;;  %v21107_v14 = vrot.slane %v18076_v6, 4  ;;  %v13520_v19 = vcombine.low %v8422_v54, %v8428_v10  ;;  %v21115_v10 = vrot.slane %v21112_v57, 4 }
 0x6d0   :  { %v7841_v35 = vsel %vm221_vm1, %v21104_v13, %v21102_v46  ;;  %8795 = vrot.lane.b32.xlu0 %v21046_v21, %s14557_s30  ;;  %v21109_v13 = vrot.slane %v21108_v58, 4  ;;  %v8231_v56 = vsel %vm221_vm1, %v8213_v17, %v21111_v42  ;;  %v21116_v54 = vrot.slane %v18204_v7, 4 }
 0x6d1   :  { %v7835_v51 = vsel %vm221_vm1, %v21107_v14, %v21106_v45  ;;  %v18556_v45 = vpop.permute.xlu1 %8001  ;;  %v8244_v14 = vsel %vm619_vm4, %v21092_v8, %v8243_v55  ;;  %v7842_v20 = vsel %vm421_vm6, %v21103_v60, %v7841_v35  ;;  %v8238_v8 = vsel %vm619_vm4, %v21097_v49, %v8237_v39 }
 0x6d2   :  { %v7853_v46 = vsel %vm221_vm1, %v21109_v13, %v20573_v28  ;;  %9598 = vmatpush2.bf16.msra.mxu1 %v13526_v44  ;;  %v18558_v12 = vpop.permute.xlu0 %7999  ;;  %v20576_v13 = vrot.slane %v18443_v25, 4  ;;  %v8225_v44 = vsel %vm221_vm1, %v8209_v33, %v21113_v4  ;;  %v21114_v28 = vld [vmem:[#allocation46_spill] sm:$0xff]  ;;  %v7836_v60 = vsel %vm421_vm6, %v18076_v6, %v7835_v51  ;;  %v21120_v4 = vld [vmem:[#allocation9_spill] sm:$0xff] }
 0x6d3   :  { %v7854_v2 = vsel %vm421_vm6, %v21108_v58, %v7853_v46  ;;  %9599 = vmatprep.subr.bf16.mxu1 %v13521_v31  ;;  %v20577_v24 = vrot.slane %v21114_v28, 4  ;;  %v13515_v58 = vcombine.high %v8238_v8, %v8244_v14  ;;  %v13487_v55 = vcombine.high %v7836_v60, %v7842_v20 }
 0x6d4   :  { %v13492_v17 = vcombine.low %v7848_v59, %v7854_v2  ;;  %v13493_v42 = vcombine.high %v7848_v59, %v7854_v2  ;;  %7995 = vrot.lane.b32.xlu0 %v21046_v21, %s14553_s0  ;;  %v8232_v35 = vsel %vm619_vm4, %v21096_v43, %v8231_v56  ;;  %v7651_v31 = vsel %vm221_vm1, %v21116_v54, %v21115_v10 }
 0x6d5   :  { %v8022_v49 = vrot.slane %v18558_v12, 4  ;;  %v8226_v51 = vsel %vm619_vm4, %v21105_v30, %v8225_v44  ;;  %v21117_v56 = vrot.slane %v18145_v38, 4  ;;  %v13514_v59 = vcombine.low %v8238_v8, %v8244_v14 }
 0x6d6   :  { %9683 = vmatprep.subr.bf16.mxu0 %v13493_v42  ;;  %9600 = vmatpush2.bf16.msra.mxu1 %v13520_v19  ;;  %v18579_v33 = vpop.permute.xlu0 %7617  ;;  %v18595_v19 = vpop.permute.xlu1 %8785  ;;  %v13486_v46 = vcombine.low %v7836_v60, %v7842_v20  ;;  %v13509_v39 = vcombine.high %v8226_v51, %v8232_v35  ;;  %v21118_v2 = vrot.slane %v18091_v11, 4  ;;  %v20588_v44 = vrot.slane %v21120_v4, 4 }
 0x6d7   :  { %9684 = vmatpush1.bf16.msra.mxu0 %v13492_v17  ;;  %v7635_v6 = vrot.slane %v18579_v33, 4  ;;  %9601 = vmatprep.subr.bf16.mxu1 %v13515_v58  ;;  %v7645_v43 = vsel %vm221_vm1, %v21117_v56, %v20576_v13  ;;  %v21119_v17 = vld [vmem:[#allocation5_spill] sm:$0xff]  ;;  %v8980_v58 = vld [vmem:[%s20322_s8 + $0x18] sm:$0xff]  ;;  %v7652_v14 = vsel %vm322_vm7, %v18204_v7, %v7651_v31  ;;  %v21121_v20 = vrot.slane %v18311_v53, 4 }
 0x6d8   :  { %9685 = vmatprep.subr.bf16.mxu0 %v13487_v55  ;;  %8779 = vrot.lane.b32.xlu0 %v21046_v21, %s14557_s30  ;;  %v7639_v30 = vsel %vm221_vm1, %v21118_v2, %v20577_v24  ;;  %v8021_v42 = vrot.slane %v21119_v17, 4  ;;  %v8025_v60 = vrot.slane %v18341_v62, 4  ;;  %v20578_v55 = vrot.slane %v18470_v63, 4 }
 0x6d9   :  { %v7657_v8 = vsel %vm221_vm1, %v21121_v20, %v7635_v6  ;;  %v7646_v7 = vsel %vm322_vm7, %v18145_v38, %v7645_v43  ;;  %v13508_v13 = vcombine.low %v8226_v51, %v8232_v35  ;;  %v8978_v38 = vld [vmem:[%s20322_s8 + $0x8] sm:$0xff] }
 0x6da   :  { %9602 = vmatpush2.bf16.msra.mxu1 %v13514_v59  ;;  %v18618_v10 = vpop.permute.xlu0 %8007  ;;  %v7658_v54 = vsel %vm322_vm7, %v18311_v53, %v7657_v8  ;;  %v8041_v20 = vsel %vm221_vm1, %v8021_v42, %v8022_v49  ;;  %v7640_v59 = vsel %vm322_vm7, %v18091_v11, %v7639_v30  ;;  %v21123_v30 = vrot.slane %v18211_v61, 4 }
 0x6db   :  { %9686 = vmatpush1.bf16.msra.mxu0 %v13486_v46  ;;  %v8026_v31 = vrot.slane %v18618_v10, 4  ;;  %9603 = vmatprep.subr.bf16.mxu1 %v13509_v39  ;;  %v13480_v56 = vcombine.low %v7652_v14, %v7658_v54  ;;  %v13481_v2 = vcombine.high %v7652_v14, %v7658_v54  ;;  %v21122_v46 = vld [vmem:[#allocation54_spill] sm:$0xff]  ;;  %v13475_v53 = vcombine.high %v7640_v59, %v7646_v7  ;;  %v18637_v39 = vpop.permute.xlu1 %7985 }
 0x6dc   :  { %8998 = vperm.xlu0 %14511, %v8980_v58   ;;  %v20579_v24 = vrot.slane %v21122_v46, 4  ;;  %v8042_v11 = vsel %vm520_vm5, %v21119_v17, %v8041_v20  ;;  %v7455_v42 = vsel %vm221_vm1, %v21123_v30, %v20588_v44  ;;  %v21124_v8 = vrot.slane %v18158_v5, 4 }
 0x6dd   :  { %9687 = vmatprep.subr.bf16.mxu0 %v13481_v2  ;;  %v8047_v43 = vsel %vm221_vm1, %v8025_v60, %v8026_v31  ;;  %v13474_v60 = vcombine.low %v7640_v59, %v7646_v7  ;;  %v7456_v7 = vsel %vm223_vm8, %v18211_v61, %v7455_v42 }
 0x6de   :  { %9604 = vmatpush2.bf16.msra.mxu1 %v13508_v13  ;;  %v18639_v35 = vpop.permute.xlu0 %7421  ;;  %v8048_v51 = vsel %vm520_vm5, %v18341_v62, %v8047_v43  ;;  %v7449_v17 = vsel %vm221_vm1, %v21124_v8, %v20578_v55  ;;  %v21125_v62 = vrot.slane %v18343_v26, 4  ;;  %v21136_v55 = vld [vmem:[#allocation19_spill] sm:$0xff] }
 0x6df   :  { %9688 = vmatpush1.bf16.msra.mxu0 %v13480_v56  ;;  %v20587_v58 = vrot.slane %v18639_v35, 4  ;;  %v13502_v14 = vcombine.low %v8042_v11, %v8048_v51  ;;  %v13503_v13 = vcombine.high %v8042_v11, %v8048_v51  ;;  %v21126_v56 = vrot.slane %v18101_v47, 4  ;;  %v18674_v11 = vpop.permute.xlu1 %8769 }
 0x6e0   :  { %9689 = vmatprep.subr.bf16.mxu0 %v13475_v53  ;;  %8988 = vperm.xlu0 %14511, %v8978_v38   ;;  %v7450_v53 = vsel %vm223_vm8, %v18158_v5, %v7449_v17  ;;  %v8013_v5 = vrot.slane %v18409_v27, 4  ;;  %v8017_v17 = vrot.slane %v18431_v48, 4 }
 0x6e1   :  { %9605 = vmatprep.subr.bf16.mxu1 %v13503_v13  ;;  %v7461_v54 = vsel %vm221_vm1, %v21125_v62, %v20587_v58  ;;  %v7443_v2 = vsel %vm221_vm1, %v21126_v56, %v20579_v24  ;;  %v21129_v56 = vld [vmem:[#allocation34_spill] sm:$0xff]  ;;  %v21137_v24 = vld [vmem:[#allocation47_spill] sm:$0xff] }
 0x6e2   :  { %9606 = vmatpush2.bf16.msra.mxu1 %v13502_v14  ;;  %v18666_v20 = vpop.permute.xlu0 %8385  ;;  %v7462_v59 = vsel %vm223_vm8, %v18343_v26, %v7461_v54  ;;  %v7444_v51 = vsel %vm223_vm8, %v18101_v47, %v7443_v2  ;;  %v21127_v14 = vld [vmem:[#allocation55_spill] sm:$0xff]  ;;  %v21128_v54 = vld [vmem:[#allocation42_spill] sm:$0xff] }
 0x6e3   :  { %9690 = vmatpush1.bf16.msra.mxu0 %v13474_v60  ;;  %v13468_v38 = vcombine.low %v7456_v7, %v7462_v59  ;;  %v13469_v43 = vcombine.high %v7456_v7, %v7462_v59  ;;  %v13463_v30 = vcombine.high %v7444_v51, %v7450_v53  ;;  %v13462_v42 = vcombine.low %v7444_v51, %v7450_v53  ;;  %v18687_v47 = vpop.permute.xlu1 %7807  ;;  %v21131_v59 = vld [vmem:[#allocation32_spill] sm:$0xff] }
 0x6e4   :  { %10621 = vrot.lane.b32.xlu0 %v21046_v21, %s14554_s25  ;;  %v20581_v13 = vrot.slane %v21127_v14, 4  ;;  %v20580_v60 = vrot.slane %v18489_v40, 4  ;;  %v21130_v2 = vpack.c.bf16 %v21128_v54, %v21129_v56  ;;  %v20582_v53 = vrot.slane %v21131_v59, 4  ;;  %v21133_v51 = vld [vmem:[#allocation48_spill] sm:$0xff] }
 0x6e5   :  { %9691 = vmatprep.subr.bf16.mxu0 %v13469_v43  ;;  %v21132_v43 = vld [vmem:[#allocation51_spill] sm:$0xff]  ;;  %v21135_v56 = vrot.slane %v18218_v0, 4 }
 0x6e6   :  { %v18680_v61 = vpop.permute.xlu0 %7983 }
 0x6e7   :  { %9692 = vmatpush1.bf16.msra.mxu0 %v13468_v38  ;;  %v8014_v26 = vrot.slane %v18680_v61, 4 }
 0x6e8   :  { %9693 = vmatprep.subr.bf16.mxu0 %v13463_v30  ;;  %10605 = vrot.lane.b32.xlu0 %v21046_v21, %s14554_s25  ;;  %v21134_v30 = vpack.c.bf16 %v21132_v43, %v21133_v51  ;;  %v21138_v43 = vpack.c.bf16 %v21136_v55, %v21137_v24  ;;  %v21140_v24 = vrot.slane %v18372_v3, 4 }
 0x6e9   :  { %v8029_v7 = vsel %vm221_vm1, %v8013_v5, %v8014_v26 }
 0x6ea   :  { %v18689_v8 = vpop.permute.xlu0 %7991  ;;  %v8030_v54 = vsel %vm520_vm5, %v18409_v27, %v8029_v7  ;;  %v21139_v27 = vrot.slane %v18167_v18, 4  ;;  %v18729_v7 = vpop.permute.xlu1 %7791 }
 0x6eb   :  { %9694 = vmatpush1.bf16.msra.mxu0 %v13462_v42  ;;  %v8018_v62 = vrot.slane %v18689_v8, 4 }
 0x6ec   :  { %9695 = vmatprep.subr.bf16.mxu0 %v21130_v2  ;;  %10425 = vrot.lane.b32.xlu0 %v21046_v21, %s14555_s26  ;;  %v8631_v2 = vsel %vm221_vm1, %v21135_v56, %v20581_v13  ;;  %v21142_v56 = vld [vmem:[#allocation49_spill] sm:$0xff] }
 0x6ed   :  { %v8035_v38 = vsel %vm221_vm1, %v8017_v17, %v8018_v62 }
 0x6ee   :  { %v18709_v42 = vpop.permute.xlu0 %8597  ;;  %v8036_v5 = vsel %vm520_vm5, %v18431_v48, %v8035_v38  ;;  %v8625_v48 = vsel %vm221_vm1, %v21139_v27, %v20580_v60  ;;  %v18736_v38 = vld [vmem:[%s20321_s7] ss:$12 sps:$4 sm:$0xff]   ;;  %v8632_v60 = vsel %vm817_vm2, %v18218_v0, %v8631_v2  ;;  %v18772_v2 = vpop.permute.xlu1 %7611 }
 0x6ef   :  { %9696 = vmatpush1.bf16.msra.mxu0 %v21134_v30  ;;  %v20586_v17 = vrot.slane %v18709_v42, 4  ;;  %v13496_v51 = vcombine.low %v8030_v54, %v8036_v5  ;;  %v13497_v30 = vcombine.high %v8030_v54, %v8036_v5  ;;  %v21141_v54 = vrot.slane %v18108_v41, 4 }
 0x6f0   :  { %9697 = vmatprep.subr.bf16.mxu0 %v21138_v43  ;;  %10409 = vrot.lane.b32.xlu0 %v21046_v21, %s14555_s26  ;;  %v21143_v43 = vld [vmem:[#allocation40_spill] sm:$0xff] }
 0x6f1   :  { %9607 = vmatprep.subr.bf16.mxu1 %v13497_v30  ;;  %v8637_v55 = vsel %vm221_vm1, %v21140_v24, %v20586_v17  ;;  %v8619_v5 = vsel %vm221_vm1, %v21141_v54, %v20582_v53  ;;  %v21144_v30 = vpack.c.bf16 %v21142_v56, %v21143_v43  ;;  %v8626_v24 = vsel %vm817_vm2, %v18167_v18, %v8625_v48  ;;  %v18762_v54 = vld [vmem:[%s20321_s7 + $0x1c] ss:$12 sps:$4 sm:$0xff]  }
 0x6f2   :  { %9608 = vmatpush2.bf16.msra.mxu1 %v13496_v51  ;;  %v18751_v27 = vpop.permute.xlu0 %8189  ;;  %v8638_v13 = vsel %vm817_vm2, %v18372_v3, %v8637_v55  ;;  %v20584_v51 = vrot.slane %v18297_v22, 4  ;;  %v20583_v56 = vrot.slane %v18666_v20, 4  ;;  %v8620_v0 = vsel %vm817_vm2, %v18108_v41, %v8619_v5  ;;  %v18815_v44 = vpop.permute.xlu1 %7595 }
 0x6f3   :  { %9698 = vmatpush1.bf16.msra.mxu0 %v21144_v30  ;;  %v13540_v43 = vcombine.low %v8632_v60, %v8638_v13  ;;  %v13541_v30 = vcombine.high %v8632_v60, %v8638_v13  ;;  %v20591_v3 = vrot.slane %v18382_v32, 4  ;;  %v13535_v18 = vcombine.high %v8620_v0, %v8626_v24 }
 0x6f4   :  { %10229 = vrot.lane.b32.xlu0 %v21046_v21, %s14556_s27  ;;  %v21145_v41 = vrot.slane %v18227_v34, 4  ;;  %v21146_v55 = vrot.slane %v18174_v50, 4  ;;  %v21148_v53 = vrot.slane %v21088_v29, 4 }
 0x6f5   :  { %9610 = vmatmul.mubr.bf16.vlgmr.msra.gmra.mxu1 %v18736_v38  ;;  %9699 = vmatprep.subr.bf16.mxu0 %v13541_v30  ;;  %v18793_v30 = vld [vmem:[%s20321_s7 + $0x18] ss:$12 sps:$4 sm:$0xff]  }
 0x6f6   :  { %v18774_v48 = vpop.permute.xlu0 %8401  ;;  %9619 = vmatprep.mubr.bf16.mxu1 %v18762_v54  ;;  %v8435_v60 = vsel %vm221_vm1, %v21145_v41, %v20584_v51  ;;  %v8429_v5 = vsel %vm221_vm1, %v21146_v55, %v20583_v56 }
 0x6f7   :  { %9700 = vmatpush2.bf16.msra.mxu0 %v13540_v43  ;;  %v20585_v13 = vrot.slane %v18774_v48, 4  ;;  %v13534_v43 = vcombine.low %v8620_v0, %v8626_v24  ;;  %v8423_v24 = vsel %vm221_vm1, %v21148_v53, %v20591_v3  ;;  %v8219_v0 = vrot.slane %v18465_v15, 4 }
 0x6f8   :  { %9701 = vmatprep.subr.bf16.mxu0 %v13535_v18  ;;  %10213 = vrot.lane.b32.xlu0 %v21046_v21, %s14556_s27  ;;  %v21147_v18 = vrot.slane %v18393_v1, 4  ;;  %v8436_v56 = vsel %vm718_vm3, %v18227_v34, %v8435_v60  ;;  %v8424_v53 = vsel %vm718_vm3, %v21088_v29, %v8423_v24  ;;  %v21150_v29 = vrot.slane %v21094_v36, 4 }
 0x6f9   :  { %v21152_v24 = vrot.slane %v21101_v37, 4 }
 0x6fa   :  { %v8441_v41 = vsel %vm221_vm1, %v21147_v18, %v20585_v13  ;;  %v18806_v55 = vpop.permute.xlu0 %7993  ;;  %v8430_v18 = vsel %vm718_vm3, %v18174_v50, %v8429_v5  ;;  %v20589_v13 = vrot.slane %v18751_v27, 4  ;;  %v21149_v50 = vrot.slane %v21095_v52, 4 }
 0x6fb   :  { %9702 = vmatpush2.bf16.msra.mxu0 %v13534_v43  ;;  %v8442_v51 = vsel %vm718_vm3, %v18393_v1, %v8441_v41  ;;  %v20590_v43 = vrot.slane %v18503_v9, 4  ;;  %v13523_v34 = vcombine.high %v8424_v53, %v8430_v18  ;;  %v21151_v5 = vrot.slane %v18411_v16, 4 }
 0x6fc   :  { %v13528_v17 = vcombine.low %v8436_v56, %v8442_v51  ;;  %v13529_v58 = vcombine.high %v8436_v56, %v8442_v51  ;;  %v8239_v51 = vsel %vm221_vm1, %v21149_v50, %v8219_v0  ;;  %v20594_v50 = vrot.slane %v18556_v45, 4 }
 0x6fd   :  { %9620 = vmatmul.mubr.bf16.gmra.mxu1 %v18793_v30  ;;  %v8240_v60 = vsel %vm619_vm4, %v21095_v52, %v8239_v51 }
 0x6fe   :  { %9703 = vmatprep.subr.bf16.mxu0 %v13529_v58  ;;  %v18821_v1 = vpop.permute.xlu0 %8205  ;;  %9768 = vmatprep.mubr.bf16.mxu1 %v20922_v23  ;;  %v8233_v58 = vsel %vm221_vm1, %v21150_v29, %v20589_v13  ;;  %v20593_v29 = vrot.slane %v18595_v19, 4 }
 0x6ff   :  { %9704 = vmatpush2.bf16.msra.mxu0 %v13528_v17  ;;  %v20600_v56 = vrot.slane %v18821_v1, 4  ;;  %v13522_v17 = vcombine.low %v8424_v53, %v8430_v18  ;;  %v18849_v18 = vpop.permute.xlu1 %7415  ;;  %v8234_v51 = vsel %vm619_vm4, %v21094_v36, %v8233_v58  ;;  %v20599_v58 = vrot.slane %v18674_v11, 4 }
 0x700   :  { %9705 = vmatprep.subr.bf16.mxu0 %v13523_v34  ;;  %v8227_v34 = vsel %vm221_vm1, %v21152_v24, %v20590_v43 }
 0x701   :  { %v8245_v41 = vsel %vm221_vm1, %v21151_v5, %v20600_v56  ;;  %v20596_v5 = vrot.slane %v18806_v55, 4  ;;  %v8228_v3 = vsel %vm619_vm4, %v21101_v37, %v8227_v34 }
 0x702   :  { %v18851_v52 = vpop.permute.xlu0 %8009  ;;  %v8246_v53 = vsel %vm619_vm4, %v18411_v16, %v8245_v41  ;;  %v13511_v16 = vcombine.high %v8228_v3, %v8234_v51  ;;  %v20595_v41 = vrot.slane %v18637_v39, 4 }
 0x703   :  { %9706 = vmatpush2.bf16.msra.mxu0 %v13522_v17  ;;  %v20592_v13 = vrot.slane %v18851_v52, 4  ;;  %v13516_v24 = vcombine.low %v8240_v60, %v8246_v53  ;;  %v13517_v43 = vcombine.high %v8240_v60, %v8246_v53  ;;  %v8043_v17 = vsel %vm221_vm1, %v8022_v49, %v20594_v50 }
 0x705   :  { %9707 = vmatprep.subr.bf16.mxu0 %v13517_v43  ;;  %v8049_v36 = vsel %vm221_vm1, %v8026_v31, %v20592_v13  ;;  %v21153_v43 = vld [vmem:[#allocation31_spill] sm:$0xff]  ;;  %v8037_v31 = vsel %vm221_vm1, %v8018_v62, %v20596_v5 }
 0x706   :  { %v18872_v60 = vpop.permute.xlu0 %8793  ;;  %v8050_v37 = vsel %vm520_vm5, %v18618_v10, %v8049_v36  ;;  %v21154_v34 = vrot.slane %v21153_v43, 4  ;;  %v8044_v10 = vsel %vm520_vm5, %v18558_v12, %v8043_v17  ;;  %v13510_v36 = vcombine.low %v8228_v3, %v8234_v51 }
 0x707   :  { %9708 = vmatpush2.bf16.msra.mxu0 %v13516_v24  ;;  %v20597_v49 = vrot.slane %v18872_v60, 4  ;;  %v18890_v24 = vpop.permute.xlu1 %7399  ;;  %v13505_v13 = vcombine.high %v8044_v10, %v8050_v37  ;;  %v8038_v51 = vsel %vm520_vm5, %v18689_v8, %v8037_v31  ;;  %v21159_v8 = vld [vmem:[#allocation16_spill] sm:$0xff] }
 0x708   :  { %9709 = vmatprep.subr.bf16.mxu0 %v13511_v16  ;;  %v8827_v53 = vsel %vm221_vm1, %v21154_v34, %v20593_v29  ;;  %v8031_v16 = vsel %vm221_vm1, %v8014_v26, %v20595_v41  ;;  %v21155_v34 = vld [vmem:[#allocation10_spill] sm:$0xff]  ;;  %v21157_v26 = vld [vmem:[#allocation23_spill] sm:$0xff]  ;;  %v21160_v31 = vrot.slane %v21159_v8, 4 }
 0x709   :  { %v21156_v29 = vrot.slane %v21155_v34, 4  ;;  %v8828_v12 = vsel %vm916_vm9, %v21153_v43, %v8827_v53  ;;  %v21158_v17 = vrot.slane %v21157_v26, 4  ;;  %v8032_v43 = vsel %vm520_vm5, %v18680_v61, %v8031_v16 }
 0x70a   :  { %v18902_v62 = vpop.permute.xlu0 %8777  ;;  %v13499_v53 = vcombine.high %v8032_v43, %v8038_v51 }
 0x70b   :  { %v8833_v50 = vsel %vm221_vm1, %v21156_v29, %v20597_v49  ;;  %9710 = vmatpush2.bf16.msra.mxu0 %v13510_v36  ;;  %v8815_v41 = vsel %vm221_vm1, %v21158_v17, %v20599_v58  ;;  %v7828_v29 = vrot.slane %v18687_v47, 4  ;;  %v20598_v36 = vrot.slane %v18902_v62, 4  ;;  %v18925_v47 = vpop.permute.xlu1 %8591 }
 0x70c   :  { %v8834_v3 = vsel %vm916_vm9, %v21155_v34, %v8833_v50  ;;  %9711 = vmatprep.subr.bf16.mxu0 %v13505_v13  ;;  %v13504_v50 = vcombine.low %v8044_v10, %v8050_v37  ;;  %v7820_v17 = vrot.slane %v18729_v7, 4  ;;  %v21161_v37 = vld [vmem:[#allocation21_spill] sm:$0xff]  ;;  %v13498_v7 = vcombine.low %v8032_v43, %v8038_v51 }
 0x70d   :  { %v13552_v5 = vcombine.low %v8828_v12, %v8834_v3  ;;  %v13553_v49 = vcombine.high %v8828_v12, %v8834_v3  ;;  %v8821_v34 = vsel %vm221_vm1, %v21160_v31, %v20598_v36  ;;  %v8816_v12 = vsel %vm916_vm9, %v21157_v26, %v8815_v41  ;;  %v21163_v36 = vld [vmem:[#allocation33_spill] sm:$0xff] }
 0x70e   :  { %v7816_v13 = vpop.permute.xlu0 %7815  ;;  %v8822_v61 = vsel %vm916_vm9, %v21159_v8, %v8821_v34  ;;  %v21164_v58 = vrot.slane %v21163_v36, 4  ;;  %v7632_v51 = vrot.slane %v18772_v2, 4 }
 0x70f   :  { %9748 = vmatprep.subr.bf16.mxu1 %v13553_v49  ;;  %9712 = vmatpush2.bf16.msra.mxu0 %v13504_v50  ;;  %v21162_v49 = vrot.slane %v21161_v37, 4  ;;  %v7832_v16 = vrot.slane %v7816_v13, 4  ;;  %v13546_v3 = vcombine.low %v8816_v12, %v8822_v61  ;;  %v13547_v31 = vcombine.high %v8816_v12, %v8822_v61  ;;  %v21165_v50 = vld [vmem:[#allocation25_spill] sm:$0xff]  ;;  %v21167_v13 = vld [vmem:[#allocation56_spill] sm:$0xff]  ;;  %v21169_v61 = vld [vmem:[#allocation14_spill] sm:$0xff] }
 0x710   :  { %9749 = vmatpush1.bf16.msra.mxu1 %v13552_v5  ;;  %9713 = vmatprep.subr.bf16.mxu0 %v13499_v53  ;;  %v21166_v56 = vrot.slane %v21165_v50, 4  ;;  %v21168_v12 = vrot.slane %v21167_v13, 4 }
 0x711   :  { %v7849_v10 = vsel %vm221_vm1, %v21162_v49, %v7828_v29  ;;  %v7855_v5 = vsel %vm221_vm1, %v21164_v58, %v7832_v16  ;;  %9750 = vmatprep.subr.bf16.mxu1 %v13547_v31  ;;  %v18945_v58 = vpop.permute.xlu1 %8575  ;;  %v21170_v49 = vrot.slane %v21112_v57, 4 }
 0x712   :  { %v7837_v41 = vsel %vm221_vm1, %v21166_v56, %v7820_v17  ;;  %v7800_v26 = vpop.permute.xlu0 %7799  ;;  %v7850_v29 = vsel %vm421_vm6, %v21161_v37, %v7849_v10  ;;  %v7856_v53 = vsel %vm421_vm6, %v21163_v36, %v7855_v5  ;;  %v7624_v17 = vrot.slane %v18815_v44, 4 }
 0x713   :  { %9714 = vmatpush2.bf16.msra.mxu0 %v13498_v7  ;;  %v7824_v43 = vrot.slane %v7800_v26, 4  ;;  %v13494_v8 = vcombine.low %v7850_v29, %v7856_v53  ;;  %v13495_v34 = vcombine.high %v7850_v29, %v7856_v53  ;;  %v7838_v2 = vsel %vm421_vm6, %v21165_v50, %v7837_v41 }
 0x714   :  { %9751 = vmatpush1.bf16.msra.mxu1 %v13546_v3  ;;  %v7653_v10 = vsel %vm221_vm1, %v21170_v49, %v7632_v51  ;;  %v21171_v7 = vrot.slane %v21114_v28, 4  ;;  %v7436_v53 = vrot.slane %v18849_v18, 4  ;;  %v21176_v49 = vrot.slane %v21122_v46, 4 }
 0x715   :  { %v7843_v56 = vsel %vm221_vm1, %v21168_v12, %v7824_v43  ;;  %9789 = vmatprep.subr.bf16.mxu1 %v13495_v34  ;;  %v18969_v50 = vpop.permute.xlu1 %8395  ;;  %v7654_v26 = vsel %vm322_vm7, %v21112_v57, %v7653_v10  ;;  %v21173_v57 = vld [vmem:[#allocation41_spill] sm:$0xff] }
 0x716   :  { %9716 = vmatmul.mubr.bf16.vlgmr.msra.gmra.mxu0 %v18736_v38  ;;  %v7620_v36 = vpop.permute.xlu0 %7619  ;;  %v7844_v37 = vsel %vm421_vm6, %v21167_v13, %v7843_v56  ;;  %v7641_v5 = vsel %vm221_vm1, %v21171_v7, %v7624_v17  ;;  %v7428_v13 = vrot.slane %v18890_v24, 4  ;;  %v21174_v56 = vrot.slane %v21120_v4, 4 }
 0x717   :  { %13558 = vmatmul.mubr.msk.bf16.vlgmr.msra.gmra.mxu1 %vm3958_vm13, %v21169_v61  ;;  %9725 = vmatprep.mubr.bf16.mxu0 %v18762_v54  ;;  %v7636_v16 = vrot.slane %v7620_v36, 4  ;;  %v13488_v3 = vcombine.low %v7838_v2, %v7844_v37  ;;  %v13489_v44 = vcombine.high %v7838_v2, %v7844_v37  ;;  %v14547_v2 = vld [vmem:[%s20321_s7 + $0x4] ss:$12 sps:$4 sm:$0xff]  }
 0x718   :  { %9790 = vmatpush1.bf16.msra.mxu1 %v13494_v8  ;;  %9778 = vmatprep.mubr.bf16.mxu1 %v20922_v23  ;;  %v21172_v8 = vrot.slane %v18443_v25, 4  ;;  %v7457_v17 = vsel %vm221_vm1, %v21174_v56, %v7436_v53  ;;  %v7445_v10 = vsel %vm221_vm1, %v21176_v49, %v7428_v13  ;;  %v21179_v13 = vrot.slane %v18709_v42, 4 }
 0x719   :  { %v7659_v31 = vsel %vm221_vm1, %v7635_v6, %v7636_v16  ;;  %9791 = vmatprep.subr.bf16.mxu1 %v13489_v44  ;;  %v18994_v37 = vpop.permute.xlu1 %8379  ;;  %v21183_v49 = vrot.slane %v18297_v22, 4 }
 0x71a   :  { %v7604_v41 = vpop.permute.xlu0 %7603  ;;  %v7660_v29 = vsel %vm322_vm7, %v18579_v33, %v7659_v31  ;;  %v7642_v33 = vsel %vm322_vm7, %v21114_v28, %v7641_v5  ;;  %v21175_v28 = vrot.slane %v18639_v35, 4  ;;  %v8612_v31 = vrot.slane %v18925_v47, 4 }
 0x71b   :  { %v7628_v51 = vrot.slane %v7604_v41, 4  ;;  %v13482_v43 = vcombine.low %v7654_v26, %v7660_v29  ;;  %v13483_v6 = vcombine.high %v7654_v26, %v7660_v29  ;;  %v21177_v26 = vrot.slane %v18470_v63, 4 }
 0x71c   :  { %9792 = vmatpush1.bf16.msra.mxu1 %v13488_v3  ;;  %v7458_v3 = vsel %vm223_vm8, %v21120_v4, %v7457_v17 }
 0x71d   :  { %v7647_v34 = vsel %vm221_vm1, %v21172_v8, %v7628_v51  ;;  %9793 = vmatprep.subr.bf16.mxu1 %v13483_v6  ;;  %v8200_v53 = vpop.permute.xlu1 %8199 }
 0x71e   :  { %9726 = vmatmul.mubr.bf16.gmra.mxu0 %v18793_v30  ;;  %v7424_v12 = vpop.permute.xlu0 %7423  ;;  %v7648_v18 = vsel %vm322_vm7, %v18443_v25, %v7647_v34 }
 0x71f   :  { %13559 = vmatmul.mubr.msk.bf16.gmra.mxu1 %vm3958_vm13, %v21173_v57  ;;  %9874 = vmatprep.mubr.bf16.mxu0 %v20922_v23  ;;  %v7440_v61 = vrot.slane %v7424_v12, 4  ;;  %v13476_v36 = vcombine.low %v7642_v33, %v7648_v18  ;;  %v13477_v24 = vcombine.high %v7642_v33, %v7648_v18  ;;  %v8416_v33 = vrot.slane %v18969_v50, 4 }
 0x720   :  { %9794 = vmatpush1.bf16.msra.mxu1 %v13482_v43  ;;  %9821 = vmatprep.mubr.bf16.mxu1 %v14547_v2  ;;  %v7446_v43 = vsel %vm223_vm8, %v21122_v46, %v7445_v10  ;;  %v21184_v10 = vld [vmem:[#allocation20_spill] sm:$0xff] }
 0x721   :  { %v7463_v25 = vsel %vm221_vm1, %v21175_v28, %v7440_v61  ;;  %9795 = vmatprep.subr.bf16.mxu1 %v13477_v24  ;;  %v8184_v17 = vpop.permute.xlu1 %8183  ;;  %v21181_v24 = vld [vmem:[#allocation7_spill] sm:$0xff]  ;;  %v8604_v28 = vrot.slane %v18945_v58, 4  ;;  %v21191_v58 = vrot.slane %v18774_v48, 4 }
 0x722   :  { %v7408_v16 = vpop.permute.xlu0 %7407  ;;  %v7464_v44 = vsel %vm223_vm8, %v18639_v35, %v7463_v25  ;;  %v21178_v35 = vrot.slane %v21127_v14, 4 }
 0x723   :  { %v7432_v7 = vrot.slane %v7408_v16, 4  ;;  %v13470_v5 = vcombine.low %v7458_v3, %v7464_v44  ;;  %v13471_v41 = vcombine.high %v7458_v3, %v7464_v44  ;;  %v21187_v3 = vrot.slane %v18489_v40, 4 }
 0x724   :  { %9796 = vmatpush1.bf16.msra.mxu1 %v13476_v36  ;;  %v8633_v47 = vsel %vm221_vm1, %v21178_v35, %v8612_v31  ;;  %v21180_v36 = vld [vmem:[#allocation17_spill] sm:$0xff]  ;;  %v21188_v31 = vld [vmem:[#allocation44_spill] sm:$0xff] }
 0x725   :  { %v7451_v29 = vsel %vm221_vm1, %v21177_v26, %v7432_v7  ;;  %9797 = vmatprep.subr.bf16.mxu1 %v13471_v41  ;;  %v8634_v46 = vsel %vm817_vm2, %v21127_v14, %v8633_v47  ;;  %v21182_v2 = vpack.c.bf16 %v21180_v36, %v21181_v24  ;;  %v8437_v14 = vsel %vm221_vm1, %v21183_v49, %v8416_v33  ;;  %v21189_v7 = vld [vmem:[#allocation30_spill] sm:$0xff] }
 0x726   :  { %v8600_v51 = vpop.permute.xlu0 %8599  ;;  %v7452_v4 = vsel %vm223_vm8, %v18470_v63, %v7451_v29  ;;  %v21192_v26 = vrot.slane %v21131_v59, 4  ;;  %v8220_v47 = vrot.slane %v8200_v53, 4 }
 0x727   :  { %v8616_v6 = vrot.slane %v8600_v51, 4  ;;  %v13464_v8 = vcombine.low %v7446_v43, %v7452_v4  ;;  %v13465_v34 = vcombine.high %v7446_v43, %v7452_v4  ;;  %v8004_v51 = vpop.permute.xlu1 %8003  ;;  %v8438_v4 = vsel %vm718_vm3, %v18297_v22, %v8437_v14 }
 0x728   :  { %9798 = vmatpush1.bf16.msra.mxu1 %v13470_v5  ;;  %v21190_v5 = vpack.c.bf16 %v21188_v31, %v21189_v7  ;;  %v8621_v29 = vsel %vm221_vm1, %v21192_v26, %v8604_v28  ;;  %v8408_v22 = vrot.slane %v18994_v37, 4  ;;  %v21198_v37 = vrot.slane %v18382_v32, 4 }
 0x729   :  { %v8639_v12 = vsel %vm221_vm1, %v21179_v13, %v8616_v6  ;;  %9799 = vmatprep.subr.bf16.mxu1 %v13465_v34  ;;  %v21193_v6 = vld [vmem:[#allocation36_spill] sm:$0xff]  ;;  %v8024_v49 = vrot.slane %v8004_v51, 4  ;;  %v21201_v26 = vrot.slane %v18851_v52, 4 }
 0x72a   :  { %v8584_v57 = vpop.permute.xlu0 %8583  ;;  %v8640_v63 = vsel %vm817_vm2, %v18709_v42, %v8639_v12  ;;  %v21185_v42 = vld [vmem:[#allocation6_spill] sm:$0xff]  ;;  %v8425_v28 = vsel %vm221_vm1, %v21198_v37, %v8408_v22 }
 0x72b   :  { %v13542_v18 = vcombine.low %v8634_v46, %v8640_v63  ;;  %v13543_v56 = vcombine.high %v8634_v46, %v8640_v63  ;;  %v8608_v61 = vrot.slane %v8584_v57, 4  ;;  %v21186_v16 = vpack.c.bf16 %v21184_v10, %v21185_v42  ;;  %v8788_v36 = vpop.permute.xlu1 %8787 }
 0x72c   :  { %9800 = vmatpush1.bf16.msra.mxu1 %v13464_v8  ;;  %v21194_v8 = vld [vmem:[#allocation18_spill] sm:$0xff]  ;;  %v8622_v63 = vsel %vm817_vm2, %v21131_v59, %v8621_v29  ;;  %v21202_v29 = vrot.slane %v18503_v9, 4 }
 0x72d   :  { %9801 = vmatprep.subr.bf16.mxu1 %v21182_v2  ;;  %v8627_v44 = vsel %vm221_vm1, %v21187_v3, %v8608_v61  ;;  %v21195_v34 = vpack.c.bf16 %v21193_v6, %v21194_v8  ;;  %v8212_v3 = vrot.slane %v8184_v17, 4 }
 0x72e   :  { %v8404_v25 = vpop.permute.xlu0 %8403  ;;  %v8628_v13 = vsel %vm817_vm2, %v18489_v40, %v8627_v44  ;;  %v21196_v40 = vrot.slane %v18666_v20, 4  ;;  %v8808_v44 = vrot.slane %v8788_v36, 4 }
 0x72f   :  { %v8420_v50 = vrot.slane %v8404_v25, 4  ;;  %v13537_v61 = vcombine.high %v8622_v63, %v8628_v13  ;;  %v13536_v2 = vcombine.low %v8622_v63, %v8628_v13  ;;  %v7988_v31 = vpop.permute.xlu1 %7987  ;;  %v8229_v51 = vsel %vm221_vm1, %v21202_v29, %v8212_v3  ;;  %v14548_v3 = vld [vmem:[%s20321_s7 + $0x8] ss:$12 sps:$4 sm:$0xff]  }
 0x730   :  { %9802 = vmatpush1.bf16.msra.mxu1 %v21186_v16  ;;  %v8230_v22 = vsel %vm619_vm4, %v18503_v9, %v8229_v51 }
 0x731   :  { %9803 = vmatprep.subr.bf16.mxu1 %v21190_v5  ;;  %v8443_v41 = vsel %vm221_vm1, %v21191_v58, %v8420_v50  ;;  %v8426_v50 = vsel %vm718_vm3, %v18382_v32, %v8425_v28  ;;  %v21199_v5 = vrot.slane %v18556_v45, 4 }
 0x732   :  { %v8388_v43 = vpop.permute.xlu0 %8387  ;;  %v8444_v35 = vsel %vm718_vm3, %v18774_v48, %v8443_v41  ;;  %v8241_v48 = vsel %vm221_vm1, %v8219_v0, %v8220_v47 }
 0x733   :  { %v13530_v12 = vcombine.low %v8438_v4, %v8444_v35  ;;  %v13531_v57 = vcombine.high %v8438_v4, %v8444_v35  ;;  %v8412_v46 = vrot.slane %v8388_v43, 4  ;;  %v8242_v0 = vsel %vm619_vm4, %v18465_v15, %v8241_v48 }
 0x734   :  { %9804 = vmatpush1.bf16.msra.mxu1 %v21195_v34  ;;  %v21203_v43 = vrot.slane %v18595_v19, 4 }
 0x735   :  { %9805 = vmatprep.subr.bf16.mxu1 %v13543_v56  ;;  %v8431_v24 = vsel %vm221_vm1, %v21196_v40, %v8412_v46  ;;  %v21197_v56 = vrot.slane %v18821_v1, 4  ;;  %v21204_v46 = vrot.slane %v18872_v60, 4 }
 0x736   :  { %v8208_v33 = vpop.permute.xlu0 %8207  ;;  %v8432_v14 = vsel %vm718_vm3, %v18666_v20, %v8431_v24  ;;  %v21200_v20 = vrot.slane %v18751_v27, 4  ;;  %v8829_v4 = vsel %vm221_vm1, %v21203_v43, %v8808_v44  ;;  %v21205_v24 = vrot.slane %v18806_v55, 4 }
 0x737   :  { %v8224_v53 = vrot.slane %v8208_v33, 4  ;;  %v13525_v15 = vcombine.high %v8426_v50, %v8432_v14  ;;  %v13524_v17 = vcombine.low %v8426_v50, %v8432_v14 }
 0x738   :  { %9806 = vmatpush2.bf16.msra.mxu1 %v13542_v18 }
 0x739   :  { %9807 = vmatprep.subr.bf16.mxu1 %v13537_v61  ;;  %v8247_v59 = vsel %vm221_vm1, %v21197_v56, %v8224_v53 }
 0x73a   :  { %v8192_v25 = vpop.permute.xlu0 %8191  ;;  %v8248_v18 = vsel %vm619_vm4, %v18821_v1, %v8247_v59  ;;  %v8045_v1 = vsel %vm221_vm1, %v21199_v5, %v8024_v49  ;;  %v21206_v59 = vrot.slane %v18637_v39, 4 }
 0x73b   :  { %v13518_v10 = vcombine.low %v8242_v0, %v8248_v18  ;;  %v13519_v42 = vcombine.high %v8242_v0, %v8248_v18  ;;  %v8216_v16 = vrot.slane %v8192_v25, 4  ;;  %v8046_v47 = vsel %vm520_vm5, %v18556_v45, %v8045_v1 }
 0x73c   :  { %9808 = vmatpush2.bf16.msra.mxu1 %v13536_v2  ;;  %v8016_v45 = vrot.slane %v7988_v31, 4  ;;  %v21208_v0 = vrot.slane %v18902_v62, 4 }
 0x73d   :  { %9809 = vmatprep.subr.bf16.mxu1 %v13531_v57  ;;  %v8235_v41 = vsel %vm221_vm1, %v21200_v20, %v8216_v16  ;;  %v8772_v57 = vpop.permute.xlu1 %8771 }
 0x73e   :  { %v8012_v7 = vpop.permute.xlu0 %8011  ;;  %v8236_v34 = vsel %vm619_vm4, %v18751_v27, %v8235_v41  ;;  %v8800_v48 = vrot.slane %v8772_v57, 4  ;;  %v8033_v2 = vsel %vm221_vm1, %v21206_v59, %v8016_v45 }
 0x73f   :  { %v8028_v58 = vrot.slane %v8012_v7, 4  ;;  %v13513_v61 = vcombine.high %v8230_v22, %v8236_v34  ;;  %v13512_v9 = vcombine.low %v8230_v22, %v8236_v34  ;;  %v8034_v49 = vsel %vm520_vm5, %v18637_v39, %v8033_v2  ;;  %v14549_v39 = vld [vmem:[%s20321_s7 + $0x20] ss:$12 sps:$4 sm:$0xff]  }
 0x740   :  { %9810 = vmatpush2.bf16.msra.mxu1 %v13530_v12 }
 0x741   :  { %9811 = vmatprep.subr.bf16.mxu1 %v13525_v15  ;;  %v8051_v32 = vsel %vm221_vm1, %v21201_v26, %v8028_v58  ;;  %v19142_v44 = vpop.permute.xlu1 %8993 }
 0x742   :  { %v8796_v35 = vpop.permute.xlu0 %8795  ;;  %v8052_v6 = vsel %vm520_vm5, %v18851_v52, %v8051_v32  ;;  %v8830_v52 = vsel %vm916_vm9, %v18595_v19, %v8829_v4 }
 0x743   :  { %v8812_v8 = vrot.slane %v8796_v35, 4  ;;  %v13506_v13 = vcombine.low %v8046_v47, %v8052_v6  ;;  %v13507_v12 = vcombine.high %v8046_v47, %v8052_v6 }
 0x744   :  { %9812 = vmatpush2.bf16.msra.mxu1 %v13524_v17 }
 0x745   :  { %9813 = vmatprep.subr.bf16.mxu1 %v13519_v42  ;;  %v8835_v63 = vsel %vm221_vm1, %v21204_v46, %v8812_v8  ;;  %v19146_v7 = vpop.permute.xlu1 %8983 }
 0x746   :  { %v7996_v33 = vpop.permute.xlu0 %7995  ;;  %v8836_v27 = vsel %vm916_vm9, %v18872_v60, %v8835_v63  ;;  %v21207_v60 = vrot.slane %v18674_v11, 4 }
 0x747   :  { %v8020_v53 = vrot.slane %v7996_v33, 4  ;;  %v13554_v36 = vcombine.low %v8830_v52, %v8836_v27  ;;  %v13555_v40 = vcombine.high %v8830_v52, %v8836_v27 }
 0x748   :  { %9814 = vmatpush2.bf16.msra.mxu1 %v13518_v10  ;;  %v8817_v37 = vsel %vm221_vm1, %v21207_v60, %v8800_v48 }
 0x749   :  { %9815 = vmatprep.subr.bf16.mxu1 %v13513_v61  ;;  %v8039_v56 = vsel %vm221_vm1, %v21205_v24, %v8020_v53  ;;  %9854 = vmatprep.subr.bf16.mxu0 %v13555_v40  ;;  %v8818_v10 = vsel %vm916_vm9, %v18674_v11, %v8817_v37 }
 0x74a   :  { %9855 = vmatpush1.bf16.msra.mxu0 %v13554_v36  ;;  %v8780_v19 = vpop.permute.xlu0 %8779  ;;  %v8040_v25 = vsel %vm520_vm5, %v18806_v55, %v8039_v56 }
 0x74b   :  { %v8804_v28 = vrot.slane %v8780_v19, 4  ;;  %v13501_v14 = vcombine.high %v8034_v49, %v8040_v25  ;;  %v13500_v55 = vcombine.low %v8034_v49, %v8040_v25 }
 0x74c   :  { %9816 = vmatpush2.bf16.msra.mxu1 %v13512_v9 }
 0x74d   :  { %9817 = vmatprep.subr.bf16.mxu1 %v13507_v12  ;;  %v8823_v18 = vsel %vm221_vm1, %v21208_v0, %v8804_v28 }
 0x74e   :  { %v8824_v42 = vsel %vm916_vm9, %v18902_v62, %v8823_v18 }
 0x74f   :  { %v13548_v16 = vcombine.low %v8818_v10, %v8824_v42  ;;  %v13549_v50 = vcombine.high %v8818_v10, %v8824_v42 }
 0x750   :  { %9818 = vmatpush2.bf16.msra.mxu1 %v13506_v13 }
 0x751   :  { %9819 = vmatprep.subr.bf16.mxu1 %v13501_v14  ;;  %9856 = vmatprep.subr.bf16.mxu0 %v13549_v50 }
 0x752   :  { %9857 = vmatpush1.bf16.msra.mxu0 %v13548_v16 }
 0x754   :  { %9820 = vmatpush2.bf16.msra.mxu1 %v13500_v55 }
 0x755   :  { %13560 = vmatmul.mubr.msk.bf16.vlgmr.msra.gmra.mxu0 %vm3958_vm13, %v14548_v3 }
 0x756   :  { %9884 = vmatprep.mubr.bf16.mxu0 %v20922_v23 }
 0x757   :  { %9822 = vmatmul.mubr.bf16.vlgmr.msra.gmra.mxu1 %v18736_v38  ;;  %v19144_v38 = vpop.permute.xlu0 %8998 }
 0x758   :  { %9831 = vmatprep.mubr.bf16.mxu1 %v18762_v54 }
 0x75b   :  { %v19150_v41 = vpop.permute.xlu0 %8988 }
 0x75d   :  { %13561 = vmatmul.mubr.msk.bf16.gmra.mxu0 %vm3958_vm13, %v14549_v39 }
 0x75f   :  { %9832 = vmatmul.mubr.bf16.gmra.mxu1 %v18793_v30 }
 0x760   :  { %12403 = vmatprep.mubr.bf16.mxu1 %v20922_v23 }
 0x775   :  { %v9664_v11 = vpop.f32.mrf.mxu0 }
 0x777   :  { %v9666_v62 = vpop.f32.mrf.mxu0 }
 0x779   :  { %v9668_v31 = vpop.f32.mrf.mxu0 }
 0x77b   :  { %v9670_v15 = vpop.f32.mrf.mxu0 }
 0x77d   :  { %v9674_v30 = vpop.f32.mrf.mxu0 }
 0x77f   :  { %v9676_v35 = vpop.f32.mrf.mxu0 }
 0x781   :  { %v9678_v33 = vpop.f32.mrf.mxu0 }
 0x783   :  { %v9680_v56 = vpop.f32.mrf.mxu0 }
 0x7b5   :  { %v9611_v54 = vpop.f32.mrf.mxu1 }
 0x7b6   :  { %v9612_v5 = vadd.f32 %v9611_v54, %v19146_v7 }
 0x7b7   :  { %v9613_v1 = vpop.f32.mrf.mxu1 }
 0x7b8   :  { %v9665_v58 = vadd.f32 %v9664_v11, %v9612_v5  ;;  %v9614_v20 = vadd.f32 %v9613_v1, %v19146_v7 }
 0x7b9   :  { %v9615_v26 = vpop.f32.mrf.mxu1 }
 0x7ba   :  { %vm9895_vm14 = vcmp.ge.f32.partialorder %v9665_v58, 0.0  ;;  %v9919_v32 = vmul.f32 0.2, %v9665_v58  ;;  %v9667_v17 = vadd.f32 %v9666_v62, %v9614_v20  ;;  %v9616_v29 = vadd.f32 %v9615_v26, %v19150_v41 }
 0x7bb   :  { %v9617_v51 = vpop.f32.mrf.mxu1 }
 0x7bc   :  { %vm9896_vm15 = vcmp.ge.f32.partialorder %v9667_v17, 0.0  ;;  %v9920_v43 = vmul.f32 0.2, %v9667_v17  ;;  %v9669_v4 = vadd.f32 %v9668_v31, %v9616_v29  ;;  %v19153_v47 = vsel %vm9895_vm14, %v9665_v58, %v9919_v32 }
 0x7bd   :  { %v9618_v6 = vadd.f32 %v9617_v51, %v19150_v41  ;;  %v9621_v8 = vpop.f32.mrf.mxu1 }
 0x7be   :  { %v19156_v34 = vsel %vm9896_vm15, %v9667_v17, %v9920_v43  ;;  %vm9901_vm0 = vcmp.ge.f32.partialorder %v9669_v4, 0.0  ;;  %v9925_v13 = vmul.f32 0.2, %v9669_v4  ;;  %v9622_v12 = vadd.f32 %v9621_v8, %v19142_v44 }
 0x7bf   :  { %v14306_v57 = vpack.c.bf16 %v19156_v34, %v19153_v47  ;;  %v9671_v46 = vadd.f32 %v9670_v15, %v9618_v6  ;;  %v9623_v63 = vpop.f32.mrf.mxu1 }
 0x7c0   :  { %v19161_v22 = vsel %vm9901_vm0, %v9669_v4, %v9925_v13  ;;  %v9624_v45 = vadd.f32 %v9623_v63, %v19142_v44  ;;  %v9675_v52 = vadd.f32 %v9674_v30, %v9622_v12 }
 0x7c1   :  { %vm9902_vm10 = vcmp.ge.f32.partialorder %v9671_v46, 0.0  ;;  %v9926_v61 = vmul.f32 0.2, %v9671_v46  ;;  %v9625_v27 = vpop.f32.mrf.mxu1  ;;  %10591 = vrot.lane.b32.xlu1 %v14306_v57, %s14554_s25 }
 0x7c2   :  { %v9626_v53 = vadd.f32 %v9625_v27, %v19144_v38  ;;  %v9677_v40 = vadd.f32 %v9676_v35, %v9624_v45  ;;  %v9931_v9 = vmul.f32 0.2, %v9675_v52  ;;  %vm9907_vm11 = vcmp.ge.f32.partialorder %v9675_v52, 0.0 }
 0x7c3   :  { %v19168_v36 = vsel %vm9902_vm10, %v9671_v46, %v9926_v61  ;;  %v9627_v24 = vpop.f32.mrf.mxu1 }
 0x7c4   :  { %v9628_v59 = vadd.f32 %v9627_v24, %v19144_v38  ;;  %v9679_v2 = vadd.f32 %v9678_v33, %v9626_v53  ;;  %v9932_v60 = vmul.f32 0.2, %v9677_v40  ;;  %vm9908_vm14 = vcmp.ge.f32.partialorder %v9677_v40, 0.0 }
 0x7c5   :  { %10395 = vrot.lane.b32.xlu1 %v14306_v57, %s14555_s26  ;;  %v19174_v25 = vsel %vm9907_vm11, %v9675_v52, %v9931_v9  ;;  %v14309_v8 = vpack.c.bf16 %v19168_v36, %v19161_v22 }
 0x7c6   :  { %vm9913_vm12 = vcmp.ge.f32.partialorder %v9679_v2, 0.0  ;;  %v9937_v37 = vmul.f32 0.2, %v9679_v2  ;;  %v9681_v28 = vadd.f32 %v9680_v56, %v9628_v59  ;;  %v19181_v14 = vsel %vm9908_vm14, %v9677_v40, %v9932_v60 }
 0x7c8   :  { %v19176_v0 = vsel %vm9913_vm12, %v9679_v2, %v9937_v37  ;;  %vm9914_vm15 = vcmp.ge.f32.partialorder %v9681_v28, 0.0  ;;  %v9938_v18 = vmul.f32 0.2, %v9681_v28 }
 0x7c9   :  { %10199 = vrot.lane.b32.xlu1 %v14306_v57, %s14556_s27 }
 0x7ca   :  { %v19183_v10 = vsel %vm9914_vm15, %v9681_v28, %v9938_v18 }
 0x7cb   :  { %v19187_v42 = vpack.c.bf16 %v19183_v10, %v19176_v0 }
 0x7cd   :  { %11375 = vrot.lane.b32.xlu1 %v14306_v57, %s14550_s14 }
 0x7d1   :  { %11179 = vrot.lane.b32.xlu1 %v14306_v57, %s14551_s15 }
 0x7d5   :  { %10983 = vrot.lane.b32.xlu1 %v14306_v57, %s14552_s24 }
 0x7d6   :  { %v9717_v50 = vpop.f32.mrf.mxu0 }
 0x7d7   :  { %v9718_v55 = vadd.f32 %v9717_v50, %v19146_v7  ;;  %v9770_v3 = vpop.f32.mrf.mxu1 }
 0x7d8   :  { %v9719_v39 = vpop.f32.mrf.mxu0 }
 0x7d9   :  { %v9720_v11 = vadd.f32 %v9719_v39, %v19146_v7  ;;  %v9771_v62 = vadd.f32 %v9770_v3, %v9718_v55  ;;  %v9772_v31 = vpop.f32.mrf.mxu1  ;;  %10787 = vrot.lane.b32.xlu1 %v14306_v57, %s14553_s0 }
 0x7da   :  { %v9721_v54 = vpop.f32.mrf.mxu0 }
 0x7db   :  { %v9921_v15 = vmul.f32 0.2, %v9771_v62  ;;  %v9722_v5 = vadd.f32 %v9721_v54, %v19150_v41  ;;  %v9773_v1 = vadd.f32 %v9772_v31, %v9720_v11  ;;  %v9774_v58 = vpop.f32.mrf.mxu1  ;;  %vm9897_vm0 = vcmp.ge.f32.partialorder %v9771_v62, 0.0 }
 0x7dc   :  { %v9723_v20 = vpop.f32.mrf.mxu0 }
 0x7dd   :  { %vm9898_vm10 = vcmp.ge.f32.partialorder %v9773_v1, 0.0  ;;  %v9922_v30 = vmul.f32 0.2, %v9773_v1  ;;  %v9724_v26 = vadd.f32 %v9723_v20, %v19150_v41  ;;  %v9776_v32 = vpop.f32.mrf.mxu1  ;;  %v9775_v17 = vadd.f32 %v9774_v58, %v9722_v5  ;;  %11571 = vrot.lane.b32.xlu1 %v14306_v57, %s14557_s30  ;;  %v19260_v58 = vpop.permute.xlu1 %10613 }
 0x7de   :  { %v9727_v29 = vpop.f32.mrf.mxu0  ;;  %v19200_v51 = vsel %vm9897_vm0, %v9771_v62, %v9921_v15  ;;  %v14312_v5 = vpack.c.bf16 %v19181_v14, %v19174_v25  ;;  %21217 = vst [vmem:[#allocation29_spill] sm:$0xff] %v19260_v58 }
 0x7df   :  { %21209 = vst [vmem:[#allocation50_spill] sm:$0xff] %v19200_v51  ;;  %v19202_v43 = vsel %vm9898_vm10, %v9773_v1, %v9922_v30  ;;  %v9728_v4 = vadd.f32 %v9727_v29, %v19142_v44  ;;  %v9777_v35 = vadd.f32 %v9776_v32, %v9724_v26  ;;  %v9780_v6 = vpop.f32.mrf.mxu1  ;;  %vm9903_vm11 = vcmp.ge.f32.partialorder %v9775_v17, 0.0 }
 0x7e0   :  { %21210 = vst [vmem:[#allocation52_spill] sm:$0xff] %v19202_v43  ;;  %v14307_v13 = vpack.c.bf16 %v19202_v43, %v19200_v51  ;;  %v9927_v12 = vmul.f32 0.2, %v9775_v17  ;;  %v9729_v46 = vpop.f32.mrf.mxu0 }
 0x7e1   :  { %vm9904_vm12 = vcmp.ge.f32.partialorder %v9777_v35, 0.0  ;;  %v9928_v57 = vmul.f32 0.2, %v9777_v35  ;;  %v9730_v63 = vadd.f32 %v9729_v46, %v19142_v44  ;;  %v9782_v45 = vpop.f32.mrf.mxu1  ;;  %v9781_v61 = vadd.f32 %v9780_v6, %v9728_v4  ;;  %10599 = vrot.lane.b32.xlu1 %v14309_v8, %s14554_s25  ;;  %v19266_v30 = vpop.permute.xlu1 %10597 }
 0x7e2   :  { %v19210_v33 = vsel %vm9903_vm11, %v9775_v17, %v9927_v12  ;;  %v9731_v52 = vpop.f32.mrf.mxu0  ;;  %10593 = vrot.lane.b32.xlu0 %v14307_v13, %s14554_s25  ;;  %21218 = vst [vmem:[#allocation28_spill] sm:$0xff] %v19266_v30 }
 0x7e3   :  { %21211 = vst [vmem:[#allocation13_spill] sm:$0xff] %v19210_v33  ;;  %v19216_v53 = vsel %vm9904_vm12, %v9777_v35, %v9928_v57  ;;  %v9784_v40 = vpop.f32.mrf.mxu1  ;;  %v9732_v24 = vadd.f32 %v9731_v52, %v19144_v38  ;;  %v9783_v56 = vadd.f32 %v9782_v45, %v9730_v63  ;;  %v9933_v37 = vmul.f32 0.2, %v9781_v61 }
 0x7e4   :  { %21212 = vst [vmem:[#allocation43_spill] sm:$0xff] %v19216_v53  ;;  %v9733_v9 = vpop.f32.mrf.mxu0  ;;  %vm9909_vm14 = vcmp.ge.f32.partialorder %v9781_v61, 0.0  ;;  %v14310_v1 = vpack.c.bf16 %v19216_v53, %v19210_v33 }
 0x7e5   :  { %v9734_v2 = vadd.f32 %v9733_v9, %v19144_v38  ;;  %v9786_v60 = vpop.f32.mrf.mxu1  ;;  %v9785_v28 = vadd.f32 %v9784_v40, %v9732_v24  ;;  %10403 = vrot.lane.b32.xlu1 %v14309_v8, %s14555_s26  ;;  %v9934_v18 = vmul.f32 0.2, %v9783_v56  ;;  %vm9910_vm15 = vcmp.ge.f32.partialorder %v9783_v56, 0.0  ;;  %v19273_v57 = vpop.permute.xlu1 %10417 }
 0x7e6   :  { %10397 = vrot.lane.b32.xlu0 %v14307_v13, %s14555_s26  ;;  %v19224_v39 = vsel %vm9909_vm14, %v9781_v61, %v9933_v37  ;;  %21219 = vst [vmem:[#allocation38_spill] sm:$0xff] %v19273_v57 }
 0x7e7   :  { %v9787_v50 = vadd.f32 %v9786_v60, %v9734_v2  ;;  %vm9915_vm0 = vcmp.ge.f32.partialorder %v9785_v28, 0.0  ;;  %v9939_v55 = vmul.f32 0.2, %v9785_v28  ;;  %21213 = vst [vmem:[#allocation35_spill] sm:$0xff] %v19224_v39  ;;  %v19230_v62 = vsel %vm9910_vm15, %v9783_v56, %v9934_v18 }
 0x7e8   :  { %21215 = vst [vmem:[#allocation22_spill] sm:$0xff] %v19230_v62  ;;  %v19280_v61 = vpack.c.bf16 %v19230_v62, %v19224_v39 }
 0x7e9   :  { %vm9916_vm10 = vcmp.ge.f32.partialorder %v9787_v50, 0.0  ;;  %v9940_v3 = vmul.f32 0.2, %v9787_v50  ;;  %v19226_v11 = vsel %vm9915_vm0, %v9785_v28, %v9939_v55  ;;  %10207 = vrot.lane.b32.xlu1 %v14309_v8, %s14556_s27  ;;  %v19288_v55 = vpop.permute.xlu1 %10401 }
 0x7ea   :  { %21214 = vst [vmem:[#allocation27_spill] sm:$0xff] %v19226_v11  ;;  %10201 = vrot.lane.b32.xlu0 %v14307_v13, %s14556_s27  ;;  %21220 = vst [vmem:[#allocation39_spill] sm:$0xff] %v19288_v55 }
 0x7eb   :  { %v19234_v54 = vsel %vm9916_vm10, %v9787_v50, %v9940_v3 }
 0x7ec   :  { %21216 = vst [vmem:[#allocation12_spill] sm:$0xff] %v19234_v54 }
 0x7ed   :  { %11383 = vrot.lane.b32.xlu1 %v14309_v8, %s14550_s14 }
 0x7ee   :  { %11377 = vrot.lane.b32.xlu0 %v14307_v13, %s14550_s14 }
 0x7f1   :  { %11187 = vrot.lane.b32.xlu1 %v14309_v8, %s14551_s15 }
 0x7f2   :  { %11181 = vrot.lane.b32.xlu0 %v14307_v13, %s14551_s15 }
 0x7f5   :  { %10991 = vrot.lane.b32.xlu1 %v14309_v8, %s14552_s24 }
 0x7f6   :  { %10985 = vrot.lane.b32.xlu0 %v14307_v13, %s14552_s24 }
 0x7f9   :  { %10795 = vrot.lane.b32.xlu1 %v14309_v8, %s14553_s0 }
 0x7fa   :  { %10789 = vrot.lane.b32.xlu0 %v14307_v13, %s14553_s0 }
 0x7fd   :  { %11579 = vrot.lane.b32.xlu1 %v14309_v8, %s14557_s30 }
 0x7fe   :  { %11573 = vrot.lane.b32.xlu0 %v14307_v13, %s14557_s30 }
 0x801   :  { %10607 = vrot.lane.b32.xlu1 %v14312_v5, %s14554_s25 }
 0x802   :  { %10601 = vrot.lane.b32.xlu0 %v14310_v1, %s14554_s25 }
 0x805   :  { %10411 = vrot.lane.b32.xlu1 %v14312_v5, %s14555_s26 }
 0x806   :  { %10405 = vrot.lane.b32.xlu0 %v14310_v1, %s14555_s26 }
 0x809   :  { %10215 = vrot.lane.b32.xlu1 %v14312_v5, %s14556_s27 }
 0x80a   :  { %10209 = vrot.lane.b32.xlu0 %v14310_v1, %s14556_s27 }
 0x80d   :  { %11391 = vrot.lane.b32.xlu1 %v14312_v5, %s14550_s14 }
 0x80e   :  { %11385 = vrot.lane.b32.xlu0 %v14310_v1, %s14550_s14 }
 0x811   :  { %11195 = vrot.lane.b32.xlu1 %v14312_v5, %s14551_s15 }
 0x812   :  { %11189 = vrot.lane.b32.xlu0 %v14310_v1, %s14551_s15 }
 0x815   :  { %10999 = vrot.lane.b32.xlu1 %v14312_v5, %s14552_s24  ;;  %v9876_v20 = vpop.f32.mrf.mxu0 }
 0x816   :  { %10993 = vrot.lane.b32.xlu0 %v14310_v1, %s14552_s24 }
 0x817   :  { %v9823_v26 = vpop.f32.mrf.mxu1  ;;  %v9878_v17 = vpop.f32.mrf.mxu0 }
 0x818   :  { %v9824_v32 = vadd.f32 %v9823_v26, %v19146_v7 }
 0x819   :  { %v9825_v29 = vpop.f32.mrf.mxu1  ;;  %10803 = vrot.lane.b32.xlu1 %v14312_v5, %s14553_s0  ;;  %v9880_v35 = vpop.f32.mrf.mxu0 }
 0x81a   :  { %v9826_v4 = vadd.f32 %v9825_v29, %v19146_v7  ;;  %10797 = vrot.lane.b32.xlu0 %v14310_v1, %s14553_s0  ;;  %v9877_v6 = vadd.f32 %v9876_v20, %v9824_v32 }
 0x81b   :  { %v9827_v8 = vpop.f32.mrf.mxu1  ;;  %v9882_v46 = vpop.f32.mrf.mxu0 }
 0x81c   :  { %v9828_v13 = vadd.f32 %v9827_v8, %v19150_v41  ;;  %v9879_v12 = vadd.f32 %v9878_v17, %v9826_v4  ;;  %v9923_v52 = vmul.f32 0.2, %v9877_v6  ;;  %vm9899_vm11 = vcmp.ge.f32.partialorder %v9877_v6, 0.0 }
 0x81d   :  { %v9829_v63 = vpop.f32.mrf.mxu1  ;;  %11587 = vrot.lane.b32.xlu1 %v14312_v5, %s14557_s30  ;;  %v9886_v7 = vpop.f32.mrf.mxu0 }
 0x81e   :  { %v9830_v45 = vadd.f32 %v9829_v63, %v19150_v41  ;;  %11581 = vrot.lane.b32.xlu0 %v14310_v1, %s14557_s30  ;;  %v9881_v40 = vadd.f32 %v9880_v35, %v9828_v13  ;;  %v9924_v56 = vmul.f32 0.2, %v9879_v12  ;;  %vm9900_vm12 = vcmp.ge.f32.partialorder %v9879_v12, 0.0 }
 0x81f   :  { %v9833_v24 = vpop.f32.mrf.mxu1  ;;  %v9888_v60 = vpop.f32.mrf.mxu0  ;;  %v19291_v3 = vsel %vm9899_vm11, %v9877_v6, %v9923_v52  ;;  %v16_v13 = vstv %s20323_s10 }
 0x820   :  { %v9834_v9 = vadd.f32 %v9833_v24, %v19142_v44  ;;  %v9883_v2 = vadd.f32 %v9882_v46, %v9830_v45  ;;  %vm9905_vm14 = vcmp.ge.f32.partialorder %v9881_v40, 0.0  ;;  %v9929_v41 = vmul.f32 0.2, %v9881_v40  ;;  %21221 = vst [vmem:[#allocation26_spill] sm:$0xff] %v19291_v3  ;;  %17 = vst [vmem:[#allocation4] sm:$0x1] %v16_v13 }
 0x821   :  { %v9835_v37 = vpop.f32.mrf.mxu1  ;;  %10615 = vrot.lane.b32.xlu1 %v19187_v42, %s14554_s25  ;;  %v9890_v50 = vpop.f32.mrf.mxu0  ;;  %v19295_v26 = vsel %vm9900_vm12, %v9879_v12, %v9924_v56 }
 0x822   :  { %vm9906_vm15 = vcmp.ge.f32.partialorder %v9883_v2, 0.0  ;;  %v9930_v28 = vmul.f32 0.2, %v9883_v2  ;;  %v9836_v18 = vadd.f32 %v9835_v37, %v19142_v44  ;;  %10609 = vrot.lane.b32.xlu0 %v19280_v61, %s14554_s25  ;;  %v19293_v5 = vsel %vm9905_vm14, %v9881_v40, %v9929_v41  ;;  %21223 = vst [vmem:[#allocation15_spill] sm:$0xff] %v19295_v26  ;;  %v19336_v37 = vpop.permute.xlu0 %10621 }
 0x823   :  { %21222 = vst [vmem:[#allocation24_spill] sm:$0xff] %v19293_v5  ;;  %v9887_v1 = vadd.f32 %v9886_v7, %v9834_v9  ;;  %v9837_v20 = vpop.f32.mrf.mxu1  ;;  %v9892_v35 = vpop.f32.mrf.mxu0  ;;  %21231 = vst [vmem:[#allocation9_spill] sm:$0xff] %v19336_v37 }
 0x824   :  { %v19299_v32 = vsel %vm9906_vm15, %v9883_v2, %v9930_v28  ;;  %v9838_v17 = vadd.f32 %v9837_v20, %v19144_v38  ;;  %v9889_v29 = vadd.f32 %v9888_v60, %v9836_v18  ;;  %v19312_v7 = vpop.permute.xlu1 %10221 }
 0x825   :  { %21224 = vst [vmem:[#allocation37_spill] sm:$0xff] %v19299_v32  ;;  %v9839_v4 = vpop.f32.mrf.mxu1  ;;  %11397 = vrot.lane.b32.xlu1 %v21046_v21, %s14550_s14  ;;  %v9935_v12 = vmul.f32 0.2, %v9887_v1  ;;  %vm9911_vm0 = vcmp.ge.f32.partialorder %v9887_v1, 0.0  ;;  %21225 = vst [vmem:[#allocation53_spill] sm:$0xff] %v19312_v7  ;;  %v19432_v59 = vpack.c.bf16 %v19299_v32, %v19293_v5 }
 0x826   :  { %v9840_v8 = vadd.f32 %v9839_v4, %v19144_v38  ;;  %10413 = vrot.lane.b32.xlu0 %v19280_v61, %s14555_s26  ;;  %v9891_v46 = vadd.f32 %v9890_v50, %v9838_v17  ;;  %v9936_v63 = vmul.f32 0.2, %v9889_v29  ;;  %vm9912_vm10 = vcmp.ge.f32.partialorder %v9889_v29, 0.0  ;;  %v19348_v18 = vpop.permute.xlu0 %10605 }
 0x827   :  { %v19318_v40 = vsel %vm9911_vm0, %v9887_v1, %v9935_v12  ;;  %21232 = vst [vmem:[#allocation54_spill] sm:$0xff] %v19348_v18  ;;  %v14316_v17 = vpack.c.bf16 %v19234_v54, %v19226_v11  ;;  %v12576_v58 = vld [vmem:[#allocation4] sm:$0x1] }
 0x828   :  { %v9893_v45 = vadd.f32 %v9892_v35, %v9840_v8  ;;  %vm9917_vm11 = vcmp.ge.f32.partialorder %v9891_v46, 0.0  ;;  %v9941_v38 = vmul.f32 0.2, %v9891_v46  ;;  %21226 = vst [vmem:[#allocation45_spill] sm:$0xff] %v19318_v40  ;;  %v19322_v56 = vsel %vm9912_vm10, %v9889_v29, %v9936_v63  ;;  %v19334_v41 = vpop.permute.xlu1 %10205 }
 0x829   :  { %10419 = vrot.lane.b32.xlu1 %v19187_v42, %s14555_s26  ;;  %21228 = vst [vmem:[#allocation8_spill] sm:$0xff] %v19322_v56  ;;  %21230 = vst [vmem:[#allocation5_spill] sm:$0xff] %v19334_v41  ;;  %v19375_v35 = vpack.c.bf16 %v19295_v26, %v19291_v3  ;;  %v14314_v44 = vpack.c.bf16 %v19322_v56, %v19318_v40  ;;  %v19480_v56 = vld [vmem:[%s20324_s9] sm:$0xff] }
 0x82a   :  { %vm9918_vm12 = vcmp.ge.f32.partialorder %v9893_v45, 0.0  ;;  %v9942_v52 = vmul.f32 0.2, %v9893_v45  ;;  %10217 = vrot.lane.b32.xlu0 %v19280_v61, %s14556_s27  ;;  %v19320_v24 = vsel %vm9917_vm11, %v9891_v46, %v9941_v38  ;;  %v19358_v20 = vpop.permute.xlu0 %10425  ;;  %21246 = vst [vmem:[#allocation16_spill] sm:$0xff] %v19480_v56  ;;  %v19492_v53 = vcombine.high %v19480_v56, %v19480_v56 }
 0x82b   :  { %21227 = vst [vmem:[#allocation11_spill] sm:$0xff] %v19320_v24  ;;  %21233 = vst [vmem:[#allocation55_spill] sm:$0xff] %v19358_v20 }
 0x82c   :  { %v19326_v2 = vsel %vm9918_vm12, %v9893_v45, %v9942_v52  ;;  %21247 = vst [vmem:[#allocation21_spill] sm:$0xff] %v19492_v53  ;;  %12362 = vmatprep.mubr.bf16.mxu0 %v19492_v53 }
 0x82d   :  { %21229 = vst [vmem:[#allocation46_spill] sm:$0xff] %v19326_v2  ;;  %10223 = vrot.lane.b32.xlu1 %v19187_v42, %s14556_s27  ;;  %v19484_v51 = vpack.c.bf16 %v19326_v2, %v19320_v24 }
 0x82e   :  { %11393 = vrot.lane.b32.xlu0 %v19280_v61, %s14550_s14  ;;  %v19371_v4 = vpop.permute.xlu0 %10409 }
 0x82f   :  { %21234 = vst [vmem:[#allocation42_spill] sm:$0xff] %v19371_v4 }
 0x831   :  { %11399 = vrot.lane.b32.xlu1 %v19187_v42, %s14550_s14 }
 0x832   :  { %11197 = vrot.lane.b32.xlu0 %v19280_v61, %s14551_s15  ;;  %v19385_v13 = vpop.permute.xlu0 %10229 }
 0x833   :  { %v19342_v28 = vpop.permute.xlu1 %10591  ;;  %21237 = vst [vmem:[#allocation51_spill] sm:$0xff] %v19385_v13 }
 0x835   :  { %11203 = vrot.lane.b32.xlu1 %v19187_v42, %s14551_s15 }
 0x836   :  { %11001 = vrot.lane.b32.xlu0 %v19280_v61, %s14552_s24  ;;  %v19395_v12 = vpop.permute.xlu0 %10213 }
 0x837   :  { %v19350_v50 = vpop.permute.xlu1 %10395  ;;  %21239 = vst [vmem:[#allocation19_spill] sm:$0xff] %v19395_v12 }
 0x839   :  { %11007 = vrot.lane.b32.xlu1 %v19187_v42, %s14552_s24 }
 0x83a   :  { %10805 = vrot.lane.b32.xlu0 %v19280_v61, %s14553_s0 }
 0x83b   :  { %v19356_v1 = vpop.permute.xlu1 %10199 }
 0x83d   :  { %10811 = vrot.lane.b32.xlu1 %v19187_v42, %s14553_s0 }
 0x83e   :  { %11589 = vrot.lane.b32.xlu0 %v19280_v61, %s14557_s30 }
 0x83f   :  { %v19366_v29 = vpop.permute.xlu1 %11375 }
 0x841   :  { %11595 = vrot.lane.b32.xlu1 %v19187_v42, %s14557_s30 }
 0x842   :  { %10617 = vrot.lane.b32.xlu0 %v14316_v17, %s14554_s25 }
 0x843   :  { %v19377_v61 = vpop.permute.xlu1 %11179 }
 0x844   :  { %21235 = vst [vmem:[#allocation34_spill] sm:$0xff] %v19377_v61 }
 0x845   :  { %10595 = vrot.lane.b32.xlu1 %v19375_v35, %s14554_s25 }
 0x846   :  { %11405 = vrot.lane.b32.xlu0 %v21046_v21, %s14550_s14 }
 0x847   :  { %v19383_v8 = vpop.permute.xlu1 %10983 }
 0x848   :  { %21236 = vst [vmem:[#allocation32_spill] sm:$0xff] %v19383_v8  ;;  %v10623_v8 = vrot.slane %v19342_v28, 4 }
 0x849   :  { %11575 = vrot.lane.b32.xlu1 %v19375_v35, %s14557_s30 }
 0x84a   :  { %10421 = vrot.lane.b32.xlu0 %v14316_v17, %s14555_s26 }
 0x84b   :  { %v19390_v42 = vpop.permute.xlu1 %10787 }
 0x84c   :  { %21238 = vst [vmem:[#allocation48_spill] sm:$0xff] %v19390_v42 }
 0x84d   :  { %10399 = vrot.lane.b32.xlu1 %v19375_v35, %s14555_s26 }
 0x84e   :  { %10225 = vrot.lane.b32.xlu0 %v14316_v17, %s14556_s27 }
 0x84f   :  { %v19397_v46 = vpop.permute.xlu1 %11571 }
 0x851   :  { %10203 = vrot.lane.b32.xlu1 %v19375_v35, %s14556_s27 }
 0x852   :  { %11401 = vrot.lane.b32.xlu0 %v14316_v17, %s14550_s14 }
 0x853   :  { %v19402_v63 = vpop.permute.xlu1 %10599 }
 0x854   :  { %v19404_v45 = vpop.permute.xlu0 %10593 }
 0x855   :  { %21240 = vst [vmem:[#allocation47_spill] sm:$0xff] %v19404_v45  ;;  %11379 = vrot.lane.b32.xlu1 %v19375_v35, %s14550_s14 }
 0x856   :  { %11205 = vrot.lane.b32.xlu0 %v14316_v17, %s14551_s15 }
 0x857   :  { %v19409_v38 = vpop.permute.xlu1 %10403 }
 0x858   :  { %v19411_v52 = vpop.permute.xlu0 %10397 }
 0x859   :  { %11183 = vrot.lane.b32.xlu1 %v19375_v35, %s14551_s15 }
 0x85a   :  { %11009 = vrot.lane.b32.xlu0 %v14316_v17, %s14552_s24 }
 0x85b   :  { %v19418_v6 = vpop.permute.xlu1 %10207 }
 0x85c   :  { %v19420_v9 = vpop.permute.xlu0 %10201 }
 0x85d   :  { %10611 = vrot.lane.b32.xlu1 %v14314_v44, %s14554_s25 }
 0x85e   :  { %10813 = vrot.lane.b32.xlu0 %v14316_v17, %s14553_s0 }
 0x85f   :  { %v19424_v60 = vpop.permute.xlu1 %11383 }
 0x860   :  { %v19426_v27 = vpop.permute.xlu0 %11377 }
 0x861   :  { %11591 = vrot.lane.b32.xlu1 %v14314_v44, %s14557_s30 }
 0x862   :  { %11597 = vrot.lane.b32.xlu0 %v14316_v17, %s14557_s30 }
 0x863   :  { %v19434_v31 = vpop.permute.xlu1 %11187 }
 0x864   :  { %v19436_v15 = vpop.permute.xlu0 %11181 }
 0x865   :  { %21241 = vst [vmem:[#allocation49_spill] sm:$0xff] %v19436_v15  ;;  %11381 = vrot.lane.b32.xlu1 %v21046_v21, %s14550_s14 }
 0x866   :  { %10603 = vrot.lane.b32.xlu0 %v19432_v59, %s14554_s25 }
 0x867   :  { %v19442_v48 = vpop.permute.xlu1 %10991 }
 0x868   :  { %21242 = vst [vmem:[#allocation40_spill] sm:$0xff] %v19442_v48  ;;  %v19444_v19 = vpop.permute.xlu0 %10985 }
 0x869   :  { %21243 = vst [vmem:[#allocation31_spill] sm:$0xff] %v19444_v19  ;;  %10415 = vrot.lane.b32.xlu1 %v14314_v44, %s14555_s26 }
 0x86a   :  { %11583 = vrot.lane.b32.xlu0 %v19432_v59, %s14557_s30 }
 0x86b   :  { %v19449_v17 = vpop.permute.xlu1 %10795 }
 0x86c   :  { %21244 = vst [vmem:[#allocation10_spill] sm:$0xff] %v19449_v17  ;;  %v19451_v49 = vpop.permute.xlu0 %10789 }
 0x86d   :  { %21245 = vst [vmem:[#allocation23_spill] sm:$0xff] %v19451_v49  ;;  %10219 = vrot.lane.b32.xlu1 %v14314_v44, %s14556_s27 }
 0x86e   :  { %10407 = vrot.lane.b32.xlu0 %v19432_v59, %s14555_s26 }
 0x86f   :  { %v19456_v16 = vpop.permute.xlu1 %11579 }
 0x870   :  { %v19458_v3 = vpop.permute.xlu0 %11573 }
 0x871   :  { %11395 = vrot.lane.b32.xlu1 %v14314_v44, %s14550_s14 }
 0x872   :  { %10211 = vrot.lane.b32.xlu0 %v19432_v59, %s14556_s27 }
 0x873   :  { %v19463_v5 = vpop.permute.xlu1 %10607 }
 0x874   :  { %v19465_v26 = vpop.permute.xlu0 %10601 }
 0x875   :  { %11199 = vrot.lane.b32.xlu1 %v14314_v44, %s14551_s15 }
 0x876   :  { %11387 = vrot.lane.b32.xlu0 %v19432_v59, %s14550_s14 }
 0x877   :  { %v19470_v32 = vpop.permute.xlu1 %10411 }
 0x878   :  { %v19472_v40 = vpop.permute.xlu0 %10405 }
 0x879   :  { %11003 = vrot.lane.b32.xlu1 %v14314_v44, %s14552_s24 }
 0x87a   :  { %11191 = vrot.lane.b32.xlu0 %v19432_v59, %s14551_s15 }
 0x87b   :  { %v19486_v33 = vpop.permute.xlu1 %10215 }
 0x87c   :  { %v19488_v43 = vpop.permute.xlu0 %10209 }
 0x87d   :  { %11201 = vrot.lane.b32.xlu1 %v21046_v21, %s14551_s15 }
 0x87e   :  { %10619 = vrot.lane.b32.xlu0 %v19484_v51, %s14554_s25 }
 0x87f   :  { %v19499_v39 = vpop.permute.xlu1 %11391 }
 0x880   :  { %v19501_v24 = vpop.permute.xlu0 %11385 }
 0x881   :  { %10987 = vrot.lane.b32.xlu1 %v19375_v35, %s14552_s24 }
 0x882   :  { %11599 = vrot.lane.b32.xlu0 %v19484_v51, %s14557_s30 }
 0x883   :  { %v19507_v2 = vpop.permute.xlu1 %11195 }
 0x884   :  { %v19509_v11 = vpop.permute.xlu0 %11189 }
 0x885   :  { %21248 = vst [vmem:[#allocation33_spill] sm:$0xff] %v19509_v11  ;;  %11185 = vrot.lane.b32.xlu1 %v21046_v21, %s14551_s15 }
 0x886   :  { %11389 = vrot.lane.b32.xlu0 %v21046_v21, %s14550_s14 }
 0x887   :  { %v19515_v62 = vpop.permute.xlu1 %10999 }
 0x888   :  { %21249 = vst [vmem:[#allocation25_spill] sm:$0xff] %v19515_v62  ;;  %v19517_v54 = vpop.permute.xlu0 %10993  ;;  %v21261_v62 = vrot.slane %v19465_v26, 4 }
 0x889   :  { %21250 = vst [vmem:[#allocation56_spill] sm:$0xff] %v19517_v54  ;;  %10807 = vrot.lane.b32.xlu1 %v14314_v44, %s14553_s0 }
 0x88a   :  { %10423 = vrot.lane.b32.xlu0 %v19484_v51, %s14555_s26 }
 0x88b   :  { %v19522_v41 = vpop.permute.xlu1 %10803 }
 0x88c   :  { %21251 = vst [vmem:[#allocation14_spill] sm:$0xff] %v19522_v41  ;;  %v19524_v12 = vpop.permute.xlu0 %10797 }
 0x88d   :  { %21252 = vst [vmem:[#allocation41_spill] sm:$0xff] %v19524_v12  ;;  %11005 = vrot.lane.b32.xlu1 %v21046_v21, %s14552_s24 }
 0x88e   :  { %11209 = vrot.lane.b32.xlu0 %v21046_v21, %s14551_s15 }
 0x88f   :  { %v19530_v7 = vpop.permute.xlu1 %11587 }
 0x890   :  { %v19532_v13 = vpop.permute.xlu0 %11581 }
 0x891   :  { %10791 = vrot.lane.b32.xlu1 %v19375_v35, %s14553_s0 }
 0x892   :  { %10227 = vrot.lane.b32.xlu0 %v19484_v51, %s14556_s27 }
 0x893   :  { %v10616_v44 = vpop.permute.xlu1 %10615 }
 0x894   :  { %v19538_v55 = vpop.permute.xlu0 %10609  ;;  %v10635_v48 = vrot.slane %v10616_v44, 4 }
 0x895   :  { %21253 = vst [vmem:[#allocation17_spill] sm:$0xff] %v19538_v55  ;;  %10989 = vrot.lane.b32.xlu1 %v21046_v21, %s14552_s24  ;;  %v20638_v41 = vrot.slane %v19538_v55, 4  ;;  %v20645_v55 = vrot.slane %v19411_v52, 4 }
 0x896   :  { %10995 = vrot.lane.b32.xlu0 %v19432_v59, %s14552_s24 }
 0x897   :  { %v19544_v4 = vpop.permute.xlu1 %11397 }
 0x898   :  { %21254 = vst [vmem:[#allocation7_spill] sm:$0xff] %v19544_v4  ;;  %v19546_v20 = vpop.permute.xlu0 %10413 }
 0x899   :  { %10809 = vrot.lane.b32.xlu1 %v21046_v21, %s14553_s0 }
 0x89a   :  { %11193 = vrot.lane.b32.xlu0 %v21046_v21, %s14551_s15 }
 0x89b   :  { %v19552_v35 = vpop.permute.xlu1 %10419 }
 0x89c   :  { %v19554_v57 = vpop.permute.xlu0 %10217 }
 0x89d   :  { %11593 = vrot.lane.b32.xlu1 %v21046_v21, %s14557_s30 }
 0x89e   :  { %11013 = vrot.lane.b32.xlu0 %v21046_v21, %s14552_s24 }
 0x89f   :  { %v19560_v23 = vpop.permute.xlu1 %10223 }
 0x8a0   :  { %v19562_v4 = vpop.permute.xlu0 %11393 }
 0x8a1   :  { %10793 = vrot.lane.b32.xlu1 %v21046_v21, %s14553_s0 }
 0x8a2   :  { %11403 = vrot.lane.b32.xlu0 %v19484_v51, %s14550_s14 }
 0x8a3   :  { %v19568_v18 = vpop.permute.xlu1 %11399 }
 0x8a4   :  { %v19570_v30 = vpop.permute.xlu0 %11197 }
 0x8a5   :  { %21255 = vst [vmem:[#allocation20_spill] sm:$0xff] %v19570_v30  ;;  %11577 = vrot.lane.b32.xlu1 %v21046_v21, %s14557_s30 }
 0x8a6   :  { %10799 = vrot.lane.b32.xlu0 %v19432_v59, %s14553_s0 }
 0x8a7   :  { %v19576_v56 = vpop.permute.xlu1 %11203 }
 0x8a8   :  { %v19578_v37 = vpop.permute.xlu0 %11001 }
 0x8a9   :  { %21256 = vst [vmem:[#allocation6_spill] sm:$0xff] %v19578_v37  ;;  %12579 = vperm.xlu1 %14512, %v12576_v58   ;;  %v10627_v58 = vrot.slane %v19402_v63, 4  ;;  %v21262_v37 = vrot.slane %v19404_v45, 4 }
 0x8aa   :  { %11207 = vrot.lane.b32.xlu0 %v19484_v51, %s14551_s15 }
 0x8ab   :  { %v19582_v42 = vpop.permute.xlu1 %11007  ;;  %v10639_v61 = vsel %vm221_vm1, %v10623_v8, %v21262_v37  ;;  %v10431_v37 = vrot.slane %v19409_v38, 4 }
 0x8ac   :  { %21257 = vst [vmem:[#allocation44_spill] sm:$0xff] %v19582_v42  ;;  %v19584_v49 = vpop.permute.xlu0 %10805  ;;  %v10645_v42 = vsel %vm221_vm1, %v10627_v58, %v21261_v62  ;;  %v10640_v8 = vsel %vm421_vm6, %v19342_v28, %v10639_v61  ;;  %v10439_v61 = vrot.slane %v19552_v35, 4 }
 0x8ad   :  { %21258 = vst [vmem:[#allocation30_spill] sm:$0xff] %v19584_v49  ;;  %v10631_v49 = vrot.slane %v19463_v5, 4 }
 0x8ae   :  { %10997 = vrot.lane.b32.xlu0 %v21046_v21, %s14552_s24 }
 0x8af   :  { %v19588_v17 = vpop.permute.xlu1 %10811  ;;  %v10651_v59 = vsel %vm221_vm1, %v10631_v49, %v20638_v41 }
 0x8b0   :  { %21259 = vst [vmem:[#allocation36_spill] sm:$0xff] %v19588_v17  ;;  %v19590_v12 = vpop.permute.xlu0 %11589  ;;  %v10652_v62 = vsel %vm421_vm6, %v19463_v5, %v10651_v59  ;;  %v10435_v5 = vrot.slane %v19470_v32, 4 }
 0x8b2   :  { %11011 = vrot.lane.b32.xlu0 %v19484_v51, %s14552_s24 }
 0x8b3   :  { %v19600_v19 = vpop.permute.xlu1 %11595 }
 0x8b4   :  { %v19602_v17 = vpop.permute.xlu0 %10617 }
 0x8b5   :  { %21260 = vst [vmem:[#allocation18_spill] sm:$0xff] %v19602_v17  ;;  %v20641_v54 = vrot.slane %v19602_v17, 4  ;;  %v10646_v17 = vsel %vm421_vm6, %v19402_v63, %v10645_v42  ;;  %v21263_v42 = vrot.slane %v19472_v40, 4 }
 0x8b6   :  { %10817 = vrot.lane.b32.xlu0 %v21046_v21, %s14553_s0 }
 0x8b7   :  { %v10657_v53 = vsel %vm221_vm1, %v10635_v48, %v20641_v54  ;;  %v19620_v49 = vpop.permute.xlu1 %10595  ;;  %v20644_v48 = vrot.slane %v19546_v20, 4  ;;  %v10449_v63 = vsel %vm221_vm1, %v10431_v37, %v21263_v42  ;;  %v10239_v42 = vrot.slane %v19486_v33, 4 }
 0x8b8   :  { %v19622_v41 = vpop.permute.xlu0 %11405  ;;  %v10658_v58 = vsel %vm421_vm6, %v10616_v44, %v10657_v53  ;;  %v13742_v53 = vcombine.high %v10640_v8, %v10646_v17 }
 0x8b9   :  { %v13747_v54 = vcombine.low %v10652_v62, %v10658_v58  ;;  %v13748_v45 = vcombine.high %v10652_v62, %v10658_v58  ;;  %v10455_v28 = vsel %vm221_vm1, %v10435_v5, %v20644_v48  ;;  %v13741_v62 = vcombine.low %v10640_v8, %v10646_v17 }
 0x8ba   :  { %10815 = vrot.lane.b32.xlu0 %v19484_v51, %s14553_s0  ;;  %v10427_v51 = vrot.slane %v19350_v50, 4  ;;  %v20647_v58 = vrot.slane %v19554_v57, 4  ;;  %v10450_v5 = vsel %vm322_vm7, %v19409_v38, %v10449_v63  ;;  %v10456_v48 = vsel %vm322_vm7, %v19470_v32, %v10455_v28 }
 0x8bb   :  { %12330 = vmatprep.subr.bf16.mxu0 %v13748_v45  ;;  %v19640_v44 = vpop.permute.xlu1 %11575  ;;  %v20648_v17 = vrot.slane %v19420_v9, 4 }
 0x8bc   :  { %12331 = vmatpush1.bf16.msra.mxu0 %v13747_v54  ;;  %v19642_v59 = vpop.permute.xlu0 %10421  ;;  %v10443_v37 = vsel %vm221_vm1, %v10427_v51, %v20645_v55  ;;  %v10243_v51 = vrot.slane %v19560_v23, 4  ;;  %v10259_v32 = vsel %vm221_vm1, %v10239_v42, %v20647_v58 }
 0x8bd   :  { %v20646_v45 = vrot.slane %v19642_v59, 4  ;;  %12332 = vmatprep.subr.bf16.mxu0 %v13742_v53 }
 0x8be   :  { %11601 = vrot.lane.b32.xlu0 %v21046_v21, %s14557_s30 }
 0x8bf   :  { %v10461_v54 = vsel %vm221_vm1, %v10439_v61, %v20646_v45  ;;  %v19663_v8 = vpop.permute.xlu1 %10399  ;;  %v10235_v45 = vrot.slane %v19418_v6, 4 }
 0x8c0   :  { %12333 = vmatpush1.bf16.msra.mxu0 %v13741_v62  ;;  %v19665_v53 = vpop.permute.xlu0 %10225  ;;  %v10462_v61 = vsel %vm322_vm7, %v19552_v35, %v10461_v54  ;;  %v10444_v62 = vsel %vm322_vm7, %v19350_v50, %v10443_v37  ;;  %v10231_v37 = vrot.slane %v19356_v1, 4 }
 0x8c1   :  { %v20649_v55 = vrot.slane %v19665_v53, 4  ;;  %v13735_v38 = vcombine.low %v10456_v48, %v10462_v61  ;;  %v13736_v63 = vcombine.high %v10456_v48, %v10462_v61  ;;  %v13730_v48 = vcombine.high %v10444_v62, %v10450_v5 }
 0x8c2   :  { %10801 = vrot.lane.b32.xlu0 %v21046_v21, %s14553_s0  ;;  %v21264_v61 = vrot.slane %v19488_v43, 4  ;;  %v13729_v58 = vcombine.low %v10444_v62, %v10450_v5 }
 0x8c3   :  { %v10265_v35 = vsel %vm221_vm1, %v10243_v51, %v20649_v55  ;;  %12334 = vmatprep.subr.bf16.mxu0 %v13736_v63  ;;  %v19685_v28 = vpop.permute.xlu1 %10203  ;;  %v10260_v51 = vsel %vm223_vm8, %v19486_v33, %v10259_v32  ;;  %v10247_v63 = vsel %vm221_vm1, %v10231_v37, %v20648_v17  ;;  %v20651_v37 = vrot.slane %v19501_v24, 4 }
 0x8c4   :  { %12335 = vmatpush1.bf16.msra.mxu0 %v13735_v38  ;;  %v19687_v54 = vpop.permute.xlu0 %11401  ;;  %v10266_v50 = vsel %vm223_vm8, %v19560_v23, %v10265_v35  ;;  %v10253_v42 = vsel %vm221_vm1, %v10235_v45, %v21264_v61  ;;  %v20652_v61 = vrot.slane %v19562_v4, 4  ;;  %v11611_v55 = vrot.slane %v19530_v7, 4 }
 0x8c5   :  { %12336 = vmatprep.subr.bf16.mxu0 %v13730_v48  ;;  %v13724_v38 = vcombine.high %v10260_v51, %v10266_v50  ;;  %v10254_v45 = vsel %vm223_vm8, %v19418_v6, %v10253_v42  ;;  %v13723_v5 = vcombine.low %v10260_v51, %v10266_v50  ;;  %v20650_v48 = vrot.slane %v19687_v54, 4 }
 0x8c6   :  { %11585 = vrot.lane.b32.xlu0 %v21046_v21, %s14557_s30  ;;  %v10248_v21 = vsel %vm223_vm8, %v19356_v1, %v10247_v63  ;;  %v11419_v6 = vrot.slane %v19568_v18, 4  ;;  %v20653_v50 = vrot.slane %v19532_v13, 4  ;;  %v11411_v51 = vrot.slane %v19424_v60, 4 }
 0x8c7   :  { %v19702_v23 = vpop.permute.xlu1 %11379  ;;  %v13718_v62 = vcombine.high %v10248_v21, %v10254_v45  ;;  %v20654_v63 = vrot.slane %v19590_v12, 4 }
 0x8c8   :  { %12337 = vmatpush1.bf16.msra.mxu0 %v13729_v58  ;;  %v19704_v35 = vpop.permute.xlu0 %11205  ;;  %v13717_v58 = vcombine.low %v10248_v21, %v10254_v45  ;;  %v11441_v45 = vsel %vm221_vm1, %v11419_v6, %v20650_v48  ;;  %v11429_v17 = vsel %vm221_vm1, %v11411_v51, %v20651_v37  ;;  %v11407_v48 = vrot.slane %v19366_v29, 4 }
 0x8c9   :  { %21265 = vst [vmem:[#allocation57_spill] sm:$0xff] %v19704_v35  ;;  %12338 = vmatprep.subr.bf16.mxu0 %v13724_v38  ;;  %v11415_v38 = vrot.slane %v19499_v39, 4  ;;  %v11442_v37 = vsel %vm817_vm2, %v19568_v18, %v11441_v45  ;;  %v21273_v45 = vrot.slane %v19458_v3, 4  ;;  %v11223_v21 = vrot.slane %v19576_v56, 4 }
 0x8cb   :  { %v19710_v33 = vpop.permute.xlu1 %11183  ;;  %v11435_v6 = vsel %vm221_vm1, %v11415_v38, %v20652_v61  ;;  %v11631_v38 = vsel %vm221_vm1, %v11611_v55, %v20654_v63  ;;  %v11615_v61 = vrot.slane %v19600_v19, 4  ;;  %v11430_v55 = vsel %vm817_vm2, %v19424_v60, %v11429_v17 }
 0x8cc   :  { %21266 = vst [vmem:[#allocation58_spill] sm:$0xff] %v19710_v33  ;;  %12339 = vmatpush1.bf16.msra.mxu0 %v13723_v5  ;;  %v19712_v32 = vpop.permute.xlu0 %11009  ;;  %v21269_v5 = vpack.c.bf16 %v19183_v10, %v19181_v14  ;;  %v11603_v14 = vrot.slane %v19397_v46, 4  ;;  %v20658_v63 = vrot.slane %v19570_v30, 4  ;;  %v21274_v60 = vpack.c.bf16 %v19161_v22, %v19153_v47  ;;  %v21312_v33 = vld [vmem:[#allocation16_spill] sm:$0xff] }
 0x8cd   :  { %21267 = vst [vmem:[#allocation59_spill] sm:$0xff] %v19712_v32  ;;  %12340 = vmatprep.subr.bf16.mxu0 %v13718_v62  ;;  %v11607_v62 = vrot.slane %v19456_v16, 4 }
 0x8cf   :  { %v19719_v42 = vpop.permute.xlu1 %10611  ;;  %v11625_v10 = vsel %vm221_vm1, %v11607_v62, %v20653_v50  ;;  %v21271_v50 = vpack.c.bf16 %v19168_v36, %v19156_v34 }
 0x8d0   :  { %12341 = vmatpush1.bf16.msra.mxu0 %v13717_v58  ;;  %v19721_v1 = vpop.permute.xlu0 %10813  ;;  %v21270_v58 = vpack.c.bf16 %v19176_v0, %v19174_v25  ;;  %v11436_v25 = vsel %vm817_vm2, %v19499_v39, %v11435_v6  ;;  %v21272_v0 = vrot.slane %v19426_v27, 4  ;;  %v11219_v39 = vrot.slane %v19507_v2, 4 }
 0x8d1   :  { %21268 = vst [vmem:[#allocation60_spill] sm:$0xff] %v19721_v1  ;;  %12342 = vmatprep.subr.bf16.mxu0 %v21269_v5  ;;  %v13796_v36 = vcombine.high %v11436_v25, %v11442_v37 }
 0x8d2   :  { %v11423_v18 = vsel %vm221_vm1, %v11407_v48, %v21272_v0  ;;  %v11632_v48 = vsel %vm916_vm9, %v19530_v7, %v11631_v38  ;;  %v21275_v0 = vrot.slane %v19704_v35, 4 }
 0x8d3   :  { %v19747_v5 = vpop.permute.xlu1 %11591  ;;  %v11424_v7 = vsel %vm817_vm2, %v19366_v29, %v11423_v18 }
 0x8d4   :  { %12343 = vmatpush1.bf16.msra.mxu0 %v21270_v58  ;;  %v19752_v51 = vpop.permute.xlu0 %11597  ;;  %v11619_v58 = vsel %vm221_vm1, %v11603_v14, %v21273_v45  ;;  %v20656_v14 = vrot.slane %v19509_v11, 4  ;;  %v11245_v45 = vsel %vm221_vm1, %v11223_v21, %v21275_v0  ;;  %v13790_v21 = vcombine.high %v11424_v7, %v11430_v55  ;;  %v21278_v0 = vld [vmem:[#allocation44_spill] sm:$0xff] }
 0x8d5   :  { %v20655_v62 = vrot.slane %v19752_v51, 4  ;;  %12344 = vmatprep.subr.bf16.mxu0 %v21271_v50  ;;  %v11246_v29 = vsel %vm718_vm3, %v19576_v56, %v11245_v45 }
 0x8d7   :  { %v11637_v34 = vsel %vm221_vm1, %v11615_v61, %v20655_v62  ;;  %v19781_v50 = vpop.permute.xlu1 %11381  ;;  %v11626_v61 = vsel %vm916_vm9, %v19456_v16, %v11625_v10  ;;  %v13795_v62 = vcombine.low %v11436_v25, %v11442_v37  ;;  %v20657_v16 = vrot.slane %v19436_v15, 4  ;;  %v21276_v25 = vld [vmem:[#allocation34_spill] sm:$0xff] }
 0x8d8   :  { %12345 = vmatpush1.bf16.msra.mxu0 %v21274_v60  ;;  %v19786_v17 = vpop.permute.xlu0 %10603  ;;  %v11638_v6 = vsel %vm916_vm9, %v19600_v19, %v11637_v34  ;;  %v11215_v60 = vrot.slane %v19434_v31, 4  ;;  %v11620_v19 = vsel %vm916_vm9, %v19397_v46, %v11619_v58  ;;  %v11239_v10 = vsel %vm221_vm1, %v11219_v39, %v20658_v63 }
 0x8d9   :  { %12346 = vmatprep.subr.bf16.mxu0 %v13796_v36  ;;  %v13807_v47 = vcombine.low %v11632_v48, %v11638_v6  ;;  %v13808_v22 = vcombine.high %v11632_v48, %v11638_v6  ;;  %v13802_v38 = vcombine.high %v11620_v19, %v11626_v61  ;;  %v11211_v46 = vrot.slane %v21276_v25, 4  ;;  %v21277_v48 = vld [vmem:[#allocation6_spill] sm:$0xff] }
 0x8da   :  { %v11233_v18 = vsel %vm221_vm1, %v11215_v60, %v20656_v14  ;;  %v20659_v58 = vrot.slane %v19712_v32, 4  ;;  %v13789_v36 = vcombine.low %v11424_v7, %v11430_v55  ;;  %v13801_v39 = vcombine.low %v11620_v19, %v11626_v61  ;;  %v21279_v61 = vld [vmem:[#allocation25_spill] sm:$0xff]  ;;  %v21280_v19 = vld [vmem:[#allocation56_spill] sm:$0xff]  ;;  %v21282_v14 = vld [vmem:[#allocation31_spill] sm:$0xff] }
 0x8db   :  { %12383 = vmatprep.subr.bf16.mxu1 %v13808_v22  ;;  %v19807_v34 = vpop.permute.xlu1 %10415  ;;  %v20660_v6 = vrot.slane %v21277_v48, 4  ;;  %v11227_v45 = vsel %vm221_vm1, %v11211_v46, %v20657_v16  ;;  %v19828_v22 = vld [vmem:[%s20324_s9 + $0x8] ss:$0 sps:$4 sm:$0xff]   ;;  %v11023_v7 = vrot.slane %v21279_v61, 4  ;;  %v21286_v32 = vld [vmem:[#allocation36_spill] sm:$0xff] }
 0x8dc   :  { %12347 = vmatpush2.bf16.msra.mxu0 %v13795_v62  ;;  %12384 = vmatpush1.bf16.msra.mxu1 %v13807_v47  ;;  %v19809_v37 = vpop.permute.xlu0 %11583  ;;  %v11240_v62 = vsel %vm718_vm3, %v19507_v2, %v11239_v10  ;;  %v11027_v47 = vrot.slane %v21278_v0, 4  ;;  %v11234_v2 = vsel %vm718_vm3, %v19434_v31, %v11233_v18  ;;  %v20667_v10 = vrot.slane %v21280_v19, 4 }
 0x8dd   :  { %12348 = vmatprep.subr.bf16.mxu0 %v13790_v21  ;;  %12385 = vmatprep.subr.bf16.mxu1 %v13802_v38  ;;  %v13784_v56 = vcombine.high %v11240_v62, %v11246_v29  ;;  %v13783_v38 = vcombine.low %v11240_v62, %v11246_v29  ;;  %v11228_v46 = vsel %vm718_vm3, %v21276_v25, %v11227_v45  ;;  %v21283_v25 = vld [vmem:[#allocation32_spill] sm:$0xff]  ;;  %v20675_v45 = vrot.slane %v19721_v1, 4 }
 0x8de   :  { %v11049_v21 = vsel %vm221_vm1, %v11027_v47, %v20659_v58  ;;  %v11043_v31 = vsel %vm221_vm1, %v11023_v7, %v20660_v6  ;;  %v13778_v18 = vcombine.high %v11228_v46, %v11234_v2  ;;  %v11015_v62 = vrot.slane %v21283_v25, 4  ;;  %v21284_v7 = vld [vmem:[#allocation21_spill] sm:$0xff]  ;;  %v21285_v6 = vld [vmem:[#allocation30_spill] sm:$0xff] }
 0x8df   :  { %v19830_v60 = vpop.permute.xlu1 %10219  ;;  %v11050_v29 = vsel %vm619_vm4, %v21278_v0, %v11049_v21  ;;  %v13777_v58 = vcombine.low %v11228_v46, %v11234_v2  ;;  %v10831_v48 = vrot.slane %v21286_v32, 4  ;;  %v21287_v21 = vrot.slane %v21282_v14, 4  ;;  %v21288_v46 = vld [vmem:[#allocation14_spill] sm:$0xff]  ;;  %v21291_v14 = vld [vmem:[#allocation23_spill] sm:$0xff] }
 0x8e0   :  { %12349 = vmatpush2.bf16.msra.mxu0 %v13789_v36  ;;  %12386 = vmatpush1.bf16.msra.mxu1 %v13801_v39  ;;  %v19832_v55 = vpop.permute.xlu0 %10407  ;;  %v21281_v36 = vld [vmem:[#allocation40_spill] sm:$0xff]  ;;  %v20679_v11 = vrot.slane %v21291_v14, 4  ;;  %v21292_v15 = vrot.slane %v21285_v6, 4  ;;  %v21303_v14 = vld [vmem:[#allocation9_spill] sm:$0xff] }
 0x8e1   :  { %12350 = vmatprep.subr.bf16.mxu0 %v13784_v56  ;;  %v11019_v39 = vrot.slane %v21281_v36, 4  ;;  %v11031_v19 = vsel %vm221_vm1, %v11015_v62, %v21287_v21  ;;  %v21290_v21 = vld [vmem:[#allocation10_spill] sm:$0xff]  ;;  %v10638_v6 = vrot.slane %v21303_v14, 4 }
 0x8e2   :  { %v11032_v62 = vsel %vm619_vm4, %v21283_v25, %v11031_v19 }
 0x8e3   :  { %13813 = vmatmul.mubr.msk.bf16.vlgmr.msra.gmra.mxu1 %vm3958_vm13, %v19828_v22  ;;  %v19850_v63 = vpop.permute.xlu1 %11395  ;;  %v11037_v56 = vsel %vm221_vm1, %v11019_v39, %v20667_v10  ;;  %v10853_v10 = vsel %vm221_vm1, %v10831_v48, %v20675_v45 }
 0x8e4   :  { %12351 = vmatpush2.bf16.msra.mxu0 %v13783_v38  ;;  %v19852_v47 = vpop.permute.xlu0 %10211  ;;  %12444 = vmatprep.mubr.bf16.mxu1 %v21284_v7  ;;  %v11044_v38 = vsel %vm619_vm4, %v21279_v61, %v11043_v31  ;;  %v11038_v2 = vsel %vm619_vm4, %v21281_v36, %v11037_v56  ;;  %v21289_v61 = vld [vmem:[#allocation41_spill] sm:$0xff]  ;;  %v10854_v48 = vsel %vm520_vm5, %v21286_v32, %v10853_v10 }
 0x8e5   :  { %12352 = vmatprep.subr.bf16.mxu0 %v13778_v18  ;;  %v13772_v0 = vcombine.high %v11044_v38, %v11050_v29  ;;  %v10827_v18 = vrot.slane %v21288_v46, 4  ;;  %v13771_v16 = vcombine.low %v11044_v38, %v11050_v29  ;;  %v13766_v56 = vcombine.high %v11032_v62, %v11038_v2  ;;  %v21295_v29 = vld [vmem:[#allocation48_spill] sm:$0xff] }
 0x8e6   :  { %v10819_v38 = vrot.slane %v21295_v29, 4  ;;  %v21296_v19 = vrot.slane %v21289_v61, 4 }
 0x8e7   :  { %v19869_v35 = vpop.permute.xlu1 %11199  ;;  %v10847_v36 = vsel %vm221_vm1, %v10827_v18, %v21292_v15  ;;  %v20684_v15 = vrot.slane %v19786_v17, 4  ;;  %v13765_v18 = vcombine.low %v11032_v62, %v11038_v2 }
 0x8e8   :  { %12353 = vmatpush2.bf16.msra.mxu0 %v13777_v58  ;;  %v19871_v39 = vpop.permute.xlu0 %11387  ;;  %v10823_v58 = vrot.slane %v21290_v21, 4  ;;  %v10835_v32 = vsel %vm221_vm1, %v10819_v38, %v20679_v11  ;;  %v21300_v38 = vrot.slane %v19465_v26, 4 }
 0x8e9   :  { %12354 = vmatprep.subr.bf16.mxu0 %v13772_v0  ;;  %v10633_v0 = vrot.slane %v19719_v42, 4 }
 0x8ea   :  { %v10841_v25 = vsel %vm221_vm1, %v10823_v58, %v21296_v19  ;;  %v10647_v11 = vsel %vm221_vm1, %v21300_v38, %v20684_v15  ;;  %v21311_v15 = vrot.slane %v19532_v13, 4 }
 0x8eb   :  { %v19887_v30 = vpop.permute.xlu1 %11003 }
 0x8ec   :  { %21293 = vst [vmem:[#allocation34_spill] sm:$0xff] %v19887_v30  ;;  %12355 = vmatpush2.bf16.msra.mxu0 %v13771_v16  ;;  %v19889_v31 = vpop.permute.xlu0 %11191  ;;  %v10848_v16 = vsel %vm520_vm5, %v21288_v46, %v10847_v36  ;;  %v21298_v46 = vld [vmem:[#allocation17_spill] sm:$0xff] }
 0x8ed   :  { %21294 = vst [vmem:[#allocation44_spill] sm:$0xff] %v19889_v31  ;;  %12356 = vmatprep.subr.bf16.mxu0 %v13766_v56  ;;  %v13760_v45 = vcombine.high %v10848_v16, %v10854_v48  ;;  %v10842_v56 = vsel %vm520_vm5, %v21290_v21, %v10841_v25  ;;  %v21299_v36 = vrot.slane %v21298_v46, 4  ;;  %v13759_v1 = vcombine.low %v10848_v16, %v10854_v48  ;;  %v21301_v25 = vld [vmem:[#allocation18_spill] sm:$0xff] }
 0x8ee   :  { %v21302_v2 = vrot.slane %v21301_v25, 4  ;;  %v21307_v48 = vrot.slane %v19747_v5, 4  ;;  %v21308_v16 = vrot.slane %v19590_v12, 4 }
 0x8ef   :  { %v19906_v61 = vpop.permute.xlu1 %11201  ;;  %v10653_v19 = vsel %vm221_vm1, %v21299_v36, %v10633_v0  ;;  %v21304_v36 = vrot.slane %v19620_v49, 4 }
 0x8f0   :  { %21297 = vst [vmem:[#allocation25_spill] sm:$0xff] %v19906_v61  ;;  %12357 = vmatpush2.bf16.msra.mxu0 %v13765_v18  ;;  %v10620_v58 = vpop.permute.xlu0 %10619  ;;  %v10836_v18 = vsel %vm520_vm5, %v21295_v29, %v10835_v32  ;;  %v21305_v61 = vld [vmem:[#allocation47_spill] sm:$0xff]  ;;  %v11633_v29 = vsel %vm221_vm1, %v21308_v16, %v21307_v48  ;;  %v10654_v48 = vsel %vm421_vm6, %v21298_v46, %v10653_v19 }
 0x8f1   :  { %v10637_v62 = vrot.slane %v10620_v58, 4  ;;  %12358 = vmatprep.subr.bf16.mxu0 %v13760_v45  ;;  %v13754_v10 = vcombine.high %v10836_v18, %v10842_v56  ;;  %v21306_v30 = vrot.slane %v21305_v61, 4  ;;  %v13753_v16 = vcombine.low %v10836_v18, %v10842_v56 }
 0x8f3   :  { %v10659_v45 = vsel %vm221_vm1, %v21302_v2, %v10637_v62  ;;  %v10641_v31 = vsel %vm221_vm1, %v21306_v30, %v21304_v36  ;;  %v19936_v32 = vpop.permute.xlu1 %10987  ;;  %v21310_v2 = vrot.slane %v19809_v37, 4 }
 0x8f4   :  { %21309 = vst [vmem:[#allocation40_spill] sm:$0xff] %v19936_v32  ;;  %12359 = vmatpush2.bf16.msra.mxu0 %v13759_v1  ;;  %v19938_v38 = vpop.permute.xlu0 %11599  ;;  %v10660_v14 = vsel %vm421_vm6, %v21301_v25, %v10659_v45  ;;  %v10648_v1 = vsel %vm421_vm6, %v19465_v26, %v10647_v11  ;;  %v19954_v25 = vcombine.low %v21312_v33, %v21312_v33  ;;  %v21313_v45 = vrot.slane %v19640_v44, 4 }
 0x8f5   :  { %v11627_v30 = vsel %vm221_vm1, %v21311_v15, %v21310_v2  ;;  %v20687_v36 = vrot.slane %v19938_v38, 4  ;;  %12360 = vmatprep.subr.bf16.mxu0 %v13754_v10  ;;  %v13749_v21 = vcombine.low %v10654_v48, %v10660_v14  ;;  %v13750_v32 = vcombine.high %v10654_v48, %v10660_v14  ;;  %v21316_v48 = vld [vmem:[#allocation29_spill] sm:$0xff] }
 0x8f6   :  { %v21314_v15 = vrot.slane %v19458_v3, 4  ;;  %v21315_v10 = vrot.slane %v19752_v51, 4  ;;  %v10642_v11 = vsel %vm421_vm6, %v21305_v61, %v10641_v31  ;;  %v11634_v26 = vsel %vm916_vm9, %v19590_v12, %v11633_v29  ;;  %v21317_v29 = vld [vmem:[#allocation28_spill] sm:$0xff] }
 0x8f7   :  { %12412 = vmatprep.subr.bf16.mxu1 %v13750_v32  ;;  %v19970_v33 = vpop.permute.xlu1 %11185  ;;  %v13744_v19 = vcombine.high %v10642_v11, %v10648_v1  ;;  %v11628_v14 = vsel %vm916_vm9, %v19532_v13, %v11627_v30  ;;  %v10661_v61 = vsel %vm221_vm1, %v10637_v62, %v10638_v6  ;;  %v10626_v32 = vrot.slane %v21317_v29, 4  ;;  %v21324_v29 = vld [vmem:[#allocation38_spill] sm:$0xff] }
 0x8f8   :  { %v11621_v2 = vsel %vm221_vm1, %v21314_v15, %v21313_v45  ;;  %v11639_v46 = vsel %vm221_vm1, %v21315_v10, %v20687_v36  ;;  %12361 = vmatpush2.bf16.msra.mxu0 %v13753_v16  ;;  %v19972_v56 = vpop.permute.xlu0 %11389  ;;  %v10634_v45 = vrot.slane %v21316_v48, 4  ;;  %12413 = vmatpush1.bf16.msra.mxu1 %v13749_v21  ;;  %v10437_v16 = vrot.slane %v19807_v34, 4  ;;  %v21318_v10 = vld [vmem:[#allocation54_spill] sm:$0xff] }
 0x8f9   :  { %v11640_v18 = vsel %vm916_vm9, %v19752_v51, %v11639_v46  ;;  %v10433_v15 = vrot.slane %v19832_v55, 4  ;;  %12414 = vmatprep.subr.bf16.mxu1 %v13744_v19  ;;  %v11622_v51 = vsel %vm916_vm9, %v19458_v3, %v11621_v2  ;;  %v10630_v46 = vrot.slane %v21318_v10, 4  ;;  %v21325_v10 = vld [vmem:[#allocation55_spill] sm:$0xff] }
 0x8fa   :  { %v13809_v31 = vcombine.low %v11634_v26, %v11640_v18  ;;  %v13810_v12 = vcombine.high %v11634_v26, %v11640_v18  ;;  %v10655_v13 = vsel %vm221_vm1, %v10633_v0, %v10634_v45  ;;  %v13743_v30 = vcombine.low %v10642_v11, %v10648_v1 }
 0x8fb   :  { %12363 = vmatmul.mubr.bf16.vlgmr.msra.gmra.mxu0 %v19954_v25  ;;  %v13804_v6 = vcombine.high %v11622_v51, %v11628_v14  ;;  %v10429_v62 = vrot.slane %v19663_v8, 4  ;;  %v10662_v21 = vsel %vm421_vm6, %v10620_v58, %v10661_v61  ;;  %v19990_v26 = vpop.permute.xlu1 %10807  ;;  %v21319_v18 = vmov 0  }
 0x8fc   :  { %12465 = vmatprep.subr.bf16.mxu0 %v13810_v12  ;;  %v10424_v19 = vpop.permute.xlu0 %10423  ;;  %12485 = vmatprep.mubr.bf16.mxu0 %v21319_v18  ;;  %v21320_v3 = vrot.slane %v19620_v49, 4  ;;  %v21321_v0 = vrot.slane %v19786_v17, 4  ;;  %v10656_v58 = vsel %vm421_vm6, %v19719_v42, %v10655_v13  ;;  %v21322_v48 = vrot.slane %v19546_v20, 4 }
 0x8fd   :  { %12466 = vmatpush1.bf16.msra.mxu0 %v13809_v31  ;;  %12415 = vmatpush1.bf16.msra.mxu1 %v13743_v30  ;;  %v10441_v11 = vrot.slane %v10424_v19, 4  ;;  %v21323_v61 = vrot.slane %v19472_v40, 4  ;;  %v13803_v12 = vcombine.low %v11622_v51, %v11628_v14  ;;  %v21326_v30 = vrot.slane %v19642_v59, 4 }
 0x8fe   :  { %v10643_v2 = vsel %vm221_vm1, %v21320_v3, %v10626_v32  ;;  %v10649_v1 = vsel %vm221_vm1, %v21321_v0, %v10630_v46  ;;  %12467 = vmatprep.subr.bf16.mxu0 %v13804_v6  ;;  %v10457_v45 = vsel %vm221_vm1, %v21322_v48, %v10437_v16  ;;  %v10438_v32 = vrot.slane %v21324_v29, 4 }
 0x8ff   :  { %v10451_v31 = vsel %vm221_vm1, %v21323_v61, %v10433_v15  ;;  %v10442_v3 = vrot.slane %v21325_v10, 4  ;;  %v13752_v46 = vcombine.high %v10656_v58, %v10662_v21  ;;  %v10463_v6 = vsel %vm221_vm1, %v21326_v30, %v10441_v11  ;;  %v20019_v14 = vpop.permute.xlu1 %11005 }
 0x900   :  { %v10644_v42 = vsel %vm421_vm6, %v19620_v49, %v10643_v2  ;;  %v21327_v13 = vrot.slane %v19411_v52, 4  ;;  %v10650_v48 = vsel %vm421_vm6, %v19786_v17, %v10649_v1  ;;  %v20021_v51 = vpop.permute.xlu0 %11209  ;;  %v10464_v61 = vsel %vm322_vm7, %v19642_v59, %v10463_v6  ;;  %v21330_v6 = vld [vmem:[#allocation51_spill] sm:$0xff] }
 0x901   :  { %12468 = vmatpush1.bf16.msra.mxu0 %v13803_v12  ;;  %v10241_v29 = vrot.slane %v19830_v60, 4  ;;  %v10465_v10 = vsel %vm221_vm1, %v10441_v11, %v10442_v3  ;;  %v10458_v49 = vsel %vm322_vm7, %v19546_v20, %v10457_v45  ;;  %v10452_v2 = vsel %vm322_vm7, %v19472_v40, %v10451_v31  ;;  %v21329_v31 = vld [vmem:[#allocation39_spill] sm:$0xff] }
 0x902   :  { %v10445_v0 = vsel %vm221_vm1, %v21327_v13, %v10429_v62  ;;  %12494 = vmatprep.subr.bf16.mxu0 %v13752_v46  ;;  %v10237_v17 = vrot.slane %v19852_v47, 4  ;;  %v13751_v1 = vcombine.low %v10656_v58, %v10662_v21  ;;  %v13737_v12 = vcombine.low %v10458_v49, %v10464_v61  ;;  %v21328_v13 = vld [vmem:[#allocation42_spill] sm:$0xff] }
 0x903   :  { %v13738_v30 = vcombine.high %v10458_v49, %v10464_v61  ;;  %v10434_v36 = vrot.slane %v21328_v13, 4  ;;  %v13746_v18 = vcombine.high %v10644_v42, %v10650_v48  ;;  %v10459_v59 = vsel %vm221_vm1, %v10437_v16, %v10438_v32  ;;  %v20040_v45 = vpop.permute.xlu1 %10791 }
 0x904   :  { %13814 = vmatmul.mubr.msk.bf16.vlgmr.msra.gmra.mxu0 %vm3958_vm13, %v19828_v22  ;;  %v10446_v11 = vsel %vm322_vm7, %v19411_v52, %v10445_v0  ;;  %v10233_v20 = vrot.slane %v19685_v28, 4  ;;  %v10466_v40 = vsel %vm322_vm7, %v10424_v19, %v10465_v10  ;;  %v10228_v21 = vpop.permute.xlu0 %10227  ;;  %v10430_v3 = vrot.slane %v21329_v31, 4 }
 0x905   :  { %12416 = vmatprep.subr.bf16.mxu1 %v13738_v30  ;;  %12495 = vmatpush1.bf16.msra.mxu0 %v13751_v1  ;;  %v13732_v58 = vcombine.high %v10446_v11, %v10452_v2  ;;  %v13745_v46 = vcombine.low %v10644_v42, %v10650_v48  ;;  %v10453_v16 = vsel %vm221_vm1, %v10433_v15, %v10434_v36  ;;  %v10245_v32 = vrot.slane %v10228_v21, 4 }
 0x906   :  { %12417 = vmatpush1.bf16.msra.mxu1 %v13737_v12  ;;  %12496 = vmatprep.subr.bf16.mxu0 %v13746_v18  ;;  %v10246_v52 = vrot.slane %v21330_v6, 4  ;;  %v10460_v0 = vsel %vm322_vm7, %v19807_v34, %v10459_v59  ;;  %v21331_v19 = vrot.slane %v19554_v57, 4  ;;  %v21332_v10 = vrot.slane %v19488_v43, 4 }
 0x907   :  { %12418 = vmatprep.subr.bf16.mxu1 %v13732_v58  ;;  %12526 = vmatprep.mubr.bf16.mxu0 %v21284_v7  ;;  %v10447_v36 = vsel %vm221_vm1, %v10429_v62, %v10430_v3  ;;  %v13740_v15 = vcombine.high %v10460_v0, %v10466_v40  ;;  %v21333_v18 = vrot.slane %v19665_v53, 4  ;;  %v13731_v48 = vcombine.low %v10446_v11, %v10452_v2  ;;  %v20063_v30 = vpop.permute.xlu1 %10989  ;;  %v21335_v62 = vld [vmem:[#allocation53_spill] sm:$0xff] }
 0x908   :  { %v10261_v61 = vsel %vm221_vm1, %v21331_v19, %v10241_v29  ;;  %v10255_v49 = vsel %vm221_vm1, %v21332_v10, %v10237_v17  ;;  %v21334_v34 = vrot.slane %v19420_v9, 4  ;;  %v10454_v12 = vsel %vm322_vm7, %v19832_v55, %v10453_v16  ;;  %v20065_v13 = vpop.permute.xlu0 %10995  ;;  %v21336_v16 = vld [vmem:[#allocation19_spill] sm:$0xff] }
 0x909   :  { %v10267_v42 = vsel %vm221_vm1, %v21333_v18, %v10245_v32  ;;  %12497 = vmatpush1.bf16.msra.mxu0 %v13745_v46  ;;  %v10242_v59 = vrot.slane %v21335_v62, 4  ;;  %v10269_v58 = vsel %vm221_vm1, %v10245_v32, %v10246_v52  ;;  %v10262_v2 = vsel %vm223_vm8, %v19554_v57, %v10261_v61  ;;  %v21340_v62 = vld [vmem:[#allocation22_spill] sm:$0xff] }
 0x90a   :  { %v10249_v1 = vsel %vm221_vm1, %v21334_v34, %v10233_v20  ;;  %v10268_v7 = vsel %vm223_vm8, %v19665_v53, %v10267_v42  ;;  %12419 = vmatpush1.bf16.msra.mxu1 %v13731_v48  ;;  %12498 = vmatprep.subr.bf16.mxu0 %v13740_v15  ;;  %v10256_v55 = vsel %vm223_vm8, %v19488_v43, %v10255_v49  ;;  %v10238_v53 = vrot.slane %v21336_v16, 4  ;;  %v21344_v16 = vld [vmem:[#allocation27_spill] sm:$0xff] }
 0x90b   :  { %v10448_v11 = vsel %vm322_vm7, %v19663_v8, %v10447_v36  ;;  %v13739_v31 = vcombine.low %v10460_v0, %v10466_v40  ;;  %v13725_v3 = vcombine.low %v10262_v2, %v10268_v7  ;;  %v13726_v46 = vcombine.high %v10262_v2, %v10268_v7  ;;  %v20082_v57 = vpop.permute.xlu1 %10809  ;;  %v21337_v40 = vld [vmem:[#allocation5_spill] sm:$0xff]  ;;  %v21339_v7 = vld [vmem:[#allocation12_spill] sm:$0xff] }
 0x90c   :  { %v10263_v6 = vsel %vm221_vm1, %v10241_v29, %v10242_v59  ;;  %v13734_v19 = vcombine.high %v10448_v11, %v10454_v12  ;;  %v10250_v32 = vsel %vm223_vm8, %v19420_v9, %v10249_v1  ;;  %v10270_v52 = vsel %vm223_vm8, %v10228_v21, %v10269_v58  ;;  %v20084_v43 = vpop.permute.xlu0 %11193 }
 0x90d   :  { %12420 = vmatprep.subr.bf16.mxu1 %v13726_v46  ;;  %12499 = vmatpush1.bf16.msra.mxu0 %v13739_v31  ;;  %v13720_v8 = vcombine.high %v10250_v32, %v10256_v55  ;;  %v10234_v0 = vrot.slane %v21337_v40, 4  ;;  %v10257_v61 = vsel %vm221_vm1, %v10237_v17, %v10238_v53  ;;  %v10264_v29 = vsel %vm223_vm8, %v19830_v60, %v10263_v6  ;;  %v21338_v17 = vld [vmem:[#allocation7_spill] sm:$0xff] }
 0x90e   :  { %12421 = vmatpush1.bf16.msra.mxu1 %v13725_v3  ;;  %12500 = vmatprep.subr.bf16.mxu0 %v13734_v19  ;;  %v13733_v10 = vcombine.low %v10448_v11, %v10454_v12  ;;  %v13728_v21 = vcombine.high %v10264_v29, %v10270_v52  ;;  %v13719_v49 = vcombine.low %v10250_v32, %v10256_v55  ;;  %v11417_v36 = vrot.slane %v19850_v63, 4  ;;  %v21345_v53 = vld [vmem:[#allocation35_spill] sm:$0xff] }
 0x90f   :  { %12422 = vmatprep.subr.bf16.mxu1 %v13720_v8  ;;  %v10251_v9 = vsel %vm221_vm1, %v10233_v20, %v10234_v0  ;;  %v10258_v15 = vsel %vm223_vm8, %v19852_v47, %v10257_v61  ;;  %v11594_v18 = vpop.permute.xlu1 %11593  ;;  %v11418_v48 = vrot.slane %v21338_v17, 4  ;;  %v11409_v20 = vrot.slane %v19702_v23, 4  ;;  %v21350_v0 = vld [vmem:[#allocation52_spill] sm:$0xff] }
 0x910   :  { %v20094_v42 = vpop.permute.xlu0 %11013  ;;  %v11614_v34 = vrot.slane %v11594_v18, 4  ;;  %v10252_v60 = vsel %vm223_vm8, %v19685_v28, %v10251_v9  ;;  %v11413_v1 = vrot.slane %v19871_v39, 4  ;;  %v13727_v12 = vcombine.low %v10264_v29, %v10270_v52 }
 0x911   :  { %12501 = vmatpush1.bf16.msra.mxu0 %v13733_v10  ;;  %v21341_v47 = vpack.c.bf16 %v21339_v7, %v21340_v62  ;;  %v13722_v59 = vcombine.high %v10252_v60, %v10258_v15  ;;  %v21342_v58 = vrot.slane %v19747_v5, 4  ;;  %v11439_v55 = vsel %vm221_vm1, %v11417_v36, %v11418_v48  ;;  %v21356_v62 = vld [vmem:[#allocation46_spill] sm:$0xff] }
 0x912   :  { %12423 = vmatpush1.bf16.msra.mxu1 %v13719_v49  ;;  %12502 = vmatprep.subr.bf16.mxu0 %v13728_v21  ;;  %v11422_v31 = vrot.slane %v19622_v41, 4  ;;  %v21343_v3 = vrot.slane %v19562_v4, 4  ;;  %v21346_v6 = vpack.c.bf16 %v21344_v16, %v21345_v53  ;;  %v21347_v32 = vrot.slane %v19426_v27, 4  ;;  %v21349_v41 = vld [vmem:[#allocation43_spill] sm:$0xff] }
 0x913   :  { %12424 = vmatprep.subr.bf16.mxu1 %v21341_v47  ;;  %v11635_v2 = vsel %vm221_vm1, %v21342_v58, %v11614_v34  ;;  %v13721_v8 = vcombine.low %v10252_v60, %v10258_v15  ;;  %v21351_v61 = vpack.c.bf16 %v21349_v41, %v21350_v0  ;;  %v11410_v29 = vrot.slane %v19781_v50, 4  ;;  %v21353_v60 = vld [vmem:[#allocation13_spill] sm:$0xff]  ;;  %v21357_v47 = vld [vmem:[#allocation8_spill] sm:$0xff]  ;;  %v21362_v53 = vld [vmem:[#allocation11_spill] sm:$0xff] }
 0x914   :  { %v11404_v11 = vpop.permute.xlu0 %11403  ;;  %v20110_v28 = vsel %vm916_vm9, %v19747_v5, %v11635_v2  ;;  %v11437_v46 = vsel %vm221_vm1, %v21343_v3, %v11417_v36  ;;  %v11425_v52 = vsel %vm221_vm1, %v21347_v32, %v11409_v20  ;;  %v21348_v5 = vrot.slane %v19501_v24, 4  ;;  %v21359_v2 = vld [vmem:[#allocation58_spill] sm:$0xff]  ;;  %v21367_v0 = vld [vmem:[#allocation37_spill] sm:$0xff] }
 0x915   :  { %12503 = vmatpush1.bf16.msra.mxu0 %v13727_v12  ;;  %v11421_v19 = vrot.slane %v11404_v11, 4  ;;  %v11440_v10 = vsel %vm817_vm2, %v19850_v63, %v11439_v55  ;;  %v21352_v9 = vrot.slane %v19687_v54, 4  ;;  %v11221_v36 = vrot.slane %v19869_v35, 4  ;;  %v21354_v12 = vld [vmem:[#allocation50_spill] sm:$0xff]  ;;  %v21360_v55 = vld [vmem:[#allocation44_spill] sm:$0xff] }
 0x916   :  { %12425 = vmatpush1.bf16.msra.mxu1 %v21346_v6  ;;  %12504 = vmatprep.subr.bf16.mxu0 %v13722_v59  ;;  %v11431_v40 = vsel %vm221_vm1, %v21348_v5, %v11413_v1  ;;  %v11438_v17 = vsel %vm817_vm2, %v19562_v4, %v11437_v46  ;;  %v11414_v63 = vrot.slane %v19972_v56, 4  ;;  %v21355_v7 = vpack.c.bf16 %v21353_v60, %v21354_v12  ;;  %v21361_v46 = vld [vmem:[#allocation34_spill] sm:$0xff]  ;;  %v21363_v6 = vld [vmem:[#allocation45_spill] sm:$0xff] }
 0x917   :  { %12426 = vmatprep.subr.bf16.mxu1 %v21351_v61  ;;  %v11443_v21 = vsel %vm221_vm1, %v21352_v9, %v11421_v19  ;;  %v11445_v49 = vsel %vm221_vm1, %v11421_v19, %v11422_v31  ;;  %v21358_v59 = vpack.c.bf16 %v21356_v62, %v21357_v47  ;;  %v11432_v58 = vsel %vm817_vm2, %v19501_v24, %v11431_v40  ;;  %v21368_v61 = vld [vmem:[#allocation15_spill] sm:$0xff]  ;;  %v21372_v9 = vld [vmem:[#allocation33_spill] sm:$0xff]  ;;  %v21377_v47 = vld [vmem:[#allocation6_spill] sm:$0xff] }
 0x918   :  { %v11446_v15 = vsel %vm817_vm2, %v11404_v11, %v11445_v49  ;;  %v20137_v18 = vpop.permute.xlu0 %10799  ;;  %v11444_v50 = vsel %vm817_vm2, %v19687_v54, %v11443_v21  ;;  %v11213_v4 = vrot.slane %v21359_v2, 4  ;;  %v11217_v11 = vrot.slane %v21360_v55, 4  ;;  %v21375_v60 = vld [vmem:[#allocation57_spill] sm:$0xff] }
 0x919   :  { %12505 = vmatpush1.bf16.msra.mxu0 %v13721_v8  ;;  %v13799_v48 = vcombine.low %v11440_v10, %v11446_v15  ;;  %v13800_v34 = vcombine.high %v11440_v10, %v11446_v15  ;;  %v13797_v54 = vcombine.low %v11438_v17, %v11444_v50  ;;  %v13798_v31 = vcombine.high %v11438_v17, %v11444_v50  ;;  %v21365_v8 = vld [vmem:[#allocation20_spill] sm:$0xff]  ;;  %v21374_v15 = vld [vmem:[#allocation25_spill] sm:$0xff] }
 0x91a   :  { %12427 = vmatpush1.bf16.msra.mxu1 %v21355_v7  ;;  %12506 = vmatprep.subr.bf16.mxu0 %v21358_v59  ;;  %v11427_v56 = vsel %vm221_vm1, %v11409_v20, %v11410_v29  ;;  %v11426_v3 = vsel %vm817_vm2, %v19426_v27, %v11425_v52  ;;  %v11025_v16 = vrot.slane %v21361_v46, 4  ;;  %v21364_v19 = vpack.c.bf16 %v21362_v53, %v21363_v6  ;;  %v21370_v52 = vld [vmem:[#allocation49_spill] sm:$0xff]  ;;  %v21380_v53 = vld [vmem:[#allocation26_spill] sm:$0xff] }
 0x91b   :  { %12428 = vmatprep.subr.bf16.mxu1 %v13798_v31  ;;  %v13792_v24 = vcombine.high %v11426_v3, %v11432_v58  ;;  %v21366_v5 = vrot.slane %v21365_v8, 4  ;;  %v11433_v41 = vsel %vm221_vm1, %v11413_v1, %v11414_v63  ;;  %v21369_v27 = vpack.c.bf16 %v21367_v0, %v21368_v61  ;;  %v21379_v31 = vld [vmem:[#allocation24_spill] sm:$0xff] }
 0x91c   :  { %v11208_v32 = vpop.permute.xlu0 %11207  ;;  %v21371_v29 = vrot.slane %v21370_v52, 4  ;;  %v21373_v21 = vrot.slane %v21372_v9, 4  ;;  %v11222_v17 = vrot.slane %v21374_v15, 4  ;;  %v11428_v1 = vsel %vm817_vm2, %v19702_v23, %v11427_v56  ;;  %v21382_v0 = vld [vmem:[#allocation40_spill] sm:$0xff] }
 0x91d   :  { %12507 = vmatpush1.bf16.msra.mxu0 %v21364_v19  ;;  %v11241_v40 = vsel %vm221_vm1, %v21366_v5, %v11221_v36  ;;  %v11225_v20 = vrot.slane %v11208_v32, 4  ;;  %v11214_v50 = vrot.slane %v19970_v33, 4  ;;  %v11226_v63 = vrot.slane %v20021_v51, 4 }
 0x91e   :  { %12429 = vmatpush2.bf16.msra.mxu1 %v13797_v54  ;;  %12508 = vmatprep.subr.bf16.mxu0 %v21369_v27  ;;  %v11229_v10 = vsel %vm221_vm1, %v21371_v29, %v11213_v4  ;;  %v11235_v49 = vsel %vm221_vm1, %v21373_v21, %v11217_v11  ;;  %v21376_v12 = vrot.slane %v21375_v60, 4  ;;  %v13791_v62 = vcombine.low %v11426_v3, %v11432_v58 }
 0x91f   :  { %12430 = vmatprep.subr.bf16.mxu1 %v13792_v24  ;;  %v21378_v59 = vrot.slane %v21377_v47, 4  ;;  %v21381_v6 = vpack.c.bf16 %v21379_v31, %v21380_v53  ;;  %v11242_v23 = vsel %vm718_vm3, %v21365_v8, %v11241_v40  ;;  %v11434_v51 = vsel %vm817_vm2, %v19871_v39, %v11433_v41 }
 0x920   :  { %v11247_v7 = vsel %vm221_vm1, %v21376_v12, %v11225_v20  ;;  %v20188_v19 = vpop.permute.xlu0 %10997  ;;  %v11218_v58 = vrot.slane %v20084_v43, 4  ;;  %v11249_v56 = vsel %vm221_vm1, %v11225_v20, %v11226_v63  ;;  %v11236_v24 = vsel %vm718_vm3, %v21372_v9, %v11235_v49  ;;  %v21385_v49 = vld [vmem:[#allocation56_spill] sm:$0xff] }
 0x921   :  { %v11045_v54 = vsel %vm221_vm1, %v21378_v59, %v11025_v16  ;;  %12509 = vmatpush1.bf16.msra.mxu0 %v21381_v6  ;;  %v11248_v33 = vsel %vm718_vm3, %v21375_v60, %v11247_v7  ;;  %v11243_v5 = vsel %vm221_vm1, %v11221_v36, %v11222_v17  ;;  %v11017_v8 = vrot.slane %v21382_v0, 4  ;;  %v21387_v60 = vld [vmem:[#allocation59_spill] sm:$0xff] }
 0x922   :  { %12431 = vmatpush2.bf16.msra.mxu1 %v13791_v62  ;;  %12510 = vmatprep.subr.bf16.mxu0 %v13800_v34  ;;  %v13785_v3 = vcombine.low %v11242_v23, %v11248_v33  ;;  %v11021_v40 = vrot.slane %v20065_v13, 4  ;;  %v13786_v61 = vcombine.high %v11242_v23, %v11248_v33  ;;  %v11231_v27 = vsel %vm221_vm1, %v11213_v4, %v11214_v50 }
 0x923   :  { %v11230_v39 = vsel %vm718_vm3, %v21370_v52, %v11229_v10  ;;  %v13794_v43 = vcombine.high %v11428_v1, %v11434_v51  ;;  %v11026_v41 = vrot.slane %v20019_v14, 4  ;;  %v11250_v34 = vsel %vm718_vm3, %v11208_v32, %v11249_v56  ;;  %v21383_v10 = vld [vmem:[#allocation31_spill] sm:$0xff] }
 0x924   :  { %12432 = vmatprep.subr.bf16.mxu1 %v13786_v61  ;;  %v11012_v20 = vpop.permute.xlu0 %11011  ;;  %v13780_v29 = vcombine.high %v11230_v39, %v11236_v24  ;;  %v11046_v36 = vsel %vm619_vm4, %v21377_v47, %v11045_v54  ;;  %v11237_v9 = vsel %vm221_vm1, %v11217_v11, %v11218_v58  ;;  %v11244_v4 = vsel %vm718_vm3, %v19869_v35, %v11243_v5  ;;  %v21389_v58 = vld [vmem:[#allocation30_spill] sm:$0xff] }
 0x925   :  { %12511 = vmatpush2.bf16.msra.mxu0 %v13799_v48  ;;  %v11029_v21 = vrot.slane %v11012_v20, 4  ;;  %v13779_v52 = vcombine.low %v11230_v39, %v11236_v24  ;;  %v21384_v14 = vrot.slane %v21383_v10, 4  ;;  %v21386_v48 = vrot.slane %v21385_v49, 4 }
 0x926   :  { %12433 = vmatpush2.bf16.msra.mxu1 %v13785_v3  ;;  %12512 = vmatprep.subr.bf16.mxu0 %v13794_v43  ;;  %v13793_v17 = vcombine.low %v11428_v1, %v11434_v51  ;;  %v11232_v11 = vsel %vm718_vm3, %v21359_v2, %v11231_v27  ;;  %v10829_v50 = vrot.slane %v19990_v26, 4  ;;  %v11030_v35 = vrot.slane %v20094_v42, 4  ;;  %v10794_v3 = vpop.permute.xlu1 %10793 }
 0x927   :  { %v11033_v32 = vsel %vm221_vm1, %v21384_v14, %v11017_v8  ;;  %v11039_v15 = vsel %vm221_vm1, %v21386_v48, %v11021_v40  ;;  %12434 = vmatprep.subr.bf16.mxu1 %v13780_v29  ;;  %v13788_v63 = vcombine.high %v11244_v4, %v11250_v34  ;;  %v21388_v12 = vrot.slane %v21387_v60, 4 }
 0x928   :  { %v11047_v62 = vsel %vm221_vm1, %v11025_v16, %v11026_v41  ;;  %v10821_v47 = vrot.slane %v20040_v45, 4  ;;  %v10818_v59 = vpop.permute.xlu0 %10817  ;;  %v11238_v2 = vsel %vm718_vm3, %v21360_v55, %v11237_v9  ;;  %v11022_v54 = vrot.slane %v20188_v19, 4 }
 0x929   :  { %v11051_v7 = vsel %vm221_vm1, %v21388_v12, %v11029_v21  ;;  %12513 = vmatpush2.bf16.msra.mxu0 %v13793_v17  ;;  %v11053_v42 = vsel %vm221_vm1, %v11029_v21, %v11030_v35  ;;  %v11040_v16 = vsel %vm619_vm4, %v21385_v49, %v11039_v15  ;;  %v11018_v53 = vrot.slane %v20063_v30, 4  ;;  %v21391_v30 = vld [vmem:[#allocation23_spill] sm:$0xff] }
 0x92a   :  { %v11052_v1 = vsel %vm619_vm4, %v21387_v60, %v11051_v7  ;;  %12435 = vmatpush2.bf16.msra.mxu1 %v13779_v52  ;;  %12514 = vmatprep.subr.bf16.mxu0 %v13788_v63  ;;  %v10825_v6 = vrot.slane %v20137_v18, 4  ;;  %v13787_v23 = vcombine.low %v11244_v4, %v11250_v34  ;;  %v11034_v51 = vsel %vm619_vm4, %v21383_v10, %v11033_v32  ;;  %v21395_v10 = vld [vmem:[#allocation60_spill] sm:$0xff]  ;;  %v11578_v63 = vpop.permute.xlu1 %11577 }
 0x92b   :  { %v13773_v31 = vcombine.low %v11046_v36, %v11052_v1  ;;  %v13774_v33 = vcombine.high %v11046_v36, %v11052_v1  ;;  %v13782_v55 = vcombine.high %v11232_v11, %v11238_v2  ;;  %v21390_v19 = vrot.slane %v21389_v58, 4  ;;  %v21393_v36 = vld [vmem:[#allocation41_spill] sm:$0xff] }
 0x92c   :  { %v11054_v24 = vsel %vm619_vm4, %v11012_v20, %v11053_v42  ;;  %v10816_v5 = vpop.permute.xlu0 %10815  ;;  %v13768_v61 = vcombine.high %v11034_v51, %v11040_v16  ;;  %v21392_v27 = vrot.slane %v21391_v30, 4  ;;  %v11041_v43 = vsel %vm221_vm1, %v11021_v40, %v11022_v54 }
 0x92d   :  { %v10849_v56 = vsel %vm221_vm1, %v21390_v19, %v10829_v50  ;;  %12436 = vmatprep.subr.bf16.mxu1 %v13774_v33  ;;  %12515 = vmatpush2.bf16.msra.mxu0 %v13787_v23  ;;  %v11048_v41 = vsel %vm619_vm4, %v21361_v46, %v11047_v62  ;;  %v10833_v34 = vrot.slane %v10816_v5, 4  ;;  %v11035_v20 = vsel %vm221_vm1, %v11017_v8, %v11018_v53 }
 0x92e   :  { %v10837_v39 = vsel %vm221_vm1, %v21392_v27, %v10821_v47  ;;  %12437 = vmatpush2.bf16.msra.mxu1 %v13773_v31  ;;  %12516 = vmatprep.subr.bf16.mxu0 %v13782_v55  ;;  %v10830_v29 = vrot.slane %v20082_v57, 4  ;;  %v21394_v9 = vrot.slane %v21393_v36, 4  ;;  %v13781_v21 = vcombine.low %v11232_v11, %v11238_v2 }
 0x92f   :  { %12438 = vmatprep.subr.bf16.mxu1 %v13768_v61  ;;  %v13776_v52 = vcombine.high %v11048_v41, %v11054_v24  ;;  %v10834_v40 = vrot.slane %v10818_v59, 4  ;;  %v21396_v14 = vrot.slane %v21395_v10, 4  ;;  %v13767_v32 = vcombine.low %v11034_v51, %v11040_v16 }
 0x930   :  { %v10843_v4 = vsel %vm221_vm1, %v21394_v9, %v10825_v6  ;;  %v11602_v49 = vpop.permute.xlu0 %11601  ;;  %v10850_v57 = vsel %vm520_vm5, %v21389_v58, %v10849_v56  ;;  %v11042_v48 = vsel %vm619_vm4, %v20065_v13, %v11041_v43  ;;  %v13775_v60 = vcombine.low %v11048_v41, %v11054_v24 }
 0x931   :  { %v10855_v46 = vsel %vm221_vm1, %v21396_v14, %v10833_v34  ;;  %12517 = vmatpush2.bf16.msra.mxu0 %v13781_v21  ;;  %v10857_v15 = vsel %vm221_vm1, %v10833_v34, %v10834_v40  ;;  %v11618_v17 = vrot.slane %v11602_v49, 4  ;;  %v10844_v35 = vsel %vm520_vm5, %v21393_v36, %v10843_v4  ;;  %v12580_v21 = vpop.permute.xlu1 %12579 }
 0x932   :  { %v10856_v8 = vsel %vm520_vm5, %v21395_v10, %v10855_v46  ;;  %12439 = vmatpush2.bf16.msra.mxu1 %v13767_v32  ;;  %12518 = vmatprep.subr.bf16.mxu0 %v13776_v52  ;;  %v10838_v7 = vsel %vm520_vm5, %v21391_v30, %v10837_v39  ;;  %v11036_v62 = vsel %vm619_vm4, %v21382_v0, %v11035_v20  ;;  %v10822_v59 = vrot.slane %v10794_v3, 4 }
 0x933   :  { %v13761_v11 = vcombine.low %v10850_v57, %v10856_v8  ;;  %v13762_v12 = vcombine.high %v10850_v57, %v10856_v8  ;;  %v10851_v13 = vsel %vm221_vm1, %v10829_v50, %v10830_v29  ;;  %v21397_v1 = vrot.slane %v19938_v38, 4 }
 0x934   :  { %v13770_v54 = vcombine.high %v11036_v62, %v11042_v48  ;;  %v10858_v42 = vsel %vm520_vm5, %v10816_v5, %v10857_v15  ;;  %v10802_v31 = vpop.permute.xlu0 %10801  ;;  %v13756_v16 = vcombine.high %v10838_v7, %v10844_v35  ;;  %v11606_v23 = vrot.slane %v11578_v63, 4 }
 0x935   :  { %v11641_v2 = vsel %vm221_vm1, %v21397_v1, %v11618_v17  ;;  %12440 = vmatprep.subr.bf16.mxu1 %v13762_v12  ;;  %12519 = vmatpush2.bf16.msra.mxu0 %v13775_v60  ;;  %v10826_v0 = vrot.slane %v10802_v31, 4  ;;  %v10852_v51 = vsel %vm520_vm5, %v19990_v26, %v10851_v13  ;;  %v13769_v55 = vcombine.low %v11036_v62, %v11042_v48 }
 0x936   :  { %v11642_v53 = vsel %vm916_vm9, %v19938_v38, %v11641_v2  ;;  %12441 = vmatpush2.bf16.msra.mxu1 %v13761_v11  ;;  %12520 = vmatprep.subr.bf16.mxu0 %v13770_v54  ;;  %v10839_v58 = vsel %vm221_vm1, %v10821_v47, %v10822_v59  ;;  %v13764_v19 = vcombine.high %v10852_v51, %v10858_v42  ;;  %v21398_v24 = vrot.slane %v19640_v44, 4 }
 0x937   :  { %v13811_v50 = vcombine.low %v20110_v28, %v11642_v53  ;;  %v13812_v33 = vcombine.high %v20110_v28, %v11642_v53  ;;  %12442 = vmatprep.subr.bf16.mxu1 %v13756_v16  ;;  %v10845_v38 = vsel %vm221_vm1, %v10825_v6, %v10826_v0  ;;  %v13755_v56 = vcombine.low %v10838_v7, %v10844_v35 }
 0x938   :  { %v11586_v3 = vpop.permute.xlu0 %11585  ;;  %v10846_v28 = vsel %vm520_vm5, %v20137_v18, %v10845_v38  ;;  %v11623_v26 = vsel %vm221_vm1, %v21398_v24, %v11606_v23  ;;  %v13763_v61 = vcombine.low %v10852_v51, %v10858_v42  ;;  %v10840_v47 = vsel %vm520_vm5, %v20040_v45, %v10839_v58 }
 0x939   :  { %12521 = vmatpush2.bf16.msra.mxu0 %v13769_v55  ;;  %v11610_v5 = vrot.slane %v11586_v3, 4  ;;  %v21399_v6 = vrot.slane %v19809_v37, 4  ;;  %v13758_v27 = vcombine.high %v10840_v47, %v10846_v28  ;;  %v11624_v18 = vsel %vm916_vm9, %v19640_v44, %v11623_v26 }
 0x93a   :  { %12443 = vmatpush2.bf16.msra.mxu1 %v13755_v56  ;;  %12522 = vmatprep.subr.bf16.mxu0 %v13764_v19  ;;  %v13757_v34 = vcombine.low %v10840_v47, %v10846_v28  ;;  %v21400_v45 = vmov 0   ;;  %v14560_v11 = vmov 1966171168  }
 0x93b   :  { %12547 = vmatprep.subr.bf16.mxu1 %v13812_v33  ;;  %v11629_v30 = vsel %vm221_vm1, %v21399_v6, %v11610_v5  ;;  %v12602_v35 = vunpack.c.l.s4 %v14560_v11 }
 0x93c   :  { %v11630_v39 = vsel %vm916_vm9, %v19809_v37, %v11629_v30  ;;  %v12582_v37 = vlaneseq }
 0x93d   :  { %12445 = vmatmul.mubr.bf16.vlgmr.msra.gmra.mxu1 %v19954_v25  ;;  %12523 = vmatpush2.bf16.msra.mxu0 %v13763_v61  ;;  %v13805_v43 = vcombine.low %v11624_v18, %v11630_v39  ;;  %v13806_v41 = vcombine.high %v11624_v18, %v11630_v39  ;;  %v12603_v60 = vunpack.c.0.s8 %v12602_v35 }
 0x93e   :  { %12548 = vmatpush1.bf16.msra.mxu1 %v13811_v50  ;;  %12524 = vmatprep.subr.bf16.mxu0 %v13758_v27  ;;  %v12583_v9 = vshrl.u32 %v12582_v37, 7  ;;  %vm12641_vm1 = vcmp.lt.s32.totalorder %v12582_v37, 768 }
 0x93f   :  { %12567 = vmatprep.mubr.bf16.mxu1 %v21400_v45  ;;  %12549 = vmatprep.subr.bf16.mxu1 %v13806_v41 }
 0x940   :  { %v12584_v4 = vsub.s32 0, %v12583_v9  ;;  %v12606_v59 = vsub.s32 %v12603_v60, %v12583_v9 }
 0x941   :  { %12525 = vmatpush2.bf16.msra.mxu0 %v13757_v34 }
 0x942   :  { %12550 = vmatpush1.bf16.msra.mxu1 %v13805_v43  ;;  %v12585_v14 = vrot.slane %v12580_v21, %v12584_v4 }
 0x944   :  { %12527 = vmatmul.mubr.bf16.vlgmr.msra.gmra.mxu0 %v19954_v25 }
 0x945   :  { %13815 = vmatmul.mubr.msk.bf16.vlgmr.msra.gmra.mxu1 %vm3958_vm13, %v19828_v22 }
 0x9a3   :  { %v12405_v20 = vpop.f32.mrf.mxu1 }
 0x9a5   :  { %v12407_v44 = vpop.f32.mrf.mxu1 }
 0x9a7   :  { %v12409_v29 = vpop.f32.mrf.mxu1 }
 0x9a9   :  { %v12410_v36 = vpop.f32.mrf.mxu1 }
 0x9bb   :  { %v12364_v52 = vpop.f32.mrf.mxu0 }
 0x9bc   :  { %v12406_v40 = vadd.f32 %v12405_v20, %v12364_v52 }
 0x9bd   :  { %v12366_v10 = vpop.f32.mrf.mxu0 }
 0x9be   :  { %v12408_v46 = vadd.f32 %v12407_v44, %v12366_v10  ;;  %v12586_v49 = vadd.f32 %v12585_v14, %v12406_v40 }
 0x9bf   :  { %v12368_v32 = vpop.f32.mrf.mxu0 }
 0x9c0   :  { %v12587_v57 = vadd.f32 %v12585_v14, %v12408_v46 }
 0x9c1   :  { %v12369_v25 = vpop.f32.mrf.mxu0 }
 0x9c2   :  { %v12598_v8 = vcombine.low %v12586_v49, %v12587_v57 }
 0x9c4   :  { %v12487_v48 = vpop.f32.mrf.mxu0  ;;  %v12607_v53 = vrot.slane %v12598_v8, %v12606_v59 }
 0x9c6   :  { %v12489_v22 = vpop.f32.mrf.mxu0 }
 0x9c8   :  { %v12491_v15 = vpop.f32.mrf.mxu0 }
 0x9ca   :  { %v12492_v17 = vpop.f32.mrf.mxu0 }
 0x9fd   :  { %v12446_v63 = vpop.f32.mrf.mxu1 }
 0x9fe   :  { %v12488_v12 = vadd.f32 %v12487_v48, %v12446_v63 }
 0x9ff   :  { %v12448_v7 = vpop.f32.mrf.mxu1 }
 0xa00   :  { %v12490_v62 = vadd.f32 %v12489_v22, %v12448_v7  ;;  %v12588_v1 = vadd.f32 %v12585_v14, %v12488_v12 }
 0xa01   :  { %v12450_v13 = vpop.f32.mrf.mxu1 }
 0xa02   :  { %v12589_v2 = vadd.f32 %v12585_v14, %v12490_v62 }
 0xa03   :  { %v12451_v54 = vpop.f32.mrf.mxu1 }
 0xa04   :  { %v12599_v42 = vcombine.low %v12588_v1, %v12589_v2  ;;  %v12528_v31 = vpop.f32.mrf.mxu0 }
 0xa05   :  { %v12569_v16 = vpop.f32.mrf.mxu1 }
 0xa06   :  { %v12614_v23 = vrot.slane %v12599_v42, %v12606_v59  ;;  %v12570_v0 = vadd.f32 %v12569_v16, %v12528_v31  ;;  %v12530_v50 = vpop.f32.mrf.mxu0 }
 0xa07   :  { %v12571_v33 = vpop.f32.mrf.mxu1 }
 0xa08   :  { %v12622_v51 = vcombine.low %v12607_v53, %v12614_v23  ;;  %v12572_v55 = vadd.f32 %v12571_v33, %v12530_v50  ;;  %v12532_v58 = vpop.f32.mrf.mxu0  ;;  %v12590_v38 = vadd.f32 %v12585_v14, %v12570_v0 }
 0xa09   :  { %v12573_v19 = vpop.f32.mrf.mxu1 }
 0xa0a   :  { %v12591_v56 = vadd.f32 %v12585_v14, %v12572_v55  ;;  %v12533_v3 = vpop.f32.mrf.mxu0  ;;  %v12629_v5 = vrot.slane %v12622_v51, %v12606_v59 }
 0xa0b   :  { %v12574_v28 = vpop.f32.mrf.mxu1 }
 0xa0c   :  { %v12600_v24 = vcombine.low %v12590_v38, %v12591_v56 }
 0xa0e   :  { %v12621_v26 = vrot.slane %v12600_v24, %v12606_v59 }
 0xa10   :  { %v12636_v61 = vrot.slane %v12621_v26, %v12606_v59 }
 0xa12   :  { %v12637_v47 = vcombine.low %v12629_v5, %v12636_v61 }
 0xa14   :  { %12643 = vst.msk [vmem:[%s20325_s11] sm:$0x3f] %vm12641_vm1, %v12637_v47 }

</bundles_post_ra>
